<compile_context>
chip_gen: v7x
topology: tpu7x:2x2x1
jax: 0.10.0
libtpu: 0.0.40
codegen_flags: <defaults>
</compile_context>

<pallas_src>
import functools

import jax
import jax.numpy as jnp
from jax.experimental import pallas as pl
from jax.experimental.pallas import tpu as pltpu


# ----------------------------------------------------------------------------
# Pallas kernel 1: conv1 (5x5 s2, Cin=1) fused with MaxPool2d(2) + ReLU.
# One dot against a block-diagonal (100,128) weight; pool max via 2 rolls.
# ----------------------------------------------------------------------------
def _conv1_kernel(c_ref, w_ref, b_ref, o_ref):
    d = jnp.dot(c_ref[...], w_ref[...], preferred_element_type=jnp.float32)  # (tm,128)
    m = jnp.maximum(d, pltpu.roll(d, shift=64, axis=1))
    m = jnp.maximum(m, pltpu.roll(m, shift=32, axis=1))
    y = m[:, :32] + b_ref[...]              # lanes 0..31 hold the 4-way pool max
    o_ref[...] = jnp.maximum(y, 0.0).astype(o_ref.dtype)


def conv1_pool(cols, w, b):
    """cols: (M,100) bf16 (4 pool offsets concat along K); w: (100,128) block-diag
    bf16; b: (1,32) f32.  Returns relu(maxpool2(conv1)) as (M,32) bf16."""
    M, K = cols.shape
    N = b.shape[1]
    # 2 grid steps: both v7x TensorCores busy, only ~2 serial steps on v5e/v6e.
    tm = min(M, pl.cdiv(pl.cdiv(M, 2), 8) * 8)
    grid = (pl.cdiv(M, tm),)
    flops = 2 * M * K * w.shape[1]
    bytes_accessed = M * K * 2 + K * w.shape[1] * 2 + N * 4 + M * N * 2
    return pl.pallas_call(
        _conv1_kernel,
        out_shape=jax.ShapeDtypeStruct((M, N), jnp.bfloat16),
        grid=grid,
        in_specs=[pl.BlockSpec((tm, K), lambda i: (i, 0)),
                  pl.BlockSpec((K, w.shape[1]), lambda i: (0, 0)),
                  pl.BlockSpec((1, N), lambda i: (0, 0))],
        out_specs=pl.BlockSpec((tm, N), lambda i: (i, 0)),
        compiler_params=pltpu.CompilerParams(dimension_semantics=("parallel",)),
        cost_estimate=pl.CostEstimate(flops=int(flops), transcendentals=0,
                                      bytes_accessed=int(bytes_accessed)),
    )(cols, w, b)


# ----------------------------------------------------------------------------
# Pallas kernel 2: fused tail -- conv2(+pool+relu), conv3, conv4, AdaptiveAvgPool
# (identity at 1x1), feature Linear+ReLU, both MLP heads, log-softmax,
# Categorical log_prob + entropy.  Single invocation, everything in VMEM.
# ----------------------------------------------------------------------------
def _tail_kernel(cols_ref, coord_ref, act_ref,
                 w2_ref, b2_ref, w3_ref, b3_ref, w4_ref, b4_ref,
                 wfd_ref, wfc_ref, bf_ref,
                 wa1_ref, ba1_ref, wa2_ref, ba2_ref, wa3_ref, ba3_ref,
                 wv1_ref, bv1_ref, wv2_ref, bv2_ref, wv3_ref, bv3_ref,
                 out_ref, *, batch):
    f32 = jnp.float32
    bf16 = jnp.bfloat16

    # conv2 (3x3 s2) + MaxPool2d(2) + ReLU: one dot against the block-diagonal
    # (1152,256) weight, then roll-max over the 4 pool-offset lane groups.
    d2 = jnp.dot(cols_ref[...], w2_ref[...], preferred_element_type=f32)   # (81B,256)
    m2 = jnp.maximum(d2, pltpu.roll(d2, shift=128, axis=1))
    m2 = jnp.maximum(m2, pltpu.roll(m2, shift=64, axis=1))
    y2 = jnp.maximum(m2[:, :64] + b2_ref[...], 0.0).astype(bf16)           # (81B,64)

    # conv3 (3x3 s2 on the 7x7 map -> 3x3) + ReLU.  Rows of y2 are ordered
    # (k3, p3, b), so each conv3 kernel tap is a contiguous row block.
    nb = 9 * batch
    acc3 = jnp.zeros((nb, 128), f32)
    for k3 in range(9):
        acc3 = acc3 + jnp.dot(y2[k3 * nb:(k3 + 1) * nb, :],
                              w3_ref[k3 * 64:(k3 + 1) * 64, :],
                              preferred_element_type=f32)
    x3 = jnp.maximum(acc3 + b3_ref[...], 0.0).astype(bf16)                 # (9B,128), rows (p3,b)

    # conv4: its 3x3 kernel covers the whole 3x3 map -> 9 accumulated dots over
    # contiguous B-row blocks; AdaptiveAvgPool2d((1,1)) is the identity at 1x1.
    acc4 = jnp.zeros((batch, 256), f32)
    for p in range(9):
        acc4 = acc4 + jnp.dot(x3[p * batch:(p + 1) * batch, :],
                              w4_ref[p * 128:(p + 1) * 128, :],
                              preferred_element_type=f32)
    x4 = jnp.maximum(acc4 + b4_ref[...], 0.0).astype(bf16)                 # (B,256)

    # feature_layer.linear on concat([depth_features, coord]) via split weights
    feat = (jnp.dot(x4, wfd_ref[...], preferred_element_type=f32)
            + jnp.dot(coord_ref[...], wfc_ref[...], preferred_element_type=f32)
            + bf_ref[...])
    feat = jnp.maximum(feat, 0.0).astype(bf16)                             # (B,256)

    # action_layer: Linear-Tanh, Linear-Tanh, Linear -> stable log-softmax
    a = jnp.tanh(jnp.dot(feat, wa1_ref[...], preferred_element_type=f32) + ba1_ref[...])
    a = jnp.tanh(jnp.dot(a.astype(bf16), wa2_ref[...], preferred_element_type=f32) + ba2_ref[...])
    logits = jnp.dot(a.astype(bf16), wa3_ref[...], preferred_element_type=f32) + ba3_ref[...]

    m = jnp.max(logits, axis=-1, keepdims=True)
    z = logits - m
    ez = jnp.exp(z)
    se = jnp.sum(ez, axis=-1, keepdims=True)
    lse = jnp.log(se)
    logp_all = z - lse                                                     # log-softmax
    onehot = (jax.lax.broadcasted_iota(jnp.int32, logits.shape, 1)
              == act_ref[...]).astype(f32)
    logp = jnp.sum(onehot * logp_all, axis=-1, keepdims=True)              # (B,1)
    # exact entropy: H = log(sum e^z) - sum(z e^z) / sum(e^z)
    ent = lse - jnp.sum(z * ez, axis=-1, keepdims=True) / se               # (B,1)

    # value_layer: Linear-Tanh, Linear-Tanh, Linear(64,1)
    v = jnp.tanh(jnp.dot(feat, wv1_ref[...], preferred_element_type=f32) + bv1_ref[...])
    v = jnp.tanh(jnp.dot(v.astype(bf16), wv2_ref[...], preferred_element_type=f32) + bv2_ref[...])
    val = jnp.dot(v.astype(bf16), wv3_ref[...], preferred_element_type=f32) + bv3_ref[...]

    # single lane-dense packed output: col0=logprob, col1=value, col2=entropy
    col = jax.lax.broadcasted_iota(jnp.int32, out_ref.shape, 1)
    out_ref[...] = jnp.where(col == 0, logp,
                             jnp.where(col == 1, val,
                                       jnp.where(col == 2, ent, 0.0)))


def tail_fused(cols2g, coord, action, p):
    B = coord.shape[0]
    assert cols2g.shape == (81 * B, 1152)
    act2 = action.astype(jnp.int32).reshape(B, 1)
    args = (cols2g, coord.astype(jnp.bfloat16), act2,
            p["cw2"], p["cb2"], p["cw3"], p["cb3"], p["cw4"], p["cb4"],
            p["wfd"], p["wfc"], p["bf"],
            p["wa1"], p["ba1"], p["wa2"], p["ba2"], p["wa3"], p["ba3"],
            p["wv1"], p["bv1"], p["wv2"], p["bv2"], p["wv3"], p["bv3"])
    flops = 2 * B * (81 * 1152 * 256 + 81 * 64 * 128 + 9 * 128 * 256
                     + 256 * 256 + 5 * 256
                     + 2 * (256 * 64 + 64 * 64) + 64 * 3 + 64 * 1)
    bytes_accessed = sum(int(a.size) * a.dtype.itemsize for a in args) + B * 128 * 4
    # TODO(synk): for large PPO minibatches add a batch-tiled grid here instead
    # of whole-array VMEM inputs (cols2g grows ~187 KB/sample).
    out = pl.pallas_call(
        functools.partial(_tail_kernel, batch=B),
        out_shape=jax.ShapeDtypeStruct((B, 128), jnp.float32),
        in_specs=[pl.BlockSpec(memory_space=pltpu.MemorySpace.VMEM)] * len(args),
        out_specs=pl.BlockSpec(memory_space=pltpu.MemorySpace.VMEM),
        cost_estimate=pl.CostEstimate(flops=int(flops), transcendentals=int(300 * B),
                                      bytes_accessed=int(bytes_accessed)),
    )(*args)
    return out


# ----------------------------------------------------------------------------
# XLA glue: static-slice im2col builds that feed the two kernels.
# ----------------------------------------------------------------------------
def im2col_conv1(x):
    """im2col for conv1 (5x5, stride 2) followed by MaxPool2d(2).

    Returns (B*31*31, 100) with rows ordered (b, ph, pw) and columns ordered
    (pool_dy, pool_dx, kh, kw) -- matching the block-diagonal conv1 weight."""
    B, H, W, C = x.shape                     # C == 1
    OH = (H - 5) // 2 + 1
    OW = (W - 5) // 2 + 1
    PH, PW = OH // 2, OW // 2
    s = 4                                    # input step between pooled outputs
    cols = []
    for dy in range(2):
        for dx in range(2):
            patches = []
            for kh in range(5):
                for kw in range(5):
                    r0 = 2 * dy + kh
                    c0 = 2 * dx + kw
                    patches.append(x[:, r0:r0 + s * (PH - 1) + 1:s,
                                     c0:c0 + s * (PW - 1) + 1:s, :])
            pmat = jnp.stack(patches, axis=3)                # (B,PH,PW,25,1)
            cols.append(pmat.reshape(B * PH * PW, 25 * C))
    return jnp.concatenate(cols, axis=1), (PH, PW)


def build_conv3_cols(y1):
    """Fused conv2->conv3 patch matrix from the conv1-pooled map y1 (B,31,31,32).

    Returns (81*B, 1152) bf16 with rows ordered (conv3 tap k3, conv3 output
    position p3, batch) and columns ordered (pool_dy, pool_dx, kh2, kw2, c1),
    matching the block-diagonal conv2 weight and the contiguous row-block
    slicing inside the tail kernel.  Rows are duplicated (81 vs 49 conv2
    outputs) so NO gather/reshape is needed in-kernel; the extra conv2 FLOPs
    are negligible."""
    B = y1.shape[0]
    kblocks = []
    for kh3 in range(3):
        for kw3 in range(3):
            groups = []
            for dy in range(2):
                for dx in range(2):
                    for kh2 in range(3):
                        for kw2 in range(3):
                            h0 = 4 * kh3 + 2 * dy + kh2
                            w0 = 4 * kw3 + 2 * dx + kw2
                            # conv3 output positions (oh3, ow3) step by 8 px
                            groups.append(y1[:, h0:h0 + 17:8, w0:w0 + 17:8, :])
            g = jnp.stack(groups, axis=3)                    # (B,3,3,36,32)
            g = jnp.transpose(g, (1, 2, 0, 3, 4))            # (oh3,ow3,B,36,32)
            kblocks.append(g.reshape(9 * B, 36 * 32))
    return jnp.concatenate(kblocks, axis=0)                  # (81B, 1152)


# ----------------------------------------------------------------------------
# Parameters (deterministic synthetic init, PyTorch shapes, pre-reshaped once)
# ----------------------------------------------------------------------------
def _block_diag4(w):
    r, c = w.shape
    out = jnp.zeros((4 * r, 4 * c), w.dtype)
    for j in range(4):
        out = out.at[j * r:(j + 1) * r, j * c:(j + 1) * c].set(w)
    return out


def init_params(key):
    def lin(k, fan_in, fan_out):
        k1, k2 = jax.random.split(k)
        bound = 1.0 / jnp.sqrt(jnp.float32(fan_in))
        w = jax.random.uniform(k1, (fan_out, fan_in), jnp.float32, -bound, bound)
        b = jax.random.uniform(k2, (fan_out,), jnp.float32, -bound, bound)
        return w, b

    def conv(k, cout, cin, ksz):
        k1, k2 = jax.random.split(k)
        bound = 1.0 / jnp.sqrt(jnp.float32(cin * ksz * ksz))
        w = jax.random.uniform(k1, (cout, cin, ksz, ksz), jnp.float32, -bound, bound)
        b = jax.random.uniform(k2, (cout,), jnp.float32, -bound, bound)
        return w, b

    def conv_mat(w):   # PyTorch (Cout,Cin,kh,kw) -> (kh*kw*Cin, Cout)
        cout, cin, kh, kw = w.shape
        return jnp.transpose(w, (2, 3, 1, 0)).reshape(kh * kw * cin, cout)

    ks = jax.random.split(key, 11)
    p = {}
    # conv1 / conv2: block-diagonal over the 4 MaxPool2d(2) offsets, bf16.
    w, b = conv(ks[0], 32, 1, 5)
    p["cw1"] = _block_diag4(conv_mat(w)).astype(jnp.bfloat16)    # (100, 128)
    p["cb1"] = b.reshape(1, 32)
    w, b = conv(ks[1], 64, 32, 3)
    p["cw2"] = _block_diag4(conv_mat(w)).astype(jnp.bfloat16)    # (1152, 256)
    p["cb2"] = b.reshape(1, 64)
    w, b = conv(ks[2], 128, 64, 3)
    p["cw3"] = conv_mat(w).astype(jnp.bfloat16)                  # (576, 128)
    p["cb3"] = b.reshape(1, 128)
    w, b = conv(ks[3], 256, 128, 3)
    p["cw4"] = conv_mat(w).astype(jnp.bfloat16)                  # (1152, 256)
    p["cb4"] = b.reshape(1, 256)

    # feature linear Linear(256+5, 256): split into depth(256) and coord(5) parts
    wf, bfb = lin(ks[4], 256 + 5, 256)
    wfT = wf.T
    p["wfd"] = wfT[:256, :].astype(jnp.bfloat16)
    p["wfc"] = wfT[256:, :].astype(jnp.bfloat16)
    p["bf"] = bfb.reshape(1, -1)

    for i, (name, fi, fo) in enumerate([("a1", 256, 64), ("a2", 64, 64), ("a3", 64, 3),
                                        ("v1", 256, 64), ("v2", 64, 64), ("v3", 64, 1)]):
        w, b = lin(ks[5 + i], fi, fo)
        p["w" + name] = w.T.astype(jnp.bfloat16)                 # (in, out) bf16
        p["b" + name] = b.reshape(1, -1)                         # f32
    return p


# ----------------------------------------------------------------------------
# Full forward (== ActorCritic.evaluate)
# ----------------------------------------------------------------------------
def actor_critic_evaluate(params, coord_state, depth_map_state_nchw, action):
    B, Cin, H, W = depth_map_state_nchw.shape
    # The fused patch geometry assumes the 128x128 depth map of this planner
    # (conv chain 62->31->15->7->3->1, so AdaptiveAvgPool((1,1)) is identity).
    assert Cin == 1 and H == 128 and W == 128
    # Cin == 1: NCHW -> NHWC is a pure (metadata-only) reshape; conv path bf16.
    x = depth_map_state_nchw.reshape(B, H, W, 1).astype(jnp.bfloat16)

    cols1, (PH1, PW1) = im2col_conv1(x)                              # (B*961, 100)
    y1 = conv1_pool(cols1, params["cw1"], params["cb1"])             # (B*961, 32)
    y1 = y1.reshape(B, PH1, PW1, 32)

    cols2g = build_conv3_cols(y1)                                    # (81B, 1152)
    out = tail_fused(cols2g, coord_state, action, params)           # (B, 128)

    logprobs = out[:, 0]
    state_value = jnp.squeeze(out[:, 1])      # matches torch.squeeze (0-d at B==1)
    entropy = out[:, 2]
    return logprobs, state_value, entropy


if __name__ == "__main__":
    key = jax.random.PRNGKey(0)
    pkey, k1, k2, k3 = jax.random.split(key, 4)
    params = init_params(pkey)

    B = 2
    coord_state = jax.random.normal(k1, (B, 5), jnp.float32)                 # agent(3)+goal(2)
    depth_map_state = jax.random.normal(k2, (B, 1, 128, 128), jnp.float32)   # NCHW
    action = jax.random.randint(k3, (B,), 0, 3)

    fwd = jax.jit(actor_critic_evaluate)
    logprobs, state_value, entropy = fwd(params, coord_state, depth_map_state, action)
    jax.block_until_ready((logprobs, state_value, entropy))

    assert logprobs.shape == (B,) and state_value.shape == (B,) and entropy.shape == (B,)
    print("KERNEL_OK")
</pallas_src>

<mosaic_0001>
module attributes {stable_mosaic.version = 11 : i64} {
  func.func @_conv1_kernel(%arg0: i32, %arg1: memref<968x100xbf16, #tpu.memory_space<vmem>>, %arg2: memref<100x128xbf16, #tpu.memory_space<vmem>>, %arg3: memref<1x32xf32, #tpu.memory_space<vmem>>, %arg4: memref<968x32xbf16, #tpu.memory_space<vmem>>) attributes {dimension_semantics = [#tpu.dimension_semantics<parallel>], iteration_bounds = array<i64: 2>, scalar_prefetch = 0 : i64, scratch_operands = 0 : i64, tpu.core_type = #tpu.core_type<tc>, window_params = [{transform_indices = @transform_0, window_bounds = array<i64: 968, 100>}, {pipeline_mode = #tpu.pipeline_mode<synchronous>, transform_indices = @transform_1, window_bounds = array<i64: 100, 128>}, {pipeline_mode = #tpu.pipeline_mode<synchronous>, transform_indices = @transform_2, window_bounds = array<i64: 1, 32>}, {transform_indices = @transform_3, window_bounds = array<i64: 968, 32>}]} {
    %c0 = arith.constant 0 : index
    %c0_0 = arith.constant 0 : index
    %0 = vector.load %arg1[%c0, %c0_0] : memref<968x100xbf16, #tpu.memory_space<vmem>>, vector<968x100xbf16>
    %c0_1 = arith.constant 0 : index
    %c0_2 = arith.constant 0 : index
    %1 = vector.load %arg2[%c0_1, %c0_2] : memref<100x128xbf16, #tpu.memory_space<vmem>>, vector<100x128xbf16>
    %cst = arith.constant dense<0.000000e+00> : vector<968x128xf32>
    %2 = tpu.matmul %0, %1, %cst {dimension_numbers = #tpu.dot_dimension_numbers<[1], [0], [0], [1], [0, 0, 1, 1], [], []>} : vector<968x100xbf16>, vector<100x128xbf16>, vector<968x128xf32> -> vector<968x128xf32>
    %c64_i32 = arith.constant 64 : i32
    %3 = tpu.dynamic_rotate %2 by %c64_i32 dim 1 : vector<968x128xf32>, i32 -> vector<968x128xf32>
    %4 = arith.maximumf %2, %3 : vector<968x128xf32>
    %c32_i32 = arith.constant 32 : i32
    %5 = tpu.dynamic_rotate %4 by %c32_i32 dim 1 : vector<968x128xf32>, i32 -> vector<968x128xf32>
    %6 = arith.maximumf %4, %5 : vector<968x128xf32>
    %7 = vector.extract_strided_slice %6 {offsets = [0, 0], sizes = [968, 32], strides = [1, 1]} : vector<968x128xf32> to vector<968x32xf32>
    %c0_3 = arith.constant 0 : index
    %c0_4 = arith.constant 0 : index
    %8 = vector.load %arg3[%c0_3, %c0_4] : memref<1x32xf32, #tpu.memory_space<vmem>>, vector<1x32xf32>
    %9 = vector.broadcast %8 : vector<1x32xf32> to vector<968x32xf32>
    %10 = arith.addf %7, %9 : vector<968x32xf32>
    %cst_5 = arith.constant 0.000000e+00 : f32
    %11 = vector.broadcast %cst_5 : f32 to vector<968x32xf32>
    %12 = arith.maximumf %10, %11 : vector<968x32xf32>
    %13 = arith.truncf %12 : vector<968x32xf32> to vector<968x32xbf16>
    %c0_6 = arith.constant 0 : index
    %c0_7 = arith.constant 0 : index
    %14 = vector.load %arg4[%c0_6, %c0_7] : memref<968x32xbf16, #tpu.memory_space<vmem>>, vector<968x32xbf16>
    tpu.vector_store %arg4[%c0_6, %c0_7], %13 {strides = array<i32>} : memref<968x32xbf16, #tpu.memory_space<vmem>>, vector<968x32xbf16>,
    return
  }
  func.func @transform_0(%arg0: i32) -> (i32, i32) {
    %c0_i32 = arith.constant 0 : i32
    %c0_i32_0 = arith.constant 0 : i32
    return %arg0, %c0_i32 : i32, i32
  }
  func.func @transform_1(%arg0: i32) -> (i32, i32) {
    %c0_i32 = arith.constant 0 : i32
    %c0_i32_0 = arith.constant 0 : i32
    %c0_i32_1 = arith.constant 0 : i32
    return %c0_i32, %c0_i32_0 : i32, i32
  }
  func.func @transform_2(%arg0: i32) -> (i32, i32) {
    %c0_i32 = arith.constant 0 : i32
    %c0_i32_0 = arith.constant 0 : i32
    %c0_i32_1 = arith.constant 0 : i32
    return %c0_i32, %c0_i32_0 : i32, i32
  }
  func.func @transform_3(%arg0: i32) -> (i32, i32) {
    %c0_i32 = arith.constant 0 : i32
    %c0_i32_0 = arith.constant 0 : i32
    return %arg0, %c0_i32 : i32, i32
  }
}

module attributes {stable_mosaic.version = 11 : i64} {
  func.func @_tail_kernel(%arg0: memref<162x1152xbf16, #tpu.memory_space<vmem>>, %arg1: memref<2x5xbf16, #tpu.memory_space<vmem>>, %arg2: memref<2x1xi32, #tpu.memory_space<vmem>>, %arg3: memref<1152x256xbf16, #tpu.memory_space<vmem>>, %arg4: memref<1x64xf32, #tpu.memory_space<vmem>>, %arg5: memref<576x128xbf16, #tpu.memory_space<vmem>>, %arg6: memref<1x128xf32, #tpu.memory_space<vmem>>, %arg7: memref<1152x256xbf16, #tpu.memory_space<vmem>>, %arg8: memref<1x256xf32, #tpu.memory_space<vmem>>, %arg9: memref<256x256xbf16, #tpu.memory_space<vmem>>, %arg10: memref<5x256xbf16, #tpu.memory_space<vmem>>, %arg11: memref<1x256xf32, #tpu.memory_space<vmem>>, %arg12: memref<256x64xbf16, #tpu.memory_space<vmem>>, %arg13: memref<1x64xf32, #tpu.memory_space<vmem>>, %arg14: memref<64x64xbf16, #tpu.memory_space<vmem>>, %arg15: memref<1x64xf32, #tpu.memory_space<vmem>>, %arg16: memref<64x3xbf16, #tpu.memory_space<vmem>>, %arg17: memref<1x3xf32, #tpu.memory_space<vmem>>, %arg18: memref<256x64xbf16, #tpu.memory_space<vmem>>, %arg19: memref<1x64xf32, #tpu.memory_space<vmem>>, %arg20: memref<64x64xbf16, #tpu.memory_space<vmem>>, %arg21: memref<1x64xf32, #tpu.memory_space<vmem>>, %arg22: memref<64x1xbf16, #tpu.memory_space<vmem>>, %arg23: memref<1x1xf32, #tpu.memory_space<vmem>>, %arg24: memref<2x128xf32, #tpu.memory_space<vmem>>) attributes {dimension_semantics = [], scalar_prefetch = 0 : i64, scratch_operands = 0 : i64, tpu.core_type = #tpu.core_type<tc>} {
    %c0 = arith.constant 0 : index
    %c0_0 = arith.constant 0 : index
    %0 = vector.load %arg0[%c0, %c0_0] : memref<162x1152xbf16, #tpu.memory_space<vmem>>, vector<162x1152xbf16>
    %c0_1 = arith.constant 0 : index
    %c0_2 = arith.constant 0 : index
    %1 = vector.load %arg3[%c0_1, %c0_2] : memref<1152x256xbf16, #tpu.memory_space<vmem>>, vector<1152x256xbf16>
    %cst = arith.constant dense<0.000000e+00> : vector<162x256xf32>
    %2 = tpu.matmul %0, %1, %cst {dimension_numbers = #tpu.dot_dimension_numbers<[1], [0], [0], [1], [0, 0, 1, 1], [], []>} : vector<162x1152xbf16>, vector<1152x256xbf16>, vector<162x256xf32> -> vector<162x256xf32>
    %c128_i32 = arith.constant 128 : i32
    %3 = tpu.dynamic_rotate %2 by %c128_i32 dim 1 : vector<162x256xf32>, i32 -> vector<162x256xf32>
    %4 = arith.maximumf %2, %3 : vector<162x256xf32>
    %c64_i32 = arith.constant 64 : i32
    %5 = tpu.dynamic_rotate %4 by %c64_i32 dim 1 : vector<162x256xf32>, i32 -> vector<162x256xf32>
    %6 = arith.maximumf %4, %5 : vector<162x256xf32>
    %7 = vector.extract_strided_slice %6 {offsets = [0, 0], sizes = [162, 64], strides = [1, 1]} : vector<162x256xf32> to vector<162x64xf32>
    %c0_3 = arith.constant 0 : index
    %c0_4 = arith.constant 0 : index
    %8 = vector.load %arg4[%c0_3, %c0_4] : memref<1x64xf32, #tpu.memory_space<vmem>>, vector<1x64xf32>
    %9 = vector.broadcast %8 : vector<1x64xf32> to vector<162x64xf32>
    %10 = arith.addf %7, %9 : vector<162x64xf32>
    %cst_5 = arith.constant 0.000000e+00 : f32
    %11 = vector.broadcast %cst_5 : f32 to vector<162x64xf32>
    %12 = arith.maximumf %10, %11 : vector<162x64xf32>
    %13 = arith.truncf %12 : vector<162x64xf32> to vector<162x64xbf16>
    %cst_6 = arith.constant 0.000000e+00 : f32
    %14 = vector.broadcast %cst_6 : f32 to vector<18x128xf32>
    %15 = vector.extract_strided_slice %13 {offsets = [0, 0], sizes = [18, 64], strides = [1, 1]} : vector<162x64xbf16> to vector<18x64xbf16>
    %c0_7 = arith.constant 0 : index
    %c0_8 = arith.constant 0 : index
    %16 = vector.load %arg5[%c0_7, %c0_8] : memref<576x128xbf16, #tpu.memory_space<vmem>>, vector<64x128xbf16>
    %cst_9 = arith.constant dense<0.000000e+00> : vector<18x128xf32>
    %17 = tpu.matmul %15, %16, %cst_9 {dimension_numbers = #tpu.dot_dimension_numbers<[1], [0], [0], [1], [0, 0, 1, 1], [], []>} : vector<18x64xbf16>, vector<64x128xbf16>, vector<18x128xf32> -> vector<18x128xf32>
    %18 = arith.addf %14, %17 : vector<18x128xf32>
    %19 = vector.extract_strided_slice %13 {offsets = [18, 0], sizes = [18, 64], strides = [1, 1]} : vector<162x64xbf16> to vector<18x64xbf16>
    %c64 = arith.constant 64 : index
    %c0_10 = arith.constant 0 : index
    %20 = vector.load %arg5[%c64, %c0_10] : memref<576x128xbf16, #tpu.memory_space<vmem>>, vector<64x128xbf16>
    %cst_11 = arith.constant dense<0.000000e+00> : vector<18x128xf32>
    %21 = tpu.matmul %19, %20, %cst_11 {dimension_numbers = #tpu.dot_dimension_numbers<[1], [0], [0], [1], [0, 0, 1, 1], [], []>} : vector<18x64xbf16>, vector<64x128xbf16>, vector<18x128xf32> -> vector<18x128xf32>
    %22 = arith.addf %18, %21 : vector<18x128xf32>
    %23 = vector.extract_strided_slice %13 {offsets = [36, 0], sizes = [18, 64], strides = [1, 1]} : vector<162x64xbf16> to vector<18x64xbf16>
    %c128 = arith.constant 128 : index
    %c0_12 = arith.constant 0 : index
    %24 = vector.load %arg5[%c128, %c0_12] : memref<576x128xbf16, #tpu.memory_space<vmem>>, vector<64x128xbf16>
    %cst_13 = arith.constant dense<0.000000e+00> : vector<18x128xf32>
    %25 = tpu.matmul %23, %24, %cst_13 {dimension_numbers = #tpu.dot_dimension_numbers<[1], [0], [0], [1], [0, 0, 1, 1], [], []>} : vector<18x64xbf16>, vector<64x128xbf16>, vector<18x128xf32> -> vector<18x128xf32>
    %26 = arith.addf %22, %25 : vector<18x128xf32>
    %27 = vector.extract_strided_slice %13 {offsets = [54, 0], sizes = [18, 64], strides = [1, 1]} : vector<162x64xbf16> to vector<18x64xbf16>
    %c192 = arith.constant 192 : index
    %c0_14 = arith.constant 0 : index
    %28 = vector.load %arg5[%c192, %c0_14] : memref<576x128xbf16, #tpu.memory_space<vmem>>, vector<64x128xbf16>
    %cst_15 = arith.constant dense<0.000000e+00> : vector<18x128xf32>
    %29 = tpu.matmul %27, %28, %cst_15 {dimension_numbers = #tpu.dot_dimension_numbers<[1], [0], [0], [1], [0, 0, 1, 1], [], []>} : vector<18x64xbf16>, vector<64x128xbf16>, vector<18x128xf32> -> vector<18x128xf32>
    %30 = arith.addf %26, %29 : vector<18x128xf32>
    %31 = vector.extract_strided_slice %13 {offsets = [72, 0], sizes = [18, 64], strides = [1, 1]} : vector<162x64xbf16> to vector<18x64xbf16>
    %c256 = arith.constant 256 : index
    %c0_16 = arith.constant 0 : index
    %32 = vector.load %arg5[%c256, %c0_16] : memref<576x128xbf16, #tpu.memory_space<vmem>>, vector<64x128xbf16>
    %cst_17 = arith.constant dense<0.000000e+00> : vector<18x128xf32>
    %33 = tpu.matmul %31, %32, %cst_17 {dimension_numbers = #tpu.dot_dimension_numbers<[1], [0], [0], [1], [0, 0, 1, 1], [], []>} : vector<18x64xbf16>, vector<64x128xbf16>, vector<18x128xf32> -> vector<18x128xf32>
    %34 = arith.addf %30, %33 : vector<18x128xf32>
    %35 = vector.extract_strided_slice %13 {offsets = [90, 0], sizes = [18, 64], strides = [1, 1]} : vector<162x64xbf16> to vector<18x64xbf16>
    %c320 = arith.constant 320 : index
    %c0_18 = arith.constant 0 : index
    %36 = vector.load %arg5[%c320, %c0_18] : memref<576x128xbf16, #tpu.memory_space<vmem>>, vector<64x128xbf16>
    %cst_19 = arith.constant dense<0.000000e+00> : vector<18x128xf32>
    %37 = tpu.matmul %35, %36, %cst_19 {dimension_numbers = #tpu.dot_dimension_numbers<[1], [0], [0], [1], [0, 0, 1, 1], [], []>} : vector<18x64xbf16>, vector<64x128xbf16>, vector<18x128xf32> -> vector<18x128xf32>
    %38 = arith.addf %34, %37 : vector<18x128xf32>
    %39 = vector.extract_strided_slice %13 {offsets = [108, 0], sizes = [18, 64], strides = [1, 1]} : vector<162x64xbf16> to vector<18x64xbf16>
    %c384 = arith.constant 384 : index
    %c0_20 = arith.constant 0 : index
    %40 = vector.load %arg5[%c384, %c0_20] : memref<576x128xbf16, #tpu.memory_space<vmem>>, vector<64x128xbf16>
    %cst_21 = arith.constant dense<0.000000e+00> : vector<18x128xf32>
    %41 = tpu.matmul %39, %40, %cst_21 {dimension_numbers = #tpu.dot_dimension_numbers<[1], [0], [0], [1], [0, 0, 1, 1], [], []>} : vector<18x64xbf16>, vector<64x128xbf16>, vector<18x128xf32> -> vector<18x128xf32>
    %42 = arith.addf %38, %41 : vector<18x128xf32>
    %43 = vector.extract_strided_slice %13 {offsets = [126, 0], sizes = [18, 64], strides = [1, 1]} : vector<162x64xbf16> to vector<18x64xbf16>
    %c448 = arith.constant 448 : index
    %c0_22 = arith.constant 0 : index
    %44 = vector.load %arg5[%c448, %c0_22] : memref<576x128xbf16, #tpu.memory_space<vmem>>, vector<64x128xbf16>
    %cst_23 = arith.constant dense<0.000000e+00> : vector<18x128xf32>
    %45 = tpu.matmul %43, %44, %cst_23 {dimension_numbers = #tpu.dot_dimension_numbers<[1], [0], [0], [1], [0, 0, 1, 1], [], []>} : vector<18x64xbf16>, vector<64x128xbf16>, vector<18x128xf32> -> vector<18x128xf32>
    %46 = arith.addf %42, %45 : vector<18x128xf32>
    %47 = vector.extract_strided_slice %13 {offsets = [144, 0], sizes = [18, 64], strides = [1, 1]} : vector<162x64xbf16> to vector<18x64xbf16>
    %c512 = arith.constant 512 : index
    %c0_24 = arith.constant 0 : index
    %48 = vector.load %arg5[%c512, %c0_24] : memref<576x128xbf16, #tpu.memory_space<vmem>>, vector<64x128xbf16>
    %cst_25 = arith.constant dense<0.000000e+00> : vector<18x128xf32>
    %49 = tpu.matmul %47, %48, %cst_25 {dimension_numbers = #tpu.dot_dimension_numbers<[1], [0], [0], [1], [0, 0, 1, 1], [], []>} : vector<18x64xbf16>, vector<64x128xbf16>, vector<18x128xf32> -> vector<18x128xf32>
    %50 = arith.addf %46, %49 : vector<18x128xf32>
    %c0_26 = arith.constant 0 : index
    %c0_27 = arith.constant 0 : index
    %51 = vector.load %arg6[%c0_26, %c0_27] : memref<1x128xf32, #tpu.memory_space<vmem>>, vector<1x128xf32>
    %52 = vector.broadcast %51 : vector<1x128xf32> to vector<18x128xf32>
    %53 = arith.addf %50, %52 : vector<18x128xf32>
    %cst_28 = arith.constant 0.000000e+00 : f32
    %54 = vector.broadcast %cst_28 : f32 to vector<18x128xf32>
    %55 = arith.maximumf %53, %54 : vector<18x128xf32>
    %56 = arith.truncf %55 : vector<18x128xf32> to vector<18x128xbf16>
    %cst_29 = arith.constant 0.000000e+00 : f32
    %57 = vector.broadcast %cst_29 : f32 to vector<2x256xf32>
    %58 = vector.extract_strided_slice %56 {offsets = [0, 0], sizes = [2, 128], strides = [1, 1]} : vector<18x128xbf16> to vector<2x128xbf16>
    %c0_30 = arith.constant 0 : index
    %c0_31 = arith.constant 0 : index
    %59 = vector.load %arg7[%c0_30, %c0_31] : memref<1152x256xbf16, #tpu.memory_space<vmem>>, vector<128x256xbf16>
    %cst_32 = arith.constant dense<0.000000e+00> : vector<2x256xf32>
    %60 = tpu.matmul %58, %59, %cst_32 {dimension_numbers = #tpu.dot_dimension_numbers<[1], [0], [0], [1], [0, 0, 1, 1], [], []>} : vector<2x128xbf16>, vector<128x256xbf16>, vector<2x256xf32> -> vector<2x256xf32>
    %61 = arith.addf %57, %60 : vector<2x256xf32>
    %62 = vector.extract_strided_slice %56 {offsets = [2, 0], sizes = [2, 128], strides = [1, 1]} : vector<18x128xbf16> to vector<2x128xbf16>
    %c128_33 = arith.constant 128 : index
    %c0_34 = arith.constant 0 : index
    %63 = vector.load %arg7[%c128_33, %c0_34] : memref<1152x256xbf16, #tpu.memory_space<vmem>>, vector<128x256xbf16>
    %cst_35 = arith.constant dense<0.000000e+00> : vector<2x256xf32>
    %64 = tpu.matmul %62, %63, %cst_35 {dimension_numbers = #tpu.dot_dimension_numbers<[1], [0], [0], [1], [0, 0, 1, 1], [], []>} : vector<2x128xbf16>, vector<128x256xbf16>, vector<2x256xf32> -> vector<2x256xf32>
    %65 = arith.addf %61, %64 : vector<2x256xf32>
    %66 = vector.extract_strided_slice %56 {offsets = [4, 0], sizes = [2, 128], strides = [1, 1]} : vector<18x128xbf16> to vector<2x128xbf16>
    %c256_36 = arith.constant 256 : index
    %c0_37 = arith.constant 0 : index
    %67 = vector.load %arg7[%c256_36, %c0_37] : memref<1152x256xbf16, #tpu.memory_space<vmem>>, vector<128x256xbf16>
    %cst_38 = arith.constant dense<0.000000e+00> : vector<2x256xf32>
    %68 = tpu.matmul %66, %67, %cst_38 {dimension_numbers = #tpu.dot_dimension_numbers<[1], [0], [0], [1], [0, 0, 1, 1], [], []>} : vector<2x128xbf16>, vector<128x256xbf16>, vector<2x256xf32> -> vector<2x256xf32>
    %69 = arith.addf %65, %68 : vector<2x256xf32>
    %70 = vector.extract_strided_slice %56 {offsets = [6, 0], sizes = [2, 128], strides = [1, 1]} : vector<18x128xbf16> to vector<2x128xbf16>
    %c384_39 = arith.constant 384 : index
    %c0_40 = arith.constant 0 : index
    %71 = vector.load %arg7[%c384_39, %c0_40] : memref<1152x256xbf16, #tpu.memory_space<vmem>>, vector<128x256xbf16>
    %cst_41 = arith.constant dense<0.000000e+00> : vector<2x256xf32>
    %72 = tpu.matmul %70, %71, %cst_41 {dimension_numbers = #tpu.dot_dimension_numbers<[1], [0], [0], [1], [0, 0, 1, 1], [], []>} : vector<2x128xbf16>, vector<128x256xbf16>, vector<2x256xf32> -> vector<2x256xf32>
    %73 = arith.addf %69, %72 : vector<2x256xf32>
    %74 = vector.extract_strided_slice %56 {offsets = [8, 0], sizes = [2, 128], strides = [1, 1]} : vector<18x128xbf16> to vector<2x128xbf16>
    %c512_42 = arith.constant 512 : index
    %c0_43 = arith.constant 0 : index
    %75 = vector.load %arg7[%c512_42, %c0_43] : memref<1152x256xbf16, #tpu.memory_space<vmem>>, vector<128x256xbf16>
    %cst_44 = arith.constant dense<0.000000e+00> : vector<2x256xf32>
    %76 = tpu.matmul %74, %75, %cst_44 {dimension_numbers = #tpu.dot_dimension_numbers<[1], [0], [0], [1], [0, 0, 1, 1], [], []>} : vector<2x128xbf16>, vector<128x256xbf16>, vector<2x256xf32> -> vector<2x256xf32>
    %77 = arith.addf %73, %76 : vector<2x256xf32>
    %78 = vector.extract_strided_slice %56 {offsets = [10, 0], sizes = [2, 128], strides = [1, 1]} : vector<18x128xbf16> to vector<2x128xbf16>
    %c640 = arith.constant 640 : index
    %c0_45 = arith.constant 0 : index
    %79 = vector.load %arg7[%c640, %c0_45] : memref<1152x256xbf16, #tpu.memory_space<vmem>>, vector<128x256xbf16>
    %cst_46 = arith.constant dense<0.000000e+00> : vector<2x256xf32>
    %80 = tpu.matmul %78, %79, %cst_46 {dimension_numbers = #tpu.dot_dimension_numbers<[1], [0], [0], [1], [0, 0, 1, 1], [], []>} : vector<2x128xbf16>, vector<128x256xbf16>, vector<2x256xf32> -> vector<2x256xf32>
    %81 = arith.addf %77, %80 : vector<2x256xf32>
    %82 = vector.extract_strided_slice %56 {offsets = [12, 0], sizes = [2, 128], strides = [1, 1]} : vector<18x128xbf16> to vector<2x128xbf16>
    %c768 = arith.constant 768 : index
    %c0_47 = arith.constant 0 : index
    %83 = vector.load %arg7[%c768, %c0_47] : memref<1152x256xbf16, #tpu.memory_space<vmem>>, vector<128x256xbf16>
    %cst_48 = arith.constant dense<0.000000e+00> : vector<2x256xf32>
    %84 = tpu.matmul %82, %83, %cst_48 {dimension_numbers = #tpu.dot_dimension_numbers<[1], [0], [0], [1], [0, 0, 1, 1], [], []>} : vector<2x128xbf16>, vector<128x256xbf16>, vector<2x256xf32> -> vector<2x256xf32>
    %85 = arith.addf %81, %84 : vector<2x256xf32>
    %86 = vector.extract_strided_slice %56 {offsets = [14, 0], sizes = [2, 128], strides = [1, 1]} : vector<18x128xbf16> to vector<2x128xbf16>
    %c896 = arith.constant 896 : index
    %c0_49 = arith.constant 0 : index
    %87 = vector.load %arg7[%c896, %c0_49] : memref<1152x256xbf16, #tpu.memory_space<vmem>>, vector<128x256xbf16>
    %cst_50 = arith.constant dense<0.000000e+00> : vector<2x256xf32>
    %88 = tpu.matmul %86, %87, %cst_50 {dimension_numbers = #tpu.dot_dimension_numbers<[1], [0], [0], [1], [0, 0, 1, 1], [], []>} : vector<2x128xbf16>, vector<128x256xbf16>, vector<2x256xf32> -> vector<2x256xf32>
    %89 = arith.addf %85, %88 : vector<2x256xf32>
    %90 = vector.extract_strided_slice %56 {offsets = [16, 0], sizes = [2, 128], strides = [1, 1]} : vector<18x128xbf16> to vector<2x128xbf16>
    %c1024 = arith.constant 1024 : index
    %c0_51 = arith.constant 0 : index
    %91 = vector.load %arg7[%c1024, %c0_51] : memref<1152x256xbf16, #tpu.memory_space<vmem>>, vector<128x256xbf16>
    %cst_52 = arith.constant dense<0.000000e+00> : vector<2x256xf32>
    %92 = tpu.matmul %90, %91, %cst_52 {dimension_numbers = #tpu.dot_dimension_numbers<[1], [0], [0], [1], [0, 0, 1, 1], [], []>} : vector<2x128xbf16>, vector<128x256xbf16>, vector<2x256xf32> -> vector<2x256xf32>
    %93 = arith.addf %89, %92 : vector<2x256xf32>
    %c0_53 = arith.constant 0 : index
    %c0_54 = arith.constant 0 : index
    %94 = vector.load %arg8[%c0_53, %c0_54] : memref<1x256xf32, #tpu.memory_space<vmem>>, vector<1x256xf32>
    %95 = vector.broadcast %94 : vector<1x256xf32> to vector<2x256xf32>
    %96 = arith.addf %93, %95 : vector<2x256xf32>
    %cst_55 = arith.constant 0.000000e+00 : f32
    %97 = vector.broadcast %cst_55 : f32 to vector<2x256xf32>
    %98 = arith.maximumf %96, %97 : vector<2x256xf32>
    %99 = arith.truncf %98 : vector<2x256xf32> to vector<2x256xbf16>
    %c0_56 = arith.constant 0 : index
    %c0_57 = arith.constant 0 : index
    %100 = vector.load %arg9[%c0_56, %c0_57] : memref<256x256xbf16, #tpu.memory_space<vmem>>, vector<256x256xbf16>
    %cst_58 = arith.constant dense<0.000000e+00> : vector<2x256xf32>
    %101 = tpu.matmul %99, %100, %cst_58 {dimension_numbers = #tpu.dot_dimension_numbers<[1], [0], [0], [1], [0, 0, 1, 1], [], []>} : vector<2x256xbf16>, vector<256x256xbf16>, vector<2x256xf32> -> vector<2x256xf32>
    %c0_59 = arith.constant 0 : index
    %c0_60 = arith.constant 0 : index
    %102 = vector.load %arg1[%c0_59, %c0_60] : memref<2x5xbf16, #tpu.memory_space<vmem>>, vector<2x5xbf16>
    %c0_61 = arith.constant 0 : index
    %c0_62 = arith.constant 0 : index
    %103 = vector.load %arg10[%c0_61, %c0_62] : memref<5x256xbf16, #tpu.memory_space<vmem>>, vector<5x256xbf16>
    %cst_63 = arith.constant dense<0.000000e+00> : vector<2x256xf32>
    %104 = tpu.matmul %102, %103, %cst_63 {dimension_numbers = #tpu.dot_dimension_numbers<[1], [0], [0], [1], [0, 0, 1, 1], [], []>} : vector<2x5xbf16>, vector<5x256xbf16>, vector<2x256xf32> -> vector<2x256xf32>
    %105 = arith.addf %101, %104 : vector<2x256xf32>
    %c0_64 = arith.constant 0 : index
    %c0_65 = arith.constant 0 : index
    %106 = vector.load %arg11[%c0_64, %c0_65] : memref<1x256xf32, #tpu.memory_space<vmem>>, vector<1x256xf32>
    %107 = vector.broadcast %106 : vector<1x256xf32> to vector<2x256xf32>
    %108 = arith.addf %105, %107 : vector<2x256xf32>
    %cst_66 = arith.constant 0.000000e+00 : f32
    %109 = vector.broadcast %cst_66 : f32 to vector<2x256xf32>
    %110 = arith.maximumf %108, %109 : vector<2x256xf32>
    %111 = arith.truncf %110 : vector<2x256xf32> to vector<2x256xbf16>
    %c0_67 = arith.constant 0 : index
    %c0_68 = arith.constant 0 : index
    %112 = vector.load %arg12[%c0_67, %c0_68] : memref<256x64xbf16, #tpu.memory_space<vmem>>, vector<256x64xbf16>
    %cst_69 = arith.constant dense<0.000000e+00> : vector<2x64xf32>
    %113 = tpu.matmul %111, %112, %cst_69 {dimension_numbers = #tpu.dot_dimension_numbers<[1], [0], [0], [1], [0, 0, 1, 1], [], []>} : vector<2x256xbf16>, vector<256x64xbf16>, vector<2x64xf32> -> vector<2x64xf32>
    %c0_70 = arith.constant 0 : index
    %c0_71 = arith.constant 0 : index
    %114 = vector.load %arg13[%c0_70, %c0_71] : memref<1x64xf32, #tpu.memory_space<vmem>>, vector<1x64xf32>
    %115 = vector.broadcast %114 : vector<1x64xf32> to vector<2x64xf32>
    %116 = arith.addf %113, %115 : vector<2x64xf32>
    %117 = math.tanh %116 : vector<2x64xf32>
    %118 = arith.truncf %117 : vector<2x64xf32> to vector<2x64xbf16>
    %c0_72 = arith.constant 0 : index
    %c0_73 = arith.constant 0 : index
    %119 = vector.load %arg14[%c0_72, %c0_73] : memref<64x64xbf16, #tpu.memory_space<vmem>>, vector<64x64xbf16>
    %cst_74 = arith.constant dense<0.000000e+00> : vector<2x64xf32>
    %120 = tpu.matmul %118, %119, %cst_74 {dimension_numbers = #tpu.dot_dimension_numbers<[1], [0], [0], [1], [0, 0, 1, 1], [], []>} : vector<2x64xbf16>, vector<64x64xbf16>, vector<2x64xf32> -> vector<2x64xf32>
    %c0_75 = arith.constant 0 : index
    %c0_76 = arith.constant 0 : index
    %121 = vector.load %arg15[%c0_75, %c0_76] : memref<1x64xf32, #tpu.memory_space<vmem>>, vector<1x64xf32>
    %122 = vector.broadcast %121 : vector<1x64xf32> to vector<2x64xf32>
    %123 = arith.addf %120, %122 : vector<2x64xf32>
    %124 = math.tanh %123 : vector<2x64xf32>
    %125 = arith.truncf %124 : vector<2x64xf32> to vector<2x64xbf16>
    %c0_77 = arith.constant 0 : index
    %c0_78 = arith.constant 0 : index
    %126 = vector.load %arg16[%c0_77, %c0_78] : memref<64x3xbf16, #tpu.memory_space<vmem>>, vector<64x3xbf16>
    %cst_79 = arith.constant dense<0.000000e+00> : vector<2x3xf32>
    %127 = tpu.matmul %125, %126, %cst_79 {dimension_numbers = #tpu.dot_dimension_numbers<[1], [0], [0], [1], [0, 0, 1, 1], [], []>} : vector<2x64xbf16>, vector<64x3xbf16>, vector<2x3xf32> -> vector<2x3xf32>
    %c0_80 = arith.constant 0 : index
    %c0_81 = arith.constant 0 : index
    %128 = vector.load %arg17[%c0_80, %c0_81] : memref<1x3xf32, #tpu.memory_space<vmem>>, vector<1x3xf32>
    %129 = vector.broadcast %128 : vector<1x3xf32> to vector<2x3xf32>
    %130 = arith.addf %127, %129 : vector<2x3xf32>
    %cst_82 = arith.constant dense<0xFF800000> : vector<2xf32>
    %131 = vector.multi_reduction <maximumf>, %130, %cst_82 [1] : vector<2x3xf32> to vector<2xf32>
    %132 = vector.shape_cast %131 : vector<2xf32> to vector<2x1xf32>
    %133 = vector.broadcast %132 : vector<2x1xf32> to vector<2x3xf32>
    %134 = arith.subf %130, %133 : vector<2x3xf32>
    %135 = math.exp %134 : vector<2x3xf32>
    %cst_83 = arith.constant dense<0.000000e+00> : vector<2xf32>
    %136 = vector.multi_reduction <add>, %135, %cst_83 [1] : vector<2x3xf32> to vector<2xf32>
    %137 = vector.shape_cast %136 : vector<2xf32> to vector<2x1xf32>
    %138 = math.log %137 : vector<2x1xf32>
    %139 = vector.broadcast %138 : vector<2x1xf32> to vector<2x3xf32>
    %140 = arith.subf %134, %139 : vector<2x3xf32>
    %141 = tpu.iota {dimensions = array<i32: 1>} : vector<2x3xi32>
    %c0_84 = arith.constant 0 : index
    %c0_85 = arith.constant 0 : index
    %142 = vector.load %arg2[%c0_84, %c0_85] : memref<2x1xi32, #tpu.memory_space<vmem>>, vector<2x1xi32>
    %143 = vector.broadcast %142 : vector<2x1xi32> to vector<2x3xi32>
    %144 = arith.cmpi eq, %141, %143 : vector<2x3xi32>
    %145 = arith.extui %144 : vector<2x3xi1> to vector<2x3xi32>
    %146 = arith.sitofp %145 : vector<2x3xi32> to vector<2x3xf32>
    %147 = arith.mulf %146, %140 : vector<2x3xf32>
    %cst_86 = arith.constant dense<0.000000e+00> : vector<2xf32>
    %148 = vector.multi_reduction <add>, %147, %cst_86 [1] : vector<2x3xf32> to vector<2xf32>
    %149 = vector.shape_cast %148 : vector<2xf32> to vector<2x1xf32>
    %150 = arith.mulf %134, %135 : vector<2x3xf32>
    %cst_87 = arith.constant dense<0.000000e+00> : vector<2xf32>
    %151 = vector.multi_reduction <add>, %150, %cst_87 [1] : vector<2x3xf32> to vector<2xf32>
    %152 = vector.shape_cast %151 : vector<2xf32> to vector<2x1xf32>
    %153 = arith.divf %152, %137 : vector<2x1xf32>
    %154 = arith.subf %138, %153 : vector<2x1xf32>
    %c0_88 = arith.constant 0 : index
    %c0_89 = arith.constant 0 : index
    %155 = vector.load %arg18[%c0_88, %c0_89] : memref<256x64xbf16, #tpu.memory_space<vmem>>, vector<256x64xbf16>
    %cst_90 = arith.constant dense<0.000000e+00> : vector<2x64xf32>
    %156 = tpu.matmul %111, %155, %cst_90 {dimension_numbers = #tpu.dot_dimension_numbers<[1], [0], [0], [1], [0, 0, 1, 1], [], []>} : vector<2x256xbf16>, vector<256x64xbf16>, vector<2x64xf32> -> vector<2x64xf32>
    %c0_91 = arith.constant 0 : index
    %c0_92 = arith.constant 0 : index
    %157 = vector.load %arg19[%c0_91, %c0_92] : memref<1x64xf32, #tpu.memory_space<vmem>>, vector<1x64xf32>
    %158 = vector.broadcast %157 : vector<1x64xf32> to vector<2x64xf32>
    %159 = arith.addf %156, %158 : vector<2x64xf32>
    %160 = math.tanh %159 : vector<2x64xf32>
    %161 = arith.truncf %160 : vector<2x64xf32> to vector<2x64xbf16>
    %c0_93 = arith.constant 0 : index
    %c0_94 = arith.constant 0 : index
    %162 = vector.load %arg20[%c0_93, %c0_94] : memref<64x64xbf16, #tpu.memory_space<vmem>>, vector<64x64xbf16>
    %cst_95 = arith.constant dense<0.000000e+00> : vector<2x64xf32>
    %163 = tpu.matmul %161, %162, %cst_95 {dimension_numbers = #tpu.dot_dimension_numbers<[1], [0], [0], [1], [0, 0, 1, 1], [], []>} : vector<2x64xbf16>, vector<64x64xbf16>, vector<2x64xf32> -> vector<2x64xf32>
    %c0_96 = arith.constant 0 : index
    %c0_97 = arith.constant 0 : index
    %164 = vector.load %arg21[%c0_96, %c0_97] : memref<1x64xf32, #tpu.memory_space<vmem>>, vector<1x64xf32>
    %165 = vector.broadcast %164 : vector<1x64xf32> to vector<2x64xf32>
    %166 = arith.addf %163, %165 : vector<2x64xf32>
    %167 = math.tanh %166 : vector<2x64xf32>
    %168 = arith.truncf %167 : vector<2x64xf32> to vector<2x64xbf16>
    %c0_98 = arith.constant 0 : index
    %c0_99 = arith.constant 0 : index
    %169 = vector.load %arg22[%c0_98, %c0_99] : memref<64x1xbf16, #tpu.memory_space<vmem>>, vector<64x1xbf16>
    %cst_100 = arith.constant dense<0.000000e+00> : vector<2x1xf32>
    %170 = tpu.matmul %168, %169, %cst_100 {dimension_numbers = #tpu.dot_dimension_numbers<[1], [0], [0], [1], [0, 0, 1, 1], [], []>} : vector<2x64xbf16>, vector<64x1xbf16>, vector<2x1xf32> -> vector<2x1xf32>
    %c0_101 = arith.constant 0 : index
    %c0_102 = arith.constant 0 : index
    %171 = vector.load %arg23[%c0_101, %c0_102] : memref<1x1xf32, #tpu.memory_space<vmem>>, vector<1x1xf32>
    %172 = vector.broadcast %171 : vector<1x1xf32> to vector<2x1xf32>
    %173 = arith.addf %170, %172 : vector<2x1xf32>
    %174 = tpu.iota {dimensions = array<i32: 1>} : vector<2x128xi32>
    %c0_i32 = arith.constant 0 : i32
    %175 = vector.broadcast %c0_i32 : i32 to vector<2x128xi32>
    %176 = arith.cmpi eq, %174, %175 : vector<2x128xi32>
    %c1_i32 = arith.constant 1 : i32
    %177 = vector.broadcast %c1_i32 : i32 to vector<2x128xi32>
    %178 = arith.cmpi eq, %174, %177 : vector<2x128xi32>
    %c2_i32 = arith.constant 2 : i32
    %179 = vector.broadcast %c2_i32 : i32 to vector<2x128xi32>
    %180 = arith.cmpi eq, %174, %179 : vector<2x128xi32>
    %cst_103 = arith.constant 0.000000e+00 : f32
    %181 = vector.shape_cast %154 : vector<2x1xf32> to vector<2x1xf32>
    %182 = vector.broadcast %181 : vector<2x1xf32> to vector<2x128xf32>
    %183 = vector.broadcast %cst_103 : f32 to vector<2x128xf32>
    %184 = arith.select %180, %182, %183 : vector<2x128xi1>, vector<2x128xf32>
    %185 = vector.shape_cast %173 : vector<2x1xf32> to vector<2x1xf32>
    %186 = vector.broadcast %185 : vector<2x1xf32> to vector<2x128xf32>
    %187 = arith.select %178, %186, %184 : vector<2x128xi1>, vector<2x128xf32>
    %188 = vector.shape_cast %149 : vector<2x1xf32> to vector<2x1xf32>
    %189 = vector.broadcast %188 : vector<2x1xf32> to vector<2x128xf32>
    %190 = arith.select %176, %189, %187 : vector<2x128xi1>, vector<2x128xf32>
    %c0_104 = arith.constant 0 : index
    %c0_105 = arith.constant 0 : index
    %191 = vector.load %arg24[%c0_104, %c0_105] : memref<2x128xf32, #tpu.memory_space<vmem>>, vector<2x128xf32>
    tpu.vector_store %arg24[%c0_104, %c0_105], %190 {strides = array<i32>} : memref<2x128xf32, #tpu.memory_space<vmem>>, vector<2x128xf32>,
    return
  }
}

</mosaic_0001>

<bundles_post_ra>
// kernel: actor_critic_evaluate.2
= control target key start
LH: loop header
LB: loop body
LE: loop exit
PB: predicated region body
PF: predicated region fallthrough
CT: control target
= control target key end

     0   :  { %s4434_s12 = smov 0   ;;  %s4436_s13 = smov 0   ;;  %s6834_s0 = inlined_call_operand.vmem [shape: bf16[1922,100], index: 0, kind: input, shape index: {}]   ;;  %s6835_s1 = inlined_call_operand.vmem [shape: bf16[100,128], index: 1, kind: input, shape index: {}]   ;;  %s6836_s2 = inlined_call_operand.vmem [shape: f32[1,32], index: 2, kind: input, shape index: {}]   ;;  %s6837_s3 = inlined_call_operand.vmem [shape: bf16[1922,32], index: 3, kind: output, shape index: {}]  }
   0x1   :  { %s4438_s14 = smov 0  }
   0x2 LB: > { %s4447_s15 = sadd.s32 4294967295, %s4376_s14   ;;  %s4449_s16 = sadd.s32 1, %s4376_s14   ;;  %s4376_s14 = sphi %s4438_s14, %s7261_s14   ;;  %s4372_s13 = sphi %s4436_s13, %s7260_s13   ;;  %s4368_s12 = sphi %s4434_s12, %s7259_s12  }
   0x3   : > { %s85_s17 = ssub.s32 %s4376_s14, %s4449_s16  ;;  %s88_s18 = sadd.s32 1, %s4372_s13 }
   0x4   : > { %p86_p0 = scmp.eq.s32.totalorder %s85_s17, 0  ;;  %p98_p1 = scmp.ne.s32.totalorder %s4372_s13, %s4368_s12 }
   0x5   : > { %p99_p2 = scmp.eq.s32.totalorder %s4447_s15, 1  ;;  %p3428_p3 = scmp.ge.s32.totalorder %s4376_s14, 1 }
   0x6   : > { %s4457_s19 = scalar_select %p86_p0, %s4372_s13, %s88_s18  }
   0x7   : > { %p4459_p4 = por %p99_p2, %p98_p1  ;;  %p146_p5 = scmp.lt.s32.totalorder %s4376_s14, 3 }
   0x9   : > { %p147_p6 = pnand %p3428_p3, %p146_p5 }
   0xb   : > { %150 = sbr.rel (%p147_p6) target bundleno = 968 (0x3c8), region = 32 }
  0x12   : > { %v4253_v0 = vld [vmem:[%s6835_s1] sm:$0xff]   ;;  %v4410_v1 = vmov 0.0   ;;  %v4254_v2 = vld [vmem:[%s6835_s1 + $0x8] sm:$0xff]   ;;  %s4474_s25 = smul.u32 121, %s4447_s15  ;;  %vm4411_vm0 = vmmov 0   ;;  %v4255_v3 = vld [vmem:[%s6835_s1 + $0x10] sm:$0xff]  }
  0x13   : > { %3888 = vmatprep.subr.bf16.mxu0 %v4410_v1  ;;  %4146 = vmatprep.subr.bf16.mxu1 %v4410_v1  ;;  %v4256_v4 = vld [vmem:[%s6835_s1 + $0x18] sm:$0xff]   ;;  %v4257_v5 = vld [vmem:[%s6835_s1 + $0x20] sm:$0xff]   ;;  %v4259_v6 = vld [vmem:[%s6835_s1 + $0x30] ss:$0 sps:$4 sm:$0x33]   ;;  %vm853_vm1 = vcmask 1041408  }
  0x14   : > { %3889 = vmatpush3.bf16.msra.mxu0 %v4253_v0  ;;  %4153 = vmatpush3.bf16.msra.mxu1 %v4253_v0  ;;  %p178_p7 = scmp.lt.s32.totalorder %s4474_s25, 240  ;;  %v4258_v7 = vld [vmem:[%s6835_s1 + $0x28] sm:$0xff]   ;;  %v855_v8 = vsel %vm853_vm1, %v4259_v6, 0  ;;  %vm669_vm2 = vcmask 818176   ;;  %s4412_s18 = smov 64   ;;  %vm2837_vm3 = vcmask 257024  }
  0x15   : > { %3890 = vmatprep.subr.bf16.mxu0 %v4410_v1  ;;  %4147 = vmatprep.subr.bf16.mxu1 %v4410_v1  ;;  %s4413_s21 = smov 32   ;;  %s170_s22 = sand.u32 1, %s4368_s12  }
  0x16   : > { %3902 = vmatprep.mubr.msk.bf16.mxu0 %vm4411_vm0, %v4410_v1  ;;  %4026 = vmatprep.mubr.msk.bf16.mxu1 %vm4411_vm0, %v4410_v1  ;;  %s179_s28 = scalar_select %p178_p7, %s4474_s25, 240 }
  0x17   : > { %s4160_s26 = smul.u32 484, %s170_s22 }
  0x18   : > { %3891 = vmatpush3.bf16.msra.mxu0 %v4254_v2  ;;  %4154 = vmatpush3.bf16.msra.mxu1 %v4254_v2  ;;  %s3429_s29 = sshll.u32 %s179_s28, 2  ;;  %s3817_s30 = smul.u32 (%p4459_p4), 484, %s4447_s15 }
  0x19   : > { %3892 = vmatprep.subr.bf16.mxu0 %v4410_v1  ;;  %4148 = vmatprep.subr.bf16.mxu1 %v4410_v1  ;;  %s4493_s7 = scalar_lea.vmem %s6834_s0, %s3429_s29  ;;  %s5466_s12 = scalar_lea.vmem [#allocation2], %s4160_s26  }
  0x1a   : > { %v4260_v9 = vld [vmem:[%s4493_s7] sm:$0xff]   ;;  %v4261_v10 = vld [vmem:[%s4493_s7 + $0xf8] sm:$0xff]   ;;  %v4262_v11 = vld [vmem:[%s4493_s7 + $0x8] sm:$0xff]   ;;  %s2967_s29 = ssub.s32 (%p4459_p4), 241, %s4474_s25  ;;  %s6642_s6 = scalar_lea.vmem (%p4459_p4), %s6837_s3, %s3817_s30  }
  0x1b   : > { %v4263_v12 = vld [vmem:[%s4493_s7 + $0x100] sm:$0xff]   ;;  %v4264_v13 = vld [vmem:[%s4493_s7 + $0x10] sm:$0xff]   ;;  %v4265_v14 = vld [vmem:[%s4493_s7 + $0x108] sm:$0xff]   ;;  %p2968_p8 = scmp.lt.s32.totalorder (%p4459_p4), %s2967_s29, 121 }
  0x1c   : > { %3893 = vmatpush3.bf16.msra.mxu0 %v4255_v3  ;;  %4155 = vmatpush3.bf16.msra.mxu1 %v4255_v3  ;;  %v4266_v15 = vld [vmem:[%s4493_s7 + $0x18] sm:$0xff]   ;;  %v4267_v16 = vld [vmem:[%s4493_s7 + $0x110] sm:$0xff]   ;;  %v4268_v17 = vld [vmem:[%s4493_s7 + $0x20] sm:$0xff]  }
  0x1d   : > { %3894 = vmatprep.subr.bf16.mxu0 %v4410_v1  ;;  %4149 = vmatprep.subr.bf16.mxu1 %v4410_v1  ;;  %v4269_v18 = vld [vmem:[%s4493_s7 + $0x118] sm:$0xff]   ;;  %v4270_v19 = vld [vmem:[%s4493_s7 + $0x28] sm:$0xff]   ;;  %v4271_v20 = vld [vmem:[%s4493_s7 + $0x120] sm:$0xff]  }
  0x1e   : > { %v4272_v21 = vld [vmem:[%s4493_s7 + $0x30] sm:$0xff]   ;;  %v4273_v22 = vld [vmem:[%s4493_s7 + $0x128] sm:$0xff]   ;;  %v4274_v23 = vld [vmem:[%s4493_s7 + $0x38] sm:$0xff]  }
  0x1f   : > { %v4275_v24 = vld [vmem:[%s4493_s7 + $0x130] sm:$0xff]   ;;  %v4276_v25 = vld [vmem:[%s4493_s7 + $0x40] sm:$0xff]   ;;  %v4277_v26 = vld [vmem:[%s4493_s7 + $0x138] sm:$0xff]  }
  0x20   : > { %3895 = vmatpush3.bf16.msra.mxu0 %v4256_v4  ;;  %4156 = vmatpush3.bf16.msra.mxu1 %v4256_v4  ;;  %v4278_v27 = vld [vmem:[%s4493_s7 + $0x48] sm:$0xff]   ;;  %v4279_v28 = vld [vmem:[%s4493_s7 + $0x140] sm:$0xff]   ;;  %v4280_v29 = vld [vmem:[%s4493_s7 + $0x50] sm:$0xff]  }
  0x21   : > { %3896 = vmatprep.subr.bf16.mxu0 %v4410_v1  ;;  %4150 = vmatprep.subr.bf16.mxu1 %v4410_v1  ;;  %v4281_v30 = vld [vmem:[%s4493_s7 + $0x148] sm:$0xff]   ;;  %v4282_v31 = vld [vmem:[%s4493_s7 + $0x58] sm:$0xff]   ;;  %v4283_v32 = vld [vmem:[%s4493_s7 + $0x150] sm:$0xff]  }
  0x22   : > { %v4284_v33 = vld [vmem:[%s4493_s7 + $0x60] sm:$0xff]   ;;  %v4285_v34 = vld [vmem:[%s4493_s7 + $0x158] sm:$0xff]   ;;  %v4286_v35 = vld [vmem:[%s4493_s7 + $0x68] sm:$0xff]  }
  0x23   : > { %v4287_v36 = vld [vmem:[%s4493_s7 + $0x160] sm:$0xff]   ;;  %v4288_v37 = vld [vmem:[%s4493_s7 + $0x70] sm:$0xff]   ;;  %v4289_v38 = vld [vmem:[%s4493_s7 + $0x168] sm:$0xff]  }
  0x24   : > { %3897 = vmatpush3.bf16.msra.mxu0 %v4257_v5  ;;  %4157 = vmatpush3.bf16.msra.mxu1 %v4257_v5  ;;  %v4290_v39 = vld [vmem:[%s4493_s7 + $0x78] sm:$0xff]   ;;  %v4291_v40 = vld [vmem:[%s4493_s7 + $0x170] sm:$0xff]   ;;  %v4292_v41 = vld [vmem:[%s4493_s7 + $0x80] sm:$0xff]  }
  0x25   : > { %3898 = vmatprep.subr.bf16.mxu0 %v4410_v1  ;;  %4151 = vmatprep.subr.bf16.mxu1 %v4410_v1  ;;  %v4293_v42 = vld [vmem:[%s4493_s7 + $0x178] sm:$0xff]   ;;  %v4294_v43 = vld [vmem:[%s4493_s7 + $0x88] sm:$0xff]   ;;  %v4295_v44 = vld [vmem:[%s4493_s7 + $0x180] sm:$0xff]  }
  0x26   : > { %v4296_v45 = vld [vmem:[%s4493_s7 + $0x90] sm:$0xff]   ;;  %v4297_v46 = vld [vmem:[%s4493_s7 + $0x188] sm:$0xff]   ;;  %v4298_v47 = vld [vmem:[%s4493_s7 + $0x98] sm:$0xff]  }
  0x27   : > { %v4299_v48 = vld [vmem:[%s4493_s7 + $0x190] sm:$0xff]   ;;  %v4300_v49 = vld [vmem:[%s4493_s7 + $0xa0] sm:$0xff]   ;;  %v4301_v50 = vld [vmem:[%s4493_s7 + $0x198] sm:$0xff]  }
  0x28   : > { %3899 = vmatpush3.bf16.msra.mxu0 %v4258_v7  ;;  %4158 = vmatpush3.bf16.msra.mxu1 %v4258_v7  ;;  %v4302_v51 = vld [vmem:[%s4493_s7 + $0xa8] sm:$0xff]   ;;  %v4303_v52 = vld [vmem:[%s4493_s7 + $0x1a0] sm:$0xff]   ;;  %v4304_v53 = vld [vmem:[%s4493_s7 + $0xb0] sm:$0xff]  }
  0x29   : > { %3900 = vmatprep.subr.bf16.mxu0 %v4410_v1  ;;  %4152 = vmatprep.subr.bf16.mxu1 %v4410_v1  ;;  %v4305_v54 = vld [vmem:[%s4493_s7 + $0x1a8] sm:$0xff]   ;;  %v4306_v55 = vld [vmem:[%s4493_s7 + $0xb8] sm:$0xff]   ;;  %v4307_v56 = vld [vmem:[%s4493_s7 + $0x1b0] sm:$0xff]  }
  0x2a   : > { %v4308_v57 = vld [vmem:[%s4493_s7 + $0xc0] sm:$0xff]   ;;  %v4309_v58 = vld [vmem:[%s4493_s7 + $0x1b8] sm:$0xff]   ;;  %v4310_v59 = vld [vmem:[%s4493_s7 + $0xc8] sm:$0xff]  }
  0x2b   : > { %v4311_v60 = vld [vmem:[%s4493_s7 + $0x1c0] sm:$0xff]   ;;  %v4312_v61 = vld [vmem:[%s4493_s7 + $0xd0] sm:$0xff]   ;;  %v4313_v62 = vld [vmem:[%s4493_s7 + $0x1c8] sm:$0xff]  }
  0x2c   : > { %3901 = vmatpush3.bf16.msra.mxu0 %v855_v8  ;;  %4159 = vmatpush3.bf16.msra.mxu1 %v855_v8  ;;  %v4314_v4 = vld [vmem:[%s4493_s7 + $0xd8] sm:$0xff]   ;;  %v4315_v7 = vld [vmem:[%s4493_s7 + $0x1d0] sm:$0xff]  }
  0x2f   : > { %3903 = vmatmul.mubr.msk.bf16.vlgmr.msra.gmra.mrb[0].mxu0 %vm669_vm2, %v4260_v9  ;;  %4027 = vmatmul.mubr.msk.bf16.vlgmr.msra.gmra.mrb[0].mxu1 %vm669_vm2, %v4261_v10 }
  0x30   : > { %3906 = vmatprep.mubr.msk.bf16.mxu0 %vm4411_vm0, %v4410_v1  ;;  %4030 = vmatprep.mubr.msk.bf16.mxu1 %vm4411_vm0, %v4410_v1 }
  0x37   : > { %3907 = vmatmul.mubr.msk.bf16.gmra.mrb[4].mxu0 %vm669_vm2, %v4262_v11  ;;  %4031 = vmatmul.mubr.msk.bf16.gmra.mrb[4].mxu1 %vm669_vm2, %v4263_v12 }
  0x38   : > { %3910 = vmatprep.mubr.msk.bf16.mxu0 %vm4411_vm0, %v4410_v1  ;;  %4034 = vmatprep.mubr.msk.bf16.mxu1 %vm4411_vm0, %v4410_v1 }
  0x3f   : > { %3911 = vmatmul.mubr.msk.bf16.gmra.mrb[8].mxu0 %vm669_vm2, %v4264_v13  ;;  %4035 = vmatmul.mubr.msk.bf16.gmra.mrb[8].mxu1 %vm669_vm2, %v4265_v14 }
  0x40   : > { %3914 = vmatprep.mubr.msk.bf16.mxu0 %vm4411_vm0, %v4410_v1  ;;  %4038 = vmatprep.mubr.msk.bf16.mxu1 %vm4411_vm0, %v4410_v1 }
  0x47   : > { %3915 = vmatmul.mubr.msk.bf16.gmra.mrb[12].mxu0 %vm669_vm2, %v4266_v15  ;;  %4039 = vmatmul.mubr.msk.bf16.gmra.mrb[12].mxu1 %vm669_vm2, %v4267_v16  ;;  %v4316_v16 = vld [vmem:[%s4493_s7 + $0xe0] sm:$0xff]  }
  0x48   : > { %3918 = vmatprep.mubr.msk.bf16.mxu0 %vm4411_vm0, %v4410_v1  ;;  %4042 = vmatprep.mubr.msk.bf16.mxu1 %vm4411_vm0, %v4410_v1 }
  0x4f   : > { %3919 = vmatmul.mubr.msk.bf16.gmra.mrb[16].mxu0 %vm669_vm2, %v4268_v17  ;;  %4043 = vmatmul.mubr.msk.bf16.gmra.mrb[16].mxu1 %vm669_vm2, %v4269_v18  ;;  %v4317_v17 = vld [vmem:[%s4493_s7 + $0x1d8] sm:$0xff]  }
  0x50   : > { %3922 = vmatprep.mubr.msk.bf16.mxu0 %vm4411_vm0, %v4410_v1  ;;  %4046 = vmatprep.mubr.msk.bf16.mxu1 %vm4411_vm0, %v4410_v1 }
  0x57   : > { %3923 = vmatmul.mubr.msk.bf16.gmra.mrb[20].mxu0 %vm669_vm2, %v4270_v19  ;;  %4047 = vmatmul.mubr.msk.bf16.gmra.mrb[20].mxu1 %vm669_vm2, %v4271_v20 }
  0x58   : > { %3926 = vmatprep.mubr.msk.bf16.mxu0 %vm4411_vm0, %v4410_v1  ;;  %4050 = vmatprep.mubr.msk.bf16.mxu1 %vm4411_vm0, %v4410_v1 }
  0x5f   : > { %3927 = vmatmul.mubr.msk.bf16.gmra.mrb[24].mxu0 %vm669_vm2, %v4272_v21  ;;  %4051 = vmatmul.mubr.msk.bf16.gmra.mrb[24].mxu1 %vm669_vm2, %v4273_v22 }
  0x60   : > { %3930 = vmatprep.mubr.msk.bf16.mxu0 %vm4411_vm0, %v4410_v1  ;;  %4054 = vmatprep.mubr.msk.bf16.mxu1 %vm4411_vm0, %v4410_v1 }
  0x67   : > { %3931 = vmatmul.mubr.msk.bf16.gmra.mrb[28].mxu0 %vm669_vm2, %v4274_v23  ;;  %4055 = vmatmul.mubr.msk.bf16.gmra.mrb[28].mxu1 %vm669_vm2, %v4275_v24 }
  0x68   : > { %3934 = vmatprep.mubr.msk.bf16.mxu0 %vm4411_vm0, %v4410_v1  ;;  %4058 = vmatprep.mubr.msk.bf16.mxu1 %vm4411_vm0, %v4410_v1 }
  0x6f   : > { %3935 = vmatmul.mubr.msk.bf16.gmra.mrb[32].mxu0 %vm669_vm2, %v4276_v25  ;;  %4059 = vmatmul.mubr.msk.bf16.gmra.mrb[32].mxu1 %vm669_vm2, %v4277_v26  ;;  %v4318_v26 = vld [vmem:[%s4493_s7 + $0xe8] sm:$0xff]  }
  0x70   : > { %3938 = vmatprep.mubr.msk.bf16.mxu0 %vm4411_vm0, %v4410_v1  ;;  %4062 = vmatprep.mubr.msk.bf16.mxu1 %vm4411_vm0, %v4410_v1 }
  0x77   : > { %3939 = vmatmul.mubr.msk.bf16.gmra.mrb[36].mxu0 %vm669_vm2, %v4278_v27  ;;  %4063 = vmatmul.mubr.msk.bf16.gmra.mrb[36].mxu1 %vm669_vm2, %v4279_v28  ;;  %v4319_v27 = vld [vmem:[%s4493_s7 + $0x1e0] ss:$0 sps:$4 sm:$0xff]  }
  0x78   : > { %3942 = vmatprep.mubr.msk.bf16.mxu0 %vm4411_vm0, %v4410_v1  ;;  %4066 = vmatprep.mubr.msk.bf16.mxu1 %vm4411_vm0, %v4410_v1 }
  0x7f   : > { %3943 = vmatmul.mubr.msk.bf16.gmra.mrb[40].mxu0 %vm669_vm2, %v4280_v29  ;;  %4067 = vmatmul.mubr.msk.bf16.gmra.mrb[40].mxu1 %vm669_vm2, %v4281_v30 }
  0x80   : > { %3946 = vmatprep.mubr.msk.bf16.mxu0 %vm4411_vm0, %v4410_v1  ;;  %4070 = vmatprep.mubr.msk.bf16.mxu1 %vm4411_vm0, %v4410_v1 }
  0x87   : > { %3947 = vmatmul.mubr.msk.bf16.gmra.mrb[44].mxu0 %vm669_vm2, %v4282_v31  ;;  %4071 = vmatmul.mubr.msk.bf16.gmra.mrb[44].mxu1 %vm669_vm2, %v4283_v32 }
  0x88   : > { %3950 = vmatprep.mubr.msk.bf16.mxu0 %vm4411_vm0, %v4410_v1  ;;  %4074 = vmatprep.mubr.msk.bf16.mxu1 %vm4411_vm0, %v4410_v1 }
  0x8f   : > { %3951 = vmatmul.mubr.msk.bf16.gmra.mrb[48].mxu0 %vm669_vm2, %v4284_v33  ;;  %4075 = vmatmul.mubr.msk.bf16.gmra.mrb[48].mxu1 %vm669_vm2, %v4285_v34 }
  0x90   : > { %3954 = vmatprep.mubr.msk.bf16.mxu0 %vm4411_vm0, %v4410_v1  ;;  %4078 = vmatprep.mubr.msk.bf16.mxu1 %vm4411_vm0, %v4410_v1 }
  0x97   : > { %3955 = vmatmul.mubr.msk.bf16.gmra.mrb[52].mxu0 %vm669_vm2, %v4286_v35  ;;  %4079 = vmatmul.mubr.msk.bf16.gmra.mrb[52].mxu1 %vm669_vm2, %v4287_v36  ;;  %v4320_v36 = vld [vmem:[%s4493_s7 + $0xf0] sm:$0xff]  }
  0x98   : > { %3958 = vmatprep.mubr.msk.bf16.mxu0 %vm4411_vm0, %v4410_v1  ;;  %4082 = vmatprep.mubr.msk.bf16.mxu1 %vm4411_vm0, %v4410_v1 }
  0x9f   : > { %3959 = vmatmul.mubr.msk.bf16.gmra.mrb[56].mxu0 %vm669_vm2, %v4288_v37  ;;  %4083 = vmatmul.mubr.msk.bf16.gmra.mrb[56].mxu1 %vm669_vm2, %v4289_v38 }
  0xa0   : > { %3962 = vmatprep.mubr.msk.bf16.mxu0 %vm4411_vm0, %v4410_v1  ;;  %4086 = vmatprep.mubr.msk.bf16.mxu1 %vm4411_vm0, %v4410_v1 }
  0xa7   : > { %3963 = vmatmul.mubr.msk.bf16.gmra.mrb[60].mxu0 %vm669_vm2, %v4290_v39  ;;  %4087 = vmatmul.mubr.msk.bf16.gmra.mrb[60].mxu1 %vm669_vm2, %v4291_v40 }
  0xa8   : > { %3966 = vmatprep.mubr.msk.bf16.mxu0 %vm4411_vm0, %v4410_v1  ;;  %4090 = vmatprep.mubr.msk.bf16.mxu1 %vm4411_vm0, %v4410_v1 }
  0xaf   : > { %3967 = vmatmul.mubr.msk.bf16.gmra.mrb[64].mxu0 %vm669_vm2, %v4292_v41  ;;  %4091 = vmatmul.mubr.msk.bf16.gmra.mrb[64].mxu1 %vm669_vm2, %v4293_v42 }
  0xb0   : > { %3970 = vmatprep.mubr.msk.bf16.mxu0 %vm4411_vm0, %v4410_v1  ;;  %4094 = vmatprep.mubr.msk.bf16.mxu1 %vm4411_vm0, %v4410_v1 }
  0xb7   : > { %3971 = vmatmul.mubr.msk.bf16.gmra.mrb[68].mxu0 %vm669_vm2, %v4294_v43  ;;  %4095 = vmatmul.mubr.msk.bf16.gmra.mrb[68].mxu1 %vm669_vm2, %v4295_v44 }
  0xb8   : > { %3974 = vmatprep.mubr.msk.bf16.mxu0 %vm4411_vm0, %v4410_v1  ;;  %4098 = vmatprep.mubr.msk.bf16.mxu1 %vm4411_vm0, %v4410_v1 }
  0xbf   : > { %3975 = vmatmul.mubr.msk.bf16.gmra.mrb[72].mxu0 %vm669_vm2, %v4296_v45  ;;  %4099 = vmatmul.mubr.msk.bf16.gmra.mrb[72].mxu1 %vm669_vm2, %v4297_v46 }
  0xc0   : > { %3978 = vmatprep.mubr.msk.bf16.mxu0 %vm4411_vm0, %v4410_v1  ;;  %4102 = vmatprep.mubr.msk.bf16.mxu1 %vm4411_vm0, %v4410_v1 }
  0xc7   : > { %3979 = vmatmul.mubr.msk.bf16.gmra.mrb[76].mxu0 %vm669_vm2, %v4298_v47  ;;  %4103 = vmatmul.mubr.msk.bf16.gmra.mrb[76].mxu1 %vm669_vm2, %v4299_v48 }
  0xc8   : > { %3982 = vmatprep.mubr.msk.bf16.mxu0 %vm4411_vm0, %v4410_v1  ;;  %4106 = vmatprep.mubr.msk.bf16.mxu1 %vm4411_vm0, %v4410_v1 }
  0xcf   : > { %3983 = vmatmul.mubr.msk.bf16.gmra.mrb[80].mxu0 %vm669_vm2, %v4300_v49  ;;  %4107 = vmatmul.mubr.msk.bf16.gmra.mrb[80].mxu1 %vm669_vm2, %v4301_v50 }
  0xd0   : > { %3986 = vmatprep.mubr.msk.bf16.mxu0 %vm4411_vm0, %v4410_v1  ;;  %4110 = vmatprep.mubr.msk.bf16.mxu1 %vm4411_vm0, %v4410_v1 }
  0xd7   : > { %3987 = vmatmul.mubr.msk.bf16.gmra.mrb[84].mxu0 %vm669_vm2, %v4302_v51  ;;  %4111 = vmatmul.mubr.msk.bf16.gmra.mrb[84].mxu1 %vm669_vm2, %v4303_v52 }
  0xd8   : > { %3990 = vmatprep.mubr.msk.bf16.mxu0 %vm4411_vm0, %v4410_v1  ;;  %4114 = vmatprep.mubr.msk.bf16.mxu1 %vm4411_vm0, %v4410_v1 }
  0xdf   : > { %3991 = vmatmul.mubr.msk.bf16.gmra.mrb[88].mxu0 %vm669_vm2, %v4304_v53  ;;  %4115 = vmatmul.mubr.msk.bf16.gmra.mrb[88].mxu1 %vm669_vm2, %v4305_v54 }
  0xe0   : > { %3994 = vmatprep.mubr.msk.bf16.mxu0 %vm4411_vm0, %v4410_v1  ;;  %4118 = vmatprep.mubr.msk.bf16.mxu1 %vm4411_vm0, %v4410_v1 }
  0xe7   : > { %3995 = vmatmul.mubr.msk.bf16.gmra.mrb[92].mxu0 %vm669_vm2, %v4306_v55  ;;  %4119 = vmatmul.mubr.msk.bf16.gmra.mrb[92].mxu1 %vm669_vm2, %v4307_v56 }
  0xe8   : > { %3998 = vmatprep.mubr.msk.bf16.mxu0 %vm4411_vm0, %v4410_v1  ;;  %4122 = vmatprep.mubr.msk.bf16.mxu1 %vm4411_vm0, %v4410_v1 }
  0xef   : > { %3999 = vmatmul.mubr.msk.bf16.gmra.mrb[96].mxu0 %vm669_vm2, %v4308_v57  ;;  %4123 = vmatmul.mubr.msk.bf16.gmra.mrb[96].mxu1 %vm669_vm2, %v4309_v58 }
  0xf0   : > { %4002 = vmatprep.mubr.msk.bf16.mxu0 %vm4411_vm0, %v4410_v1  ;;  %4126 = vmatprep.mubr.msk.bf16.mxu1 %vm4411_vm0, %v4410_v1 }
  0xf7   : > { %4003 = vmatmul.mubr.msk.bf16.gmra.mrb[100].mxu0 %vm669_vm2, %v4310_v59  ;;  %4127 = vmatmul.mubr.msk.bf16.gmra.mrb[100].mxu1 %vm669_vm2, %v4311_v60 }
  0xf8   : > { %4006 = vmatprep.mubr.msk.bf16.mxu0 %vm4411_vm0, %v4410_v1  ;;  %4130 = vmatprep.mubr.msk.bf16.mxu1 %vm4411_vm0, %v4410_v1 }
  0xff   : > { %4007 = vmatmul.mubr.msk.bf16.gmra.mrb[104].mxu0 %vm669_vm2, %v4312_v61  ;;  %4131 = vmatmul.mubr.msk.bf16.gmra.mrb[104].mxu1 %vm669_vm2, %v4313_v62 }
 0x100   : > { %4010 = vmatprep.mubr.msk.bf16.mxu0 %vm4411_vm0, %v4410_v1  ;;  %4134 = vmatprep.mubr.msk.bf16.mxu1 %vm4411_vm0, %v4410_v1 }
 0x102   : > { %v4728_v63 = vpop.f32.mrb[0].mxu0  ;;  %v4730_v0 = vpop.f32.mrb[0].mxu1 }
 0x103   : > { %v4028_v2 = vpop.f32.mrb[1].mxu1  ;;  %1377 = vrot.lane.b32.xlu0 %v4728_v63, %s4412_s18  ;;  %v3904_v3 = vpop.f32.mrb[1].mxu0 }
 0x104   : > { %v4735_v5 = vpop.f32.mrb[2].mxu0  ;;  %v4737_v6 = vpop.f32.mrb[2].mxu1 }
 0x105   : > { %1503 = vrot.lane.b32.xlu1 %v4737_v6, %s4412_s18  ;;  %v3905_v8 = vpop.f32.mrb[3].mxu0  ;;  %v4029_v9 = vpop.f32.mrb[3].mxu1 }
 0x107   : > { %1501 = vrot.lane.b32.xlu0 %v4730_v0, %s4412_s18  ;;  %4011 = vmatmul.mubr.msk.bf16.gmra.mrb[108].mxu0 %vm669_vm2, %v4314_v4 }
 0x108   : > { %4135 = vmatmul.mubr.msk.bf16.gmra.mrb[108].mxu1 %vm669_vm2, %v4315_v7  ;;  %4014 = vmatprep.mubr.msk.bf16.mxu0 %vm4411_vm0, %v4410_v1 }
 0x109   : > { %4138 = vmatprep.mubr.msk.bf16.mxu1 %vm4411_vm0, %v4410_v1 }
 0x10a   : > { %v4750_v10 = vpop.f32.mrb[4].mxu0  ;;  %v4752_v11 = vpop.f32.mrb[4].mxu1 }
 0x10b   : > { %1379 = vrot.lane.b32.xlu0 %v4735_v5, %s4412_s18  ;;  %1381 = vrot.lane.b32.xlu1 %v4750_v10, %s4412_s18  ;;  %v3908_v12 = vpop.f32.mrb[5].mxu0  ;;  %v4032_v13 = vpop.f32.mrb[5].mxu1 }
 0x10c   : > { %v4758_v14 = vpop.f32.mrb[6].mxu0  ;;  %v4760_v15 = vpop.f32.mrb[6].mxu1 }
 0x10d   : > { %v3909_v18 = vpop.f32.mrb[7].mxu0  ;;  %v4033_v19 = vpop.f32.mrb[7].mxu1 }
 0x10f   : > { %1505 = vrot.lane.b32.xlu0 %v4752_v11, %s4412_s18  ;;  %1383 = vrot.lane.b32.xlu1 %v4758_v14, %s4412_s18 }
 0x110   : > { %4015 = vmatmul.mubr.msk.bf16.gmra.mrb[112].mxu0 %vm669_vm2, %v4316_v16  ;;  %4139 = vmatmul.mubr.msk.bf16.gmra.mrb[112].mxu1 %vm669_vm2, %v4317_v17 }
 0x111   : > { %4018 = vmatprep.mubr.msk.bf16.mxu0 %vm4411_vm0, %v4410_v1  ;;  %4142 = vmatprep.mubr.msk.bf16.mxu1 %vm4411_vm0, %v4410_v1 }
 0x112   : > { %v4774_v20 = vpop.f32.mrb[8].mxu0  ;;  %v4776_v21 = vpop.f32.mrb[8].mxu1 }
 0x113   : > { %1507 = vrot.lane.b32.xlu1 %v4760_v15, %s4412_s18  ;;  %1385 = vrot.lane.b32.xlu0 %v4774_v20, %s4412_s18  ;;  %v3912_v22 = vpop.f32.mrb[9].mxu0  ;;  %v4036_v23 = vpop.f32.mrb[9].mxu1 }
 0x114   : > { %v4782_v24 = vpop.f32.mrb[10].mxu0  ;;  %v4784_v25 = vpop.f32.mrb[10].mxu1 }
 0x115   : > { %v3913_v28 = vpop.f32.mrb[11].mxu0  ;;  %v4037_v29 = vpop.f32.mrb[11].mxu1 }
 0x117   : > { %1509 = vrot.lane.b32.xlu0 %v4776_v21, %s4412_s18  ;;  %1387 = vrot.lane.b32.xlu1 %v4782_v24, %s4412_s18 }
 0x118   : > { %4019 = vmatmul.mubr.msk.bf16.gmra.mrb[116].mxu0 %vm669_vm2, %v4318_v26  ;;  %4143 = vmatmul.mubr.msk.bf16.gmra.mrb[116].mxu1 %vm669_vm2, %v4319_v27 }
 0x119   : > { %4022 = vmatprep.mubr.msk.bf16.mxu0 %vm4411_vm0, %v4410_v1 }
 0x11a   : > { %v4796_v30 = vpop.f32.mrb[12].mxu0  ;;  %v4798_v31 = vpop.f32.mrb[12].mxu1 }
 0x11b   : > { %1511 = vrot.lane.b32.xlu1 %v4784_v25, %s4412_s18  ;;  %1389 = vrot.lane.b32.xlu0 %v4796_v30, %s4412_s18  ;;  %v3916_v32 = vpop.f32.mrb[13].mxu0  ;;  %v4040_v33 = vpop.f32.mrb[13].mxu1 }
 0x11c   : > { %v4804_v34 = vpop.f32.mrb[14].mxu0  ;;  %v4806_v35 = vpop.f32.mrb[14].mxu1 }
 0x11d   : > { %v3917_v37 = vpop.f32.mrb[15].mxu0  ;;  %v4041_v38 = vpop.f32.mrb[15].mxu1 }
 0x11f   : > { %1513 = vrot.lane.b32.xlu0 %v4798_v31, %s4412_s18  ;;  %1391 = vrot.lane.b32.xlu1 %v4804_v34, %s4412_s18 }
 0x120   : > { %4023 = vmatmul.mubr.msk.bf16.gmra.mrb[120].mxu0 %vm669_vm2, %v4320_v36 }
 0x122   : > { %v4814_v1 = vpop.f32.mrb[16].mxu0  ;;  %v4816_v39 = vpop.f32.mrb[16].mxu1 }
 0x123   : > { %1515 = vrot.lane.b32.xlu1 %v4806_v35, %s4412_s18  ;;  %1393 = vrot.lane.b32.xlu0 %v4814_v1, %s4412_s18  ;;  %v3920_v40 = vpop.f32.mrb[17].mxu0  ;;  %v4044_v41 = vpop.f32.mrb[17].mxu1 }
 0x124   : > { %v4822_v42 = vpop.f32.mrb[18].mxu0  ;;  %v4824_v43 = vpop.f32.mrb[18].mxu1 }
 0x125   : > { %v3921_v44 = vpop.f32.mrb[19].mxu0  ;;  %v4045_v45 = vpop.f32.mrb[19].mxu1 }
 0x127   : > { %1517 = vrot.lane.b32.xlu0 %v4816_v39, %s4412_s18  ;;  %1395 = vrot.lane.b32.xlu1 %v4822_v42, %s4412_s18 }
 0x12a   : > { %v4830_v46 = vpop.f32.mrb[20].mxu0  ;;  %v4832_v47 = vpop.f32.mrb[20].mxu1 }
 0x12b   : > { %1519 = vrot.lane.b32.xlu1 %v4824_v43, %s4412_s18  ;;  %1397 = vrot.lane.b32.xlu0 %v4830_v46, %s4412_s18  ;;  %v3924_v48 = vpop.f32.mrb[21].mxu0  ;;  %v4048_v49 = vpop.f32.mrb[21].mxu1 }
 0x12c   : > { %v4838_v50 = vpop.f32.mrb[22].mxu0  ;;  %v4840_v51 = vpop.f32.mrb[22].mxu1 }
 0x12d   : > { %v3925_v52 = vpop.f32.mrb[23].mxu0  ;;  %v4049_v53 = vpop.f32.mrb[23].mxu1 }
 0x12f   : > { %1521 = vrot.lane.b32.xlu0 %v4832_v47, %s4412_s18  ;;  %1399 = vrot.lane.b32.xlu1 %v4838_v50, %s4412_s18 }
 0x132   : > { %v4846_v54 = vpop.f32.mrb[24].mxu0  ;;  %v4848_v55 = vpop.f32.mrb[24].mxu1 }
 0x133   : > { %1523 = vrot.lane.b32.xlu1 %v4840_v51, %s4412_s18  ;;  %1401 = vrot.lane.b32.xlu0 %v4846_v54, %s4412_s18  ;;  %v3928_v56 = vpop.f32.mrb[25].mxu0  ;;  %v4052_v57 = vpop.f32.mrb[25].mxu1 }
 0x134   : > { %v4854_v58 = vpop.f32.mrb[26].mxu0  ;;  %v4856_v59 = vpop.f32.mrb[26].mxu1 }
 0x135   : > { %v3929_v60 = vpop.f32.mrb[27].mxu0  ;;  %v4053_v61 = vpop.f32.mrb[27].mxu1 }
 0x137   : > { %1525 = vrot.lane.b32.xlu0 %v4848_v55, %s4412_s18  ;;  %1403 = vrot.lane.b32.xlu1 %v4854_v58, %s4412_s18 }
 0x13a   : > { %v4862_v62 = vpop.f32.mrb[28].mxu0  ;;  %v4864_v2 = vpop.f32.mrb[28].mxu1 }
 0x13b   : > { %1527 = vrot.lane.b32.xlu1 %v4856_v59, %s4412_s18  ;;  %1405 = vrot.lane.b32.xlu0 %v4862_v62, %s4412_s18  ;;  %v3932_v3 = vpop.f32.mrb[29].mxu0  ;;  %v4056_v4 = vpop.f32.mrb[29].mxu1 }
 0x13c   : > { %v4870_v7 = vpop.f32.mrb[30].mxu0  ;;  %v4872_v8 = vpop.f32.mrb[30].mxu1 }
 0x13d   : > { %v3933_v9 = vpop.f32.mrb[31].mxu0  ;;  %v4057_v12 = vpop.f32.mrb[31].mxu1 }
 0x13f   : > { %1529 = vrot.lane.b32.xlu0 %v4864_v2, %s4412_s18  ;;  %1407 = vrot.lane.b32.xlu1 %v4870_v7, %s4412_s18 }
 0x142   : > { %v4878_v13 = vpop.f32.mrb[32].mxu0  ;;  %v4880_v16 = vpop.f32.mrb[32].mxu1 }
 0x143   : > { %6970 = vst [vmem:[#allocation3_spill] sm:$0xff] %v4878_v13  ;;  %6971 = vst [vmem:[#allocation4_spill] sm:$0xff] %v4880_v16  ;;  %1531 = vrot.lane.b32.xlu1 %v4872_v8, %s4412_s18  ;;  %1409 = vrot.lane.b32.xlu0 %v4878_v13, %s4412_s18  ;;  %v3936_v17 = vpop.f32.mrb[33].mxu0  ;;  %v4060_v18 = vpop.f32.mrb[33].mxu1 }
 0x144   : > { %v4886_v19 = vpop.f32.mrb[34].mxu0  ;;  %v4888_v22 = vpop.f32.mrb[34].mxu1 }
 0x145   : > { %6972 = vst [vmem:[#allocation5_spill] sm:$0xff] %v4886_v19  ;;  %6973 = vst [vmem:[#allocation6_spill] sm:$0xff] %v4888_v22  ;;  %v3937_v23 = vpop.f32.mrb[35].mxu0  ;;  %v4061_v26 = vpop.f32.mrb[35].mxu1 }
 0x147   : > { %1533 = vrot.lane.b32.xlu0 %v4880_v16, %s4412_s18  ;;  %1411 = vrot.lane.b32.xlu1 %v4886_v19, %s4412_s18 }
 0x14a   : > { %v4894_v27 = vpop.f32.mrb[36].mxu0  ;;  %v4896_v28 = vpop.f32.mrb[36].mxu1 }
 0x14b   : > { %6974 = vst [vmem:[#allocation7_spill] sm:$0xff] %v4894_v27  ;;  %6975 = vst [vmem:[#allocation8_spill] sm:$0xff] %v4896_v28  ;;  %1535 = vrot.lane.b32.xlu1 %v4888_v22, %s4412_s18  ;;  %1413 = vrot.lane.b32.xlu0 %v4894_v27, %s4412_s18  ;;  %v3940_v29 = vpop.f32.mrb[37].mxu0  ;;  %v4064_v32 = vpop.f32.mrb[37].mxu1 }
 0x14c   : > { %v4902_v33 = vpop.f32.mrb[38].mxu0  ;;  %v4904_v36 = vpop.f32.mrb[38].mxu1 }
 0x14d   : > { %6976 = vst [vmem:[#allocation9_spill] sm:$0xff] %v4902_v33  ;;  %6977 = vst [vmem:[#allocation10_spill] sm:$0xff] %v4904_v36  ;;  %v3941_v37 = vpop.f32.mrb[39].mxu0  ;;  %v4065_v38 = vpop.f32.mrb[39].mxu1 }
 0x14f   : > { %1537 = vrot.lane.b32.xlu0 %v4896_v28, %s4412_s18  ;;  %1415 = vrot.lane.b32.xlu1 %v4902_v33, %s4412_s18 }
 0x152   : > { %v4910_v40 = vpop.f32.mrb[40].mxu0  ;;  %v4912_v41 = vpop.f32.mrb[40].mxu1 }
 0x153   : > { %6978 = vst [vmem:[#allocation11_spill] sm:$0xff] %v4910_v40  ;;  %6979 = vst [vmem:[#allocation12_spill] sm:$0xff] %v4912_v41  ;;  %1539 = vrot.lane.b32.xlu1 %v4904_v36, %s4412_s18  ;;  %1417 = vrot.lane.b32.xlu0 %v4910_v40, %s4412_s18  ;;  %v3944_v44 = vpop.f32.mrb[41].mxu0  ;;  %v4068_v45 = vpop.f32.mrb[41].mxu1 }
 0x154   : > { %v4918_v48 = vpop.f32.mrb[42].mxu0  ;;  %v4920_v49 = vpop.f32.mrb[42].mxu1 }
 0x155   : > { %6980 = vst [vmem:[#allocation13_spill] sm:$0xff] %v4918_v48  ;;  %6981 = vst [vmem:[#allocation14_spill] sm:$0xff] %v4920_v49  ;;  %v3945_v52 = vpop.f32.mrb[43].mxu0  ;;  %v4069_v53 = vpop.f32.mrb[43].mxu1 }
 0x157   : > { %1541 = vrot.lane.b32.xlu0 %v4912_v41, %s4412_s18  ;;  %1419 = vrot.lane.b32.xlu1 %v4918_v48, %s4412_s18 }
 0x15a   : > { %v4926_v56 = vpop.f32.mrb[44].mxu0  ;;  %v4928_v57 = vpop.f32.mrb[44].mxu1 }
 0x15b   : > { %6982 = vst [vmem:[#allocation15_spill] sm:$0xff] %v4926_v56  ;;  %6983 = vst [vmem:[#allocation16_spill] sm:$0xff] %v4928_v57  ;;  %1543 = vrot.lane.b32.xlu1 %v4920_v49, %s4412_s18  ;;  %1421 = vrot.lane.b32.xlu0 %v4926_v56, %s4412_s18  ;;  %v3948_v60 = vpop.f32.mrb[45].mxu0  ;;  %v4072_v61 = vpop.f32.mrb[45].mxu1 }
 0x15c   : > { %v4934_v3 = vpop.f32.mrb[46].mxu0  ;;  %v4936_v4 = vpop.f32.mrb[46].mxu1 }
 0x15d   : > { %6984 = vst [vmem:[#allocation17_spill] sm:$0xff] %v4934_v3  ;;  %6985 = vst [vmem:[#allocation18_spill] sm:$0xff] %v4936_v4  ;;  %v3949_v9 = vpop.f32.mrb[47].mxu0  ;;  %v4073_v12 = vpop.f32.mrb[47].mxu1 }
 0x15f   : > { %1545 = vrot.lane.b32.xlu0 %v4928_v57, %s4412_s18  ;;  %1423 = vrot.lane.b32.xlu1 %v4934_v3, %s4412_s18 }
 0x162   : > { %v4942_v17 = vpop.f32.mrb[48].mxu0  ;;  %v4944_v18 = vpop.f32.mrb[48].mxu1 }
 0x163   : > { %6986 = vst [vmem:[#allocation19_spill] sm:$0xff] %v4942_v17  ;;  %6987 = vst [vmem:[#allocation20_spill] sm:$0xff] %v4944_v18  ;;  %1547 = vrot.lane.b32.xlu1 %v4936_v4, %s4412_s18  ;;  %1425 = vrot.lane.b32.xlu0 %v4942_v17, %s4412_s18  ;;  %v3952_v23 = vpop.f32.mrb[49].mxu0  ;;  %v4076_v26 = vpop.f32.mrb[49].mxu1 }
 0x164   : > { %v4950_v29 = vpop.f32.mrb[50].mxu0  ;;  %v4952_v32 = vpop.f32.mrb[50].mxu1 }
 0x165   : > { %6988 = vst [vmem:[#allocation21_spill] sm:$0xff] %v4950_v29  ;;  %6989 = vst [vmem:[#allocation22_spill] sm:$0xff] %v4952_v32  ;;  %v3953_v37 = vpop.f32.mrb[51].mxu0  ;;  %v4077_v38 = vpop.f32.mrb[51].mxu1 }
 0x167   : > { %1549 = vrot.lane.b32.xlu0 %v4944_v18, %s4412_s18  ;;  %1427 = vrot.lane.b32.xlu1 %v4950_v29, %s4412_s18 }
 0x16a   : > { %v4958_v44 = vpop.f32.mrb[52].mxu0  ;;  %v4960_v45 = vpop.f32.mrb[52].mxu1 }
 0x16b   : > { %6990 = vst [vmem:[#allocation23_spill] sm:$0xff] %v4958_v44  ;;  %6991 = vst [vmem:[#allocation24_spill] sm:$0xff] %v4960_v45  ;;  %1551 = vrot.lane.b32.xlu1 %v4952_v32, %s4412_s18  ;;  %1429 = vrot.lane.b32.xlu0 %v4958_v44, %s4412_s18  ;;  %v3956_v52 = vpop.f32.mrb[53].mxu0  ;;  %v4080_v53 = vpop.f32.mrb[53].mxu1 }
 0x16c   : > { %v4966_v60 = vpop.f32.mrb[54].mxu0  ;;  %v4968_v61 = vpop.f32.mrb[54].mxu1 }
 0x16d   : > { %6992 = vst [vmem:[#allocation25_spill] sm:$0xff] %v4966_v60  ;;  %6993 = vst [vmem:[#allocation26_spill] sm:$0xff] %v4968_v61  ;;  %v3957_v9 = vpop.f32.mrb[55].mxu0  ;;  %v4081_v12 = vpop.f32.mrb[55].mxu1 }
 0x16f   : > { %1553 = vrot.lane.b32.xlu0 %v4960_v45, %s4412_s18  ;;  %1431 = vrot.lane.b32.xlu1 %v4966_v60, %s4412_s18 }
 0x172   : > { %v4974_v23 = vpop.f32.mrb[56].mxu0  ;;  %v4976_v26 = vpop.f32.mrb[56].mxu1 }
 0x173   : > { %6994 = vst [vmem:[#allocation27_spill] sm:$0xff] %v4974_v23  ;;  %6995 = vst [vmem:[#allocation28_spill] sm:$0xff] %v4976_v26  ;;  %1555 = vrot.lane.b32.xlu1 %v4968_v61, %s4412_s18  ;;  %1433 = vrot.lane.b32.xlu0 %v4974_v23, %s4412_s18  ;;  %v3960_v37 = vpop.f32.mrb[57].mxu0  ;;  %v4084_v38 = vpop.f32.mrb[57].mxu1 }
 0x174   : > { %v4982_v52 = vpop.f32.mrb[58].mxu0  ;;  %v4984_v53 = vpop.f32.mrb[58].mxu1 }
 0x175   : > { %6996 = vst [vmem:[#allocation29_spill] sm:$0xff] %v4982_v52  ;;  %6997 = vst [vmem:[#allocation30_spill] sm:$0xff] %v4984_v53  ;;  %v1378_v9 = vpop.permute.xlu0 %1377  ;;  %v3961_v12 = vpop.f32.mrb[59].mxu0 }
 0x176   : > { %v4085_v45 = vpop.f32.mrb[59].mxu1  ;;  %v5001_v12 = vmax.f32 %v4728_v63, %v1378_v9 }
 0x177   : > { %1557 = vrot.lane.b32.xlu0 %v4976_v26, %s4412_s18  ;;  %1435 = vrot.lane.b32.xlu1 %v4982_v52, %s4412_s18  ;;  %v1504_v60 = vpop.permute.xlu1 %1503 }
 0x178   : > { %v5014_v9 = vmax.f32 %v4737_v6, %v1504_v60 }
 0x179   : > { %v1502_v61 = vpop.permute.xlu0 %1501 }
 0x17a   : > { %v4990_v44 = vpop.f32.mrb[60].mxu0  ;;  %v4992_v23 = vpop.f32.mrb[60].mxu1 }
 0x17b   : > { %6998 = vst [vmem:[#allocation31_spill] sm:$0xff] %v4990_v44  ;;  %6999 = vst [vmem:[#allocation32_spill] sm:$0xff] %v4992_v23  ;;  %1559 = vrot.lane.b32.xlu1 %v4984_v53, %s4412_s18  ;;  %v3964_v37 = vpop.f32.mrb[61].mxu0  ;;  %v4088_v38 = vpop.f32.mrb[61].mxu1 }
 0x17c   : > { %v4996_v32 = vpop.f32.mrb[62].mxu0  ;;  %v4998_v45 = vpop.f32.mrb[62].mxu1  ;;  %v5011_v37 = vmax.f32 %v4730_v0, %v1502_v61 }
 0x17d   : > { %7000 = vst [vmem:[#allocation33_spill] sm:$0xff] %v4996_v32  ;;  %7001 = vst [vmem:[#allocation34_spill] sm:$0xff] %v4998_v45  ;;  %v1380_v26 = vpop.permute.xlu0 %1379  ;;  %v1382_v52 = vpop.permute.xlu1 %1381 }
 0x17e   : > { %v5004_v18 = vmax.f32 %v4735_v5, %v1380_v26  ;;  %v3965_v29 = vpop.f32.mrb[63].mxu0  ;;  %v4089_v17 = vpop.f32.mrb[63].mxu1 }
 0x17f   : > { %1740 = vrot.lane.b32.xlu1 %v5001_v12, %s4413_s21 }
 0x180   : > { %1742 = vrot.lane.b32.xlu0 %v5004_v18, %s4413_s21 }
 0x181   : > { %v1506_v38 = vpop.permute.xlu0 %1505  ;;  %v1384_v63 = vpop.permute.xlu1 %1383 }
 0x182   : > { %v5016_v53 = vpop.f32.mrb[64].mxu0  ;;  %v5018_v5 = vpop.f32.mrb[64].mxu1  ;;  %v5050_v48 = vmax.f32 %v4758_v14, %v1384_v63 }
 0x183   : > { %7002 = vst [vmem:[#allocation35_spill] sm:$0xff] %v5016_v53  ;;  %7003 = vst [vmem:[#allocation36_spill] sm:$0xff] %v5018_v5  ;;  %1864 = vrot.lane.b32.xlu1 %v5011_v37, %s4413_s21  ;;  %v3968_v17 = vpop.f32.mrb[65].mxu0  ;;  %v4092_v29 = vpop.f32.mrb[65].mxu1 }
 0x184   : > { %1866 = vrot.lane.b32.xlu0 %v5014_v9, %s4413_s21  ;;  %v5024_v26 = vpop.f32.mrb[66].mxu0  ;;  %v5026_v0 = vpop.f32.mrb[66].mxu1  ;;  %7011 = vst [vmem:[#allocation44_spill] sm:$0xff] %v5050_v48 }
 0x185   : > { %7004 = vst [vmem:[#allocation37_spill] sm:$0xff] %v5024_v26  ;;  %7005 = vst [vmem:[#allocation38_spill] sm:$0xff] %v5026_v0  ;;  %v1508_v61 = vpop.permute.xlu1 %1507  ;;  %v1386_v4 = vpop.permute.xlu0 %1385 }
 0x186   : > { %v3969_v6 = vpop.f32.mrb[67].mxu0  ;;  %v4093_v60 = vpop.f32.mrb[67].mxu1 }
 0x187   : > { %1439 = vrot.lane.b32.xlu1 %v4996_v32, %s4412_s18  ;;  %v5045_v32 = vmax.f32 %v4750_v10, %v1382_v52  ;;  %v5064_v52 = vmax.f32 %v4760_v15, %v1508_v61 }
 0x188   : > { %1437 = vrot.lane.b32.xlu0 %v4990_v44, %s4412_s18 }
 0x189   : > { %v1510_v57 = vpop.permute.xlu0 %1509  ;;  %v1388_v17 = vpop.permute.xlu1 %1387  ;;  %7010 = vst [vmem:[#allocation43_spill] sm:$0xff] %v5045_v32  ;;  %7013 = vst [vmem:[#allocation46_spill] sm:$0xff] %v5064_v52 }
 0x18a   : > { %v5032_v29 = vpop.f32.mrb[68].mxu0  ;;  %v5034_v3 = vpop.f32.mrb[68].mxu1 }
 0x18b   : > { %7006 = vst [vmem:[#allocation39_spill] sm:$0xff] %v5032_v29  ;;  %7007 = vst [vmem:[#allocation40_spill] sm:$0xff] %v5034_v3  ;;  %1563 = vrot.lane.b32.xlu1 %v4998_v45, %s4412_s18  ;;  %v3972_v56 = vpop.f32.mrb[69].mxu0  ;;  %v4096_v49 = vpop.f32.mrb[69].mxu1 }
 0x18c   : > { %1561 = vrot.lane.b32.xlu0 %v4992_v23, %s4412_s18  ;;  %v5040_v6 = vpop.f32.mrb[70].mxu0  ;;  %v5042_v60 = vpop.f32.mrb[70].mxu1  ;;  %v5057_v49 = vmax.f32 %v4752_v11, %v1506_v38 }
 0x18d   : > { %7008 = vst [vmem:[#allocation41_spill] sm:$0xff] %v5040_v6  ;;  %7009 = vst [vmem:[#allocation42_spill] sm:$0xff] %v5042_v60  ;;  %v1512_v44 = vpop.permute.xlu1 %1511  ;;  %v5047_v41 = vpop.permute.xlu0 %1389 }
 0x18e   : > { %v3973_v40 = vpop.f32.mrb[71].mxu0  ;;  %v4097_v45 = vpop.f32.mrb[71].mxu1  ;;  %7012 = vst [vmem:[#allocation45_spill] sm:$0xff] %v5057_v49 }
 0x18f   : > { %1744 = vrot.lane.b32.xlu1 %v5045_v32, %s4413_s21 }
 0x190   : > { %1746 = vrot.lane.b32.xlu0 %v5050_v48, %s4413_s21  ;;  %v5110_v48 = vmax.f32 %v4782_v24, %v1388_v17 }
 0x191   : > { %v5059_v56 = vpop.permute.xlu0 %1513  ;;  %v5061_v10 = vpop.permute.xlu1 %1391 }
 0x192   : > { %v5066_v14 = vpop.f32.mrb[72].mxu0  ;;  %v5068_v40 = vpop.f32.mrb[72].mxu1  ;;  %7023 = vst [vmem:[#allocation56_spill] sm:$0xff] %v5110_v48 }
 0x193   : > { %7014 = vst [vmem:[#allocation47_spill] sm:$0xff] %v5066_v14  ;;  %7015 = vst [vmem:[#allocation48_spill] sm:$0xff] %v5068_v40  ;;  %1868 = vrot.lane.b32.xlu1 %v5057_v49, %s4413_s21  ;;  %v3976_v45 = vpop.f32.mrb[73].mxu0  ;;  %v4100_v63 = vpop.f32.mrb[73].mxu1 }
 0x194   : > { %1870 = vrot.lane.b32.xlu0 %v5064_v52, %s4413_s21  ;;  %v5074_v11 = vpop.f32.mrb[74].mxu0  ;;  %v5076_v38 = vpop.f32.mrb[74].mxu1 }
 0x195   : > { %7016 = vst [vmem:[#allocation49_spill] sm:$0xff] %v5074_v11  ;;  %7017 = vst [vmem:[#allocation50_spill] sm:$0xff] %v5076_v38  ;;  %v5078_v23 = vpop.permute.xlu1 %1515  ;;  %v5080_v15 = vpop.permute.xlu0 %1393 }
 0x196   : > { %v3977_v61 = vpop.f32.mrb[75].mxu0  ;;  %v4101_v36 = vpop.f32.mrb[75].mxu1 }
 0x197   : > { %1443 = vrot.lane.b32.xlu1 %v5024_v26, %s4412_s18 }
 0x198   : > { %1441 = vrot.lane.b32.xlu0 %v5016_v53, %s4412_s18  ;;  %v5103_v53 = vmax.f32 %v4774_v20, %v1386_v4 }
 0x199   : > { %v5086_v45 = vpop.permute.xlu0 %1517  ;;  %v5088_v63 = vpop.permute.xlu1 %1395 }
 0x19a   : > { %v5090_v28 = vpop.f32.mrb[76].mxu0  ;;  %v5092_v33 = vpop.f32.mrb[76].mxu1  ;;  %7022 = vst [vmem:[#allocation55_spill] sm:$0xff] %v5103_v53 }
 0x19b   : > { %7018 = vst [vmem:[#allocation51_spill] sm:$0xff] %v5090_v28  ;;  %7019 = vst [vmem:[#allocation52_spill] sm:$0xff] %v5092_v33  ;;  %1567 = vrot.lane.b32.xlu1 %v5026_v0, %s4412_s18  ;;  %v3980_v27 = vpop.f32.mrb[77].mxu0  ;;  %v4104_v61 = vpop.f32.mrb[77].mxu1 }
 0x19c   : > { %1565 = vrot.lane.b32.xlu0 %v5018_v5, %s4412_s18  ;;  %v5098_v36 = vpop.f32.mrb[78].mxu0  ;;  %v5100_v26 = vpop.f32.mrb[78].mxu1  ;;  %v5117_v61 = vmax.f32 %v4776_v21, %v1510_v57  ;;  %v5124_v5 = vmax.f32 %v4784_v25, %v1512_v44 }
 0x19d   : > { %7020 = vst [vmem:[#allocation53_spill] sm:$0xff] %v5098_v36  ;;  %7021 = vst [vmem:[#allocation54_spill] sm:$0xff] %v5100_v26  ;;  %v5105_v52 = vpop.permute.xlu1 %1519  ;;  %v5107_v49 = vpop.permute.xlu0 %1397 }
 0x19e   : > { %v3981_v0 = vpop.f32.mrb[79].mxu0  ;;  %v4105_v27 = vpop.f32.mrb[79].mxu1  ;;  %7024 = vst [vmem:[#allocation57_spill] sm:$0xff] %v5117_v61  ;;  %7025 = vst [vmem:[#allocation58_spill] sm:$0xff] %v5124_v5 }
 0x19f   : > { %1748 = vrot.lane.b32.xlu1 %v5103_v53, %s4413_s21 }
 0x1a0   : > { %1750 = vrot.lane.b32.xlu0 %v5110_v48, %s4413_s21 }
 0x1a1   : > { %v5119_v20 = vpop.permute.xlu0 %1521  ;;  %v5121_v4 = vpop.permute.xlu1 %1399 }
 0x1a2   : > { %v5126_v24 = vpop.f32.mrb[80].mxu0  ;;  %v5128_v0 = vpop.f32.mrb[80].mxu1 }
 0x1a3   : > { %7026 = vst [vmem:[#allocation59_spill] sm:$0xff] %v5126_v24  ;;  %7027 = vst [vmem:[#allocation60_spill] sm:$0xff] %v5128_v0  ;;  %1872 = vrot.lane.b32.xlu1 %v5117_v61, %s4413_s21  ;;  %v3984_v17 = vpop.f32.mrb[81].mxu0  ;;  %v4108_v27 = vpop.f32.mrb[81].mxu1 }
 0x1a4   : > { %1874 = vrot.lane.b32.xlu0 %v5124_v5, %s4413_s21  ;;  %v5134_v21 = vpop.f32.mrb[82].mxu0  ;;  %v5136_v57 = vpop.f32.mrb[82].mxu1 }
 0x1a5   : > { %7028 = vst [vmem:[#allocation61_spill] sm:$0xff] %v5134_v21  ;;  %7029 = vst [vmem:[#allocation62_spill] sm:$0xff] %v5136_v57  ;;  %v5138_v48 = vpop.permute.xlu1 %1523  ;;  %v5140_v25 = vpop.permute.xlu0 %1401 }
 0x1a6   : > { %v3985_v44 = vpop.f32.mrb[83].mxu0  ;;  %v4109_v53 = vpop.f32.mrb[83].mxu1 }
 0x1a7   : > { %1447 = vrot.lane.b32.xlu1 %v5040_v6, %s4412_s18 }
 0x1a8   : > { %1445 = vrot.lane.b32.xlu0 %v5032_v29, %s4412_s18  ;;  %v5164_v29 = vmax.f32 %v4796_v30, %v5047_v41  ;;  %v5180_v30 = vmax.f32 %v4798_v31, %v5059_v56 }
 0x1a9   : > { %v5146_v17 = vpop.permute.xlu0 %1525  ;;  %v5148_v27 = vpop.permute.xlu1 %1403 }
 0x1aa   : > { %v5150_v5 = vpop.f32.mrb[84].mxu0  ;;  %v5152_v61 = vpop.f32.mrb[84].mxu1  ;;  %7034 = vst [vmem:[#allocation67_spill] sm:$0xff] %v5164_v29  ;;  %7036 = vst [vmem:[#allocation69_spill] sm:$0xff] %v5180_v30 }
 0x1ab   : > { %7030 = vst [vmem:[#allocation63_spill] sm:$0xff] %v5150_v5  ;;  %7031 = vst [vmem:[#allocation64_spill] sm:$0xff] %v5152_v61  ;;  %1571 = vrot.lane.b32.xlu1 %v5042_v60, %s4412_s18  ;;  %v3988_v32 = vpop.f32.mrb[85].mxu0  ;;  %v4112_v44 = vpop.f32.mrb[85].mxu1  ;;  %v5172_v60 = vmax.f32 %v4804_v34, %v5061_v10  ;;  %v5188_v34 = vmax.f32 %v4806_v35, %v5078_v23 }
 0x1ac   : > { %1569 = vrot.lane.b32.xlu0 %v5034_v3, %s4412_s18  ;;  %v5158_v53 = vpop.f32.mrb[86].mxu0  ;;  %v5160_v6 = vpop.f32.mrb[86].mxu1 }
 0x1ad   : > { %7032 = vst [vmem:[#allocation65_spill] sm:$0xff] %v5158_v53  ;;  %7033 = vst [vmem:[#allocation66_spill] sm:$0xff] %v5160_v6  ;;  %v5166_v22 = vpop.permute.xlu1 %1527  ;;  %v5168_v16 = vpop.permute.xlu0 %1405 }
 0x1ae   : > { %7035 = vst [vmem:[#allocation68_spill] sm:$0xff] %v5172_v60  ;;  %v3989_v32 = vpop.f32.mrb[87].mxu0  ;;  %v4113_v44 = vpop.f32.mrb[87].mxu1  ;;  %7037 = vst [vmem:[#allocation70_spill] sm:$0xff] %v5188_v34 }
 0x1af   : > { %1752 = vrot.lane.b32.xlu1 %v5164_v29, %s4413_s21 }
 0x1b0   : > { %1754 = vrot.lane.b32.xlu0 %v5172_v60, %s4413_s21 }
 0x1b1   : > { %v5182_v41 = vpop.permute.xlu0 %1529  ;;  %v5184_v3 = vpop.permute.xlu1 %1407 }
 0x1b2   : > { %v5190_v10 = vpop.f32.mrb[88].mxu0  ;;  %v5192_v32 = vpop.f32.mrb[88].mxu1 }
 0x1b3   : > { %7038 = vst [vmem:[#allocation71_spill] sm:$0xff] %v5190_v10  ;;  %7039 = vst [vmem:[#allocation72_spill] sm:$0xff] %v5192_v32  ;;  %1876 = vrot.lane.b32.xlu1 %v5180_v30, %s4413_s21  ;;  %v3992_v44 = vpop.f32.mrb[89].mxu0  ;;  %v4116_v60 = vpop.f32.mrb[89].mxu1 }
 0x1b4   : > { %1878 = vrot.lane.b32.xlu0 %v5188_v34, %s4413_s21  ;;  %v5198_v31 = vpop.f32.mrb[90].mxu0  ;;  %v5200_v56 = vpop.f32.mrb[90].mxu1 }
 0x1b5   : > { %7040 = vst [vmem:[#allocation73_spill] sm:$0xff] %v5198_v31  ;;  %7041 = vst [vmem:[#allocation74_spill] sm:$0xff] %v5200_v56  ;;  %v5202_v29 = vpop.permute.xlu1 %1531  ;;  %v5204_v35 = vpop.permute.xlu0 %1409 }
 0x1b6   : > { %v3993_v23 = vpop.f32.mrb[91].mxu0  ;;  %v4117_v19 = vpop.f32.mrb[91].mxu1 }
 0x1b7   : > { %1451 = vrot.lane.b32.xlu1 %v5074_v11, %s4412_s18 }
 0x1b8   : > { %1449 = vrot.lane.b32.xlu0 %v5066_v14, %s4412_s18  ;;  %v5228_v14 = vmax.f32 %v4814_v1, %v5080_v15  ;;  %v5244_v1 = vmax.f32 %v4816_v39, %v5086_v45 }
 0x1b9   : > { %v5210_v60 = vpop.permute.xlu0 %1533  ;;  %v5212_v44 = vpop.permute.xlu1 %1411 }
 0x1ba   : > { %7042 = vst [vmem:[#allocation75_spill] sm:$0xff] %v5210_v60  ;;  %v5214_v34 = vpop.f32.mrb[92].mxu0  ;;  %v5216_v30 = vpop.f32.mrb[92].mxu1  ;;  %7047 = vst [vmem:[#allocation80_spill] sm:$0xff] %v5228_v14 }
 0x1bb   : > { %7043 = vst [vmem:[#allocation76_spill] sm:$0xff] %v5214_v34  ;;  %7044 = vst [vmem:[#allocation77_spill] sm:$0xff] %v5216_v30  ;;  %1575 = vrot.lane.b32.xlu1 %v5076_v38, %s4412_s18  ;;  %v3996_v13 = vpop.f32.mrb[93].mxu0  ;;  %v4120_v23 = vpop.f32.mrb[93].mxu1  ;;  %v5236_v38 = vmax.f32 %v4822_v42, %v5088_v63  ;;  %v5252_v42 = vmax.f32 %v4824_v43, %v5105_v52 }
 0x1bc   : > { %1573 = vrot.lane.b32.xlu0 %v5068_v40, %s4412_s18  ;;  %v5222_v19 = vpop.f32.mrb[94].mxu0  ;;  %v5224_v11 = vpop.f32.mrb[94].mxu1  ;;  %7049 = vst [vmem:[#allocation82_spill] sm:$0xff] %v5244_v1 }
 0x1bd   : > { %7045 = vst [vmem:[#allocation78_spill] sm:$0xff] %v5222_v19  ;;  %7046 = vst [vmem:[#allocation79_spill] sm:$0xff] %v5224_v11  ;;  %v5230_v60 = vpop.permute.xlu1 %1535  ;;  %v5232_v34 = vpop.permute.xlu0 %1413 }
 0x1be   : > { %7048 = vst [vmem:[#allocation81_spill] sm:$0xff] %v5236_v38  ;;  %v3997_v13 = vpop.f32.mrb[95].mxu0  ;;  %v4121_v23 = vpop.f32.mrb[95].mxu1  ;;  %7050 = vst [vmem:[#allocation83_spill] sm:$0xff] %v5252_v42 }
 0x1bf   : > { %1756 = vrot.lane.b32.xlu1 %v5228_v14, %s4413_s21 }
 0x1c0   : > { %1758 = vrot.lane.b32.xlu0 %v5236_v38, %s4413_s21 }
 0x1c1   : > { %v5246_v15 = vpop.permute.xlu0 %1537  ;;  %v5248_v40 = vpop.permute.xlu1 %1415 }
 0x1c2   : > { %v5254_v63 = vpop.f32.mrb[96].mxu0  ;;  %v5256_v13 = vpop.f32.mrb[96].mxu1 }
 0x1c3   : > { %7051 = vst [vmem:[#allocation84_spill] sm:$0xff] %v5254_v63  ;;  %7052 = vst [vmem:[#allocation85_spill] sm:$0xff] %v5256_v13  ;;  %1880 = vrot.lane.b32.xlu1 %v5244_v1, %s4413_s21  ;;  %v4000_v23 = vpop.f32.mrb[97].mxu0  ;;  %v4124_v38 = vpop.f32.mrb[97].mxu1 }
 0x1c4   : > { %1882 = vrot.lane.b32.xlu0 %v5252_v42, %s4413_s21  ;;  %v5262_v39 = vpop.f32.mrb[98].mxu0  ;;  %v5264_v45 = vpop.f32.mrb[98].mxu1 }
 0x1c5   : > { %7053 = vst [vmem:[#allocation86_spill] sm:$0xff] %v5262_v39  ;;  %7054 = vst [vmem:[#allocation87_spill] sm:$0xff] %v5264_v45  ;;  %v5266_v14 = vpop.permute.xlu1 %1539  ;;  %v5268_v43 = vpop.permute.xlu0 %1417 }
 0x1c6   : > { %7055 = vst [vmem:[#allocation88_spill] sm:$0xff] %v5268_v43  ;;  %v4001_v52 = vpop.f32.mrb[99].mxu0  ;;  %v4125_v63 = vpop.f32.mrb[99].mxu1 }
 0x1c7   : > { %1455 = vrot.lane.b32.xlu1 %v5098_v36, %s4412_s18 }
 0x1c8   : > { %1453 = vrot.lane.b32.xlu0 %v5090_v28, %s4412_s18  ;;  %v5292_v28 = vmax.f32 %v4830_v46, %v5107_v49  ;;  %v5308_v46 = vmax.f32 %v4832_v47, %v5119_v20 }
 0x1c9   : > { %v5274_v38 = vpop.permute.xlu0 %1541  ;;  %v5276_v23 = vpop.permute.xlu1 %1419 }
 0x1ca   : > { %7056 = vst [vmem:[#allocation89_spill] sm:$0xff] %v5274_v38  ;;  %v5278_v42 = vpop.f32.mrb[100].mxu0  ;;  %v5280_v1 = vpop.f32.mrb[100].mxu1  ;;  %7061 = vst [vmem:[#allocation94_spill] sm:$0xff] %v5292_v28 }
 0x1cb   : > { %7057 = vst [vmem:[#allocation90_spill] sm:$0xff] %v5278_v42  ;;  %7058 = vst [vmem:[#allocation91_spill] sm:$0xff] %v5280_v1  ;;  %1579 = vrot.lane.b32.xlu1 %v5100_v26, %s4412_s18  ;;  %v4004_v43 = vpop.f32.mrb[101].mxu0  ;;  %v4128_v52 = vpop.f32.mrb[101].mxu1  ;;  %v5300_v26 = vmax.f32 %v4838_v50, %v5121_v4  ;;  %v5316_v50 = vmax.f32 %v4840_v51, %v5138_v48 }
 0x1cc   : > { %1577 = vrot.lane.b32.xlu0 %v5092_v33, %s4412_s18  ;;  %v5286_v63 = vpop.f32.mrb[102].mxu0  ;;  %v5288_v36 = vpop.f32.mrb[102].mxu1  ;;  %7063 = vst [vmem:[#allocation96_spill] sm:$0xff] %v5308_v46 }
 0x1cd   : > { %7059 = vst [vmem:[#allocation92_spill] sm:$0xff] %v5286_v63  ;;  %7060 = vst [vmem:[#allocation93_spill] sm:$0xff] %v5288_v36  ;;  %v5294_v38 = vpop.permute.xlu1 %1543  ;;  %v5296_v42 = vpop.permute.xlu0 %1421 }
 0x1ce   : > { %7062 = vst [vmem:[#allocation95_spill] sm:$0xff] %v5300_v26  ;;  %v4005_v43 = vpop.f32.mrb[103].mxu0  ;;  %v4129_v52 = vpop.f32.mrb[103].mxu1  ;;  %7064 = vst [vmem:[#allocation97_spill] sm:$0xff] %v5316_v50 }
 0x1cf   : > { %1760 = vrot.lane.b32.xlu1 %v5292_v28, %s4413_s21 }
 0x1d0   : > { %1762 = vrot.lane.b32.xlu0 %v5300_v26, %s4413_s21 }
 0x1d1   : > { %v5310_v49 = vpop.permute.xlu0 %1545  ;;  %v5312_v33 = vpop.permute.xlu1 %1423 }
 0x1d2   : > { %v5318_v4 = vpop.f32.mrb[104].mxu0  ;;  %v5320_v43 = vpop.f32.mrb[104].mxu1 }
 0x1d3   : > { %7065 = vst [vmem:[#allocation98_spill] sm:$0xff] %v5318_v4  ;;  %7066 = vst [vmem:[#allocation99_spill] sm:$0xff] %v5320_v43  ;;  %1884 = vrot.lane.b32.xlu1 %v5308_v46, %s4413_s21  ;;  %v4008_v52 = vpop.f32.mrb[105].mxu0  ;;  %v4132_v26 = vpop.f32.mrb[105].mxu1 }
 0x1d4   : > { %1886 = vrot.lane.b32.xlu0 %v5316_v50, %s4413_s21  ;;  %v5326_v47 = vpop.f32.mrb[106].mxu0  ;;  %v5328_v20 = vpop.f32.mrb[106].mxu1 }
 0x1d5   : > { %7067 = vst [vmem:[#allocation100_spill] sm:$0xff] %v5326_v47  ;;  %7068 = vst [vmem:[#allocation101_spill] sm:$0xff] %v5328_v20  ;;  %v5330_v28 = vpop.permute.xlu1 %1547  ;;  %v5332_v51 = vpop.permute.xlu0 %1425 }
 0x1d6   : > { %v4009_v48 = vpop.f32.mrb[107].mxu0  ;;  %v4133_v4 = vpop.f32.mrb[107].mxu1 }
 0x1d7   : > { %1459 = vrot.lane.b32.xlu1 %v5134_v21, %s4412_s18  ;;  %v5354_v21 = vmax.f32 %v4846_v54, %v5140_v25  ;;  %v5372_v54 = vmax.f32 %v4848_v55, %v5146_v17 }
 0x1d8   : > { %1457 = vrot.lane.b32.xlu0 %v5126_v24, %s4412_s18 }
 0x1d9   : > { %v5338_v26 = vpop.permute.xlu0 %1549  ;;  %v5340_v52 = vpop.permute.xlu1 %1427  ;;  %7073 = vst [vmem:[#allocation106_spill] sm:$0xff] %v5354_v21 }
 0x1da   : > { %7069 = vst [vmem:[#allocation102_spill] sm:$0xff] %v5338_v26  ;;  %v5342_v50 = vpop.f32.mrb[108].mxu0 }
 0x1db   : > { %7070 = vst [vmem:[#allocation103_spill] sm:$0xff] %v5342_v50  ;;  %1583 = vrot.lane.b32.xlu1 %v5136_v57, %s4412_s18  ;;  %v4012_v46 = vpop.f32.mrb[109].mxu0  ;;  %v5346_v43 = vpop.f32.mrb[108].mxu1  ;;  %v5362_v57 = vmax.f32 %v4854_v58, %v5148_v27  ;;  %v5380_v58 = vmax.f32 %v4856_v59, %v5166_v22 }
 0x1dc   : > { %7071 = vst [vmem:[#allocation104_spill] sm:$0xff] %v5346_v43  ;;  %1581 = vrot.lane.b32.xlu0 %v5128_v0, %s4412_s18  ;;  %v5350_v4 = vpop.f32.mrb[110].mxu0  ;;  %v4136_v48 = vpop.f32.mrb[109].mxu1 }
 0x1dd   : > { %7072 = vst [vmem:[#allocation105_spill] sm:$0xff] %v5350_v4  ;;  %v5356_v24 = vpop.permute.xlu1 %1551  ;;  %v5358_v26 = vpop.permute.xlu0 %1429  ;;  %7074 = vst [vmem:[#allocation107_spill] sm:$0xff] %v5362_v57 }
 0x1de   : > { %v4013_v46 = vpop.f32.mrb[111].mxu0  ;;  %v5364_v43 = vpop.f32.mrb[110].mxu1 }
 0x1df   : > { %7075 = vst [vmem:[#allocation108_spill] sm:$0xff] %v5364_v43  ;;  %1764 = vrot.lane.b32.xlu1 %v5354_v21, %s4413_s21  ;;  %v4137_v0 = vpop.f32.mrb[111].mxu1 }
 0x1e0   : > { %1766 = vrot.lane.b32.xlu0 %v5362_v57, %s4413_s21 }
 0x1e1   : > { %v5374_v25 = vpop.permute.xlu0 %1553  ;;  %v5376_v48 = vpop.permute.xlu1 %1431 }
 0x1e3   : > { %1888 = vrot.lane.b32.xlu1 %v5372_v54, %s4413_s21  ;;  %v5384_v27 = vpop.f32.mrb[112].mxu0  ;;  %v5386_v0 = vpop.f32.mrb[112].mxu1 }
 0x1e4   : > { %7076 = vst [vmem:[#allocation109_spill] sm:$0xff] %v5384_v27  ;;  %7077 = vst [vmem:[#allocation110_spill] sm:$0xff] %v5386_v0  ;;  %1890 = vrot.lane.b32.xlu0 %v5380_v58, %s4413_s21  ;;  %v4016_v55 = vpop.f32.mrb[113].mxu0  ;;  %v4140_v17 = vpop.f32.mrb[113].mxu1 }
 0x1e5   : > { %v5390_v46 = vpop.permute.xlu1 %1555  ;;  %v5392_v57 = vpop.permute.xlu0 %1433 }
 0x1e6   : > { %7078 = vst [vmem:[#allocation111_spill] sm:$0xff] %v5392_v57  ;;  %v5394_v21 = vpop.f32.mrb[114].mxu0  ;;  %v5396_v59 = vpop.f32.mrb[114].mxu1 }
 0x1e7   : > { %7079 = vst [vmem:[#allocation112_spill] sm:$0xff] %v5394_v21  ;;  %7080 = vst [vmem:[#allocation113_spill] sm:$0xff] %v5396_v59  ;;  %1463 = vrot.lane.b32.xlu1 %v5158_v53, %s4412_s18  ;;  %v4017_v22 = vpop.f32.mrb[115].mxu0  ;;  %v4141_v27 = vpop.f32.mrb[115].mxu1  ;;  %v5416_v53 = vmax.f32 %v4862_v62, %v5168_v16  ;;  %v5433_v62 = vmax.f32 %v4864_v2, %v5182_v41  ;;  %v5438_v16 = vld [vmem:[%s6836_s2] ss:$0 sm:$0xff] }
 0x1e8   : > { %1461 = vrot.lane.b32.xlu0 %v5150_v5, %s4412_s18 }
 0x1e9   : > { %v5402_v0 = vpop.permute.xlu1 %1435  ;;  %v5404_v55 = vpop.permute.xlu0 %1557 }
 0x1ea   : > { %7081 = vst [vmem:[#allocation114_spill] sm:$0xff] %v5402_v0  ;;  %7082 = vst [vmem:[#allocation115_spill] sm:$0xff] %v5404_v55 }
 0x1eb   : > { %1587 = vrot.lane.b32.xlu1 %v5160_v6, %s4412_s18  ;;  %v5408_v17 = vpop.f32.mrb[116].mxu0  ;;  %v5410_v57 = vpop.f32.mrb[116].mxu1  ;;  %v5424_v6 = vmax.f32 %v4870_v7, %v5184_v3  ;;  %v5442_v3 = vmax.f32 %v4872_v8, %v5202_v29 }
 0x1ec   : > { %7083 = vst [vmem:[#allocation116_spill] sm:$0xff] %v5408_v17  ;;  %7084 = vst [vmem:[#allocation117_spill] sm:$0xff] %v5410_v57  ;;  %1585 = vrot.lane.b32.xlu0 %v5152_v61, %s4412_s18  ;;  %v4020_v22 = vpop.f32.mrb[117].mxu0  ;;  %v4144_v27 = vpop.f32.mrb[117].mxu1 }
 0x1ed   : > { %v5418_v5 = vpop.permute.xlu1 %1559  ;;  %v5420_v55 = vpop.f32.mrb[118].mxu0 }
 0x1ee   : > { %v4021_v17 = vpop.f32.mrb[119].mxu0  ;;  %v1374_v0 = vpop.f32.mrb[118].mxu1 }
 0x1ef   : > { %1768 = vrot.lane.b32.xlu1 %v5416_v53, %s4413_s21  ;;  %v4145_v61 = vpop.f32.mrb[119].mxu1 }
 0x1f0   : > { %1770 = vrot.lane.b32.xlu0 %v5424_v6, %s4413_s21 }
 0x1f1   : > { %v1741_v7 = vpop.permute.xlu1 %1740 }
 0x1f2   : > { %v1982_v61 = vmax.f32 %v5001_v12, %v1741_v7  ;;  %v1743_v0 = vpop.permute.xlu0 %1742 }
 0x1f3   : > { %v1983_v17 = vmax.f32 %v5004_v18, %v1743_v0  ;;  %1892 = vrot.lane.b32.xlu1 %v5433_v62, %s4413_s21  ;;  %v5448_v2 = vpop.f32.mrb[120].mxu0 }
 0x1f4   : > { %7085 = vst [vmem:[#allocation118_spill] sm:$0xff] %v5448_v2  ;;  %v2110_v41 = vadd.f32 %v5438_v16, %v1982_v61  ;;  %1894 = vrot.lane.b32.xlu0 %v5442_v3, %s4413_s21  ;;  %v4024_v22 = vpop.f32.mrb[121].mxu0 }
 0x1f5   : > { %v2111_v8 = vadd.f32 %v5438_v16, %v1983_v17  ;;  %v1865_v29 = vpop.permute.xlu1 %1864  ;;  %v5454_v27 = vpop.f32.mrb[122].mxu0 }
 0x1f6   : > { %7086 = vst [vmem:[#allocation119_spill] sm:$0xff] %v5454_v27  ;;  %v2231_v12 = vmax.f32 %v2110_v41, 0.0  ;;  %v2044_v7 = vmax.f32 %v5011_v37, %v1865_v29  ;;  %v1867_v18 = vpop.permute.xlu0 %1866  ;;  %v4025_v0 = vpop.f32.mrb[123].mxu0 }
 0x1f7   : > { %v2232_v57 = vmax.f32 %v2111_v8, 0.0  ;;  %v2045_v2 = vmax.f32 %v5014_v9, %v1867_v18  ;;  %1467 = vrot.lane.b32.xlu1 %v5198_v31, %s4412_s18  ;;  %v7088_v18 = vld [vmem:[#allocation5_spill] sm:$0xff] }
 0x1f8   : > { %v3696_v61 = vpack.c.bf16 %v2231_v12, %v2231_v12  ;;  %v2172_v22 = vadd.f32 %v5438_v16, %v2044_v7  ;;  %1465 = vrot.lane.b32.xlu0 %v5190_v10, %s4412_s18  ;;  %v5486_v0 = vmax.f32 %v7088_v18, %v5212_v44  ;;  %v7091_v44 = vld [vmem:[#allocation6_spill] sm:$0xff]  ;;  %v7094_v18 = vld [vmem:[#allocation44_spill] sm:$0xff] }
 0x1f9   : > { %v3697_v17 = vpack.c.bf16 %v2232_v57, %v2232_v57  ;;  %v2173_v41 = vadd.f32 %v5438_v16, %v2045_v2  ;;  %v5464_v27 = vpop.permute.xlu1 %1439  ;;  %v7087_v2 = vld [vmem:[#allocation3_spill] sm:$0xff]  ;;  %v7097_v10 = vld [vmem:[#allocation76_spill] sm:$0xff] }
 0x1fa   : > { %2838 = vst.msk [vmem:[%s5466_s12] sm:$0xf] %vm2837_vm3, %v3696_v61  ;;  %v2293_v37 = vmax.f32 %v2172_v22, 0.0  ;;  %v5470_v9 = vpop.permute.xlu0 %1437  ;;  %v5480_v29 = vmax.f32 %v7087_v2, %v5204_v35  ;;  %v7089_v35 = vld [vmem:[#allocation75_spill] sm:$0xff]  ;;  %v7090_v22 = vld [vmem:[#allocation4_spill] sm:$0xff] }
 0x1fb   : > { %2839 = vst.msk [vmem:[%s5466_s12 + $0x4] sm:$0xf] %vm2837_vm3, %v3697_v17  ;;  %v2294_v8 = vmax.f32 %v2173_v41, 0.0  ;;  %1591 = vrot.lane.b32.xlu1 %v5200_v56, %s4412_s18  ;;  %v5500_v17 = vmax.f32 %v7090_v22, %v7089_v35 }
 0x1fc   : > { %v3758_v57 = vpack.c.bf16 %v2293_v37, %v2293_v37  ;;  %1589 = vrot.lane.b32.xlu0 %v5192_v32, %s4412_s18  ;;  %v5504_v37 = vmax.f32 %v7091_v44, %v5230_v60  ;;  %v7095_v44 = vld [vmem:[#allocation45_spill] sm:$0xff]  ;;  %v7096_v32 = vld [vmem:[#allocation46_spill] sm:$0xff] }
 0x1fd   : > { %v3759_v12 = vpack.c.bf16 %v2294_v8, %v2294_v8  ;;  %v5482_v7 = vpop.permute.xlu1 %1563  ;;  %v7093_v8 = vld [vmem:[#allocation43_spill] sm:$0xff] }
 0x1fe   : > { %2900 = vst.msk [vmem:[%s5466_s12 + $0xf8] sm:$0xf] %vm2837_vm3, %v3758_v57  ;;  %v5490_v61 = vpop.permute.xlu0 %1561  ;;  %7092 = vst [vmem:[#allocation3_spill] sm:$0xff] %v5504_v37 }
 0x1ff   : > { %2901 = vst.msk [vmem:[%s5466_s12 + $0xfc] sm:$0xf] %vm2837_vm3, %v3759_v12  ;;  %1772 = vrot.lane.b32.xlu1 %v5480_v29, %s4413_s21 }
 0x200   : > { %1774 = vrot.lane.b32.xlu0 %v5486_v0, %s4413_s21 }
 0x201   : > { %v1745_v41 = vpop.permute.xlu1 %1744 }
 0x202   : > { %v1984_v57 = vmax.f32 %v7093_v8, %v1745_v41  ;;  %v1747_v2 = vpop.permute.xlu0 %1746 }
 0x203   : > { %v1985_v12 = vmax.f32 %v7094_v18, %v1747_v2  ;;  %1896 = vrot.lane.b32.xlu1 %v5500_v17, %s4413_s21 }
 0x204   : > { %v2112_v56 = vadd.f32 %v5438_v16, %v1984_v57  ;;  %1898 = vrot.lane.b32.xlu0 %v5504_v37, %s4413_s21 }
 0x205   : > { %v2113_v35 = vadd.f32 %v5438_v16, %v1985_v12  ;;  %v1869_v22 = vpop.permute.xlu1 %1868 }
 0x206   : > { %v2233_v60 = vmax.f32 %v2112_v56, 0.0  ;;  %v2046_v31 = vmax.f32 %v7095_v44, %v1869_v22  ;;  %v1871_v41 = vpop.permute.xlu0 %1870 }
 0x207   : > { %v2234_v8 = vmax.f32 %v2113_v35, 0.0  ;;  %v2047_v2 = vmax.f32 %v7096_v32, %v1871_v41  ;;  %1471 = vrot.lane.b32.xlu1 %v5222_v19, %s4412_s18 }
 0x208   : > { %v3698_v18 = vpack.c.bf16 %v2233_v60, %v2233_v60  ;;  %v2174_v57 = vadd.f32 %v5438_v16, %v2046_v31  ;;  %1469 = vrot.lane.b32.xlu0 %v7097_v10, %s4412_s18  ;;  %v7098_v60 = vld [vmem:[#allocation7_spill] sm:$0xff]  ;;  %v7107_v10 = vld [vmem:[#allocation84_spill] sm:$0xff] }
 0x209   : > { %v3699_v12 = vpack.c.bf16 %v2234_v8, %v2234_v8  ;;  %v2175_v37 = vadd.f32 %v5438_v16, %v2047_v2  ;;  %v5522_v56 = vpop.permute.xlu1 %1443  ;;  %v5536_v44 = vmax.f32 %v7098_v60, %v5232_v34  ;;  %v7099_v2 = vld [vmem:[#allocation9_spill] sm:$0xff]  ;;  %v7100_v34 = vld [vmem:[#allocation8_spill] sm:$0xff] }
 0x20a   : > { %2840 = vst.msk [vmem:[%s5466_s12 + $0x8] sm:$0xf] %vm2837_vm3, %v3698_v18  ;;  %v2295_v35 = vmax.f32 %v2174_v57, 0.0  ;;  %v5526_v32 = vpop.permute.xlu0 %1441  ;;  %v5542_v18 = vmax.f32 %v7099_v2, %v5248_v40  ;;  %v5556_v57 = vmax.f32 %v7100_v34, %v5246_v15  ;;  %v7101_v40 = vld [vmem:[#allocation10_spill] sm:$0xff]  ;;  %v7104_v2 = vld [vmem:[#allocation56_spill] sm:$0xff] }
 0x20b   : > { %2841 = vst.msk [vmem:[%s5466_s12 + $0xc] sm:$0xf] %vm2837_vm3, %v3699_v12  ;;  %v2296_v22 = vmax.f32 %v2175_v37, 0.0  ;;  %1595 = vrot.lane.b32.xlu1 %v5224_v11, %s4412_s18 }
 0x20c   : > { %v3760_v31 = vpack.c.bf16 %v2295_v35, %v2295_v35  ;;  %1593 = vrot.lane.b32.xlu0 %v5216_v30, %s4412_s18  ;;  %v5560_v35 = vmax.f32 %v7101_v40, %v5266_v14  ;;  %v7105_v40 = vld [vmem:[#allocation57_spill] sm:$0xff]  ;;  %v7106_v30 = vld [vmem:[#allocation58_spill] sm:$0xff] }
 0x20d   : > { %v3761_v41 = vpack.c.bf16 %v2296_v22, %v2296_v22  ;;  %v5538_v8 = vpop.permute.xlu1 %1567  ;;  %v7103_v22 = vld [vmem:[#allocation55_spill] sm:$0xff] }
 0x20e   : > { %2902 = vst.msk [vmem:[%s5466_s12 + $0x100] sm:$0xf] %vm2837_vm3, %v3760_v31  ;;  %v5546_v37 = vpop.permute.xlu0 %1565  ;;  %7102 = vst [vmem:[#allocation5_spill] sm:$0xff] %v5560_v35 }
 0x20f   : > { %2903 = vst.msk [vmem:[%s5466_s12 + $0x104] sm:$0xf] %vm2837_vm3, %v3761_v41  ;;  %1776 = vrot.lane.b32.xlu1 %v5536_v44, %s4413_s21 }
 0x210   : > { %1778 = vrot.lane.b32.xlu0 %v5542_v18, %s4413_s21 }
 0x211   : > { %v1749_v12 = vpop.permute.xlu1 %1748 }
 0x212   : > { %v1986_v31 = vmax.f32 %v7103_v22, %v1749_v12  ;;  %v1751_v60 = vpop.permute.xlu0 %1750 }
 0x213   : > { %v1987_v41 = vmax.f32 %v7104_v2, %v1751_v60  ;;  %1900 = vrot.lane.b32.xlu1 %v5556_v57, %s4413_s21 }
 0x214   : > { %v2114_v11 = vadd.f32 %v5438_v16, %v1986_v31  ;;  %1902 = vrot.lane.b32.xlu0 %v5560_v35, %s4413_s21 }
 0x215   : > { %v2115_v15 = vadd.f32 %v5438_v16, %v1987_v41  ;;  %v1873_v34 = vpop.permute.xlu1 %1872 }
 0x216   : > { %v2235_v14 = vmax.f32 %v2114_v11, 0.0  ;;  %v2048_v19 = vmax.f32 %v7105_v40, %v1873_v34  ;;  %v1875_v12 = vpop.permute.xlu0 %1874  ;;  %v7109_v40 = vld [vmem:[#allocation11_spill] sm:$0xff] }
 0x217   : > { %v2236_v22 = vmax.f32 %v2115_v15, 0.0  ;;  %v2049_v60 = vmax.f32 %v7106_v30, %v1875_v12  ;;  %1475 = vrot.lane.b32.xlu1 %v5262_v39, %s4412_s18  ;;  %v7118_v39 = vld [vmem:[#allocation68_spill] sm:$0xff] }
 0x218   : > { %v3700_v2 = vpack.c.bf16 %v2235_v14, %v2235_v14  ;;  %v2176_v31 = vadd.f32 %v5438_v16, %v2048_v19  ;;  %1473 = vrot.lane.b32.xlu0 %v7107_v10, %s4412_s18  ;;  %v7108_v14 = vld [vmem:[#allocation88_spill] sm:$0xff] }
 0x219   : > { %v3701_v41 = vpack.c.bf16 %v2236_v22, %v2236_v22  ;;  %v2177_v35 = vadd.f32 %v5438_v16, %v2049_v60  ;;  %v5578_v11 = vpop.permute.xlu1 %1447  ;;  %v5592_v12 = vmax.f32 %v7109_v40, %v7108_v14 }
 0x21a   : > { %2842 = vst.msk [vmem:[%s5466_s12 + $0x10] sm:$0xf] %vm2837_vm3, %v3700_v2  ;;  %v2297_v15 = vmax.f32 %v2176_v31, 0.0  ;;  %v5582_v30 = vpop.permute.xlu0 %1445  ;;  %v7110_v2 = vld [vmem:[#allocation13_spill] sm:$0xff] }
 0x21b   : > { %2843 = vst.msk [vmem:[%s5466_s12 + $0x14] sm:$0xf] %vm2837_vm3, %v3701_v41  ;;  %v2298_v34 = vmax.f32 %v2177_v35, 0.0  ;;  %1599 = vrot.lane.b32.xlu1 %v5264_v45, %s4412_s18  ;;  %v5598_v31 = vmax.f32 %v7110_v2, %v5276_v23  ;;  %v7112_v41 = vld [vmem:[#allocation89_spill] sm:$0xff]  ;;  %v7115_v23 = vld [vmem:[#allocation14_spill] sm:$0xff] }
 0x21c   : > { %v3762_v19 = vpack.c.bf16 %v2297_v15, %v2297_v15  ;;  %1597 = vrot.lane.b32.xlu0 %v5256_v13, %s4412_s18  ;;  %v7113_v15 = vld [vmem:[#allocation12_spill] sm:$0xff]  ;;  %v5616_v40 = vmax.f32 %v7115_v23, %v5294_v38  ;;  %v7119_v23 = vld [vmem:[#allocation69_spill] sm:$0xff] }
 0x21d   : > { %v3763_v22 = vpack.c.bf16 %v2298_v34, %v2298_v34  ;;  %v5594_v60 = vpop.permute.xlu1 %1571  ;;  %7111 = vst [vmem:[#allocation75_spill] sm:$0xff] %v5598_v31  ;;  %v5612_v34 = vmax.f32 %v7113_v15, %v7112_v41 }
 0x21e   : > { %2904 = vst.msk [vmem:[%s5466_s12 + $0x108] sm:$0xf] %vm2837_vm3, %v3762_v19  ;;  %v5602_v35 = vpop.permute.xlu0 %1569  ;;  %7116 = vst [vmem:[#allocation6_spill] sm:$0xff] %v5616_v40  ;;  %v7117_v19 = vld [vmem:[#allocation67_spill] sm:$0xff] }
 0x21f   : > { %2905 = vst.msk [vmem:[%s5466_s12 + $0x10c] sm:$0xf] %vm2837_vm3, %v3763_v22  ;;  %1780 = vrot.lane.b32.xlu1 %v5592_v12, %s4413_s21  ;;  %7114 = vst [vmem:[#allocation4_spill] sm:$0xff] %v5612_v34 }
 0x220   : > { %1782 = vrot.lane.b32.xlu0 %v5598_v31, %s4413_s21  ;;  %v7120_v31 = vld [vmem:[#allocation70_spill] sm:$0xff] }
 0x221   : > { %v1753_v14 = vpop.permute.xlu1 %1752 }
 0x222   : > { %v1988_v2 = vmax.f32 %v7117_v19, %v1753_v14  ;;  %v1755_v45 = vpop.permute.xlu0 %1754 }
 0x223   : > { %v1989_v22 = vmax.f32 %v7118_v39, %v1755_v45  ;;  %1904 = vrot.lane.b32.xlu1 %v5612_v34, %s4413_s21  ;;  %v7121_v34 = vld [vmem:[#allocation90_spill] sm:$0xff] }
 0x224   : > { %v2116_v13 = vadd.f32 %v5438_v16, %v1988_v2  ;;  %1906 = vrot.lane.b32.xlu0 %v5616_v40, %s4413_s21 }
 0x225   : > { %v2117_v41 = vadd.f32 %v5438_v16, %v1989_v22  ;;  %v1877_v15 = vpop.permute.xlu1 %1876 }
 0x226   : > { %v2237_v38 = vmax.f32 %v2116_v13, 0.0  ;;  %v2050_v10 = vmax.f32 %v7119_v23, %v1877_v15  ;;  %v1879_v14 = vpop.permute.xlu0 %1878 }
 0x227   : > { %v2238_v19 = vmax.f32 %v2117_v41, 0.0  ;;  %v2051_v39 = vmax.f32 %v7120_v31, %v1879_v14  ;;  %1479 = vrot.lane.b32.xlu1 %v5286_v63, %s4412_s18 }
 0x228   : > { %v3702_v45 = vpack.c.bf16 %v2237_v38, %v2237_v38  ;;  %v2178_v2 = vadd.f32 %v5438_v16, %v2050_v10  ;;  %1477 = vrot.lane.b32.xlu0 %v7121_v34, %s4412_s18  ;;  %v7122_v38 = vld [vmem:[#allocation15_spill] sm:$0xff]  ;;  %v7131_v34 = vld [vmem:[#allocation98_spill] sm:$0xff] }
 0x229   : > { %v3703_v22 = vpack.c.bf16 %v2238_v19, %v2238_v19  ;;  %v2179_v40 = vadd.f32 %v5438_v16, %v2051_v39  ;;  %v5634_v13 = vpop.permute.xlu1 %1451  ;;  %v5648_v23 = vmax.f32 %v7122_v38, %v5296_v42  ;;  %v7123_v39 = vld [vmem:[#allocation17_spill] sm:$0xff]  ;;  %v7124_v42 = vld [vmem:[#allocation16_spill] sm:$0xff] }
 0x22a   : > { %2844 = vst.msk [vmem:[%s5466_s12 + $0x18] sm:$0xf] %vm2837_vm3, %v3702_v45  ;;  %v2299_v41 = vmax.f32 %v2178_v2, 0.0  ;;  %v5638_v31 = vpop.permute.xlu0 %1449  ;;  %v5654_v45 = vmax.f32 %v7123_v39, %v5312_v33  ;;  %v5668_v2 = vmax.f32 %v7124_v42, %v5310_v49  ;;  %v7125_v33 = vld [vmem:[#allocation18_spill] sm:$0xff]  ;;  %v7128_v39 = vld [vmem:[#allocation81_spill] sm:$0xff] }
 0x22b   : > { %2845 = vst.msk [vmem:[%s5466_s12 + $0x1c] sm:$0xf] %vm2837_vm3, %v3703_v22  ;;  %v2300_v15 = vmax.f32 %v2179_v40, 0.0  ;;  %1603 = vrot.lane.b32.xlu1 %v5288_v36, %s4412_s18 }
 0x22c   : > { %v3764_v10 = vpack.c.bf16 %v2299_v41, %v2299_v41  ;;  %1601 = vrot.lane.b32.xlu0 %v5280_v1, %s4412_s18  ;;  %v5672_v41 = vmax.f32 %v7125_v33, %v5330_v28  ;;  %v7129_v33 = vld [vmem:[#allocation82_spill] sm:$0xff]  ;;  %v7130_v1 = vld [vmem:[#allocation83_spill] sm:$0xff] }
 0x22d   : > { %v3765_v14 = vpack.c.bf16 %v2300_v15, %v2300_v15  ;;  %v5650_v19 = vpop.permute.xlu1 %1575  ;;  %v7127_v15 = vld [vmem:[#allocation80_spill] sm:$0xff] }
 0x22e   : > { %2906 = vst.msk [vmem:[%s5466_s12 + $0x110] sm:$0xf] %vm2837_vm3, %v3764_v10  ;;  %v5658_v40 = vpop.permute.xlu0 %1573  ;;  %7126 = vst [vmem:[#allocation43_spill] sm:$0xff] %v5672_v41 }
 0x22f   : > { %2907 = vst.msk [vmem:[%s5466_s12 + $0x114] sm:$0xf] %vm2837_vm3, %v3765_v14  ;;  %1784 = vrot.lane.b32.xlu1 %v5648_v23, %s4413_s21 }
 0x230   : > { %1786 = vrot.lane.b32.xlu0 %v5654_v45, %s4413_s21 }
 0x231   : > { %v1757_v22 = vpop.permute.xlu1 %1756 }
 0x232   : > { %v1990_v10 = vmax.f32 %v7127_v15, %v1757_v22  ;;  %v1759_v38 = vpop.permute.xlu0 %1758 }
 0x233   : > { %v1991_v14 = vmax.f32 %v7128_v39, %v1759_v38  ;;  %1908 = vrot.lane.b32.xlu1 %v5668_v2, %s4413_s21 }
 0x234   : > { %v2118_v36 = vadd.f32 %v5438_v16, %v1990_v10  ;;  %1910 = vrot.lane.b32.xlu0 %v5672_v41, %s4413_s21 }
 0x235   : > { %v2119_v49 = vadd.f32 %v5438_v16, %v1991_v14  ;;  %v1881_v42 = vpop.permute.xlu1 %1880 }
 0x236   : > { %v2239_v28 = vmax.f32 %v2118_v36, 0.0  ;;  %v2052_v63 = vmax.f32 %v7129_v33, %v1881_v42  ;;  %v1883_v22 = vpop.permute.xlu0 %1882  ;;  %v7133_v33 = vld [vmem:[#allocation19_spill] sm:$0xff] }
 0x237   : > { %v2240_v15 = vmax.f32 %v2119_v49, 0.0  ;;  %v2053_v38 = vmax.f32 %v7130_v1, %v1883_v22  ;;  %1483 = vrot.lane.b32.xlu1 %v5326_v47, %s4412_s18  ;;  %v5704_v22 = vmax.f32 %v7133_v33, %v5332_v51  ;;  %v7136_v51 = vld [vmem:[#allocation102_spill] sm:$0xff]  ;;  %v7141_v47 = vld [vmem:[#allocation95_spill] sm:$0xff] }
 0x238   : > { %v3704_v39 = vpack.c.bf16 %v2239_v28, %v2239_v28  ;;  %v2180_v10 = vadd.f32 %v5438_v16, %v2052_v63  ;;  %1481 = vrot.lane.b32.xlu0 %v7131_v34, %s4412_s18  ;;  %v7132_v28 = vld [vmem:[#allocation99_spill] sm:$0xff] }
 0x239   : > { %v3705_v14 = vpack.c.bf16 %v2240_v15, %v2240_v15  ;;  %v2181_v41 = vadd.f32 %v5438_v16, %v2053_v38  ;;  %v5690_v36 = vpop.permute.xlu1 %1455 }
 0x23a   : > { %2846 = vst.msk [vmem:[%s5466_s12 + $0x20] sm:$0xf] %vm2837_vm3, %v3704_v39  ;;  %v2301_v49 = vmax.f32 %v2180_v10, 0.0  ;;  %v5694_v1 = vpop.permute.xlu0 %1453  ;;  %v7134_v39 = vld [vmem:[#allocation21_spill] sm:$0xff] }
 0x23b   : > { %2847 = vst.msk [vmem:[%s5466_s12 + $0x24] sm:$0xf] %vm2837_vm3, %v3705_v14  ;;  %v2302_v42 = vmax.f32 %v2181_v41, 0.0  ;;  %1607 = vrot.lane.b32.xlu1 %v5328_v20, %s4412_s18  ;;  %v5710_v10 = vmax.f32 %v7134_v39, %v5340_v52  ;;  %v7137_v14 = vld [vmem:[#allocation20_spill] sm:$0xff]  ;;  %v7138_v52 = vld [vmem:[#allocation22_spill] sm:$0xff] }
 0x23c   : > { %v3766_v63 = vpack.c.bf16 %v2301_v49, %v2301_v49  ;;  %1605 = vrot.lane.b32.xlu0 %v7132_v28, %s4412_s18  ;;  %v5724_v49 = vmax.f32 %v7137_v14, %v7136_v51  ;;  %v5728_v33 = vmax.f32 %v7138_v52, %v5356_v24  ;;  %v7142_v52 = vld [vmem:[#allocation96_spill] sm:$0xff] }
 0x23d   : > { %v3767_v15 = vpack.c.bf16 %v2302_v42, %v2302_v42  ;;  %v5706_v38 = vpop.permute.xlu1 %1579  ;;  %7135 = vst [vmem:[#allocation44_spill] sm:$0xff] %v5710_v10 }
 0x23e   : > { %2908 = vst.msk [vmem:[%s5466_s12 + $0x118] sm:$0xf] %vm2837_vm3, %v3766_v63  ;;  %v5714_v41 = vpop.permute.xlu0 %1577  ;;  %7139 = vst [vmem:[#allocation45_spill] sm:$0xff] %v5728_v33  ;;  %v7140_v63 = vld [vmem:[#allocation94_spill] sm:$0xff] }
 0x23f   : > { %2909 = vst.msk [vmem:[%s5466_s12 + $0x11c] sm:$0xf] %vm2837_vm3, %v3767_v15  ;;  %1788 = vrot.lane.b32.xlu1 %v5704_v22, %s4413_s21 }
 0x240   : > { %1790 = vrot.lane.b32.xlu0 %v5710_v10, %s4413_s21  ;;  %v7143_v10 = vld [vmem:[#allocation97_spill] sm:$0xff] }
 0x241   : > { %v1761_v42 = vpop.permute.xlu1 %1760 }
 0x242   : > { %v1992_v39 = vmax.f32 %v7140_v63, %v1761_v42  ;;  %v1763_v20 = vpop.permute.xlu0 %1762 }
 0x243   : > { %v1993_v15 = vmax.f32 %v7141_v47, %v1763_v20  ;;  %1912 = vrot.lane.b32.xlu1 %v5724_v49, %s4413_s21 }
 0x244   : > { %v2120_v28 = vadd.f32 %v5438_v16, %v1992_v39  ;;  %1914 = vrot.lane.b32.xlu0 %v5728_v33, %s4413_s21 }
 0x245   : > { %v2121_v51 = vadd.f32 %v5438_v16, %v1993_v15  ;;  %v1885_v14 = vpop.permute.xlu1 %1884 }
 0x246   : > { %v2241_v24 = vmax.f32 %v2120_v28, 0.0  ;;  %v2054_v34 = vmax.f32 %v7142_v52, %v1885_v14  ;;  %v1887_v42 = vpop.permute.xlu0 %1886  ;;  %v7145_v52 = vld [vmem:[#allocation23_spill] sm:$0xff] }
 0x247   : > { %v2242_v63 = vmax.f32 %v2121_v51, 0.0  ;;  %v2055_v47 = vmax.f32 %v7143_v10, %v1887_v42  ;;  %1487 = vrot.lane.b32.xlu1 %v5350_v4, %s4412_s18  ;;  %v5760_v42 = vmax.f32 %v7145_v52, %v5358_v26  ;;  %v7147_v26 = vld [vmem:[#allocation24_spill] sm:$0xff] }
 0x248   : > { %v3706_v20 = vpack.c.bf16 %v2241_v24, %v2241_v24  ;;  %v2182_v39 = vadd.f32 %v5438_v16, %v2054_v34  ;;  %1485 = vrot.lane.b32.xlu0 %v5342_v50, %s4412_s18  ;;  %v7144_v24 = vld [vmem:[#allocation104_spill] sm:$0xff] }
 0x249   : > { %v3707_v15 = vpack.c.bf16 %v2242_v63, %v2242_v63  ;;  %v2183_v33 = vadd.f32 %v5438_v16, %v2055_v47  ;;  %v5746_v28 = vpop.permute.xlu1 %1459 }
 0x24a   : > { %2848 = vst.msk [vmem:[%s5466_s12 + $0x28] sm:$0xf] %vm2837_vm3, %v3706_v20  ;;  %v2303_v51 = vmax.f32 %v2182_v39, 0.0  ;;  %v5750_v10 = vpop.permute.xlu0 %1457  ;;  %v7146_v20 = vld [vmem:[#allocation25_spill] sm:$0xff] }
 0x24b   : > { %2849 = vst.msk [vmem:[%s5466_s12 + $0x2c] sm:$0xf] %vm2837_vm3, %v3707_v15  ;;  %v2304_v14 = vmax.f32 %v2183_v33, 0.0  ;;  %1611 = vrot.lane.b32.xlu1 %v5364_v43, %s4412_s18  ;;  %v5766_v39 = vmax.f32 %v7146_v20, %v5376_v48  ;;  %v5780_v15 = vmax.f32 %v7147_v26, %v5374_v25  ;;  %v7148_v48 = vld [vmem:[#allocation26_spill] sm:$0xff]  ;;  %v7150_v43 = vld [vmem:[#allocation107_spill] sm:$0xff] }
 0x24c   : > { %v3768_v34 = vpack.c.bf16 %v2303_v51, %v2303_v51  ;;  %1609 = vrot.lane.b32.xlu0 %v7144_v24, %s4412_s18  ;;  %v7151_v24 = vld [vmem:[#allocation109_spill] sm:$0xff] }
 0x24d   : > { %v3769_v63 = vpack.c.bf16 %v2304_v14, %v2304_v14  ;;  %v5762_v47 = vpop.permute.xlu1 %1583  ;;  %v5784_v14 = vmax.f32 %v7148_v48, %v5390_v46 }
 0x24e   : > { %2910 = vst.msk [vmem:[%s5466_s12 + $0x120] sm:$0xf] %vm2837_vm3, %v3768_v34  ;;  %v5770_v33 = vpop.permute.xlu0 %1581  ;;  %v7149_v34 = vld [vmem:[#allocation106_spill] sm:$0xff] }
 0x24f   : > { %2911 = vst.msk [vmem:[%s5466_s12 + $0x124] sm:$0xf] %vm2837_vm3, %v3769_v63  ;;  %1792 = vrot.lane.b32.xlu1 %v5760_v42, %s4413_s21 }
 0x250   : > { %1794 = vrot.lane.b32.xlu0 %v5766_v39, %s4413_s21 }
 0x251   : > { %v1765_v51 = vpop.permute.xlu1 %1764 }
 0x252   : > { %v1994_v52 = vmax.f32 %v7149_v34, %v1765_v51  ;;  %v1767_v20 = vpop.permute.xlu0 %1766 }
 0x253   : > { %v1995_v63 = vmax.f32 %v7150_v43, %v1767_v20  ;;  %1916 = vrot.lane.b32.xlu1 %v5780_v15, %s4413_s21 }
 0x254   : > { %v2122_v4 = vadd.f32 %v5438_v16, %v1994_v52  ;;  %1918 = vrot.lane.b32.xlu0 %v5784_v14, %s4413_s21 }
 0x255   : > { %v2123_v25 = vadd.f32 %v5438_v16, %v1995_v63  ;;  %v1889_v26 = vpop.permute.xlu1 %1888 }
 0x256   : > { %v2243_v46 = vmax.f32 %v2122_v4, 0.0  ;;  %v2056_v48 = vmax.f32 %v5372_v54, %v1889_v26  ;;  %v1891_v51 = vpop.permute.xlu0 %1890 }
 0x257   : > { %v2244_v34 = vmax.f32 %v2123_v25, 0.0  ;;  %v2057_v43 = vmax.f32 %v5380_v58, %v1891_v51  ;;  %1491 = vrot.lane.b32.xlu1 %v5394_v21, %s4412_s18  ;;  %v7154_v51 = vld [vmem:[#allocation27_spill] sm:$0xff] }
 0x258   : > { %v3708_v20 = vpack.c.bf16 %v2243_v46, %v2243_v46  ;;  %v2184_v52 = vadd.f32 %v5438_v16, %v2056_v48  ;;  %1489 = vrot.lane.b32.xlu0 %v7151_v24, %s4412_s18  ;;  %v7152_v46 = vld [vmem:[#allocation110_spill] sm:$0xff]  ;;  %v7153_v48 = vld [vmem:[#allocation111_spill] sm:$0xff] }
 0x259   : > { %v3709_v63 = vpack.c.bf16 %v2244_v34, %v2244_v34  ;;  %v2185_v50 = vadd.f32 %v5438_v16, %v2057_v43  ;;  %v5802_v4 = vpop.permute.xlu1 %1463  ;;  %v5816_v34 = vmax.f32 %v7154_v51, %v7153_v48  ;;  %v7159_v51 = vld [vmem:[#allocation30_spill] sm:$0xff] }
 0x25a   : > { %2850 = vst.msk [vmem:[%s5466_s12 + $0x30] sm:$0xf] %vm2837_vm3, %v3708_v20  ;;  %v2305_v54 = vmax.f32 %v2184_v52, 0.0  ;;  %v5806_v58 = vpop.permute.xlu0 %1461  ;;  %v7155_v20 = vld [vmem:[#allocation114_spill] sm:$0xff]  ;;  %v7156_v52 = vld [vmem:[#allocation29_spill] sm:$0xff] }
 0x25b   : > { %2851 = vst.msk [vmem:[%s5466_s12 + $0x34] sm:$0xf] %vm2837_vm3, %v3709_v63  ;;  %v2306_v25 = vmax.f32 %v2185_v50, 0.0  ;;  %1615 = vrot.lane.b32.xlu1 %v5396_v59, %s4412_s18  ;;  %v5822_v24 = vmax.f32 %v7156_v52, %v7155_v20  ;;  %v7157_v63 = vld [vmem:[#allocation115_spill] sm:$0xff]  ;;  %v5840_v20 = vmax.f32 %v7159_v51, %v5418_v5 }
 0x25c   : > { %v3770_v26 = vpack.c.bf16 %v2305_v54, %v2305_v54  ;;  %1613 = vrot.lane.b32.xlu0 %v7152_v46, %s4412_s18  ;;  %v7158_v54 = vld [vmem:[#allocation28_spill] sm:$0xff] }
 0x25d   : > { %v3771_v43 = vpack.c.bf16 %v2306_v25, %v2306_v25  ;;  %v5818_v21 = vpop.permute.xlu1 %1587  ;;  %v5836_v25 = vmax.f32 %v7158_v54, %v7157_v63  ;;  %7160 = vst [vmem:[#allocation46_spill] sm:$0xff] %v5840_v20 }
 0x25e   : > { %2912 = vst.msk [vmem:[%s5466_s12 + $0x128] sm:$0xf] %vm2837_vm3, %v3770_v26  ;;  %v5826_v50 = vpop.permute.xlu0 %1585 }
 0x25f   : > { %2913 = vst.msk [vmem:[%s5466_s12 + $0x12c] sm:$0xf] %vm2837_vm3, %v3771_v43  ;;  %1796 = vrot.lane.b32.xlu1 %v5816_v34, %s4413_s21 }
 0x260   : > { %1798 = vrot.lane.b32.xlu0 %v5822_v24, %s4413_s21 }
 0x261   : > { %v1769_v48 = vpop.permute.xlu1 %1768 }
 0x262   : > { %v1996_v26 = vmax.f32 %v5416_v53, %v1769_v48  ;;  %v1771_v52 = vpop.permute.xlu0 %1770 }
 0x263   : > { %v1997_v43 = vmax.f32 %v5424_v6, %v1771_v52  ;;  %1920 = vrot.lane.b32.xlu1 %v5836_v25, %s4413_s21  ;;  %v7161_v52 = vld [vmem:[#allocation116_spill] sm:$0xff] }
 0x264   : > { %v2124_v59 = vadd.f32 %v5438_v16, %v1996_v26  ;;  %1922 = vrot.lane.b32.xlu0 %v5840_v20, %s4413_s21 }
 0x265   : > { %v2125_v63 = vadd.f32 %v5438_v16, %v1997_v43  ;;  %v1893_v54 = vpop.permute.xlu1 %1892  ;;  %v7162_v43 = vld [vmem:[#allocation31_spill] sm:$0xff] }
 0x266   : > { %v2245_v46 = vmax.f32 %v2124_v59, 0.0  ;;  %v2058_v5 = vmax.f32 %v5433_v62, %v1893_v54  ;;  %v1895_v53 = vpop.permute.xlu0 %1894  ;;  %v5859_v20 = vmax.f32 %v7162_v43, %v5470_v9 }
 0x267   : > { %v2246_v48 = vmax.f32 %v2125_v63, 0.0  ;;  %v2059_v6 = vmax.f32 %v5442_v3, %v1895_v53  ;;  %1495 = vrot.lane.b32.xlu1 %v5420_v55, %s4412_s18  ;;  %v7164_v53 = vld [vmem:[#allocation32_spill] sm:$0xff] }
 0x268   : > { %v3710_v51 = vpack.c.bf16 %v2245_v46, %v2245_v46  ;;  %v2186_v26 = vadd.f32 %v5438_v16, %v2058_v5  ;;  %1493 = vrot.lane.b32.xlu0 %v7161_v52, %s4412_s18  ;;  %v7163_v5 = vld [vmem:[#allocation117_spill] sm:$0xff] }
 0x269   : > { %v3711_v59 = vpack.c.bf16 %v2246_v48, %v2246_v48  ;;  %v2187_v62 = vadd.f32 %v5438_v16, %v2059_v6  ;;  %v5862_v63 = vpop.permute.xlu1 %1467  ;;  %v5876_v48 = vmax.f32 %v7164_v53, %v5490_v61  ;;  %v7169_v53 = vld [vmem:[#allocation119_spill] sm:$0xff] }
 0x26a   : > { %2852 = vst.msk [vmem:[%s5466_s12 + $0x38] sm:$0xf] %vm2837_vm3, %v3710_v51  ;;  %v2307_v3 = vmax.f32 %v2186_v26, 0.0  ;;  %v5866_v46 = vpop.permute.xlu0 %1465  ;;  %v7165_v51 = vld [vmem:[#allocation33_spill] sm:$0xff] }
 0x26b   : > { %2853 = vst.msk [vmem:[%s5466_s12 + $0x3c] sm:$0xf] %vm2837_vm3, %v3711_v59  ;;  %v2308_v54 = vmax.f32 %v2187_v62, 0.0  ;;  %1800 = vrot.lane.b32.xlu1 %v5859_v20, %s4413_s21  ;;  %v5882_v26 = vmax.f32 %v7165_v51, %v5464_v27  ;;  %v7167_v62 = vld [vmem:[#allocation34_spill] sm:$0xff]  ;;  %v7170_v51 = vld [vmem:[#allocation35_spill] sm:$0xff] }
 0x26c   : > { %v3772_v9 = vpack.c.bf16 %v2307_v3, %v2307_v3  ;;  %1617 = vrot.lane.b32.xlu0 %v7163_v5, %s4412_s18  ;;  %v5896_v3 = vmax.f32 %v7167_v62, %v5482_v7  ;;  %v5907_v5 = vmax.f32 %v7170_v51, %v5526_v32  ;;  %v7172_v32 = vld [vmem:[#allocation118_spill] sm:$0xff] }
 0x26d   : > { %v3773_v6 = vpack.c.bf16 %v2308_v54, %v2308_v54  ;;  %v5878_v43 = vpop.permute.xlu1 %1591  ;;  %7166 = vst [vmem:[#allocation7_spill] sm:$0xff] %v5882_v26 }
 0x26e   : > { %2914 = vst.msk [vmem:[%s5466_s12 + $0x130] sm:$0xf] %vm2837_vm3, %v3772_v9  ;;  %v5886_v59 = vpop.permute.xlu0 %1589  ;;  %7168 = vst [vmem:[#allocation9_spill] sm:$0xff] %v5896_v3 }
 0x26f   : > { %2915 = vst.msk [vmem:[%s5466_s12 + $0x134] sm:$0xf] %vm2837_vm3, %v3773_v6  ;;  %1924 = vrot.lane.b32.xlu1 %v5876_v48, %s4413_s21 }
 0x270   : > { %1802 = vrot.lane.b32.xlu0 %v5882_v26, %s4413_s21 }
 0x271   : > { %v1773_v61 = vpop.permute.xlu1 %1772 }
 0x272   : > { %v1998_v27 = vmax.f32 %v5480_v29, %v1773_v61  ;;  %v1775_v54 = vpop.permute.xlu0 %1774 }
 0x273   : > { %v1999_v9 = vmax.f32 %v5486_v0, %v1775_v54  ;;  %1499 = vrot.lane.b32.xlu1 %v7169_v53, %s4412_s18  ;;  %v7171_v53 = vld [vmem:[#allocation3_spill] sm:$0xff] }
 0x274   : > { %v2126_v6 = vadd.f32 %v5438_v16, %v1998_v27  ;;  %1926 = vrot.lane.b32.xlu0 %v5896_v3, %s4413_s21 }
 0x275   : > { %v2127_v7 = vadd.f32 %v5438_v16, %v1999_v9  ;;  %v1897_v62 = vpop.permute.xlu1 %1896  ;;  %v7173_v9 = vld [vmem:[#allocation36_spill] sm:$0xff] }
 0x276   : > { %v2247_v29 = vmax.f32 %v2126_v6, 0.0  ;;  %v2060_v61 = vmax.f32 %v5500_v17, %v1897_v62  ;;  %v1899_v0 = vpop.permute.xlu0 %1898  ;;  %v5919_v51 = vmax.f32 %v7173_v9, %v5546_v37 }
 0x277   : > { %v2248_v54 = vmax.f32 %v2127_v7, 0.0  ;;  %v2061_v26 = vmax.f32 %v7171_v53, %v1899_v0  ;;  %1804 = vrot.lane.b32.xlu1 %v5907_v5, %s4413_s21  ;;  %v7174_v53 = vld [vmem:[#allocation37_spill] sm:$0xff] }
 0x278   : > { %v3712_v27 = vpack.c.bf16 %v2247_v29, %v2247_v29  ;;  %v2188_v3 = vadd.f32 %v5438_v16, %v2060_v61  ;;  %1497 = vrot.lane.b32.xlu0 %v7172_v32, %s4412_s18  ;;  %v5926_v62 = vmax.f32 %v7174_v53, %v5522_v56 }
 0x279   : > { %v3713_v6 = vpack.c.bf16 %v2248_v54, %v2248_v54  ;;  %v2189_v17 = vadd.f32 %v5438_v16, %v2061_v26  ;;  %v5922_v7 = vpop.permute.xlu1 %1471  ;;  %v7175_v26 = vld [vmem:[#allocation39_spill] sm:$0xff] }
 0x27a   : > { %2854 = vst.msk [vmem:[%s5466_s12 + $0x40] sm:$0xf] %vm2837_vm3, %v3712_v27  ;;  %v2309_v29 = vmax.f32 %v2188_v3, 0.0  ;;  %v5930_v61 = vpop.permute.xlu0 %1469  ;;  %v5940_v54 = vmax.f32 %v7175_v26, %v5582_v30  ;;  %v7176_v3 = vld [vmem:[#allocation38_spill] sm:$0xff]  ;;  %v7177_v30 = vld [vmem:[#allocation40_spill] sm:$0xff] }
 0x27b   : > { %2855 = vst.msk [vmem:[%s5466_s12 + $0x44] sm:$0xf] %vm2837_vm3, %v3713_v6  ;;  %v2310_v37 = vmax.f32 %v2189_v17, 0.0  ;;  %1928 = vrot.lane.b32.xlu1 %v5919_v51, %s4413_s21  ;;  %v5946_v27 = vmax.f32 %v7176_v3, %v5538_v8  ;;  %v5960_v17 = vmax.f32 %v7177_v30, %v5602_v35  ;;  %v7179_v8 = vld [vmem:[#allocation41_spill] sm:$0xff]  ;;  %v7181_v35 = vld [vmem:[#allocation47_spill] sm:$0xff] }
 0x27c   : > { %v3774_v0 = vpack.c.bf16 %v2309_v29, %v2309_v29  ;;  %1806 = vrot.lane.b32.xlu0 %v5926_v62, %s4413_s21  ;;  %v5964_v29 = vmax.f32 %v7179_v8, %v5578_v11  ;;  %v5975_v3 = vmax.f32 %v7181_v35, %v5638_v31 }
 0x27d   : > { %v3775_v56 = vpack.c.bf16 %v2310_v37, %v2310_v37  ;;  %v5942_v9 = vpop.permute.xlu1 %1595  ;;  %7178 = vst [vmem:[#allocation8_spill] sm:$0xff] %v5960_v17 }
 0x27e   : > { %2916 = vst.msk [vmem:[%s5466_s12 + $0x138] sm:$0xf] %vm2837_vm3, %v3774_v0  ;;  %v5950_v6 = vpop.permute.xlu0 %1593  ;;  %7180 = vst [vmem:[#allocation10_spill] sm:$0xff] %v5964_v29 }
 0x27f   : > { %2917 = vst.msk [vmem:[%s5466_s12 + $0x13c] sm:$0xf] %vm2837_vm3, %v3775_v56  ;;  %1808 = vrot.lane.b32.xlu1 %v5940_v54, %s4413_s21 }
 0x280   : > { %1930 = vrot.lane.b32.xlu0 %v5946_v27, %s4413_s21 }
 0x281   : > { %v1777_v53 = vpop.permute.xlu1 %1776 }
 0x282   : > { %v2000_v37 = vmax.f32 %v5536_v44, %v1777_v53  ;;  %v1779_v0 = vpop.permute.xlu0 %1778  ;;  %v7182_v44 = vld [vmem:[#allocation42_spill] sm:$0xff] }
 0x283   : > { %v2001_v26 = vmax.f32 %v5542_v18, %v1779_v0  ;;  %1932 = vrot.lane.b32.xlu1 %v5960_v17, %s4413_s21  ;;  %v5980_v53 = vmax.f32 %v7182_v44, %v5594_v60  ;;  %v7183_v17 = vld [vmem:[#allocation5_spill] sm:$0xff]  ;;  %v7184_v60 = vld [vmem:[#allocation48_spill] sm:$0xff] }
 0x284   : > { %v2128_v56 = vadd.f32 %v5438_v16, %v2000_v37  ;;  %1810 = vrot.lane.b32.xlu0 %v5964_v29, %s4413_s21  ;;  %v5991_v35 = vmax.f32 %v7184_v60, %v5658_v40 }
 0x285   : > { %v2129_v11 = vadd.f32 %v5438_v16, %v2001_v26  ;;  %v1901_v30 = vpop.permute.xlu1 %1900 }
 0x286   : > { %v2249_v18 = vmax.f32 %v2128_v56, 0.0  ;;  %v2062_v8 = vmax.f32 %v5556_v57, %v1901_v30  ;;  %v1903_v37 = vpop.permute.xlu0 %1902 }
 0x287   : > { %v2250_v0 = vmax.f32 %v2129_v11, 0.0  ;;  %v2063_v29 = vmax.f32 %v7183_v17, %v1903_v37  ;;  %1812 = vrot.lane.b32.xlu1 %v5975_v3, %s4413_s21  ;;  %v7185_v17 = vld [vmem:[#allocation49_spill] sm:$0xff] }
 0x288   : > { %v3714_v31 = vpack.c.bf16 %v2249_v18, %v2249_v18  ;;  %v2190_v26 = vadd.f32 %v5438_v16, %v2062_v8  ;;  %1934 = vrot.lane.b32.xlu0 %v5980_v53, %s4413_s21  ;;  %v5998_v30 = vmax.f32 %v7185_v17, %v5634_v13 }
 0x289   : > { %v3715_v56 = vpack.c.bf16 %v2250_v0, %v2250_v0  ;;  %v2191_v57 = vadd.f32 %v5438_v16, %v2063_v29  ;;  %v5994_v11 = vpop.permute.xlu1 %1475  ;;  %v7186_v29 = vld [vmem:[#allocation51_spill] sm:$0xff] }
 0x28a   : > { %2856 = vst.msk [vmem:[%s5466_s12 + $0x48] sm:$0xf] %vm2837_vm3, %v3714_v31  ;;  %v2311_v44 = vmax.f32 %v2190_v26, 0.0  ;;  %v6002_v18 = vpop.permute.xlu0 %1473  ;;  %v6012_v37 = vmax.f32 %v7186_v29, %v5694_v1  ;;  %v7187_v31 = vld [vmem:[#allocation50_spill] sm:$0xff]  ;;  %v7189_v1 = vld [vmem:[#allocation52_spill] sm:$0xff] }
 0x28b   : > { %2857 = vst.msk [vmem:[%s5466_s12 + $0x4c] sm:$0xf] %vm2837_vm3, %v3715_v56  ;;  %v2312_v40 = vmax.f32 %v2191_v57, 0.0  ;;  %1936 = vrot.lane.b32.xlu1 %v5991_v35, %s4413_s21  ;;  %v6018_v26 = vmax.f32 %v7187_v31, %v5650_v19  ;;  %v6032_v56 = vmax.f32 %v7189_v1, %v5714_v41  ;;  %v7191_v19 = vld [vmem:[#allocation53_spill] sm:$0xff]  ;;  %v7194_v41 = vld [vmem:[#allocation59_spill] sm:$0xff] }
 0x28c   : > { %v3776_v8 = vpack.c.bf16 %v2311_v44, %v2311_v44  ;;  %1814 = vrot.lane.b32.xlu0 %v5998_v30, %s4413_s21  ;;  %v6036_v17 = vmax.f32 %v7191_v19, %v5690_v36  ;;  %v6047_v31 = vmax.f32 %v7194_v41, %v5750_v10 }
 0x28d   : > { %v3777_v13 = vpack.c.bf16 %v2312_v40, %v2312_v40  ;;  %v6014_v0 = vpop.permute.xlu1 %1599  ;;  %7188 = vst [vmem:[#allocation55_spill] sm:$0xff] %v6018_v26  ;;  %7190 = vst [vmem:[#allocation56_spill] sm:$0xff] %v6032_v56 }
 0x28e   : > { %2918 = vst.msk [vmem:[%s5466_s12 + $0x140] sm:$0xf] %vm2837_vm3, %v3776_v8  ;;  %v6022_v60 = vpop.permute.xlu0 %1597  ;;  %7192 = vst [vmem:[#allocation57_spill] sm:$0xff] %v6036_v17  ;;  %v7193_v8 = vld [vmem:[#allocation75_spill] sm:$0xff] }
 0x28f   : > { %2919 = vst.msk [vmem:[%s5466_s12 + $0x144] sm:$0xf] %vm2837_vm3, %v3777_v13  ;;  %1816 = vrot.lane.b32.xlu1 %v6012_v37, %s4413_s21 }
 0x290   : > { %1938 = vrot.lane.b32.xlu0 %v6018_v26, %s4413_s21  ;;  %v7197_v26 = vld [vmem:[#allocation6_spill] sm:$0xff] }
 0x291   : > { %v1781_v57 = vpop.permute.xlu1 %1780 }
 0x292   : > { %v2002_v44 = vmax.f32 %v5592_v12, %v1781_v57  ;;  %v1783_v40 = vpop.permute.xlu0 %1782  ;;  %v7195_v12 = vld [vmem:[#allocation54_spill] sm:$0xff] }
 0x293   : > { %v2003_v29 = vmax.f32 %v7193_v8, %v1783_v40  ;;  %1940 = vrot.lane.b32.xlu1 %v6032_v56, %s4413_s21  ;;  %v6052_v57 = vmax.f32 %v7195_v12, %v5706_v38  ;;  %v7196_v40 = vld [vmem:[#allocation4_spill] sm:$0xff] }
 0x294   : > { %v2130_v13 = vadd.f32 %v5438_v16, %v2002_v44  ;;  %1818 = vrot.lane.b32.xlu0 %v6036_v17, %s4413_s21  ;;  %v7198_v38 = vld [vmem:[#allocation60_spill] sm:$0xff] }
 0x295   : > { %v2131_v36 = vadd.f32 %v5438_v16, %v2003_v29  ;;  %v1905_v1 = vpop.permute.xlu1 %1904  ;;  %v6063_v41 = vmax.f32 %v7198_v38, %v5770_v33 }
 0x296   : > { %v2251_v19 = vmax.f32 %v2130_v13, 0.0  ;;  %v2064_v8 = vmax.f32 %v7196_v40, %v1905_v1  ;;  %v1907_v44 = vpop.permute.xlu0 %1906 }
 0x297   : > { %v2252_v56 = vmax.f32 %v2131_v36, 0.0  ;;  %v2065_v17 = vmax.f32 %v7197_v26, %v1907_v44  ;;  %1820 = vrot.lane.b32.xlu1 %v6047_v31, %s4413_s21  ;;  %v7199_v26 = vld [vmem:[#allocation61_spill] sm:$0xff] }
 0x298   : > { %v3716_v10 = vpack.c.bf16 %v2251_v19, %v2251_v19  ;;  %v2192_v29 = vadd.f32 %v5438_v16, %v2064_v8  ;;  %1942 = vrot.lane.b32.xlu0 %v6052_v57, %s4413_s21  ;;  %v6070_v12 = vmax.f32 %v7199_v26, %v5746_v28 }
 0x299   : > { %v3717_v13 = vpack.c.bf16 %v2252_v56, %v2252_v56  ;;  %v2193_v1 = vadd.f32 %v5438_v16, %v2065_v17  ;;  %v6066_v36 = vpop.permute.xlu1 %1479  ;;  %v7200_v17 = vld [vmem:[#allocation63_spill] sm:$0xff] }
 0x29a   : > { %2858 = vst.msk [vmem:[%s5466_s12 + $0x50] sm:$0xf] %vm2837_vm3, %v3716_v10  ;;  %v2313_v19 = vmax.f32 %v2192_v29, 0.0  ;;  %v6074_v40 = vpop.permute.xlu0 %1477  ;;  %v6084_v8 = vmax.f32 %v7200_v17, %v5806_v58  ;;  %v7201_v10 = vld [vmem:[#allocation62_spill] sm:$0xff]  ;;  %v7202_v58 = vld [vmem:[#allocation64_spill] sm:$0xff] }
 0x29b   : > { %2859 = vst.msk [vmem:[%s5466_s12 + $0x54] sm:$0xf] %vm2837_vm3, %v3717_v13  ;;  %v2314_v33 = vmax.f32 %v2193_v1, 0.0  ;;  %1944 = vrot.lane.b32.xlu1 %v6063_v41, %s4413_s21  ;;  %v6090_v29 = vmax.f32 %v7201_v10, %v5762_v47  ;;  %v6104_v13 = vmax.f32 %v7202_v58, %v5826_v50  ;;  %v7203_v47 = vld [vmem:[#allocation65_spill] sm:$0xff]  ;;  %v7205_v50 = vld [vmem:[#allocation71_spill] sm:$0xff] }
 0x29c   : > { %v3778_v56 = vpack.c.bf16 %v2313_v19, %v2313_v19  ;;  %1822 = vrot.lane.b32.xlu0 %v6070_v12, %s4413_s21  ;;  %v6108_v26 = vmax.f32 %v7203_v47, %v5802_v4 }
 0x29d   : > { %v3779_v28 = vpack.c.bf16 %v2314_v33, %v2314_v33  ;;  %v6086_v44 = vpop.permute.xlu1 %1603 }
 0x29e   : > { %2920 = vst.msk [vmem:[%s5466_s12 + $0x148] sm:$0xf] %vm2837_vm3, %v3778_v56  ;;  %v6094_v38 = vpop.permute.xlu0 %1601  ;;  %7204 = vst [vmem:[#allocation58_spill] sm:$0xff] %v6108_v26 }
 0x29f   : > { %2921 = vst.msk [vmem:[%s5466_s12 + $0x14c] sm:$0xf] %vm2837_vm3, %v3779_v28  ;;  %1824 = vrot.lane.b32.xlu1 %v6084_v8, %s4413_s21  ;;  %v6119_v28 = vmax.f32 %v7205_v50, %v5866_v46 }
 0x2a0   : > { %1946 = vrot.lane.b32.xlu0 %v6090_v29, %s4413_s21 }
 0x2a1   : > { %v1785_v1 = vpop.permute.xlu1 %1784 }
 0x2a2   : > { %v2004_v19 = vmax.f32 %v5648_v23, %v1785_v1  ;;  %v1787_v33 = vpop.permute.xlu0 %1786  ;;  %v7206_v23 = vld [vmem:[#allocation66_spill] sm:$0xff] }
 0x2a3   : > { %v2005_v56 = vmax.f32 %v5654_v45, %v1787_v33  ;;  %1948 = vrot.lane.b32.xlu1 %v6104_v13, %s4413_s21  ;;  %v6124_v58 = vmax.f32 %v7206_v23, %v5818_v21  ;;  %v7207_v33 = vld [vmem:[#allocation43_spill] sm:$0xff]  ;;  %v7208_v21 = vld [vmem:[#allocation72_spill] sm:$0xff] }
 0x2a4   : > { %v2132_v17 = vadd.f32 %v5438_v16, %v2004_v19  ;;  %1826 = vrot.lane.b32.xlu0 %v6108_v26, %s4413_s21  ;;  %v6135_v50 = vmax.f32 %v7208_v21, %v5886_v59 }
 0x2a5   : > { %v2133_v4 = vadd.f32 %v5438_v16, %v2005_v56  ;;  %v1909_v10 = vpop.permute.xlu1 %1908 }
 0x2a6   : > { %v2253_v45 = vmax.f32 %v2132_v17, 0.0  ;;  %v2066_v1 = vmax.f32 %v5668_v2, %v1909_v10  ;;  %v1911_v47 = vpop.permute.xlu0 %1910  ;;  %v7209_v10 = vld [vmem:[#allocation73_spill] sm:$0xff] }
 0x2a7   : > { %v2254_v19 = vmax.f32 %v2133_v4, 0.0  ;;  %v2067_v26 = vmax.f32 %v7207_v33, %v1911_v47  ;;  %1828 = vrot.lane.b32.xlu1 %v6119_v28, %s4413_s21  ;;  %v6142_v23 = vmax.f32 %v7209_v10, %v5862_v63 }
 0x2a8   : > { %v3718_v46 = vpack.c.bf16 %v2253_v45, %v2253_v45  ;;  %v2194_v56 = vadd.f32 %v5438_v16, %v2066_v1  ;;  %1950 = vrot.lane.b32.xlu0 %v6124_v58, %s4413_s21 }
 0x2a9   : > { %v3719_v17 = vpack.c.bf16 %v2254_v19, %v2254_v19  ;;  %v2195_v2 = vadd.f32 %v5438_v16, %v2067_v26  ;;  %v6138_v4 = vpop.permute.xlu1 %1483  ;;  %v7210_v26 = vld [vmem:[#allocation76_spill] sm:$0xff] }
 0x2aa   : > { %2860 = vst.msk [vmem:[%s5466_s12 + $0x58] sm:$0xf] %vm2837_vm3, %v3718_v46  ;;  %v2315_v45 = vmax.f32 %v2194_v56, 0.0  ;;  %v6146_v1 = vpop.permute.xlu0 %1481  ;;  %v6156_v19 = vmax.f32 %v7210_v26, %v5930_v61  ;;  %v7211_v46 = vld [vmem:[#allocation74_spill] sm:$0xff]  ;;  %v7212_v61 = vld [vmem:[#allocation77_spill] sm:$0xff] }
 0x2ab   : > { %2861 = vst.msk [vmem:[%s5466_s12 + $0x5c] sm:$0xf] %vm2837_vm3, %v3719_v17  ;;  %v2316_v59 = vmax.f32 %v2195_v2, 0.0  ;;  %1952 = vrot.lane.b32.xlu1 %v6135_v50, %s4413_s21  ;;  %v6162_v56 = vmax.f32 %v7211_v46, %v5878_v43  ;;  %v6176_v17 = vmax.f32 %v7212_v61, %v5950_v6  ;;  %v7213_v43 = vld [vmem:[#allocation78_spill] sm:$0xff]  ;;  %v7216_v6 = vld [vmem:[#allocation84_spill] sm:$0xff] }
 0x2ac   : > { %v3780_v47 = vpack.c.bf16 %v2315_v45, %v2315_v45  ;;  %1830 = vrot.lane.b32.xlu0 %v6142_v23, %s4413_s21  ;;  %v6180_v10 = vmax.f32 %v7213_v43, %v5922_v7  ;;  %v6191_v46 = vmax.f32 %v7216_v6, %v6002_v18  ;;  %v6196_v7 = vld [vmem:[%s6836_s2] ss:$0 sm:$0xff] }
 0x2ad   : > { %v3781_v63 = vpack.c.bf16 %v2316_v59, %v2316_v59  ;;  %v6158_v33 = vpop.permute.xlu1 %1607 }
 0x2ae   : > { %2922 = vst.msk [vmem:[%s5466_s12 + $0x150] sm:$0xf] %vm2837_vm3, %v3780_v47  ;;  %v6166_v21 = vpop.permute.xlu0 %1605  ;;  %7214 = vst [vmem:[#allocation88_spill] sm:$0xff] %v6180_v10  ;;  %v7215_v47 = vld [vmem:[#allocation44_spill] sm:$0xff] }
 0x2af   : > { %2923 = vst.msk [vmem:[%s5466_s12 + $0x154] sm:$0xf] %vm2837_vm3, %v3781_v63  ;;  %1832 = vrot.lane.b32.xlu1 %v6156_v19, %s4413_s21 }
 0x2b0   : > { %1954 = vrot.lane.b32.xlu0 %v6162_v56, %s4413_s21 }
 0x2b1   : > { %v1789_v2 = vpop.permute.xlu1 %1788 }
 0x2b2   : > { %v2006_v45 = vmax.f32 %v5704_v22, %v1789_v2  ;;  %v1791_v59 = vpop.permute.xlu0 %1790  ;;  %v7217_v2 = vld [vmem:[#allocation79_spill] sm:$0xff] }
 0x2b3   : > { %v2007_v26 = vmax.f32 %v7215_v47, %v1791_v59  ;;  %1956 = vrot.lane.b32.xlu1 %v6176_v17, %s4413_s21  ;;  %v6201_v43 = vmax.f32 %v7217_v2, %v5942_v9  ;;  %v7218_v47 = vld [vmem:[#allocation45_spill] sm:$0xff] }
 0x2b4   : > { %v2134_v63 = vadd.f32 %v5438_v16, %v2006_v45  ;;  %1834 = vrot.lane.b32.xlu0 %v6180_v10, %s4413_s21  ;;  %v7219_v9 = vld [vmem:[#allocation85_spill] sm:$0xff] }
 0x2b5   : > { %v2135_v22 = vadd.f32 %v6196_v7, %v2007_v26  ;;  %v1913_v61 = vpop.permute.xlu1 %1912  ;;  %v6212_v2 = vmax.f32 %v7219_v9, %v6022_v60 }
 0x2b6   : > { %v2255_v16 = vmax.f32 %v2134_v63, 0.0  ;;  %v2068_v45 = vmax.f32 %v5724_v49, %v1913_v61  ;;  %v1915_v59 = vpop.permute.xlu0 %1914  ;;  %v7220_v61 = vld [vmem:[#allocation86_spill] sm:$0xff] }
 0x2b7   : > { %v2256_v18 = vmax.f32 %v2135_v22, 0.0  ;;  %v2069_v6 = vmax.f32 %v7218_v47, %v1915_v59  ;;  %1836 = vrot.lane.b32.xlu1 %v6191_v46, %s4413_s21  ;;  %v6219_v59 = vmax.f32 %v7220_v61, %v5994_v11 }
 0x2b8   : > { %v3720_v10 = vpack.c.bf16 %v2255_v16, %v2255_v16  ;;  %v2196_v26 = vadd.f32 %v6196_v7, %v2068_v45  ;;  %1958 = vrot.lane.b32.xlu0 %v6201_v43, %s4413_s21 }
 0x2b9   : > { %v3721_v63 = vpack.c.bf16 %v2256_v18, %v2256_v18  ;;  %v2197_v49 = vadd.f32 %v6196_v7, %v2069_v6  ;;  %v6215_v22 = vpop.permute.xlu1 %1487  ;;  %v7221_v18 = vld [vmem:[#allocation90_spill] sm:$0xff] }
 0x2ba   : > { %2862 = vst.msk [vmem:[%s5466_s12 + $0x60] sm:$0xf] %vm2837_vm3, %v3720_v10  ;;  %v2317_v16 = vmax.f32 %v2196_v26, 0.0  ;;  %v1486_v45 = vpop.permute.xlu0 %1485  ;;  %v6231_v6 = vmax.f32 %v7221_v18, %v6074_v40  ;;  %v7222_v10 = vld [vmem:[#allocation87_spill] sm:$0xff] }
 0x2bb   : > { %2863 = vst.msk [vmem:[%s5466_s12 + $0x64] sm:$0xf] %vm2837_vm3, %v3721_v63  ;;  %v2318_v47 = vmax.f32 %v2197_v49, 0.0  ;;  %1960 = vrot.lane.b32.xlu1 %v6212_v2, %s4413_s21  ;;  %v6237_v26 = vmax.f32 %v7222_v10, %v6014_v0  ;;  %v7223_v40 = vld [vmem:[#allocation91_spill] sm:$0xff] }
 0x2bc   : > { %v3782_v60 = vpack.c.bf16 %v2317_v16, %v2317_v16  ;;  %1838 = vrot.lane.b32.xlu0 %v6219_v59, %s4413_s21  ;;  %v6249_v49 = vmax.f32 %v7223_v40, %v6094_v38  ;;  %v7224_v16 = vld [vmem:[#allocation92_spill] sm:$0xff]  ;;  %v7226_v38 = vld [vmem:[#allocation98_spill] sm:$0xff] }
 0x2bd   : > { %v3783_v11 = vpack.c.bf16 %v2318_v47, %v2318_v47  ;;  %v6233_v9 = vpop.permute.xlu1 %1611  ;;  %v6253_v0 = vmax.f32 %v7224_v16, %v6066_v36  ;;  %v6264_v10 = vmax.f32 %v7226_v38, %v6146_v1 }
 0x2be   : > { %2924 = vst.msk [vmem:[%s5466_s12 + $0x158] sm:$0xf] %vm2837_vm3, %v3782_v60  ;;  %v1610_v63 = vpop.permute.xlu0 %1609 }
 0x2bf   : > { %2925 = vst.msk [vmem:[%s5466_s12 + $0x15c] sm:$0xf] %vm2837_vm3, %v3783_v11  ;;  %1840 = vrot.lane.b32.xlu1 %v6231_v6, %s4413_s21  ;;  %7225 = vst [vmem:[#allocation11_spill] sm:$0xff] %v6253_v0 }
 0x2c0   : > { %1962 = vrot.lane.b32.xlu0 %v6237_v26, %s4413_s21 }
 0x2c1   : > { %v1793_v61 = vpop.permute.xlu1 %1792 }
 0x2c2   : > { %v2008_v47 = vmax.f32 %v5760_v42, %v1793_v61  ;;  %v1795_v60 = vpop.permute.xlu0 %1794  ;;  %v7227_v42 = vld [vmem:[#allocation93_spill] sm:$0xff] }
 0x2c3   : > { %v2009_v18 = vmax.f32 %v5766_v39, %v1795_v60  ;;  %1964 = vrot.lane.b32.xlu1 %v6249_v49, %s4413_s21  ;;  %v6269_v61 = vmax.f32 %v7227_v42, %v6086_v44  ;;  %v7228_v44 = vld [vmem:[#allocation99_spill] sm:$0xff] }
 0x2c4   : > { %v2136_v11 = vadd.f32 %v6196_v7, %v2008_v47  ;;  %1842 = vrot.lane.b32.xlu0 %v6253_v0, %s4413_s21  ;;  %v6280_v38 = vmax.f32 %v7228_v44, %v6166_v21 }
 0x2c5   : > { %v2137_v36 = vadd.f32 %v6196_v7, %v2009_v18  ;;  %v1917_v40 = vpop.permute.xlu1 %1916 }
 0x2c6   : > { %v2257_v39 = vmax.f32 %v2136_v11, 0.0  ;;  %v2070_v16 = vmax.f32 %v5780_v15, %v1917_v40  ;;  %v1919_v47 = vpop.permute.xlu0 %1918 }
 0x2c7   : > { %v2258_v60 = vmax.f32 %v2137_v36, 0.0  ;;  %v2071_v0 = vmax.f32 %v5784_v14, %v1919_v47  ;;  %1844 = vrot.lane.b32.xlu1 %v6264_v10, %s4413_s21  ;;  %v7229_v14 = vld [vmem:[#allocation100_spill] sm:$0xff] }
 0x2c8   : > { %v3722_v1 = vpack.c.bf16 %v2257_v39, %v2257_v39  ;;  %v2198_v18 = vadd.f32 %v6196_v7, %v2070_v16  ;;  %1966 = vrot.lane.b32.xlu0 %v6269_v61, %s4413_s21  ;;  %v6285_v40 = vmax.f32 %v7229_v14, %v6138_v4  ;;  %v7234_v14 = vld [vmem:[#allocation105_spill] sm:$0xff] }
 0x2c9   : > { %v3723_v11 = vpack.c.bf16 %v2258_v60, %v2258_v60  ;;  %v2199_v15 = vadd.f32 %v6196_v7, %v2071_v0  ;;  %v1492_v36 = vpop.permute.xlu1 %1491  ;;  %v7230_v0 = vld [vmem:[#allocation103_spill] sm:$0xff] }
 0x2ca   : > { %2864 = vst.msk [vmem:[%s5466_s12 + $0x68] sm:$0xf] %vm2837_vm3, %v3722_v1  ;;  %v2319_v42 = vmax.f32 %v2198_v18, 0.0  ;;  %v1490_v39 = vpop.permute.xlu0 %1489  ;;  %v6296_v47 = vmax.f32 %v7230_v0, %v1486_v45  ;;  %v7231_v1 = vld [vmem:[#allocation101_spill] sm:$0xff]  ;;  %v7232_v45 = vld [vmem:[#allocation104_spill] sm:$0xff] }
 0x2cb   : > { %2865 = vst.msk [vmem:[%s5466_s12 + $0x6c] sm:$0xf] %vm2837_vm3, %v3723_v11  ;;  %v2320_v16 = vmax.f32 %v2199_v15, 0.0  ;;  %1968 = vrot.lane.b32.xlu1 %v6280_v38, %s4413_s21  ;;  %v6302_v18 = vmax.f32 %v7231_v1, %v6158_v33  ;;  %v6313_v11 = vmax.f32 %v7232_v45, %v1610_v63  ;;  %v7235_v63 = vld [vmem:[#allocation109_spill] sm:$0xff]  ;;  %v7236_v45 = vld [vmem:[#allocation108_spill] sm:$0xff] }
 0x2cc   : > { %v3784_v21 = vpack.c.bf16 %v2319_v42, %v2319_v42  ;;  %1846 = vrot.lane.b32.xlu0 %v6285_v40, %s4413_s21  ;;  %v6317_v42 = vmax.f32 %v7234_v14, %v6215_v22 }
 0x2cd   : > { %v3785_v60 = vpack.c.bf16 %v2320_v16, %v2320_v16  ;;  %v6298_v4 = vpop.permute.xlu1 %1615  ;;  %7233 = vst [vmem:[#allocation13_spill] sm:$0xff] %v6313_v11 }
 0x2ce   : > { %2926 = vst.msk [vmem:[%s5466_s12 + $0x160] sm:$0xf] %vm2837_vm3, %v3784_v21  ;;  %v1614_v44 = vpop.permute.xlu0 %1613 }
 0x2cf   : > { %2927 = vst.msk [vmem:[%s5466_s12 + $0x164] sm:$0xf] %vm2837_vm3, %v3785_v60  ;;  %1848 = vrot.lane.b32.xlu1 %v6296_v47, %s4413_s21  ;;  %v6327_v60 = vmax.f32 %v7235_v63, %v1490_v39  ;;  %v7238_v63 = vld [vmem:[#allocation110_spill] sm:$0xff] }
 0x2d0   : > { %1970 = vrot.lane.b32.xlu0 %v6302_v18, %s4413_s21 }
 0x2d1   : > { %v1797_v15 = vpop.permute.xlu1 %1796 }
 0x2d2   : > { %v2010_v33 = vmax.f32 %v5816_v34, %v1797_v15  ;;  %v1799_v16 = vpop.permute.xlu0 %1798  ;;  %v6332_v34 = vmax.f32 %v7236_v45, %v6233_v9  ;;  %v6342_v9 = vmax.f32 %v7238_v63, %v1614_v44 }
 0x2d3   : > { %v2011_v21 = vmax.f32 %v5822_v24, %v1799_v16  ;;  %1972 = vrot.lane.b32.xlu1 %v6313_v11, %s4413_s21  ;;  %v7237_v16 = vld [vmem:[#allocation46_spill] sm:$0xff] }
 0x2d4   : > { %v2138_v0 = vadd.f32 %v6196_v7, %v2010_v33  ;;  %1850 = vrot.lane.b32.xlu0 %v6317_v42, %s4413_s21 }
 0x2d5   : > { %v2139_v1 = vadd.f32 %v6196_v7, %v2011_v21  ;;  %v1921_v22 = vpop.permute.xlu1 %1920 }
 0x2d6   : > { %v2259_v24 = vmax.f32 %v2138_v0, 0.0  ;;  %v2072_v15 = vmax.f32 %v5836_v25, %v1921_v22  ;;  %v1923_v14 = vpop.permute.xlu0 %1922 }
 0x2d7   : > { %v2260_v33 = vmax.f32 %v2139_v1, 0.0  ;;  %v2073_v11 = vmax.f32 %v7237_v16, %v1923_v14  ;;  %1852 = vrot.lane.b32.xlu1 %v6327_v60, %s4413_s21  ;;  %v7239_v1 = vld [vmem:[#allocation112_spill] sm:$0xff] }
 0x2d8   : > { %v3724_v39 = vpack.c.bf16 %v2259_v24, %v2259_v24  ;;  %v2200_v21 = vadd.f32 %v6196_v7, %v2072_v15  ;;  %1974 = vrot.lane.b32.xlu0 %v6332_v34, %s4413_s21  ;;  %v6346_v45 = vmax.f32 %v7239_v1, %v1492_v36 }
 0x2d9   : > { %v3725_v0 = vpack.c.bf16 %v2260_v33, %v2260_v33  ;;  %v2201_v25 = vadd.f32 %v6196_v7, %v2073_v11  ;;  %v1496_v22 = vpop.permute.xlu1 %1495 }
 0x2da   : > { %2866 = vst.msk [vmem:[%s5466_s12 + $0x70] sm:$0xf] %vm2837_vm3, %v3724_v39  ;;  %v2321_v24 = vmax.f32 %v2200_v21, 0.0  ;;  %v1494_v14 = vpop.permute.xlu0 %1493  ;;  %v6362_v16 = vmax.f32 %v5420_v55, %v1496_v22  ;;  %v7241_v22 = vld [vmem:[#allocation7_spill] sm:$0xff] }
 0x2db   : > { %2867 = vst.msk [vmem:[%s5466_s12 + $0x74] sm:$0xf] %vm2837_vm3, %v3725_v0  ;;  %v2322_v15 = vmax.f32 %v2201_v25, 0.0  ;;  %1976 = vrot.lane.b32.xlu1 %v6342_v9, %s4413_s21  ;;  %v6357_v33 = vmax.f32 %v7161_v52, %v1494_v14 }
 0x2dc   : > { %v3786_v44 = vpack.c.bf16 %v2321_v24, %v2321_v24  ;;  %1854 = vrot.lane.b32.xlu0 %v6346_v45, %s4413_s21  ;;  %7240 = vst [vmem:[#allocation89_spill] sm:$0xff] %v6362_v16 }
 0x2dd   : > { %v3787_v11 = vpack.c.bf16 %v2322_v15, %v2322_v15  ;;  %v1801_v36 = vpop.permute.xlu1 %1800 }
 0x2de   : > { %2928 = vst.msk [vmem:[%s5466_s12 + $0x168] sm:$0xf] %vm2837_vm3, %v3786_v44  ;;  %v2012_v39 = vmax.f32 %v5859_v20, %v1801_v36  ;;  %v1618_v21 = vpop.permute.xlu0 %1617 }
 0x2df   : > { %2929 = vst.msk [vmem:[%s5466_s12 + $0x16c] sm:$0xf] %vm2837_vm3, %v3787_v11  ;;  %1856 = vrot.lane.b32.xlu1 %v6357_v33, %s4413_s21  ;;  %v7242_v11 = vld [vmem:[#allocation119_spill] sm:$0xff] }
 0x2e0   : > { %v2140_v63 = vadd.f32 %v6196_v7, %v2012_v39  ;;  %1858 = vrot.lane.b32.xlu0 %v6362_v16, %s4413_s21 }
 0x2e1   : > { %v1925_v52 = vpop.permute.xlu1 %1924 }
 0x2e2   : > { %v2261_v0 = vmax.f32 %v2140_v63, 0.0  ;;  %v2074_v25 = vmax.f32 %v5876_v48, %v1925_v52  ;;  %v1803_v55 = vpop.permute.xlu0 %1802  ;;  %v7243_v48 = vld [vmem:[#allocation9_spill] sm:$0xff] }
 0x2e3   : > { %v2013_v1 = vmax.f32 %v7241_v22, %v1803_v55  ;;  %v7244_v22 = vld [vmem:[#allocation113_spill] sm:$0xff] }
 0x2e4   : > { %v3726_v24 = vpack.c.bf16 %v2261_v0, %v2261_v0  ;;  %v2202_v20 = vadd.f32 %v6196_v7, %v2074_v25 }
 0x2e5   : > { %v2141_v14 = vadd.f32 %v6196_v7, %v2013_v1  ;;  %v1500_v15 = vpop.permute.xlu1 %1499  ;;  %v6387_v1 = vmax.f32 %v7244_v22, %v6298_v4 }
 0x2e6   : > { %2868 = vst.msk [vmem:[%s5466_s12 + $0x78] sm:$0xf] %vm2837_vm3, %v3726_v24  ;;  %v2323_v44 = vmax.f32 %v2202_v20, 0.0  ;;  %v6379_v36 = vmax.f32 %v7242_v11, %v1500_v15  ;;  %v1927_v39 = vpop.permute.xlu0 %1926 }
 0x2e7   : > { %v2262_v63 = vmax.f32 %v2141_v14, 0.0  ;;  %v2075_v52 = vmax.f32 %v7243_v48, %v1927_v39 }
 0x2e8   : > { %v3788_v16 = vpack.c.bf16 %v2323_v44, %v2323_v44  ;;  %1862 = vrot.lane.b32.xlu0 %v6379_v36, %s4413_s21 }
 0x2e9   : > { %v3727_v0 = vpack.c.bf16 %v2262_v63, %v2262_v63  ;;  %v2203_v25 = vadd.f32 %v6196_v7, %v2075_v52  ;;  %v1805_v55 = vpop.permute.xlu1 %1804  ;;  %v7245_v63 = vld [vmem:[#allocation117_spill] sm:$0xff] }
 0x2ea   : > { %2930 = vst.msk [vmem:[%s5466_s12 + $0x170] sm:$0xf] %vm2837_vm3, %v3788_v16  ;;  %v2014_v24 = vmax.f32 %v5907_v5, %v1805_v55  ;;  %v1498_v20 = vpop.permute.xlu0 %1497  ;;  %v6404_v48 = vmax.f32 %v7245_v63, %v1618_v21 }
 0x2eb   : > { %2869 = vst.msk [vmem:[%s5466_s12 + $0x7c] sm:$0xf] %vm2837_vm3, %v3727_v0  ;;  %v2324_v14 = vmax.f32 %v2203_v25, 0.0  ;;  %v6395_v15 = vmax.f32 %v7172_v32, %v1498_v20 }
 0x2ec   : > { %v2142_v44 = vadd.f32 %v6196_v7, %v2014_v24  ;;  %1978 = vrot.lane.b32.xlu0 %v6387_v1, %s4413_s21 }
 0x2ed   : > { %v3789_v4 = vpack.c.bf16 %v2324_v14, %v2324_v14  ;;  %1860 = vrot.lane.b32.xlu1 %v6395_v15, %s4413_s21  ;;  %v1929_v16 = vpop.permute.xlu1 %1928 }
 0x2ee   : > { %v2263_v11 = vmax.f32 %v2142_v44, 0.0  ;;  %v2076_v5 = vmax.f32 %v5919_v51, %v1929_v16  ;;  %v1807_v39 = vpop.permute.xlu0 %1806 }
 0x2ef   : > { %2931 = vst.msk [vmem:[%s5466_s12 + $0x174] sm:$0xf] %vm2837_vm3, %v3789_v4  ;;  %v2015_v32 = vmax.f32 %v5926_v62, %v1807_v39 }
 0x2f0   : > { %v3728_v52 = vpack.c.bf16 %v2263_v11, %v2263_v11  ;;  %v2204_v0 = vadd.f32 %v6196_v7, %v2076_v5  ;;  %v7246_v5 = vld [vmem:[#allocation8_spill] sm:$0xff] }
 0x2f1   : > { %v2143_v25 = vadd.f32 %v6196_v7, %v2015_v32  ;;  %1980 = vrot.lane.b32.xlu1 %v6404_v48, %s4413_s21  ;;  %v1809_v55 = vpop.permute.xlu1 %1808  ;;  %v7247_v32 = vld [vmem:[#allocation10_spill] sm:$0xff] }
 0x2f2   : > { %2870 = vst.msk [vmem:[%s5466_s12 + $0x80] sm:$0xf] %vm2837_vm3, %v3728_v52  ;;  %v2325_v51 = vmax.f32 %v2204_v0, 0.0  ;;  %v2016_v21 = vmax.f32 %v5940_v54, %v1809_v55  ;;  %v1931_v22 = vpop.permute.xlu0 %1930 }
 0x2f3   : > { %v2264_v24 = vmax.f32 %v2143_v25, 0.0  ;;  %v2077_v62 = vmax.f32 %v5946_v27, %v1931_v22 }
 0x2f4   : > { %v3790_v20 = vpack.c.bf16 %v2325_v51, %v2325_v51  ;;  %v2144_v14 = vadd.f32 %v6196_v7, %v2016_v21 }
 0x2f5   : > { %v3729_v44 = vpack.c.bf16 %v2264_v24, %v2264_v24  ;;  %v2205_v4 = vadd.f32 %v6196_v7, %v2077_v62  ;;  %v1933_v16 = vpop.permute.xlu1 %1932 }
 0x2f6   : > { %2932 = vst.msk [vmem:[%s5466_s12 + $0x178] sm:$0xf] %vm2837_vm3, %v3790_v20  ;;  %v2265_v11 = vmax.f32 %v2144_v14, 0.0  ;;  %v2078_v39 = vmax.f32 %v7246_v5, %v1933_v16  ;;  %v1811_v63 = vpop.permute.xlu0 %1810 }
 0x2f7   : > { %2871 = vst.msk [vmem:[%s5466_s12 + $0x84] sm:$0xf] %vm2837_vm3, %v3729_v44  ;;  %v2326_v54 = vmax.f32 %v2205_v4, 0.0  ;;  %v2017_v27 = vmax.f32 %v7247_v32, %v1811_v63 }
 0x2f8   : > { %v3730_v52 = vpack.c.bf16 %v2265_v11, %v2265_v11  ;;  %v2206_v0 = vadd.f32 %v6196_v7, %v2078_v39 }
 0x2f9   : > { %v3791_v25 = vpack.c.bf16 %v2326_v54, %v2326_v54  ;;  %v2145_v55 = vadd.f32 %v6196_v7, %v2017_v27  ;;  %v1813_v51 = vpop.permute.xlu1 %1812 }
 0x2fa   : > { %2872 = vst.msk [vmem:[%s5466_s12 + $0x88] sm:$0xf] %vm2837_vm3, %v3730_v52  ;;  %v2327_v21 = vmax.f32 %v2206_v0, 0.0  ;;  %v2018_v22 = vmax.f32 %v5975_v3, %v1813_v51  ;;  %v1935_v24 = vpop.permute.xlu0 %1934 }
 0x2fb   : > { %2933 = vst.msk [vmem:[%s5466_s12 + $0x17c] sm:$0xf] %vm2837_vm3, %v3791_v25  ;;  %v2266_v62 = vmax.f32 %v2145_v55, 0.0  ;;  %v2079_v20 = vmax.f32 %v5980_v53, %v1935_v24 }
 0x2fc   : > { %v3792_v14 = vpack.c.bf16 %v2327_v21, %v2327_v21  ;;  %v2146_v44 = vadd.f32 %v6196_v7, %v2018_v22  ;;  %v7248_v21 = vld [vmem:[#allocation55_spill] sm:$0xff] }
 0x2fd   : > { %v3731_v4 = vpack.c.bf16 %v2266_v62, %v2266_v62  ;;  %v2207_v16 = vadd.f32 %v6196_v7, %v2079_v20  ;;  %v1937_v11 = vpop.permute.xlu1 %1936 }
 0x2fe   : > { %2934 = vst.msk [vmem:[%s5466_s12 + $0x180] sm:$0xf] %vm2837_vm3, %v3792_v14  ;;  %v2267_v5 = vmax.f32 %v2146_v44, 0.0  ;;  %v2080_v3 = vmax.f32 %v5991_v35, %v1937_v11  ;;  %v1815_v39 = vpop.permute.xlu0 %1814 }
 0x2ff   : > { %2873 = vst.msk [vmem:[%s5466_s12 + $0x8c] sm:$0xf] %vm2837_vm3, %v3731_v4  ;;  %v2328_v63 = vmax.f32 %v2207_v16, 0.0  ;;  %v2019_v53 = vmax.f32 %v5998_v30, %v1815_v39  ;;  %v7249_v4 = vld [vmem:[#allocation56_spill] sm:$0xff] }
 0x300   : > { %v3732_v54 = vpack.c.bf16 %v2267_v5, %v2267_v5  ;;  %v2208_v32 = vadd.f32 %v6196_v7, %v2080_v3  ;;  %v7250_v5 = vld [vmem:[#allocation57_spill] sm:$0xff] }
 0x301   : > { %v3793_v27 = vpack.c.bf16 %v2328_v63, %v2328_v63  ;;  %v2147_v52 = vadd.f32 %v6196_v7, %v2019_v53  ;;  %v1817_v0 = vpop.permute.xlu1 %1816 }
 0x302   : > { %2874 = vst.msk [vmem:[%s5466_s12 + $0x90] sm:$0xf] %vm2837_vm3, %v3732_v54  ;;  %v2329_v25 = vmax.f32 %v2208_v32, 0.0  ;;  %v2020_v35 = vmax.f32 %v6012_v37, %v1817_v0  ;;  %v1939_v55 = vpop.permute.xlu0 %1938 }
 0x303   : > { %2935 = vst.msk [vmem:[%s5466_s12 + $0x184] sm:$0xf] %vm2837_vm3, %v3793_v27  ;;  %v2268_v51 = vmax.f32 %v2147_v52, 0.0  ;;  %v2081_v30 = vmax.f32 %v7248_v21, %v1939_v55 }
 0x304   : > { %v3794_v22 = vpack.c.bf16 %v2329_v25, %v2329_v25  ;;  %v2148_v24 = vadd.f32 %v6196_v7, %v2020_v35 }
 0x305   : > { %v3733_v62 = vpack.c.bf16 %v2268_v51, %v2268_v51  ;;  %v2209_v20 = vadd.f32 %v6196_v7, %v2081_v30  ;;  %v1941_v14 = vpop.permute.xlu1 %1940 }
 0x306   : > { %2936 = vst.msk [vmem:[%s5466_s12 + $0x188] sm:$0xf] %vm2837_vm3, %v3794_v22  ;;  %v2269_v44 = vmax.f32 %v2148_v24, 0.0  ;;  %v2082_v37 = vmax.f32 %v7249_v4, %v1941_v14  ;;  %v1819_v16 = vpop.permute.xlu0 %1818 }
 0x307   : > { %2875 = vst.msk [vmem:[%s5466_s12 + $0x94] sm:$0xf] %vm2837_vm3, %v3733_v62  ;;  %v2330_v11 = vmax.f32 %v2209_v20, 0.0  ;;  %v2021_v3 = vmax.f32 %v7250_v5, %v1819_v16 }
 0x308   : > { %v3734_v39 = vpack.c.bf16 %v2269_v44, %v2269_v44  ;;  %v2210_v63 = vadd.f32 %v6196_v7, %v2082_v37 }
 0x309   : > { %v3795_v53 = vpack.c.bf16 %v2330_v11, %v2330_v11  ;;  %v2149_v54 = vadd.f32 %v6196_v7, %v2021_v3  ;;  %v1821_v32 = vpop.permute.xlu1 %1820 }
 0x30a   : > { %2876 = vst.msk [vmem:[%s5466_s12 + $0x98] sm:$0xf] %vm2837_vm3, %v3734_v39  ;;  %v2331_v27 = vmax.f32 %v2210_v63, 0.0  ;;  %v2022_v52 = vmax.f32 %v6047_v31, %v1821_v32  ;;  %v1943_v0 = vpop.permute.xlu0 %1942 }
 0x30b   : > { %2937 = vst.msk [vmem:[%s5466_s12 + $0x18c] sm:$0xf] %vm2837_vm3, %v3795_v53  ;;  %v2270_v25 = vmax.f32 %v2149_v54, 0.0  ;;  %v2083_v35 = vmax.f32 %v6052_v57, %v1943_v0 }
 0x30c   : > { %v3796_v55 = vpack.c.bf16 %v2331_v27, %v2331_v27  ;;  %v2150_v51 = vadd.f32 %v6196_v7, %v2022_v52 }
 0x30d   : > { %v3735_v21 = vpack.c.bf16 %v2270_v25, %v2270_v25  ;;  %v2211_v30 = vadd.f32 %v6196_v7, %v2083_v35  ;;  %v1945_v22 = vpop.permute.xlu1 %1944  ;;  %v7251_v25 = vld [vmem:[#allocation58_spill] sm:$0xff] }
 0x30e   : > { %2938 = vst.msk [vmem:[%s5466_s12 + $0x190] sm:$0xf] %vm2837_vm3, %v3796_v55  ;;  %v2271_v24 = vmax.f32 %v2150_v51, 0.0  ;;  %v2084_v31 = vmax.f32 %v6063_v41, %v1945_v22  ;;  %v1823_v62 = vpop.permute.xlu0 %1822 }
 0x30f   : > { %2877 = vst.msk [vmem:[%s5466_s12 + $0x9c] sm:$0xf] %vm2837_vm3, %v3735_v21  ;;  %v2332_v20 = vmax.f32 %v2211_v30, 0.0  ;;  %v2023_v57 = vmax.f32 %v6070_v12, %v1823_v62 }
 0x310   : > { %v3736_v14 = vpack.c.bf16 %v2271_v24, %v2271_v24  ;;  %v2212_v44 = vadd.f32 %v6196_v7, %v2084_v31 }
 0x311   : > { %v3797_v4 = vpack.c.bf16 %v2332_v20, %v2332_v20  ;;  %v2151_v37 = vadd.f32 %v6196_v7, %v2023_v57  ;;  %v1825_v16 = vpop.permute.xlu1 %1824 }
 0x312   : > { %2878 = vst.msk [vmem:[%s5466_s12 + $0xa0] sm:$0xf] %vm2837_vm3, %v3736_v14  ;;  %v2333_v11 = vmax.f32 %v2212_v44, 0.0  ;;  %v2024_v41 = vmax.f32 %v6084_v8, %v1825_v16  ;;  %v1947_v5 = vpop.permute.xlu0 %1946 }
 0x313   : > { %2939 = vst.msk [vmem:[%s5466_s12 + $0x194] sm:$0xf] %vm2837_vm3, %v3797_v4  ;;  %v2272_v3 = vmax.f32 %v2151_v37, 0.0  ;;  %v2085_v12 = vmax.f32 %v6090_v29, %v1947_v5 }
 0x314   : > { %v3798_v39 = vpack.c.bf16 %v2333_v11, %v2333_v11  ;;  %v2152_v63 = vadd.f32 %v6196_v7, %v2024_v41 }
 0x315   : > { %v3737_v53 = vpack.c.bf16 %v2272_v3, %v2272_v3  ;;  %v2213_v54 = vadd.f32 %v6196_v7, %v2085_v12  ;;  %v1949_v32 = vpop.permute.xlu1 %1948 }
 0x316   : > { %2940 = vst.msk [vmem:[%s5466_s12 + $0x198] sm:$0xf] %vm2837_vm3, %v3798_v39  ;;  %v2273_v27 = vmax.f32 %v2152_v63, 0.0  ;;  %v2086_v8 = vmax.f32 %v6104_v13, %v1949_v32  ;;  %v1827_v52 = vpop.permute.xlu0 %1826 }
 0x317   : > { %2879 = vst.msk [vmem:[%s5466_s12 + $0xa4] sm:$0xf] %vm2837_vm3, %v3737_v53  ;;  %v2334_v0 = vmax.f32 %v2213_v54, 0.0  ;;  %v2025_v29 = vmax.f32 %v7251_v25, %v1827_v52 }
 0x318   : > { %v3738_v35 = vpack.c.bf16 %v2273_v27, %v2273_v27  ;;  %v2214_v55 = vadd.f32 %v6196_v7, %v2086_v8 }
 0x319   : > { %v3799_v51 = vpack.c.bf16 %v2334_v0, %v2334_v0  ;;  %v2153_v21 = vadd.f32 %v6196_v7, %v2025_v29  ;;  %v1829_v30 = vpop.permute.xlu1 %1828 }
 0x31a   : > { %2880 = vst.msk [vmem:[%s5466_s12 + $0xa8] sm:$0xf] %vm2837_vm3, %v3738_v35  ;;  %v2335_v22 = vmax.f32 %v2214_v55, 0.0  ;;  %v2026_v13 = vmax.f32 %v6119_v28, %v1829_v30  ;;  %v1951_v24 = vpop.permute.xlu0 %1950  ;;  %v7252_v55 = vld [vmem:[#allocation88_spill] sm:$0xff] }
 0x31b   : > { %2941 = vst.msk [vmem:[%s5466_s12 + $0x19c] sm:$0xf] %vm2837_vm3, %v3799_v51  ;;  %v2274_v31 = vmax.f32 %v2153_v21, 0.0  ;;  %v2087_v62 = vmax.f32 %v6124_v58, %v1951_v24 }
 0x31c   : > { %v3800_v20 = vpack.c.bf16 %v2335_v22, %v2335_v22  ;;  %v2154_v57 = vadd.f32 %v6196_v7, %v2026_v13 }
 0x31d   : > { %v3739_v14 = vpack.c.bf16 %v2274_v31, %v2274_v31  ;;  %v2215_v44 = vadd.f32 %v6196_v7, %v2087_v62  ;;  %v1953_v4 = vpop.permute.xlu1 %1952 }
 0x31e   : > { %2942 = vst.msk [vmem:[%s5466_s12 + $0x1a0] sm:$0xf] %vm2837_vm3, %v3800_v20  ;;  %v2275_v37 = vmax.f32 %v2154_v57, 0.0  ;;  %v2088_v28 = vmax.f32 %v6135_v50, %v1953_v4  ;;  %v1831_v16 = vpop.permute.xlu0 %1830 }
 0x31f   : > { %2881 = vst.msk [vmem:[%s5466_s12 + $0xac] sm:$0xf] %vm2837_vm3, %v3739_v14  ;;  %v2336_v11 = vmax.f32 %v2215_v44, 0.0  ;;  %v2027_v58 = vmax.f32 %v6142_v23, %v1831_v16 }
 0x320   : > { %v3740_v41 = vpack.c.bf16 %v2275_v37, %v2275_v37  ;;  %v2216_v5 = vadd.f32 %v6196_v7, %v2088_v28 }
 0x321   : > { %v3801_v3 = vpack.c.bf16 %v2336_v11, %v2336_v11  ;;  %v2155_v12 = vadd.f32 %v6196_v7, %v2027_v58  ;;  %v1833_v39 = vpop.permute.xlu1 %1832 }
 0x322   : > { %2882 = vst.msk [vmem:[%s5466_s12 + $0xb0] sm:$0xf] %vm2837_vm3, %v3740_v41  ;;  %v2337_v63 = vmax.f32 %v2216_v5, 0.0  ;;  %v2028_v50 = vmax.f32 %v6156_v19, %v1833_v39  ;;  %v1955_v53 = vpop.permute.xlu0 %1954 }
 0x323   : > { %2943 = vst.msk [vmem:[%s5466_s12 + $0x1a4] sm:$0xf] %vm2837_vm3, %v3801_v3  ;;  %v2276_v54 = vmax.f32 %v2155_v12, 0.0  ;;  %v2089_v23 = vmax.f32 %v6162_v56, %v1955_v53 }
 0x324   : > { %v3802_v32 = vpack.c.bf16 %v2337_v63, %v2337_v63  ;;  %v2156_v27 = vadd.f32 %v6196_v7, %v2028_v50 }
 0x325   : > { %v3741_v8 = vpack.c.bf16 %v2276_v54, %v2276_v54  ;;  %v2217_v52 = vadd.f32 %v6196_v7, %v2089_v23  ;;  %v1957_v0 = vpop.permute.xlu1 %1956 }
 0x326   : > { %2944 = vst.msk [vmem:[%s5466_s12 + $0x1a8] sm:$0xf] %vm2837_vm3, %v3802_v32  ;;  %v2277_v25 = vmax.f32 %v2156_v27, 0.0  ;;  %v2090_v19 = vmax.f32 %v6176_v17, %v1957_v0  ;;  %v1835_v29 = vpop.permute.xlu0 %1834 }
 0x327   : > { %2883 = vst.msk [vmem:[%s5466_s12 + $0xb4] sm:$0xf] %vm2837_vm3, %v3741_v8  ;;  %v2338_v35 = vmax.f32 %v2217_v52, 0.0  ;;  %v2029_v56 = vmax.f32 %v7252_v55, %v1835_v29 }
 0x328   : > { %v3742_v51 = vpack.c.bf16 %v2277_v25, %v2277_v25  ;;  %v2218_v21 = vadd.f32 %v6196_v7, %v2090_v19  ;;  %v7253_v25 = vld [vmem:[#allocation11_spill] sm:$0xff] }
 0x329   : > { %v3803_v30 = vpack.c.bf16 %v2338_v35, %v2338_v35  ;;  %v2157_v22 = vadd.f32 %v6196_v7, %v2029_v56  ;;  %v1837_v13 = vpop.permute.xlu1 %1836 }
 0x32a   : > { %2884 = vst.msk [vmem:[%s5466_s12 + $0xb8] sm:$0xf] %vm2837_vm3, %v3742_v51  ;;  %v2339_v24 = vmax.f32 %v2218_v21, 0.0  ;;  %v2030_v17 = vmax.f32 %v6191_v46, %v1837_v13  ;;  %v1959_v31 = vpop.permute.xlu0 %1958 }
 0x32b   : > { %2945 = vst.msk [vmem:[%s5466_s12 + $0x1ac] sm:$0xf] %vm2837_vm3, %v3803_v30  ;;  %v2278_v62 = vmax.f32 %v2157_v22, 0.0  ;;  %v2091_v20 = vmax.f32 %v6201_v43, %v1959_v31 }
 0x32c   : > { %v3804_v57 = vpack.c.bf16 %v2339_v24, %v2339_v24  ;;  %v2158_v14 = vadd.f32 %v6196_v7, %v2030_v17 }
 0x32d   : > { %v3743_v44 = vpack.c.bf16 %v2278_v62, %v2278_v62  ;;  %v2219_v4 = vadd.f32 %v6196_v7, %v2091_v20  ;;  %v1961_v37 = vpop.permute.xlu1 %1960 }
 0x32e   : > { %2946 = vst.msk [vmem:[%s5466_s12 + $0x1b0] sm:$0xf] %vm2837_vm3, %v3804_v57  ;;  %v2279_v28 = vmax.f32 %v2158_v14, 0.0  ;;  %v2092_v46 = vmax.f32 %v6212_v2, %v1961_v37  ;;  %v1839_v16 = vpop.permute.xlu0 %1838 }
 0x32f   : > { %2885 = vst.msk [vmem:[%s5466_s12 + $0xbc] sm:$0xf] %vm2837_vm3, %v3743_v44  ;;  %v2340_v11 = vmax.f32 %v2219_v4, 0.0  ;;  %v2031_v43 = vmax.f32 %v6219_v59, %v1839_v16 }
 0x330   : > { %v3744_v58 = vpack.c.bf16 %v2279_v28, %v2279_v28  ;;  %v2220_v41 = vadd.f32 %v6196_v7, %v2092_v46 }
 0x331   : > { %v3805_v5 = vpack.c.bf16 %v2340_v11, %v2340_v11  ;;  %v2159_v3 = vadd.f32 %v6196_v7, %v2031_v43  ;;  %v1841_v12 = vpop.permute.xlu1 %1840 }
 0x332   : > { %2886 = vst.msk [vmem:[%s5466_s12 + $0xc0] sm:$0xf] %vm2837_vm3, %v3744_v58  ;;  %v2341_v39 = vmax.f32 %v2220_v41, 0.0  ;;  %v2032_v2 = vmax.f32 %v6231_v6, %v1841_v12  ;;  %v1963_v63 = vpop.permute.xlu0 %1962 }
 0x333   : > { %2947 = vst.msk [vmem:[%s5466_s12 + $0x1b4] sm:$0xf] %vm2837_vm3, %v3805_v5  ;;  %v2280_v50 = vmax.f32 %v2159_v3, 0.0  ;;  %v2093_v59 = vmax.f32 %v6237_v26, %v1963_v63 }
 0x334   : > { %v3806_v53 = vpack.c.bf16 %v2341_v39, %v2341_v39  ;;  %v2160_v54 = vadd.f32 %v6196_v7, %v2032_v2  ;;  %v7254_v2 = vld [vmem:[#allocation13_spill] sm:$0xff] }
 0x335   : > { %v3745_v23 = vpack.c.bf16 %v2280_v50, %v2280_v50  ;;  %v2221_v32 = vadd.f32 %v6196_v7, %v2093_v59  ;;  %v1965_v27 = vpop.permute.xlu1 %1964 }
 0x336   : > { %2948 = vst.msk [vmem:[%s5466_s12 + $0x1b8] sm:$0xf] %vm2837_vm3, %v3806_v53  ;;  %v2281_v8 = vmax.f32 %v2160_v54, 0.0  ;;  %v2094_v6 = vmax.f32 %v6249_v49, %v1965_v27  ;;  %v1843_v52 = vpop.permute.xlu0 %1842 }
 0x337   : > { %2887 = vst.msk [vmem:[%s5466_s12 + $0xc4] sm:$0xf] %vm2837_vm3, %v3745_v23  ;;  %v2342_v0 = vmax.f32 %v2221_v32, 0.0  ;;  %v2033_v26 = vmax.f32 %v7253_v25, %v1843_v52 }
 0x338   : > { %v3746_v19 = vpack.c.bf16 %v2281_v8, %v2281_v8  ;;  %v2222_v29 = vadd.f32 %v6196_v7, %v2094_v6 }
 0x339   : > { %v3807_v35 = vpack.c.bf16 %v2342_v0, %v2342_v0  ;;  %v2161_v55 = vadd.f32 %v6196_v7, %v2033_v26  ;;  %v1845_v56 = vpop.permute.xlu1 %1844 }
 0x33a   : > { %2888 = vst.msk [vmem:[%s5466_s12 + $0xc8] sm:$0xf] %vm2837_vm3, %v3746_v19  ;;  %v2343_v51 = vmax.f32 %v2222_v29, 0.0  ;;  %v2034_v49 = vmax.f32 %v6264_v10, %v1845_v56  ;;  %v1967_v21 = vpop.permute.xlu0 %1966 }
 0x33b   : > { %2949 = vst.msk [vmem:[%s5466_s12 + $0x1bc] sm:$0xf] %vm2837_vm3, %v3807_v35  ;;  %v2282_v30 = vmax.f32 %v2161_v55, 0.0  ;;  %v2095_v22 = vmax.f32 %v6269_v61, %v1967_v21 }
 0x33c   : > { %v3808_v13 = vpack.c.bf16 %v2343_v51, %v2343_v51  ;;  %v2162_v24 = vadd.f32 %v6196_v7, %v2034_v49 }
 0x33d   : > { %v3747_v17 = vpack.c.bf16 %v2282_v30, %v2282_v30  ;;  %v2223_v31 = vadd.f32 %v6196_v7, %v2095_v22  ;;  %v1969_v62 = vpop.permute.xlu1 %1968 }
 0x33e   : > { %2950 = vst.msk [vmem:[%s5466_s12 + $0x1c0] sm:$0xf] %vm2837_vm3, %v3808_v13  ;;  %v2283_v20 = vmax.f32 %v2162_v24, 0.0  ;;  %v2096_v10 = vmax.f32 %v6280_v38, %v1969_v62  ;;  %v1847_v57 = vpop.permute.xlu0 %1846 }
 0x33f   : > { %2889 = vst.msk [vmem:[%s5466_s12 + $0xcc] sm:$0xf] %vm2837_vm3, %v3747_v17  ;;  %v2344_v14 = vmax.f32 %v2223_v31, 0.0  ;;  %v2035_v61 = vmax.f32 %v6285_v40, %v1847_v57  ;;  %v7255_v17 = vld [vmem:[#allocation89_spill] sm:$0xff] }
 0x340   : > { %v3748_v44 = vpack.c.bf16 %v2283_v20, %v2283_v20  ;;  %v2224_v4 = vadd.f32 %v6196_v7, %v2096_v10 }
 0x341   : > { %v3809_v37 = vpack.c.bf16 %v2344_v14, %v2344_v14  ;;  %v2163_v28 = vadd.f32 %v6196_v7, %v2035_v61  ;;  %v1849_v46 = vpop.permute.xlu1 %1848 }
 0x342   : > { %2890 = vst.msk [vmem:[%s5466_s12 + $0xd0] sm:$0xf] %vm2837_vm3, %v3748_v44  ;;  %v2345_v16 = vmax.f32 %v2224_v4, 0.0  ;;  %v2036_v38 = vmax.f32 %v6296_v47, %v1849_v46  ;;  %v1971_v11 = vpop.permute.xlu0 %1970 }
 0x343   : > { %2951 = vst.msk [vmem:[%s5466_s12 + $0x1c4] sm:$0xf] %vm2837_vm3, %v3809_v37  ;;  %v2284_v43 = vmax.f32 %v2163_v28, 0.0  ;;  %v2097_v40 = vmax.f32 %v6302_v18, %v1971_v11 }
 0x344   : > { %v3810_v58 = vpack.c.bf16 %v2345_v16, %v2345_v16  ;;  %v2164_v41 = vadd.f32 %v6196_v7, %v2036_v38 }
 0x345   : > { %v3749_v5 = vpack.c.bf16 %v2284_v43, %v2284_v43  ;;  %v2225_v3 = vadd.f32 %v6196_v7, %v2097_v40  ;;  %v1973_v12 = vpop.permute.xlu1 %1972 }
 0x346   : > { %2952 = vst.msk [vmem:[%s5466_s12 + $0x1c8] sm:$0xf] %vm2837_vm3, %v3810_v58  ;;  %v2285_v39 = vmax.f32 %v2164_v41, 0.0  ;;  %v2098_v47 = vmax.f32 %v7254_v2, %v1973_v12  ;;  %v1851_v63 = vpop.permute.xlu0 %1850 }
 0x347   : > { %2891 = vst.msk [vmem:[%s5466_s12 + $0xd4] sm:$0xf] %vm2837_vm3, %v3749_v5  ;;  %v2346_v50 = vmax.f32 %v2225_v3, 0.0  ;;  %v2037_v18 = vmax.f32 %v6317_v42, %v1851_v63 }
 0x348   : > { %v3750_v59 = vpack.c.bf16 %v2285_v39, %v2285_v39  ;;  %v2226_v53 = vadd.f32 %v6196_v7, %v2098_v47 }
 0x349   : > { %v3811_v54 = vpack.c.bf16 %v2346_v50, %v2346_v50  ;;  %v2165_v23 = vadd.f32 %v6196_v7, %v2037_v18  ;;  %v1853_v32 = vpop.permute.xlu1 %1852 }
 0x34a   : > { %2892 = vst.msk [vmem:[%s5466_s12 + $0xd8] sm:$0xf] %vm2837_vm3, %v3750_v59  ;;  %v2347_v27 = vmax.f32 %v2226_v53, 0.0  ;;  %v2038_v8 = vmax.f32 %v6327_v60, %v1853_v32  ;;  %v1975_v6 = vpop.permute.xlu0 %1974 }
 0x34b   : > { %2953 = vst.msk [vmem:[%s5466_s12 + $0x1cc] sm:$0xf] %vm2837_vm3, %v3811_v54  ;;  %v2286_v52 = vmax.f32 %v2165_v23, 0.0  ;;  %v2099_v42 = vmax.f32 %v6332_v34, %v1975_v6 }
 0x34c   : > { %v3812_v0 = vpack.c.bf16 %v2347_v27, %v2347_v27  ;;  %v2166_v25 = vadd.f32 %v6196_v7, %v2038_v8 }
 0x34d   : > { %v3751_v26 = vpack.c.bf16 %v2286_v52, %v2286_v52  ;;  %v2227_v19 = vadd.f32 %v6196_v7, %v2099_v42  ;;  %v1977_v29 = vpop.permute.xlu1 %1976 }
 0x34e   : > { %2954 = vst.msk [vmem:[%s5466_s12 + $0x1d0] sm:$0xf] %vm2837_vm3, %v3812_v0  ;;  %v2287_v35 = vmax.f32 %v2166_v25, 0.0  ;;  %v2100_v60 = vmax.f32 %v6342_v9, %v1977_v29  ;;  %v1855_v55 = vpop.permute.xlu0 %1854 }
 0x34f   : > { %2893 = vst.msk [vmem:[%s5466_s12 + $0xdc] sm:$0xf] %vm2837_vm3, %v3751_v26  ;;  %v2348_v56 = vmax.f32 %v2227_v19, 0.0  ;;  %v2039_v34 = vmax.f32 %v6346_v45, %v1855_v55 }
 0x350   : > { %v3752_v51 = vpack.c.bf16 %v2287_v35, %v2287_v35  ;;  %v2228_v49 = vadd.f32 %v6196_v7, %v2100_v60 }
 0x351   : > { %v3813_v21 = vpack.c.bf16 %v2348_v56, %v2348_v56  ;;  %v2167_v30 = vadd.f32 %v6196_v7, %v2039_v34  ;;  %v1857_v22 = vpop.permute.xlu1 %1856 }
 0x352   : > { %2894 = vst.msk [vmem:[%s5466_s12 + $0xe0] sm:$0xf] %vm2837_vm3, %v3752_v51  ;;  %v2349_v13 = vmax.f32 %v2228_v49, 0.0  ;;  %v2040_v9 = vmax.f32 %v6357_v33, %v1857_v22  ;;  %v1859_v24 = vpop.permute.xlu0 %1858 }
 0x353   : > { %2955 = vst.msk [vmem:[%s5466_s12 + $0x1d4] sm:$0xf] %vm2837_vm3, %v3813_v21  ;;  %v2288_v45 = vmax.f32 %v2167_v30, 0.0  ;;  %v2041_v31 = vmax.f32 %v7255_v17, %v1859_v24 }
 0x354   : > { %v3814_v62 = vpack.c.bf16 %v2349_v13, %v2349_v13  ;;  %v2168_v20 = vadd.f32 %v6196_v7, %v2040_v9 }
 0x355   : > { %v3753_v10 = vpack.c.bf16 %v2288_v45, %v2288_v45  ;;  %v2169_v57 = vadd.f32 %v6196_v7, %v2041_v31 }
 0x356   : > { %2956 = vst.msk [vmem:[%s5466_s12 + $0x1d8] sm:$0xf] %vm2837_vm3, %v3814_v62  ;;  %v2289_v14 = vmax.f32 %v2168_v20, 0.0 }
 0x357   : > { %2895 = vst.msk [vmem:[%s5466_s12 + $0xe4] sm:$0xf] %vm2837_vm3, %v3753_v10  ;;  %v2290_v61 = vmax.f32 %v2169_v57, 0.0 }
 0x358   : > { %v3754_v33 = vpack.c.bf16 %v2289_v14, %v2289_v14 }
 0x359   : > { %v3755_v44 = vpack.c.bf16 %v2290_v61, %v2290_v61 }
 0x35a   : > { %2896 = vst.msk [vmem:[%s5466_s12 + $0xe8] sm:$0xf] %vm2837_vm3, %v3754_v33  ;;  %v1863_v4 = vpop.permute.xlu0 %1862 }
 0x35b   : > { %2897 = vst.msk [vmem:[%s5466_s12 + $0xec] sm:$0xf] %vm2837_vm3, %v3755_v44  ;;  %v2043_v37 = vmax.f32 %v6379_v36, %v1863_v4 }
 0x35d   : > { %v2171_v28 = vadd.f32 %v6196_v7, %v2043_v37 }
 0x35e   : > { %v1979_v46 = vpop.permute.xlu0 %1978 }
 0x35f   : > { %v2292_v16 = vmax.f32 %v2171_v28, 0.0  ;;  %v2101_v38 = vmax.f32 %v6387_v1, %v1979_v46  ;;  %v1861_v11 = vpop.permute.xlu1 %1860 }
 0x360   : > { %v2042_v43 = vmax.f32 %v6395_v15, %v1861_v11 }
 0x361   : > { %v3757_v40 = vpack.c.bf16 %v2292_v16, %v2292_v16  ;;  %v2229_v58 = vadd.f32 %v6196_v7, %v2101_v38 }
 0x362   : > { %v2170_v41 = vadd.f32 %v6196_v7, %v2042_v43 }
 0x363   : > { %2899 = vst.msk [vmem:[%s5466_s12 + $0xf4] sm:$0xf] %vm2837_vm3, %v3757_v40  ;;  %v2350_v36 = vmax.f32 %v2229_v58, 0.0  ;;  %v1981_v5 = vpop.permute.xlu1 %1980 }
 0x364   : > { %v2291_v3 = vmax.f32 %v2170_v41, 0.0  ;;  %v2102_v12 = vmax.f32 %v6404_v48, %v1981_v5 }
 0x365   : > { %v3815_v39 = vpack.c.bf16 %v2350_v36, %v2350_v36 }
 0x366   : > { %v3756_v2 = vpack.c.bf16 %v2291_v3, %v2291_v3  ;;  %v2230_v1 = vadd.f32 %v6196_v7, %v2102_v12  ;;  %2965 = sbr.rel (!%p4459_p4) target bundleno = 968 (0x3c8), region = 36 }
 0x367   : > { %2957 = vst.msk [vmem:[%s5466_s12 + $0x1dc] sm:$0xf] %vm2837_vm3, %v3815_v39 }
 0x368   : > { %2898 = vst.msk [vmem:[%s5466_s12 + $0xf0] sm:$0xf] %vm2837_vm3, %v3756_v2  ;;  %v2351_v15 = vmax.f32 %v2230_v1, 0.0 }
 0x36a   : > { %v3816_v47 = vpack.c.bf16 %v2351_v15, %v2351_v15 }
 0x36c   : > { %2958 = vst.msk [vmem:[%s5466_s12 + $0x1e0] sm:$0xf] %vm2837_vm3, %v3816_v47 }
 0x36d   : > { %s7263_s29 = smov (!%p2968_p8, %s2967_s29), 121 }
 0x36e   : > { %s3681_s7 = sshll.u32 %s7263_s29, 6 }
 0x36f   : > { %p3684_p9 = scmp.eq.s32.totalorder %s3681_s7, 0 }
 0x370   : > { %s6648_s8 = sshrl.u32 (!%p3684_p9), %s7263_s29, 6 }
 0x371   : > { %2976 = sbr.rel (%p3684_p9) target bundleno = 968 (0x3c8), region = 40  ;;  %p3685_p10 = scmp.le.s32.totalorder (!%p3684_p9), %s6648_s8, 0 }
 0x378   : > { %3381 = sbr.rel (%p3685_p10) target bundleno = 947 (0x3b3), region = 112  ;;  %s7256_s15 = smov (!%p3685_p10), %s6642_s6 }
 0x379   : > { %s7257_s20 = smov (!%p3685_p10), %s5466_s12  ;;  %s6657_s25 = smov (!%p3685_p10), 0  }
 0x37a   : > { %s6659_s9 = smov (!%p3685_p10), 0  }
 0x37f LB: >> { %v2992_v7 = vld [vmem:[%s4384_s20] sm:$0xf]  ;;  %v2994_v48 = vld [vmem:[%s4384_s20 + $0x4] sm:$0xf]  ;;  %v2996_v63 = vld [vmem:[%s4384_s20 + $0x8] sm:$0xf]  ;;  %s4392_s9 = sphi %s6659_s9, %s2986_s9   ;;  %s4388_s25 = sphi %s6657_s25, %s7258_s25   ;;  %s4384_s20 = sphi %s7257_s20, %s3125_s20   ;;  %s4380_s15 = sphi %s7256_s15, %s3126_s15  }
 0x380   : >> { %2993 = vst [vmem:[%s4380_s15] sm:$0xf] %v2992_v7  ;;  %2995 = vst [vmem:[%s4380_s15 + $0x4] sm:$0xf] %v2994_v48  ;;  %v2998_v50 = vld [vmem:[%s4384_s20 + $0xc] sm:$0xf]  ;;  %s3120_s10 = sadd.s32 1, %s4388_s25 }
 0x381   : >> { %2997 = vst [vmem:[%s4380_s15 + $0x8] sm:$0xf] %v2996_v63  ;;  %v3000_v18 = vld [vmem:[%s4384_s20 + $0x10] sm:$0xf]  ;;  %v3002_v59 = vld [vmem:[%s4384_s20 + $0x14] sm:$0xf]  ;;  %p3121_p11 = scmp.ge.s32.totalorder %s3120_s10, %s6648_s8 }
 0x382   : >> { %2999 = vst [vmem:[%s4380_s15 + $0xc] sm:$0xf] %v2998_v50  ;;  %3001 = vst [vmem:[%s4380_s15 + $0x10] sm:$0xf] %v3000_v18  ;;  %v3004_v53 = vld [vmem:[%s4384_s20 + $0x18] sm:$0xf] }
 0x383   : >> { %3003 = vst [vmem:[%s4380_s15 + $0x14] sm:$0xf] %v3002_v59  ;;  %v3006_v54 = vld [vmem:[%s4384_s20 + $0x1c] sm:$0xf]  ;;  %v3008_v23 = vld [vmem:[%s4384_s20 + $0x20] sm:$0xf] }
 0x384   : >> { %3005 = vst [vmem:[%s4380_s15 + $0x18] sm:$0xf] %v3004_v53  ;;  %3007 = vst [vmem:[%s4380_s15 + $0x1c] sm:$0xf] %v3006_v54  ;;  %v3010_v32 = vld [vmem:[%s4384_s20 + $0x24] sm:$0xf] }
 0x385   : >> { %3009 = vst [vmem:[%s4380_s15 + $0x20] sm:$0xf] %v3008_v23  ;;  %v3012_v27 = vld [vmem:[%s4384_s20 + $0x28] sm:$0xf]  ;;  %v3014_v8 = vld [vmem:[%s4384_s20 + $0x2c] sm:$0xf] }
 0x386   : >> { %3011 = vst [vmem:[%s4380_s15 + $0x24] sm:$0xf] %v3010_v32  ;;  %3013 = vst [vmem:[%s4380_s15 + $0x28] sm:$0xf] %v3012_v27  ;;  %v3016_v6 = vld [vmem:[%s4384_s20 + $0x30] sm:$0xf] }
 0x387   : >> { %3015 = vst [vmem:[%s4380_s15 + $0x2c] sm:$0xf] %v3014_v8  ;;  %v3018_v52 = vld [vmem:[%s4384_s20 + $0x34] sm:$0xf]  ;;  %v3020_v42 = vld [vmem:[%s4384_s20 + $0x38] sm:$0xf] }
 0x388   : >> { %3017 = vst [vmem:[%s4380_s15 + $0x30] sm:$0xf] %v3016_v6  ;;  %3019 = vst [vmem:[%s4380_s15 + $0x34] sm:$0xf] %v3018_v52  ;;  %v3022_v0 = vld [vmem:[%s4384_s20 + $0x3c] sm:$0xf] }
 0x389   : >> { %3021 = vst [vmem:[%s4380_s15 + $0x38] sm:$0xf] %v3020_v42  ;;  %v3024_v25 = vld [vmem:[%s4384_s20 + $0x40] sm:$0xf]  ;;  %v3026_v26 = vld [vmem:[%s4384_s20 + $0x44] sm:$0xf] }
 0x38a   : >> { %3023 = vst [vmem:[%s4380_s15 + $0x3c] sm:$0xf] %v3022_v0  ;;  %3025 = vst [vmem:[%s4380_s15 + $0x40] sm:$0xf] %v3024_v25  ;;  %v3028_v19 = vld [vmem:[%s4384_s20 + $0x48] sm:$0xf] }
 0x38b   : >> { %3027 = vst [vmem:[%s4380_s15 + $0x44] sm:$0xf] %v3026_v26  ;;  %v3030_v29 = vld [vmem:[%s4384_s20 + $0x4c] sm:$0xf]  ;;  %v3032_v35 = vld [vmem:[%s4384_s20 + $0x50] sm:$0xf] }
 0x38c   : >> { %3029 = vst [vmem:[%s4380_s15 + $0x48] sm:$0xf] %v3028_v19  ;;  %3031 = vst [vmem:[%s4380_s15 + $0x4c] sm:$0xf] %v3030_v29  ;;  %v3034_v60 = vld [vmem:[%s4384_s20 + $0x54] sm:$0xf] }
 0x38d   : >> { %3033 = vst [vmem:[%s4380_s15 + $0x50] sm:$0xf] %v3032_v35  ;;  %v3036_v55 = vld [vmem:[%s4384_s20 + $0x58] sm:$0xf]  ;;  %v3038_v56 = vld [vmem:[%s4384_s20 + $0x5c] sm:$0xf] }
 0x38e   : >> { %3035 = vst [vmem:[%s4380_s15 + $0x54] sm:$0xf] %v3034_v60  ;;  %3037 = vst [vmem:[%s4380_s15 + $0x58] sm:$0xf] %v3036_v55  ;;  %v3040_v34 = vld [vmem:[%s4384_s20 + $0x60] sm:$0xf] }
 0x38f   : >> { %3039 = vst [vmem:[%s4380_s15 + $0x5c] sm:$0xf] %v3038_v56  ;;  %v3042_v51 = vld [vmem:[%s4384_s20 + $0x64] sm:$0xf]  ;;  %v3044_v49 = vld [vmem:[%s4384_s20 + $0x68] sm:$0xf] }
 0x390   : >> { %3041 = vst [vmem:[%s4380_s15 + $0x60] sm:$0xf] %v3040_v34  ;;  %3043 = vst [vmem:[%s4380_s15 + $0x64] sm:$0xf] %v3042_v51  ;;  %v3046_v21 = vld [vmem:[%s4384_s20 + $0x6c] sm:$0xf] }
 0x391   : >> { %3045 = vst [vmem:[%s4380_s15 + $0x68] sm:$0xf] %v3044_v49  ;;  %v3048_v30 = vld [vmem:[%s4384_s20 + $0x70] sm:$0xf]  ;;  %v3050_v22 = vld [vmem:[%s4384_s20 + $0x74] sm:$0xf] }
 0x392   : >> { %3047 = vst [vmem:[%s4380_s15 + $0x6c] sm:$0xf] %v3046_v21  ;;  %3049 = vst [vmem:[%s4380_s15 + $0x70] sm:$0xf] %v3048_v30  ;;  %v3052_v13 = vld [vmem:[%s4384_s20 + $0x78] sm:$0xf] }
 0x393   : >> { %3051 = vst [vmem:[%s4380_s15 + $0x74] sm:$0xf] %v3050_v22  ;;  %v3054_v9 = vld [vmem:[%s4384_s20 + $0x7c] sm:$0xf]  ;;  %v3056_v24 = vld [vmem:[%s4384_s20 + $0x80] sm:$0xf] }
 0x394   : >> { %3053 = vst [vmem:[%s4380_s15 + $0x78] sm:$0xf] %v3052_v13  ;;  %3055 = vst [vmem:[%s4380_s15 + $0x7c] sm:$0xf] %v3054_v9  ;;  %v3058_v45 = vld [vmem:[%s4384_s20 + $0x84] sm:$0xf] }
 0x395   : >> { %3057 = vst [vmem:[%s4380_s15 + $0x80] sm:$0xf] %v3056_v24  ;;  %v3060_v17 = vld [vmem:[%s4384_s20 + $0x88] sm:$0xf]  ;;  %v3062_v31 = vld [vmem:[%s4384_s20 + $0x8c] sm:$0xf] }
 0x396   : >> { %3059 = vst [vmem:[%s4380_s15 + $0x84] sm:$0xf] %v3058_v45  ;;  %3061 = vst [vmem:[%s4380_s15 + $0x88] sm:$0xf] %v3060_v17  ;;  %v3064_v62 = vld [vmem:[%s4384_s20 + $0x90] sm:$0xf] }
 0x397   : >> { %3063 = vst [vmem:[%s4380_s15 + $0x8c] sm:$0xf] %v3062_v31  ;;  %v3066_v20 = vld [vmem:[%s4384_s20 + $0x94] sm:$0xf]  ;;  %v3068_v10 = vld [vmem:[%s4384_s20 + $0x98] sm:$0xf] }
 0x398   : >> { %3065 = vst [vmem:[%s4380_s15 + $0x90] sm:$0xf] %v3064_v62  ;;  %3067 = vst [vmem:[%s4380_s15 + $0x94] sm:$0xf] %v3066_v20  ;;  %v3070_v57 = vld [vmem:[%s4384_s20 + $0x9c] sm:$0xf] }
 0x399   : >> { %3069 = vst [vmem:[%s4380_s15 + $0x98] sm:$0xf] %v3068_v10  ;;  %v3072_v14 = vld [vmem:[%s4384_s20 + $0xa0] sm:$0xf]  ;;  %v3074_v61 = vld [vmem:[%s4384_s20 + $0xa4] sm:$0xf] }
 0x39a   : >> { %3071 = vst [vmem:[%s4380_s15 + $0x9c] sm:$0xf] %v3070_v57  ;;  %3073 = vst [vmem:[%s4380_s15 + $0xa0] sm:$0xf] %v3072_v14  ;;  %v3076_v33 = vld [vmem:[%s4384_s20 + $0xa8] sm:$0xf] }
 0x39b   : >> { %3075 = vst [vmem:[%s4380_s15 + $0xa4] sm:$0xf] %v3074_v61  ;;  %v3078_v44 = vld [vmem:[%s4384_s20 + $0xac] sm:$0xf]  ;;  %v3080_v4 = vld [vmem:[%s4384_s20 + $0xb0] sm:$0xf] }
 0x39c   : >> { %3077 = vst [vmem:[%s4380_s15 + $0xa8] sm:$0xf] %v3076_v33  ;;  %3079 = vst [vmem:[%s4380_s15 + $0xac] sm:$0xf] %v3078_v44  ;;  %v3082_v37 = vld [vmem:[%s4384_s20 + $0xb4] sm:$0xf] }
 0x39d   : >> { %3081 = vst [vmem:[%s4380_s15 + $0xb0] sm:$0xf] %v3080_v4  ;;  %v3084_v28 = vld [vmem:[%s4384_s20 + $0xb8] sm:$0xf]  ;;  %v3086_v46 = vld [vmem:[%s4384_s20 + $0xbc] sm:$0xf] }
 0x39e   : >> { %3083 = vst [vmem:[%s4380_s15 + $0xb4] sm:$0xf] %v3082_v37  ;;  %3085 = vst [vmem:[%s4380_s15 + $0xb8] sm:$0xf] %v3084_v28  ;;  %v3088_v16 = vld [vmem:[%s4384_s20 + $0xc0] sm:$0xf] }
 0x39f   : >> { %3087 = vst [vmem:[%s4380_s15 + $0xbc] sm:$0xf] %v3086_v46  ;;  %v3090_v38 = vld [vmem:[%s4384_s20 + $0xc4] sm:$0xf]  ;;  %v3092_v11 = vld [vmem:[%s4384_s20 + $0xc8] sm:$0xf] }
 0x3a0   : >> { %3089 = vst [vmem:[%s4380_s15 + $0xc0] sm:$0xf] %v3088_v16  ;;  %3091 = vst [vmem:[%s4380_s15 + $0xc4] sm:$0xf] %v3090_v38  ;;  %v3094_v43 = vld [vmem:[%s4384_s20 + $0xcc] sm:$0xf] }
 0x3a1   : >> { %3093 = vst [vmem:[%s4380_s15 + $0xc8] sm:$0xf] %v3092_v11  ;;  %v3096_v40 = vld [vmem:[%s4384_s20 + $0xd0] sm:$0xf]  ;;  %v3098_v58 = vld [vmem:[%s4384_s20 + $0xd4] sm:$0xf] }
 0x3a2   : >> { %3095 = vst [vmem:[%s4380_s15 + $0xcc] sm:$0xf] %v3094_v43  ;;  %3097 = vst [vmem:[%s4380_s15 + $0xd0] sm:$0xf] %v3096_v40  ;;  %v3100_v41 = vld [vmem:[%s4384_s20 + $0xd8] sm:$0xf] }
 0x3a3   : >> { %3099 = vst [vmem:[%s4380_s15 + $0xd4] sm:$0xf] %v3098_v58  ;;  %v3102_v36 = vld [vmem:[%s4384_s20 + $0xdc] sm:$0xf]  ;;  %v3104_v5 = vld [vmem:[%s4384_s20 + $0xe0] sm:$0xf] }
 0x3a4   : >> { %3101 = vst [vmem:[%s4380_s15 + $0xd8] sm:$0xf] %v3100_v41  ;;  %3103 = vst [vmem:[%s4380_s15 + $0xdc] sm:$0xf] %v3102_v36  ;;  %v3106_v3 = vld [vmem:[%s4384_s20 + $0xe4] sm:$0xf] }
 0x3a5   : >> { %3105 = vst [vmem:[%s4380_s15 + $0xe0] sm:$0xf] %v3104_v5  ;;  %v3108_v12 = vld [vmem:[%s4384_s20 + $0xe8] sm:$0xf]  ;;  %v3110_v39 = vld [vmem:[%s4384_s20 + $0xec] sm:$0xf] }
 0x3a6   : >> { %3107 = vst [vmem:[%s4380_s15 + $0xe4] sm:$0xf] %v3106_v3  ;;  %3109 = vst [vmem:[%s4380_s15 + $0xe8] sm:$0xf] %v3108_v12  ;;  %v3112_v2 = vld [vmem:[%s4384_s20 + $0xf0] sm:$0xf] }
 0x3a7   : >> { %3111 = vst [vmem:[%s4380_s15 + $0xec] sm:$0xf] %v3110_v39  ;;  %v3114_v1 = vld [vmem:[%s4384_s20 + $0xf4] sm:$0xf]  ;;  %v3116_v15 = vld [vmem:[%s4384_s20 + $0xf8] sm:$0xf] }
 0x3a8   : >> { %3113 = vst [vmem:[%s4380_s15 + $0xf0] sm:$0xf] %v3112_v2  ;;  %3115 = vst [vmem:[%s4380_s15 + $0xf4] sm:$0xf] %v3114_v1  ;;  %v3118_v47 = vld [vmem:[%s4384_s20 + $0xfc] sm:$0xf] }
 0x3a9   : >> { %3117 = vst [vmem:[%s4380_s15 + $0xf8] sm:$0xf] %v3116_v15  ;;  %3119 = vst [vmem:[%s4380_s15 + $0xfc] sm:$0xf] %v3118_v47  ;;  %s7265_s10 = smov (%p3121_p11, %s3120_s10), 0  ;;  %s2986_s9 = sadd.s32 1, %s4392_s9  }
 0x3aa   : >> { %s3686_s11 = sshll.u32 %s7265_s10, 8  ;;  %p2985_p12 = scmp.ge.s32.totalorder %s2986_s9, %s6648_s8 }
 0x3ab   : >> { %s3125_s20 = scalar_lea.vmem %s5466_s12, %s3686_s11 [#allocation2]   ;;  %s3126_s15 = scalar_lea.vmem %s6642_s6, %s3686_s11  }
 0x3ac   : >> { %s7258_s25 = smov %s7265_s10  ;;  %2988 = sbr.rel (!%p2985_p12) target bundleno = 895 (0x37f), region = 118 }
 0x3b3 PF: > { %s6816_s14 = sand.u32 63, %s7263_s29   ;;  %s3818_s17 = sshll.u32 %s6648_s8, 8 }
 0x3b4   : > { %s3131_s18 = scalar_lea.vmem %s5466_s12, %s3818_s17 [#allocation2]   ;;  %s3133_s21 = scalar_lea.vmem %s6642_s6, %s3818_s17  }
 0x3b5   : > { %p3691_p13 = scmp.le.s32.totalorder %s6816_s14, 0 }
 0x3b6   : > { %s4394_s22 = smov (!%p3691_p13), %s3133_s21   ;;  %s4398_s23 = smov (!%p3691_p13), %s3131_s18  }
 0x3b7   : > { %3395 = sbr.rel (%p3691_p13) target bundleno = 968 (0x3c8), region = 123  ;;  %s4402_s24 = smov (!%p3691_p13), 0  }
 0x3b8   : > { %s4406_s26 = smov (!%p3691_p13), 0  }
 0x3be LB: >> { %v3143_v7 = vld [vmem:[%s4400_s23] sm:$0xf]  ;;  %s3145_s27 = sadd.s32 1, %s4404_s24  ;;  %s3137_s26 = sadd.s32 1, %s4408_s26   ;;  %s4408_s26 = sphi %s4406_s26, %s3137_s26   ;;  %s4404_s24 = sphi %s4402_s24, %s4403_s24   ;;  %s4400_s23 = sphi %s4398_s23, %s3150_s23   ;;  %s4396_s22 = sphi %s4394_s22, %s3151_s22  }
 0x3bf   : >> { %3144 = vst [vmem:[%s4396_s22] sm:$0xf] %v3143_v7  ;;  %p3146_p0 = scmp.ge.s32.totalorder %s3145_s27, %s6816_s14  ;;  %p3136_p1 = scmp.ge.s32.totalorder %s3137_s26, %s6816_s14 }
 0x3c1   : >> { %s7267_s27 = smov (%p3146_p0, %s3145_s27), 0  ;;  %3139 = sbr.rel (!%p3136_p1) target bundleno = 958 (0x3be), region = 129 }
 0x3c2   : >> { %s3692_s12 = sshll.u32 %s7267_s27, 2  ;;  %s4403_s24 = smov %s7267_s27  }
 0x3c3   : >> { %s3150_s23 = scalar_lea.vmem %s3131_s18, %s3692_s12 [#allocation2]   ;;  %s3151_s22 = scalar_lea.vmem %s3133_s21, %s3692_s12  }
 0x3c8 PF: > { %p10_p2 = scmp.ge.s32.totalorder %s4449_s16, 4   ;;  %s7259_s12 = smov %s4372_s13 }
 0x3c9   : > { %s7260_s13 = smov %s4457_s19  ;;  %s7261_s14 = smov %s4449_s16 }
 0x3ca   :  { %12 = sbr.rel (!%p10_p2) target bundleno = 2 (0x2), region = 140 }

// kernel: actor_critic_evaluate.3
= control target key start
LH: loop header
LB: loop body
LE: loop exit
PB: predicated region body
PF: predicated region fallthrough
CT: control target
= control target key end

     0   :  { %vm2410_vm0 = vcmask 1046528   ;;  %vm2438_vm1 = vcmask 523264   ;;  %vm2580_vm2 = vcmask 1045504   ;;  %vm2674_vm3 = vcmask 1044480   ;;  %s9184_s3 = inlined_call_operand.vmem [shape: bf16[1152,256], index: 3, kind: input, shape index: {}]   ;;  %s9185_s0 = inlined_call_operand.vmem [shape: bf16[162,1152], index: 0, kind: input, shape index: {}]   ;;  %s9186_s5 = inlined_call_operand.vmem [shape: bf16[576,128], index: 5, kind: input, shape index: {}]   ;;  %s9187_s4 = inlined_call_operand.vmem [shape: f32[1,64], index: 4, kind: input, shape index: {}]   ;;  %s9188_s7 = inlined_call_operand.vmem [shape: bf16[1152,256], index: 7, kind: input, shape index: {}]   ;;  %s9189_s6 = inlined_call_operand.vmem [shape: f32[1,128], index: 6, kind: input, shape index: {}]   ;;  %s9190_s9 = inlined_call_operand.vmem [shape: bf16[256,256], index: 9, kind: input, shape index: {}]   ;;  %s9191_s10 = inlined_call_operand.vmem [shape: bf16[5,256], index: 10, kind: input, shape index: {}]   ;;  %s9192_s1 = inlined_call_operand.vmem [shape: bf16[2,5], index: 1, kind: input, shape index: {}]   ;;  %s9193_s12 = inlined_call_operand.vmem [shape: bf16[256,64], index: 12, kind: input, shape index: {}]   ;;  %s9194_s18 = inlined_call_operand.vmem [shape: bf16[256,64], index: 18, kind: input, shape index: {}]   ;;  %s9195_s8 = inlined_call_operand.vmem [shape: f32[1,256], index: 8, kind: input, shape index: {}]   ;;  %s9196_s11 = inlined_call_operand.vmem [shape: f32[1,256], index: 11, kind: input, shape index: {}]   ;;  %s9197_s14 = inlined_call_operand.vmem [shape: bf16[64,64], index: 14, kind: input, shape index: {}]   ;;  %s9198_s13 = inlined_call_operand.vmem [shape: f32[1,64], index: 13, kind: input, shape index: {}]   ;;  %s9199_s16 = inlined_call_operand.vmem [shape: bf16[64,3], index: 16, kind: input, shape index: {}]   ;;  %s9200_s20 = inlined_call_operand.vmem [shape: bf16[64,64], index: 20, kind: input, shape index: {}]   ;;  %s9201_s15 = inlined_call_operand.vmem [shape: f32[1,64], index: 15, kind: input, shape index: {}]   ;;  %s9202_s19 = inlined_call_operand.vmem [shape: f32[1,64], index: 19, kind: input, shape index: {}]   ;;  %s9203_s22 = inlined_call_operand.vmem [shape: bf16[64,1], index: 22, kind: input, shape index: {}]   ;;  %s9204_s17 = inlined_call_operand.vmem [shape: f32[1,3], index: 17, kind: input, shape index: {}]   ;;  %s9205_s21 = inlined_call_operand.vmem [shape: f32[1,64], index: 21, kind: input, shape index: {}]   ;;  %s9206_s23 = inlined_call_operand.<no memory space> [shape: f32[1,1], index: 23, kind: input, shape index: {}]   ;;  %s9207_s2 = inlined_call_operand.vmem [shape: s32[2,1], index: 2, kind: input, shape index: {}]   ;;  %s9208_s24 = inlined_call_operand.vmem [shape: f32[2,128], index: 24, kind: output, shape index: {}]  }
   0x1   :  { %9214 = sst [smem:[#allocation3_spill]] %s9184_s3  ;;  %vm2768_vm4 = vcmask 1043456   ;;  %vm2862_vm5 = vcmask 1042432   ;;  %vm2956_vm6 = vcmask 1041408   ;;  %vm3050_vm7 = vcmask 1040384  }
   0x2   :  { %9215 = sst [smem:[#allocation4_spill]] %s9185_s0  ;;  %s9223_s27 = sld [smem:[#allocation3_spill]]  ;;  %vm4558_vm8 = vcmask 39936   ;;  %vm7282_vm9 = vmmov 0   ;;  %vm5175_vm10 = vcmask 17408  }
   0x3   :  { %9216 = sst [smem:[#allocation5_spill]] %s9186_s5 }
   0x4   :  { %9217 = sst [smem:[#allocation6_spill]] %s9187_s4  ;;  %s9225_s30 = sld [smem:[#allocation5_spill]] }
   0x5   :  { %9218 = sst [smem:[#allocation7_spill]] %s9188_s7  ;;  %s9226_s29 = sld [smem:[#allocation6_spill]] }
   0x6   :  { %9219 = sst [smem:[#allocation8_spill]] %s9189_s6  ;;  %s9224_s6 = sld [smem:[#allocation4_spill]] }
   0x7   :  { %9220 = sst [smem:[#allocation9_spill]] %s9190_s9  ;;  %s9227_s0 = sld [smem:[#allocation7_spill]] }
   0x8   :  { %9221 = sst [smem:[#allocation10_spill]] %s9191_s10  ;;  %v6559_v0 = vld [vmem:[%s9223_s27 + $0x4] ss:$8 sps:$4 sm:$0xff]   ;;  %v6561_v1 = vld [vmem:[%s9223_s27] ss:$8 sps:$4 sm:$0xff]   ;;  %s9228_s3 = sld [smem:[#allocation8_spill]] }
   0x9   :  { %9222 = sst [smem:[#allocation11_spill]] %s9192_s1  ;;  %1541 = vmatprep.subr.bf16.mxu0 %v6559_v0  ;;  %v6562_v2 = vld [vmem:[%s9223_s27 + $0x14] ss:$8 sps:$4 sm:$0xff]   ;;  %v6564_v3 = vld [vmem:[%s9223_s27 + $0x10] ss:$8 sps:$4 sm:$0xff]   ;;  %s9230_s25 = sld [smem:[#allocation10_spill]] }
   0xa   :  { %1542 = vmatpush1.bf16.msra.mxu0 %v6561_v1  ;;  %v6565_v4 = vld [vmem:[%s9223_s27 + $0x24] ss:$8 sps:$4 sm:$0xff]   ;;  %v6567_v5 = vld [vmem:[%s9223_s27 + $0x20] ss:$8 sps:$4 sm:$0xff]   ;;  %v6568_v6 = vld [vmem:[%s9223_s27 + $0x34] ss:$8 sps:$4 sm:$0xff]  }
   0xb   :  { %1543 = vmatprep.subr.bf16.mxu0 %v6562_v2  ;;  %v6570_v7 = vld [vmem:[%s9223_s27 + $0x30] ss:$8 sps:$4 sm:$0xff]   ;;  %v6571_v8 = vld [vmem:[%s9223_s27 + $0x44] ss:$8 sps:$4 sm:$0xff]   ;;  %v6573_v9 = vld [vmem:[%s9223_s27 + $0x40] ss:$8 sps:$4 sm:$0xff]  }
   0xc   :  { %v6574_v10 = vld [vmem:[%s9223_s27 + $0x54] ss:$8 sps:$4 sm:$0xff]   ;;  %v6576_v11 = vld [vmem:[%s9223_s27 + $0x50] ss:$8 sps:$4 sm:$0xff]   ;;  %v6577_v12 = vld [vmem:[%s9223_s27 + $0x64] ss:$8 sps:$4 sm:$0xff]  }
   0xd   :  { %v6609_v13 = vld [vmem:[%s9224_s6 + $0x4] ss:$36 sps:$4 sm:$0xff]   ;;  %v6580_v15 = vld [vmem:[%s9223_s27 + $0x74] ss:$8 sps:$4 sm:$0xff]   ;;  %v6582_v16 = vld [vmem:[%s9223_s27 + $0x70] ss:$8 sps:$4 sm:$0xff]  }
   0xe   :  { %1544 = vmatpush1.bf16.msra.mxu0 %v6564_v3  ;;  %v6579_v14 = vld [vmem:[%s9223_s27 + $0x60] ss:$8 sps:$4 sm:$0xff]   ;;  %1573 = vmatprep.mubr.bf16.mxu0 %v6609_v13  ;;  %v6583_v17 = vld [vmem:[%s9223_s27 + $0x84] ss:$8 sps:$4 sm:$0xff]   ;;  %v6586_v19 = vld [vmem:[%s9223_s27 + $0x94] ss:$8 sps:$4 sm:$0xff]  }
   0xf   :  { %1545 = vmatprep.subr.bf16.mxu0 %v6565_v4  ;;  %v6585_v18 = vld [vmem:[%s9223_s27 + $0x80] ss:$8 sps:$4 sm:$0xff]   ;;  %v6588_v20 = vld [vmem:[%s9223_s27 + $0x90] ss:$8 sps:$4 sm:$0xff]   ;;  %v6589_v21 = vld [vmem:[%s9223_s27 + $0xa4] ss:$8 sps:$4 sm:$0xff]  }
  0x10   :  { %v6591_v22 = vld [vmem:[%s9223_s27 + $0xa0] ss:$8 sps:$4 sm:$0xff]   ;;  %v6592_v23 = vld [vmem:[%s9223_s27 + $0xb4] ss:$8 sps:$4 sm:$0xff]   ;;  %v6594_v24 = vld [vmem:[%s9223_s27 + $0xb0] ss:$8 sps:$4 sm:$0xff]  }
  0x11   :  { %v6595_v25 = vld [vmem:[%s9223_s27 + $0xc4] ss:$8 sps:$4 sm:$0xff]   ;;  %v6597_v26 = vld [vmem:[%s9223_s27 + $0xc0] ss:$8 sps:$4 sm:$0xff]   ;;  %v6598_v27 = vld [vmem:[%s9223_s27 + $0xd4] ss:$8 sps:$4 sm:$0xff]  }
  0x12   :  { %1546 = vmatpush1.bf16.msra.mxu0 %v6567_v5  ;;  %v6600_v28 = vld [vmem:[%s9223_s27 + $0xd0] ss:$8 sps:$4 sm:$0xff]   ;;  %v6601_v29 = vld [vmem:[%s9223_s27 + $0xe4] ss:$8 sps:$4 sm:$0xff]   ;;  %v6603_v30 = vld [vmem:[%s9223_s27 + $0xe0] ss:$8 sps:$4 sm:$0xff]  }
  0x13   :  { %1547 = vmatprep.subr.bf16.mxu0 %v6568_v6  ;;  %v6604_v31 = vld [vmem:[%s9223_s27 + $0xf4] ss:$8 sps:$4 sm:$0xff]   ;;  %v6606_v32 = vld [vmem:[%s9223_s27 + $0xf0] ss:$8 sps:$4 sm:$0xff]   ;;  %v6612_v33 = vld [vmem:[%s9223_s27 + $0x104] ss:$8 sps:$4 sm:$0xff]  }
  0x14   :  { %v6607_v34 = vld [vmem:[%s9224_s6] ss:$36 sps:$4 sm:$0xff]   ;;  %v6616_v36 = vld [vmem:[%s9224_s6 + $0x4c] ss:$36 sps:$4 sm:$0xff]   ;;  %v6615_v37 = vld [vmem:[%s9223_s27 + $0x114] ss:$8 sps:$4 sm:$0xff]  }
  0x15   :  { %v6610_v35 = vld [vmem:[%s9223_s27 + $0x100] ss:$8 sps:$4 sm:$0xff]   ;;  %v6613_v38 = vld [vmem:[%s9223_s27 + $0x110] ss:$8 sps:$4 sm:$0xff]   ;;  %v6621_v39 = vld [vmem:[%s9223_s27 + $0x124] ss:$8 sps:$4 sm:$0xff]  }
  0x16   :  { %1548 = vmatpush1.bf16.msra.mxu0 %v6570_v7  ;;  %v6618_v40 = vld [vmem:[%s9224_s6 + $0x48] ss:$36 sps:$4 sm:$0xff]   ;;  %v6622_v42 = vld [vmem:[%s9224_s6 + $0x94] ss:$36 sps:$4 sm:$0xff]   ;;  %v6631_v48 = vld [vmem:[%s9224_s6 + $0xdc] ss:$36 sps:$4 sm:$0xff]  }
  0x17   :  { %1549 = vmatprep.subr.bf16.mxu0 %v6571_v8  ;;  %v6619_v41 = vld [vmem:[%s9223_s27 + $0x120] ss:$8 sps:$4 sm:$0xff]   ;;  %v6627_v43 = vld [vmem:[%s9223_s27 + $0x134] ss:$8 sps:$4 sm:$0xff]   ;;  %v6625_v44 = vld [vmem:[%s9223_s27 + $0x130] ss:$8 sps:$4 sm:$0xff]  }
  0x18   :  { %v6630_v45 = vld [vmem:[%s9223_s27 + $0x144] ss:$8 sps:$4 sm:$0xff]   ;;  %v6624_v46 = vld [vmem:[%s9224_s6 + $0x90] ss:$36 sps:$4 sm:$0xff]   ;;  %v6628_v47 = vld [vmem:[%s9223_s27 + $0x140] ss:$8 sps:$4 sm:$0xff]  }
  0x19   :  { %v6636_v49 = vld [vmem:[%s9223_s27 + $0x154] ss:$8 sps:$4 sm:$0xff]   ;;  %v6634_v50 = vld [vmem:[%s9223_s27 + $0x150] ss:$8 sps:$4 sm:$0xff]   ;;  %v6642_v52 = vld [vmem:[%s9223_s27 + $0x164] ss:$8 sps:$4 sm:$0xff]  }
  0x1a   :  { %1550 = vmatpush1.bf16.msra.mxu0 %v6573_v9  ;;  %v6633_v51 = vld [vmem:[%s9224_s6 + $0xd8] ss:$36 sps:$4 sm:$0xff]   ;;  %v6637_v53 = vld [vmem:[%s9224_s6 + $0x124] ss:$36 sps:$4 sm:$0xff]   ;;  %v6643_v59 = vld [vmem:[%s9224_s6 + $0x16c] ss:$36 sps:$4 sm:$0xff]  }
  0x1b   :  { %1551 = vmatprep.subr.bf16.mxu0 %v6574_v10  ;;  %v6640_v54 = vld [vmem:[%s9223_s27 + $0x160] ss:$8 sps:$4 sm:$0xff]   ;;  %v6647_v55 = vld [vmem:[%s9223_s27 + $0x174] ss:$8 sps:$4 sm:$0xff]   ;;  %v6645_v56 = vld [vmem:[%s9223_s27 + $0x170] ss:$8 sps:$4 sm:$0xff]  }
  0x1c   :  { %v6651_v57 = vld [vmem:[%s9223_s27 + $0x184] ss:$8 sps:$4 sm:$0xff]   ;;  %v6649_v60 = vld [vmem:[%s9223_s27 + $0x180] ss:$8 sps:$4 sm:$0xff]   ;;  %v6657_v61 = vld [vmem:[%s9223_s27 + $0x194] ss:$8 sps:$4 sm:$0xff]  }
  0x1d   :  { %v6639_v58 = vld [vmem:[%s9224_s6 + $0x120] ss:$36 sps:$4 sm:$0xff]   ;;  %v6655_v62 = vld [vmem:[%s9223_s27 + $0x190] ss:$8 sps:$4 sm:$0xff]   ;;  %v6648_v0 = vld [vmem:[%s9224_s6 + $0x168] ss:$36 sps:$4 sm:$0xff]  }
  0x1e   :  { %1552 = vmatpush1.bf16.msra.mxu0 %v6576_v11  ;;  %v6662_v63 = vld [vmem:[%s9223_s27 + $0x1a4] ss:$8 sps:$4 sm:$0xff]   ;;  %v6652_v1 = vld [vmem:[%s9224_s6 + $0x1b4] ss:$36 sps:$4 sm:$0xff]   ;;  %v6660_v2 = vld [vmem:[%s9223_s27 + $0x1a0] ss:$8 sps:$4 sm:$0xff]  }
  0x1f   :  { %1553 = vmatprep.subr.bf16.mxu0 %v6577_v12  ;;  %v6666_v3 = vld [vmem:[%s9223_s27 + $0x1b4] ss:$8 sps:$4 sm:$0xff]   ;;  %v6664_v4 = vld [vmem:[%s9223_s27 + $0x1b0] ss:$8 sps:$4 sm:$0xff]   ;;  %v6672_v5 = vld [vmem:[%s9223_s27 + $0x1c4] ss:$8 sps:$4 sm:$0xff]  }
  0x20   :  { %v6654_v6 = vld [vmem:[%s9224_s6 + $0x1b0] ss:$36 sps:$4 sm:$0xff]   ;;  %v6658_v7 = vld [vmem:[%s9224_s6 + $0x1fc] ss:$36 sps:$4 sm:$0xff]   ;;  %v6681_v12 = vld [vmem:[%s9223_s27 + $0x1e4] ss:$8 sps:$4 sm:$0xff]  }
  0x21   :  { %v6670_v8 = vld [vmem:[%s9223_s27 + $0x1c0] ss:$8 sps:$4 sm:$0xff]   ;;  %v6678_v9 = vld [vmem:[%s9223_s27 + $0x1d4] ss:$8 sps:$4 sm:$0xff]   ;;  %v6676_v10 = vld [vmem:[%s9223_s27 + $0x1d0] ss:$8 sps:$4 sm:$0xff]  }
  0x22   :  { %1554 = vmatpush1.bf16.msra.mxu0 %v6579_v14  ;;  %v6663_v11 = vld [vmem:[%s9224_s6 + $0x1f8] ss:$36 sps:$4 sm:$0xff]   ;;  %v6667_v13 = vld [vmem:[%s9224_s6 + $0x244] ss:$36 sps:$4 sm:$0xff]   ;;  %s9231_s1 = sld [smem:[#allocation11_spill]] }
  0x23   :  { %1555 = vmatprep.subr.bf16.mxu0 %v6580_v15  ;;  %v6679_v14 = vld [vmem:[%s9223_s27 + $0x1e0] ss:$8 sps:$4 sm:$0xff]   ;;  %v6686_v15 = vld [vmem:[%s9223_s27 + $0x1f4] ss:$8 sps:$4 sm:$0xff]  }
  0x26   :  { %1556 = vmatpush1.bf16.msra.mxu0 %v6582_v16  ;;  %v6684_v16 = vld [vmem:[%s9223_s27 + $0x1f0] ss:$8 sps:$4 sm:$0xff]  }
  0x27   :  { %1557 = vmatprep.subr.bf16.mxu0 %v6583_v17  ;;  %v6692_v17 = vld [vmem:[%s9223_s27 + $0x204] ss:$8 sps:$4 sm:$0xff]  }
  0x2a   :  { %1558 = vmatpush1.bf16.msra.mxu0 %v6585_v18  ;;  %v6669_v18 = vld [vmem:[%s9224_s6 + $0x240] ss:$36 sps:$4 sm:$0xff]  }
  0x2b   :  { %1559 = vmatprep.subr.bf16.mxu0 %v6586_v19  ;;  %v6673_v19 = vld [vmem:[%s9224_s6 + $0x28c] ss:$36 sps:$4 sm:$0xff]  }
  0x2e   :  { %1560 = vmatpush1.bf16.msra.mxu0 %v6588_v20  ;;  %v180_v20 = vld [vmem:[%s9224_s6 + $0x2d0] sm:$0x11] }
  0x2f   :  { %1561 = vmatprep.subr.bf16.mxu0 %v6589_v21  ;;  %v6675_v21 = vld [vmem:[%s9224_s6 + $0x288] ss:$36 sps:$4 sm:$0xff]  }
  0x32   :  { %1562 = vmatpush1.bf16.msra.mxu0 %v6591_v22  ;;  %v5656_v22 = vcombine.high %v180_v20, %v180_v20 }
  0x33   :  { %1563 = vmatprep.subr.bf16.mxu0 %v6592_v23  ;;  %v5655_v23 = vcombine.low %v180_v20, %v180_v20  ;;  %v6773_v20 = vld [vmem:[%s9223_s27 + $0x310] ss:$8 sps:$4 sm:$0xff]  }
  0x36   :  { %1564 = vmatpush1.bf16.msra.mxu0 %v6594_v24  ;;  %v6689_v24 = vld [vmem:[%s9224_s6 + $0xc] ss:$36 sps:$4 sm:$0xff]  }
  0x37   :  { %1565 = vmatprep.subr.bf16.mxu0 %v6595_v25  ;;  %v6687_v25 = vld [vmem:[%s9224_s6 + $0x8] ss:$36 sps:$4 sm:$0xff]  }
  0x3a   :  { %1566 = vmatpush1.bf16.msra.mxu0 %v6597_v26  ;;  %v6690_v26 = vld [vmem:[%s9223_s27 + $0x200] ss:$8 sps:$4 sm:$0xff]  }
  0x3b   :  { %1567 = vmatprep.subr.bf16.mxu0 %v6598_v27  ;;  %v6696_v27 = vld [vmem:[%s9224_s6 + $0x54] ss:$36 sps:$4 sm:$0xff]  }
  0x3e   :  { %1568 = vmatpush1.bf16.msra.mxu0 %v6600_v28  ;;  %v6695_v28 = vld [vmem:[%s9223_s27 + $0x214] ss:$8 sps:$4 sm:$0xff]  }
  0x3f   :  { %1569 = vmatprep.subr.bf16.mxu0 %v6601_v29  ;;  %v6693_v29 = vld [vmem:[%s9223_s27 + $0x210] ss:$8 sps:$4 sm:$0xff]  }
  0x42   :  { %1570 = vmatpush1.bf16.msra.mxu0 %v6603_v30  ;;  %v6701_v30 = vld [vmem:[%s9223_s27 + $0x224] ss:$8 sps:$4 sm:$0xff]  }
  0x43   :  { %1571 = vmatprep.subr.bf16.mxu0 %v6604_v31  ;;  %v6698_v31 = vld [vmem:[%s9224_s6 + $0x50] ss:$36 sps:$4 sm:$0xff]  }
  0x46   :  { %1572 = vmatpush1.bf16.msra.mxu0 %v6606_v32  ;;  %v6699_v32 = vld [vmem:[%s9223_s27 + $0x220] ss:$8 sps:$4 sm:$0xff]  }
  0x47   :  { %1682 = vmatprep.subr.bf16.mxu0 %v6612_v33  ;;  %v6702_v33 = vld [vmem:[%s9224_s6 + $0x9c] ss:$36 sps:$4 sm:$0xff]  }
  0x49   :  { %1574 = vmatmul.mubr.bf16.vlgmr.msra.gmra.mrb[0].mxu0 %v6607_v34  ;;  %v6707_v34 = vld [vmem:[%s9223_s27 + $0x234] ss:$8 sps:$4 sm:$0xff]  }
  0x4a   :  { %1683 = vmatpush1.bf16.msra.mxu0 %v6610_v35  ;;  %1583 = vmatprep.mubr.bf16.mxu0 %v6616_v36  ;;  %v6705_v35 = vld [vmem:[%s9223_s27 + $0x230] ss:$8 sps:$4 sm:$0xff]   ;;  %v6710_v36 = vld [vmem:[%s9223_s27 + $0x244] ss:$8 sps:$4 sm:$0xff]  }
  0x4b   :  { %1684 = vmatprep.subr.bf16.mxu0 %v6615_v37  ;;  %v6704_v37 = vld [vmem:[%s9224_s6 + $0x98] ss:$36 sps:$4 sm:$0xff]  }
  0x4e   :  { %1685 = vmatpush1.bf16.msra.mxu0 %v6613_v38  ;;  %v6708_v38 = vld [vmem:[%s9223_s27 + $0x240] ss:$8 sps:$4 sm:$0xff]  }
  0x4f   :  { %1686 = vmatprep.subr.bf16.mxu0 %v6621_v39  ;;  %v6711_v39 = vld [vmem:[%s9224_s6 + $0xe4] ss:$36 sps:$4 sm:$0xff]  }
  0x51   :  { %1584 = vmatmul.mubr.bf16.gmra.mrb[4].mxu0 %v6618_v40  ;;  %v6716_v40 = vld [vmem:[%s9223_s27 + $0x254] ss:$8 sps:$4 sm:$0xff]  }
  0x52   :  { %1687 = vmatpush1.bf16.msra.mxu0 %v6619_v41  ;;  %1593 = vmatprep.mubr.bf16.mxu0 %v6622_v42  ;;  %v6714_v41 = vld [vmem:[%s9223_s27 + $0x250] ss:$8 sps:$4 sm:$0xff]   ;;  %v6722_v42 = vld [vmem:[%s9223_s27 + $0x264] ss:$8 sps:$4 sm:$0xff]  }
  0x53   :  { %1688 = vmatprep.subr.bf16.mxu0 %v6627_v43  ;;  %v6713_v43 = vld [vmem:[%s9224_s6 + $0xe0] ss:$36 sps:$4 sm:$0xff]  }
  0x56   :  { %1689 = vmatpush1.bf16.msra.mxu0 %v6625_v44  ;;  %v6717_v44 = vld [vmem:[%s9224_s6 + $0x12c] ss:$36 sps:$4 sm:$0xff]  }
  0x57   :  { %1690 = vmatprep.subr.bf16.mxu0 %v6630_v45  ;;  %v6720_v45 = vld [vmem:[%s9223_s27 + $0x260] ss:$8 sps:$4 sm:$0xff]  }
  0x59   :  { %1594 = vmatmul.mubr.bf16.gmra.mrb[8].mxu0 %v6624_v46  ;;  %v6727_v46 = vld [vmem:[%s9223_s27 + $0x274] ss:$8 sps:$4 sm:$0xff]  }
  0x5a   :  { %1603 = vmatprep.mubr.bf16.mxu0 %v6631_v48  ;;  %1691 = vmatpush1.bf16.msra.mxu0 %v6628_v47  ;;  %v6725_v47 = vld [vmem:[%s9223_s27 + $0x270] ss:$8 sps:$4 sm:$0xff]   ;;  %v6731_v48 = vld [vmem:[%s9223_s27 + $0x284] ss:$8 sps:$4 sm:$0xff]  }
  0x5b   :  { %1692 = vmatprep.subr.bf16.mxu0 %v6636_v49  ;;  %v6719_v49 = vld [vmem:[%s9224_s6 + $0x128] ss:$36 sps:$4 sm:$0xff]  }
  0x5e   :  { %1693 = vmatpush1.bf16.msra.mxu0 %v6634_v50  ;;  %v6723_v50 = vld [vmem:[%s9224_s6 + $0x174] ss:$36 sps:$4 sm:$0xff]  }
  0x5f   :  { %1694 = vmatprep.subr.bf16.mxu0 %v6642_v52  ;;  %v6737_v52 = vld [vmem:[%s9223_s27 + $0x294] ss:$8 sps:$4 sm:$0xff]  }
  0x61   :  { %1604 = vmatmul.mubr.bf16.gmra.mrb[12].mxu0 %v6633_v51  ;;  %v6729_v51 = vld [vmem:[%s9223_s27 + $0x280] ss:$8 sps:$4 sm:$0xff]  }
  0x62   :  { %1613 = vmatprep.mubr.bf16.mxu0 %v6637_v53  ;;  %1695 = vmatpush1.bf16.msra.mxu0 %v6640_v54  ;;  %v6735_v53 = vld [vmem:[%s9223_s27 + $0x290] ss:$8 sps:$4 sm:$0xff]   ;;  %v6742_v54 = vld [vmem:[%s9223_s27 + $0x2a4] ss:$8 sps:$4 sm:$0xff]  }
  0x63   :  { %1696 = vmatprep.subr.bf16.mxu0 %v6647_v55  ;;  %v6728_v55 = vld [vmem:[%s9224_s6 + $0x170] ss:$36 sps:$4 sm:$0xff]  }
  0x66   :  { %1697 = vmatpush1.bf16.msra.mxu0 %v6645_v56  ;;  %v6732_v56 = vld [vmem:[%s9224_s6 + $0x1bc] ss:$36 sps:$4 sm:$0xff]  }
  0x67   :  { %1698 = vmatprep.subr.bf16.mxu0 %v6651_v57  ;;  %v6740_v57 = vld [vmem:[%s9223_s27 + $0x2a0] ss:$8 sps:$4 sm:$0xff]  }
  0x69   :  { %1614 = vmatmul.mubr.bf16.gmra.mrb[16].mxu0 %v6639_v58  ;;  %v6746_v58 = vld [vmem:[%s9223_s27 + $0x2b4] ss:$8 sps:$4 sm:$0xff]  }
  0x6a   :  { %1623 = vmatprep.mubr.bf16.mxu0 %v6643_v59  ;;  %1699 = vmatpush1.bf16.msra.mxu0 %v6649_v60  ;;  %v6744_v59 = vld [vmem:[%s9223_s27 + $0x2b0] ss:$8 sps:$4 sm:$0xff]   ;;  %v6752_v60 = vld [vmem:[%s9223_s27 + $0x2c4] ss:$8 sps:$4 sm:$0xff]  }
  0x6b   :  { %1700 = vmatprep.subr.bf16.mxu0 %v6657_v61  ;;  %v6734_v61 = vld [vmem:[%s9224_s6 + $0x1b8] ss:$36 sps:$4 sm:$0xff]  }
  0x6e   :  { %1701 = vmatpush1.bf16.msra.mxu0 %v6655_v62  ;;  %v6738_v62 = vld [vmem:[%s9224_s6 + $0x204] ss:$36 sps:$4 sm:$0xff]  }
  0x6f   :  { %1702 = vmatprep.subr.bf16.mxu0 %v6662_v63  ;;  %v6750_v63 = vld [vmem:[%s9223_s27 + $0x2c0] ss:$8 sps:$4 sm:$0xff]  }
  0x71   :  { %1624 = vmatmul.mubr.bf16.gmra.mrb[20].mxu0 %v6648_v0  ;;  %v6758_v0 = vld [vmem:[%s9223_s27 + $0x2d4] ss:$8 sps:$4 sm:$0xff]  }
  0x72   :  { %1633 = vmatprep.mubr.bf16.mxu0 %v6652_v1  ;;  %1703 = vmatpush1.bf16.msra.mxu0 %v6660_v2  ;;  %v6756_v1 = vld [vmem:[%s9223_s27 + $0x2d0] ss:$8 sps:$4 sm:$0xff]   ;;  %v6761_v2 = vld [vmem:[%s9223_s27 + $0x2e4] ss:$8 sps:$4 sm:$0xff]  }
  0x73   :  { %1704 = vmatprep.subr.bf16.mxu0 %v6666_v3  ;;  %v6743_v3 = vld [vmem:[%s9224_s6 + $0x200] ss:$36 sps:$4 sm:$0xff]  }
  0x76   :  { %1705 = vmatpush1.bf16.msra.mxu0 %v6664_v4  ;;  %v6747_v4 = vld [vmem:[%s9224_s6 + $0x24c] ss:$36 sps:$4 sm:$0xff]  }
  0x77   :  { %1706 = vmatprep.subr.bf16.mxu0 %v6672_v5  ;;  %v6759_v5 = vld [vmem:[%s9223_s27 + $0x2e0] ss:$8 sps:$4 sm:$0xff]  }
  0x79   :  { %1634 = vmatmul.mubr.bf16.gmra.mrb[24].mxu0 %v6654_v6  ;;  %v6766_v6 = vld [vmem:[%s9223_s27 + $0x2f4] ss:$8 sps:$4 sm:$0xff]  }
  0x7a   :  { %1643 = vmatprep.mubr.bf16.mxu0 %v6658_v7  ;;  %1707 = vmatpush1.bf16.msra.mxu0 %v6670_v8  ;;  %v6764_v7 = vld [vmem:[%s9223_s27 + $0x2f0] ss:$8 sps:$4 sm:$0xff]   ;;  %v6772_v8 = vld [vmem:[%s9223_s27 + $0x304] ss:$8 sps:$4 sm:$0xff]  }
  0x7b   :  { %1708 = vmatprep.subr.bf16.mxu0 %v6678_v9  ;;  %v6749_v9 = vld [vmem:[%s9224_s6 + $0x248] ss:$36 sps:$4 sm:$0xff]  }
  0x7e   :  { %1709 = vmatpush1.bf16.msra.mxu0 %v6676_v10  ;;  %v6753_v10 = vld [vmem:[%s9224_s6 + $0x294] ss:$36 sps:$4 sm:$0xff]  }
  0x7f   :  { %1710 = vmatprep.subr.bf16.mxu0 %v6681_v12  ;;  %v6755_v12 = vld [vmem:[%s9224_s6 + $0x290] ss:$36 sps:$4 sm:$0xff]  }
  0x81   :  { %1644 = vmatmul.mubr.bf16.gmra.mrb[28].mxu0 %v6663_v11  ;;  %v181_v11 = vld [vmem:[%s9224_s6 + $0x2d8] sm:$0x11] }
  0x82   :  { %1653 = vmatprep.mubr.bf16.mxu0 %v6667_v13  ;;  %1711 = vmatpush1.bf16.msra.mxu0 %v6679_v14  ;;  %v5658_v13 = vcombine.high %v181_v11, %v181_v11  ;;  %v5657_v14 = vcombine.low %v181_v11, %v181_v11  ;;  %v6858_v11 = vld [vmem:[%s9223_s27 + $0x414] ss:$8 sps:$4 sm:$0xff]  }
  0x83   :  { %1712 = vmatprep.subr.bf16.mxu0 %v6686_v15  ;;  %v6769_v15 = vld [vmem:[%s9224_s6 + $0x14] ss:$36 sps:$4 sm:$0xff]  }
  0x86   :  { %1713 = vmatpush1.bf16.msra.mxu0 %v6684_v16  ;;  %v6767_v16 = vld [vmem:[%s9224_s6 + $0x10] ss:$36 sps:$4 sm:$0xff]  }
  0x87   :  { %1823 = vmatprep.subr.bf16.mxu0 %v6692_v17  ;;  %v6770_v17 = vld [vmem:[%s9223_s27 + $0x300] ss:$8 sps:$4 sm:$0xff]  }
  0x89   :  { %1654 = vmatmul.mubr.bf16.gmra.mrb[32].mxu0 %v6669_v18  ;;  %v6776_v18 = vld [vmem:[%s9224_s6 + $0x5c] ss:$36 sps:$4 sm:$0xff]  }
  0x8a   :  { %1663 = vmatprep.mubr.bf16.mxu0 %v6673_v19  ;;  %v6775_v19 = vld [vmem:[%s9223_s27 + $0x314] ss:$8 sps:$4 sm:$0xff]  }
  0x91   :  { %1664 = vmatmul.mubr.bf16.gmra.mrb[36].mxu0 %v6675_v21  ;;  %v6781_v21 = vld [vmem:[%s9223_s27 + $0x324] ss:$8 sps:$4 sm:$0xff]  }
  0x92   :  { %1673 = vmatprep.mubr.bf16.mxu0 %v5656_v22  ;;  %v6778_v22 = vld [vmem:[%s9224_s6 + $0x58] ss:$36 sps:$4 sm:$0xff]  }
  0x99   :  { %1674 = vmatmul.mubr.bf16.gmra.mrb[40].mxu0 %v5655_v23  ;;  %v6779_v23 = vld [vmem:[%s9223_s27 + $0x320] ss:$8 sps:$4 sm:$0xff]  }
  0x9a   :  { %1714 = vmatprep.mubr.bf16.mxu0 %v6689_v24  ;;  %v6782_v24 = vld [vmem:[%s9224_s6 + $0xa4] ss:$36 sps:$4 sm:$0xff]  }
  0xa1   :  { %1715 = vmatmul.mubr.bf16.vlgmr.msra.gmra.mrb[0].mxu0 %v6687_v25  ;;  %v6787_v25 = vld [vmem:[%s9223_s27 + $0x334] ss:$8 sps:$4 sm:$0xff]  }
  0xa2   :  { %1824 = vmatpush1.bf16.msra.mxu0 %v6690_v26  ;;  %1724 = vmatprep.mubr.bf16.mxu0 %v6696_v27  ;;  %v6785_v26 = vld [vmem:[%s9223_s27 + $0x330] ss:$8 sps:$4 sm:$0xff]   ;;  %v6790_v27 = vld [vmem:[%s9223_s27 + $0x344] ss:$8 sps:$4 sm:$0xff]  }
  0xa3   :  { %1825 = vmatprep.subr.bf16.mxu0 %v6695_v28  ;;  %v6784_v28 = vld [vmem:[%s9224_s6 + $0xa0] ss:$36 sps:$4 sm:$0xff]  }
  0xa6   :  { %1826 = vmatpush1.bf16.msra.mxu0 %v6693_v29  ;;  %v6788_v29 = vld [vmem:[%s9223_s27 + $0x340] ss:$8 sps:$4 sm:$0xff]  }
  0xa7   :  { %1827 = vmatprep.subr.bf16.mxu0 %v6701_v30  ;;  %v6791_v30 = vld [vmem:[%s9224_s6 + $0xec] ss:$36 sps:$4 sm:$0xff]  }
  0xa9   :  { %1725 = vmatmul.mubr.bf16.gmra.mrb[4].mxu0 %v6698_v31  ;;  %v6796_v31 = vld [vmem:[%s9223_s27 + $0x354] ss:$8 sps:$4 sm:$0xff]  }
  0xaa   :  { %1828 = vmatpush1.bf16.msra.mxu0 %v6699_v32  ;;  %1734 = vmatprep.mubr.bf16.mxu0 %v6702_v33  ;;  %v6794_v32 = vld [vmem:[%s9223_s27 + $0x350] ss:$8 sps:$4 sm:$0xff]   ;;  %v6802_v33 = vld [vmem:[%s9223_s27 + $0x364] ss:$8 sps:$4 sm:$0xff]  }
  0xab   :  { %1829 = vmatprep.subr.bf16.mxu0 %v6707_v34  ;;  %v6793_v34 = vld [vmem:[%s9224_s6 + $0xe8] ss:$36 sps:$4 sm:$0xff]  }
  0xae   :  { %1830 = vmatpush1.bf16.msra.mxu0 %v6705_v35  ;;  %v6797_v35 = vld [vmem:[%s9224_s6 + $0x134] ss:$36 sps:$4 sm:$0xff]  }
  0xaf   :  { %1831 = vmatprep.subr.bf16.mxu0 %v6710_v36  ;;  %v6800_v36 = vld [vmem:[%s9223_s27 + $0x360] ss:$8 sps:$4 sm:$0xff]  }
  0xb1   :  { %1735 = vmatmul.mubr.bf16.gmra.mrb[8].mxu0 %v6704_v37  ;;  %v6807_v37 = vld [vmem:[%s9223_s27 + $0x374] ss:$8 sps:$4 sm:$0xff]  }
  0xb2   :  { %1744 = vmatprep.mubr.bf16.mxu0 %v6711_v39  ;;  %1832 = vmatpush1.bf16.msra.mxu0 %v6708_v38  ;;  %v6805_v38 = vld [vmem:[%s9223_s27 + $0x370] ss:$8 sps:$4 sm:$0xff]   ;;  %v6811_v39 = vld [vmem:[%s9223_s27 + $0x384] ss:$8 sps:$4 sm:$0xff]  }
  0xb3   :  { %1833 = vmatprep.subr.bf16.mxu0 %v6716_v40  ;;  %v6799_v40 = vld [vmem:[%s9224_s6 + $0x130] ss:$36 sps:$4 sm:$0xff]  }
  0xb6   :  { %1834 = vmatpush1.bf16.msra.mxu0 %v6714_v41  ;;  %v6803_v41 = vld [vmem:[%s9224_s6 + $0x17c] ss:$36 sps:$4 sm:$0xff]  }
  0xb7   :  { %1835 = vmatprep.subr.bf16.mxu0 %v6722_v42  ;;  %v6809_v42 = vld [vmem:[%s9223_s27 + $0x380] ss:$8 sps:$4 sm:$0xff]  }
  0xb9   :  { %1745 = vmatmul.mubr.bf16.gmra.mrb[12].mxu0 %v6713_v43  ;;  %v6817_v43 = vld [vmem:[%s9223_s27 + $0x394] ss:$8 sps:$4 sm:$0xff]  }
  0xba   :  { %1754 = vmatprep.mubr.bf16.mxu0 %v6717_v44  ;;  %1836 = vmatpush1.bf16.msra.mxu0 %v6720_v45  ;;  %v6815_v44 = vld [vmem:[%s9223_s27 + $0x390] ss:$8 sps:$4 sm:$0xff]   ;;  %v6822_v45 = vld [vmem:[%s9223_s27 + $0x3a4] ss:$8 sps:$4 sm:$0xff]  }
  0xbb   :  { %1837 = vmatprep.subr.bf16.mxu0 %v6727_v46  ;;  %v6808_v46 = vld [vmem:[%s9224_s6 + $0x178] ss:$36 sps:$4 sm:$0xff]  }
  0xbe   :  { %1838 = vmatpush1.bf16.msra.mxu0 %v6725_v47  ;;  %v6812_v47 = vld [vmem:[%s9224_s6 + $0x1c4] ss:$36 sps:$4 sm:$0xff]  }
  0xbf   :  { %1839 = vmatprep.subr.bf16.mxu0 %v6731_v48  ;;  %v6820_v48 = vld [vmem:[%s9223_s27 + $0x3a0] ss:$8 sps:$4 sm:$0xff]  }
  0xc1   :  { %1755 = vmatmul.mubr.bf16.gmra.mrb[16].mxu0 %v6719_v49  ;;  %v6826_v49 = vld [vmem:[%s9223_s27 + $0x3b4] ss:$8 sps:$4 sm:$0xff]  }
  0xc2   :  { %1764 = vmatprep.mubr.bf16.mxu0 %v6723_v50  ;;  %1840 = vmatpush1.bf16.msra.mxu0 %v6729_v51  ;;  %v6824_v50 = vld [vmem:[%s9223_s27 + $0x3b0] ss:$8 sps:$4 sm:$0xff]   ;;  %v6832_v51 = vld [vmem:[%s9223_s27 + $0x3c4] ss:$8 sps:$4 sm:$0xff]  }
  0xc3   :  { %1841 = vmatprep.subr.bf16.mxu0 %v6737_v52  ;;  %v7278_v52 = vmov 0  }
  0xc4   :  { %6557 = vset.pattern.permute.xlu0 %v7278_v52  ;;  %6558 = vset.pattern.permute.xlu1 %v7278_v52 }
  0xc6   :  { %1842 = vmatpush1.bf16.msra.mxu0 %v6735_v53  ;;  %v6814_v53 = vld [vmem:[%s9224_s6 + $0x1c0] ss:$36 sps:$4 sm:$0xff]  }
  0xc7   :  { %1843 = vmatprep.subr.bf16.mxu0 %v6742_v54  ;;  %v6818_v54 = vld [vmem:[%s9224_s6 + $0x20c] ss:$36 sps:$4 sm:$0xff]  }
  0xc9   :  { %1765 = vmatmul.mubr.bf16.gmra.mrb[20].mxu0 %v6728_v55  ;;  %v6830_v55 = vld [vmem:[%s9223_s27 + $0x3c0] ss:$8 sps:$4 sm:$0xff]  }
  0xca   :  { %1774 = vmatprep.mubr.bf16.mxu0 %v6732_v56  ;;  %1844 = vmatpush1.bf16.msra.mxu0 %v6740_v57  ;;  %v6838_v56 = vld [vmem:[%s9223_s27 + $0x3d4] ss:$8 sps:$4 sm:$0xff]   ;;  %v6836_v57 = vld [vmem:[%s9223_s27 + $0x3d0] ss:$8 sps:$4 sm:$0xff]  }
  0xcb   :  { %1845 = vmatprep.subr.bf16.mxu0 %v6746_v58  ;;  %v6841_v58 = vld [vmem:[%s9223_s27 + $0x3e4] ss:$8 sps:$4 sm:$0xff]  }
  0xce   :  { %1846 = vmatpush1.bf16.msra.mxu0 %v6744_v59  ;;  %v6823_v59 = vld [vmem:[%s9224_s6 + $0x208] ss:$36 sps:$4 sm:$0xff]  }
  0xcf   :  { %1847 = vmatprep.subr.bf16.mxu0 %v6752_v60  ;;  %v6827_v60 = vld [vmem:[%s9224_s6 + $0x254] ss:$36 sps:$4 sm:$0xff]  }
  0xd1   :  { %1775 = vmatmul.mubr.bf16.gmra.mrb[24].mxu0 %v6734_v61  ;;  %v6839_v61 = vld [vmem:[%s9223_s27 + $0x3e0] ss:$8 sps:$4 sm:$0xff]  }
  0xd2   :  { %1784 = vmatprep.mubr.bf16.mxu0 %v6738_v62  ;;  %1848 = vmatpush1.bf16.msra.mxu0 %v6750_v63  ;;  %v6846_v62 = vld [vmem:[%s9223_s27 + $0x3f4] ss:$8 sps:$4 sm:$0xff]   ;;  %v6844_v63 = vld [vmem:[%s9223_s27 + $0x3f0] ss:$8 sps:$4 sm:$0xff]  }
  0xd3   :  { %1849 = vmatprep.subr.bf16.mxu0 %v6758_v0  ;;  %v6852_v0 = vld [vmem:[%s9223_s27 + $0x404] ss:$8 sps:$4 sm:$0xff]  }
  0xd6   :  { %1850 = vmatpush1.bf16.msra.mxu0 %v6756_v1  ;;  %v6829_v1 = vld [vmem:[%s9224_s6 + $0x250] ss:$36 sps:$4 sm:$0xff]  }
  0xd7   :  { %1851 = vmatprep.subr.bf16.mxu0 %v6761_v2  ;;  %v6833_v2 = vld [vmem:[%s9224_s6 + $0x29c] ss:$36 sps:$4 sm:$0xff]  }
  0xd9   :  { %1785 = vmatmul.mubr.bf16.gmra.mrb[28].mxu0 %v6743_v3  ;;  %v182_v3 = vld [vmem:[%s9224_s6 + $0x2e0] sm:$0x11] }
  0xda   :  { %1794 = vmatprep.mubr.bf16.mxu0 %v6747_v4  ;;  %1852 = vmatpush1.bf16.msra.mxu0 %v6759_v5  ;;  %v6835_v4 = vld [vmem:[%s9224_s6 + $0x298] ss:$36 sps:$4 sm:$0xff]   ;;  %v5660_v5 = vcombine.high %v182_v3, %v182_v3 }
  0xdb   :  { %1853 = vmatprep.subr.bf16.mxu0 %v6766_v6  ;;  %v5659_v6 = vcombine.low %v182_v3, %v182_v3 }
  0xde   :  { %1854 = vmatpush1.bf16.msra.mxu0 %v6764_v7  ;;  %v6849_v7 = vld [vmem:[%s9224_s6 + $0x1c] ss:$36 sps:$4 sm:$0xff]  }
  0xdf   :  { %1964 = vmatprep.subr.bf16.mxu0 %v6772_v8  ;;  %v6847_v8 = vld [vmem:[%s9224_s6 + $0x18] ss:$36 sps:$4 sm:$0xff]  }
  0xe1   :  { %1795 = vmatmul.mubr.bf16.gmra.mrb[32].mxu0 %v6749_v9  ;;  %v6850_v9 = vld [vmem:[%s9223_s27 + $0x400] ss:$8 sps:$4 sm:$0xff]  }
  0xe2   :  { %1804 = vmatprep.mubr.bf16.mxu0 %v6753_v10  ;;  %v6853_v10 = vld [vmem:[%s9224_s6 + $0x64] ss:$36 sps:$4 sm:$0xff]  }
  0xe9   :  { %1805 = vmatmul.mubr.bf16.gmra.mrb[36].mxu0 %v6755_v12  ;;  %v6856_v12 = vld [vmem:[%s9223_s27 + $0x410] ss:$8 sps:$4 sm:$0xff]  }
  0xea   :  { %1814 = vmatprep.mubr.bf16.mxu0 %v5658_v13  ;;  %v6864_v13 = vld [vmem:[%s9223_s27 + $0x424] ss:$8 sps:$4 sm:$0xff]  }
  0xf1   :  { %1815 = vmatmul.mubr.bf16.gmra.mrb[40].mxu0 %v5657_v14  ;;  %v6855_v14 = vld [vmem:[%s9224_s6 + $0x60] ss:$36 sps:$4 sm:$0xff]  }
  0xf2   :  { %1855 = vmatprep.mubr.bf16.mxu0 %v6769_v15  ;;  %v6859_v15 = vld [vmem:[%s9224_s6 + $0xac] ss:$36 sps:$4 sm:$0xff]  }
  0xf9   :  { %1856 = vmatmul.mubr.bf16.vlgmr.msra.gmra.mrb[0].mxu0 %v6767_v16  ;;  %v6862_v16 = vld [vmem:[%s9223_s27 + $0x420] ss:$8 sps:$4 sm:$0xff]  }
  0xfa   :  { %1965 = vmatpush1.bf16.msra.mxu0 %v6770_v17  ;;  %1865 = vmatprep.mubr.bf16.mxu0 %v6776_v18  ;;  %v6873_v17 = vld [vmem:[%s9223_s27 + $0x434] ss:$8 sps:$4 sm:$0xff]   ;;  %v6871_v18 = vld [vmem:[%s9223_s27 + $0x430] ss:$8 sps:$4 sm:$0xff]  }
  0xfb   :  { %1966 = vmatprep.subr.bf16.mxu0 %v6775_v19  ;;  %v6879_v19 = vld [vmem:[%s9223_s27 + $0x444] ss:$8 sps:$4 sm:$0xff]  }
  0xfe   :  { %1967 = vmatpush1.bf16.msra.mxu0 %v6773_v20  ;;  %v6861_v20 = vld [vmem:[%s9224_s6 + $0xa8] ss:$36 sps:$4 sm:$0xff]  }
  0xff   :  { %1968 = vmatprep.subr.bf16.mxu0 %v6781_v21  ;;  %v6865_v21 = vld [vmem:[%s9224_s6 + $0xf4] ss:$36 sps:$4 sm:$0xff]  }
 0x101   :  { %1866 = vmatmul.mubr.bf16.gmra.mrb[4].mxu0 %v6778_v22  ;;  %v6877_v22 = vld [vmem:[%s9223_s27 + $0x440] ss:$8 sps:$4 sm:$0xff]  }
 0x102   :  { %1969 = vmatpush1.bf16.msra.mxu0 %v6779_v23  ;;  %1875 = vmatprep.mubr.bf16.mxu0 %v6782_v24  ;;  %v6887_v23 = vld [vmem:[%s9223_s27 + $0x454] ss:$8 sps:$4 sm:$0xff]   ;;  %v6885_v24 = vld [vmem:[%s9223_s27 + $0x450] ss:$8 sps:$4 sm:$0xff]  }
 0x103   :  { %1970 = vmatprep.subr.bf16.mxu0 %v6787_v25  ;;  %v6894_v25 = vld [vmem:[%s9223_s27 + $0x464] ss:$8 sps:$4 sm:$0xff]  }
 0x106   :  { %1971 = vmatpush1.bf16.msra.mxu0 %v6785_v26  ;;  %v6867_v26 = vld [vmem:[%s9224_s6 + $0xf0] ss:$36 sps:$4 sm:$0xff]  }
 0x107   :  { %1972 = vmatprep.subr.bf16.mxu0 %v6790_v27  ;;  %v6868_v27 = vld [vmem:[%s9224_s6 + $0x13c] ss:$36 sps:$4 sm:$0xff]  }
 0x109   :  { %1876 = vmatmul.mubr.bf16.gmra.mrb[8].mxu0 %v6784_v28  ;;  %v6892_v28 = vld [vmem:[%s9223_s27 + $0x460] ss:$8 sps:$4 sm:$0xff]  }
 0x10a   :  { %1885 = vmatprep.mubr.bf16.mxu0 %v6791_v30  ;;  %1973 = vmatpush1.bf16.msra.mxu0 %v6788_v29  ;;  %v6900_v29 = vld [vmem:[%s9223_s27 + $0x474] ss:$8 sps:$4 sm:$0xff]   ;;  %v6898_v30 = vld [vmem:[%s9223_s27 + $0x470] ss:$8 sps:$4 sm:$0xff]   ;;  %s9229_s27 = sld [smem:[#allocation9_spill]] }
 0x10b   :  { %1974 = vmatprep.subr.bf16.mxu0 %v6796_v31  ;;  %v6870_v31 = vld [vmem:[%s9224_s6 + $0x138] ss:$36 sps:$4 sm:$0xff]  }
 0x10e   :  { %1975 = vmatpush1.bf16.msra.mxu0 %v6794_v32  ;;  %v6874_v32 = vld [vmem:[%s9224_s6 + $0x184] ss:$36 sps:$4 sm:$0xff]  }
 0x10f   :  { %1976 = vmatprep.subr.bf16.mxu0 %v6802_v33  ;;  %v6876_v33 = vld [vmem:[%s9224_s6 + $0x180] ss:$36 sps:$4 sm:$0xff]  }
 0x111   :  { %1886 = vmatmul.mubr.bf16.gmra.mrb[12].mxu0 %v6793_v34  ;;  %v6880_v34 = vld [vmem:[%s9224_s6 + $0x1cc] ss:$36 sps:$4 sm:$0xff]  }
 0x112   :  { %1895 = vmatprep.mubr.bf16.mxu0 %v6797_v35  ;;  %1977 = vmatpush1.bf16.msra.mxu0 %v6800_v36  ;;  %v6882_v35 = vld [vmem:[%s9224_s6 + $0x1c8] ss:$36 sps:$4 sm:$0xff]   ;;  %v6883_v36 = vld [vmem:[%s9224_s6 + $0x214] ss:$36 sps:$4 sm:$0xff]  }
 0x113   :  { %1978 = vmatprep.subr.bf16.mxu0 %v6807_v37  ;;  %v6888_v37 = vld [vmem:[%s9224_s6 + $0x210] ss:$36 sps:$4 sm:$0xff]  }
 0x116   :  { %1979 = vmatpush1.bf16.msra.mxu0 %v6805_v38  ;;  %v6889_v38 = vld [vmem:[%s9224_s6 + $0x25c] ss:$36 sps:$4 sm:$0xff]  }
 0x117   :  { %1980 = vmatprep.subr.bf16.mxu0 %v6811_v39  ;;  %v6891_v39 = vld [vmem:[%s9224_s6 + $0x258] ss:$36 sps:$4 sm:$0xff]  }
 0x119   :  { %1896 = vmatmul.mubr.bf16.gmra.mrb[16].mxu0 %v6799_v40  ;;  %v6895_v40 = vld [vmem:[%s9224_s6 + $0x2a4] ss:$36 sps:$4 sm:$0xff]  }
 0x11a   :  { %1905 = vmatprep.mubr.bf16.mxu0 %v6803_v41  ;;  %1981 = vmatpush1.bf16.msra.mxu0 %v6809_v42  ;;  %v183_v41 = vld [vmem:[%s9224_s6 + $0x2e8] sm:$0x11]  ;;  %v6897_v42 = vld [vmem:[%s9224_s6 + $0x2a0] ss:$36 sps:$4 sm:$0xff]  }
 0x11b   :  { %1982 = vmatprep.subr.bf16.mxu0 %v6817_v43  ;;  %v5662_v43 = vcombine.high %v183_v41, %v183_v41 }
 0x11e   :  { %1983 = vmatpush1.bf16.msra.mxu0 %v6815_v44  ;;  %v5661_v44 = vcombine.low %v183_v41, %v183_v41 }
 0x11f   :  { %1984 = vmatprep.subr.bf16.mxu0 %v6822_v45  ;;  %v6903_v45 = vld [vmem:[%s9224_s6 + $0x20] ss:$36 sps:$4 sm:$0xff]  }
 0x121   :  { %1906 = vmatmul.mubr.bf16.gmra.mrb[20].mxu0 %v6808_v46  ;;  %v6904_v46 = vld [vmem:[%s9224_s6 + $0x68] ss:$36 sps:$4 sm:$0xff]  }
 0x122   :  { %1915 = vmatprep.mubr.bf16.mxu0 %v6812_v47  ;;  %1985 = vmatpush1.bf16.msra.mxu0 %v6820_v48  ;;  %v6905_v47 = vld [vmem:[%s9224_s6 + $0xb0] ss:$36 sps:$4 sm:$0xff]   ;;  %v6906_v48 = vld [vmem:[%s9224_s6 + $0xf8] ss:$36 sps:$4 sm:$0xff]  }
 0x123   :  { %1986 = vmatprep.subr.bf16.mxu0 %v6826_v49  ;;  %v6907_v49 = vld [vmem:[%s9224_s6 + $0x140] ss:$36 sps:$4 sm:$0xff]  }
 0x126   :  { %1987 = vmatpush1.bf16.msra.mxu0 %v6824_v50  ;;  %v6908_v50 = vld [vmem:[%s9224_s6 + $0x188] ss:$36 sps:$4 sm:$0xff]  }
 0x127   :  { %1988 = vmatprep.subr.bf16.mxu0 %v6832_v51  ;;  %v6909_v51 = vld [vmem:[%s9224_s6 + $0x1d0] ss:$36 sps:$4 sm:$0xff]  }
 0x129   :  { %1916 = vmatmul.mubr.bf16.gmra.mrb[24].mxu0 %v6814_v53  ;;  %v6910_v53 = vld [vmem:[%s9224_s6 + $0x218] ss:$36 sps:$4 sm:$0xff]  }
 0x12a   :  { %1925 = vmatprep.mubr.bf16.mxu0 %v6818_v54  ;;  %1989 = vmatpush1.bf16.msra.mxu0 %v6830_v55  ;;  %v6911_v54 = vld [vmem:[%s9224_s6 + $0x260] ss:$36 sps:$4 sm:$0xff]   ;;  %v6912_v55 = vld [vmem:[%s9224_s6 + $0x2a8] ss:$36 sps:$4 sm:$0xff]  }
 0x12b   :  { %1990 = vmatprep.subr.bf16.mxu0 %v6838_v56  ;;  %v6913_v56 = vld [vmem:[%s9224_s6 + $0x2f0] ss:$0 sps:$4 sm:$0x11]   ;;  %s7279_s6 = smov 64  }
 0x12e   :  { %1991 = vmatpush1.bf16.msra.mxu0 %v6836_v57 }
 0x12f   :  { %1992 = vmatprep.subr.bf16.mxu0 %v6841_v58 }
 0x131   :  { %1926 = vmatmul.mubr.bf16.gmra.mrb[28].mxu0 %v6823_v59 }
 0x132   :  { %1935 = vmatprep.mubr.bf16.mxu0 %v6827_v60  ;;  %1993 = vmatpush1.bf16.msra.mxu0 %v6839_v61 }
 0x133   :  { %1994 = vmatprep.subr.bf16.mxu0 %v6846_v62 }
 0x136   :  { %1995 = vmatpush1.bf16.msra.mxu0 %v6844_v63  ;;  %v6914_v63 = vld [vmem:[%s9225_s30 + $0x20] sm:$0xff]  }
 0x137   :  { %2105 = vmatprep.subr.bf16.mxu0 %v6852_v0  ;;  %6220 = vmatprep.subr.bf16.mxu1 %v6914_v63 }
 0x138   :  { %6221 = vmatpush3.bf16.msra.mxu1 %v6914_v63 }
 0x139   :  { %1936 = vmatmul.mubr.bf16.gmra.mrb[32].mxu0 %v6829_v1  ;;  %v6915_v1 = vld [vmem:[%s9225_s30 + $0x28] sm:$0xff]  }
 0x13a   :  { %1945 = vmatprep.mubr.bf16.mxu0 %v6833_v2  ;;  %6222 = vmatprep.subr.bf16.mxu1 %v6915_v1 }
 0x13c   :  { %6223 = vmatpush3.bf16.msra.mxu1 %v6915_v1 }
 0x141   :  { %1946 = vmatmul.mubr.bf16.gmra.mrb[36].mxu0 %v6835_v4 }
 0x142   :  { %1955 = vmatprep.mubr.bf16.mxu0 %v5660_v5 }
 0x149   :  { %1956 = vmatmul.mubr.bf16.gmra.mrb[40].mxu0 %v5659_v6 }
 0x14a   :  { %1996 = vmatprep.mubr.bf16.mxu0 %v6849_v7  ;;  %v6916_v7 = vld [vmem:[%s9225_s30 + $0x30] sm:$0xff]  }
 0x14b   :  { %6224 = vmatprep.subr.bf16.mxu1 %v6916_v7 }
 0x14c   :  { %6225 = vmatpush3.bf16.msra.mxu1 %v6916_v7 }
 0x151   :  { %1997 = vmatmul.mubr.bf16.vlgmr.msra.gmra.mrb[0].mxu0 %v6847_v8 }
 0x152   :  { %2106 = vmatpush1.bf16.msra.mxu0 %v6850_v9  ;;  %2006 = vmatprep.mubr.bf16.mxu0 %v6853_v10  ;;  %v6917_v9 = vld [vmem:[%s9225_s30 + $0x38] sm:$0xff]  }
 0x153   :  { %2107 = vmatprep.subr.bf16.mxu0 %v6858_v11  ;;  %6226 = vmatprep.subr.bf16.mxu1 %v6917_v9 }
 0x154   :  { %6227 = vmatpush3.bf16.msra.mxu1 %v6917_v9  ;;  %v8245_v9 = vld [vmem:[%s9226_s29] ss:$0 sm:$0xff] }
 0x156   :  { %2108 = vmatpush1.bf16.msra.mxu0 %v6856_v12 }
 0x157   :  { %2109 = vmatprep.subr.bf16.mxu0 %v6864_v13 }
 0x159   :  { %2007 = vmatmul.mubr.bf16.gmra.mrb[4].mxu0 %v6855_v14 }
 0x15a   :  { %2016 = vmatprep.mubr.bf16.mxu0 %v6859_v15  ;;  %2110 = vmatpush1.bf16.msra.mxu0 %v6862_v16  ;;  %v8173_v15 = vld [vmem:[%s9225_s30] sm:$0xff]  }
 0x15b   :  { %2111 = vmatprep.subr.bf16.mxu0 %v6873_v17  ;;  %6232 = vmatprep.subr.bf16.mxu1 %v8173_v15 }
 0x15e   :  { %2112 = vmatpush1.bf16.msra.mxu0 %v6871_v18 }
 0x15f   :  { %2113 = vmatprep.subr.bf16.mxu0 %v6879_v19 }
 0x161   :  { %2017 = vmatmul.mubr.bf16.gmra.mrb[8].mxu0 %v6861_v20 }
 0x162   :  { %2026 = vmatprep.mubr.bf16.mxu0 %v6865_v21  ;;  %2114 = vmatpush1.bf16.msra.mxu0 %v6877_v22 }
 0x163   :  { %2115 = vmatprep.subr.bf16.mxu0 %v6887_v23 }
 0x166   :  { %2116 = vmatpush1.bf16.msra.mxu0 %v6885_v24 }
 0x167   :  { %2117 = vmatprep.subr.bf16.mxu0 %v6894_v25 }
 0x169   :  { %2027 = vmatmul.mubr.bf16.gmra.mrb[12].mxu0 %v6867_v26 }
 0x16a   :  { %2036 = vmatprep.mubr.bf16.mxu0 %v6868_v27  ;;  %2118 = vmatpush1.bf16.msra.mxu0 %v6892_v28 }
 0x16b   :  { %2119 = vmatprep.subr.bf16.mxu0 %v6900_v29 }
 0x16e   :  { %2120 = vmatpush1.bf16.msra.mxu0 %v6898_v30 }
 0x171   :  { %2037 = vmatmul.mubr.bf16.gmra.mrb[16].mxu0 %v6870_v31 }
 0x172   :  { %2046 = vmatprep.mubr.bf16.mxu0 %v6874_v32 }
 0x179   :  { %2047 = vmatmul.mubr.bf16.gmra.mrb[20].mxu0 %v6876_v33 }
 0x17a   :  { %2056 = vmatprep.mubr.bf16.mxu0 %v6880_v34 }
 0x181   :  { %2057 = vmatmul.mubr.bf16.gmra.mrb[24].mxu0 %v6882_v35 }
 0x182   :  { %2066 = vmatprep.mubr.bf16.mxu0 %v6883_v36 }
 0x189   :  { %2067 = vmatmul.mubr.bf16.gmra.mrb[28].mxu0 %v6888_v37 }
 0x18a   :  { %2076 = vmatprep.mubr.bf16.mxu0 %v6889_v38 }
 0x191   :  { %2077 = vmatmul.mubr.bf16.gmra.mrb[32].mxu0 %v6891_v39 }
 0x192   :  { %2086 = vmatprep.mubr.bf16.mxu0 %v6895_v40 }
 0x199   :  { %2087 = vmatmul.mubr.bf16.gmra.mrb[36].mxu0 %v6897_v42 }
 0x19a   :  { %2096 = vmatprep.mubr.bf16.mxu0 %v5662_v43 }
 0x1a1   :  { %2097 = vmatmul.mubr.bf16.gmra.mrb[40].mxu0 %v5661_v44 }
 0x1a2   :  { %2137 = vmatprep.mubr.bf16.mxu0 %v7278_v52 }
 0x1a9   :  { %2138 = vmatmul.mubr.bf16.vlgmr.msra.gmra.mrb[0].mxu0 %v6903_v45 }
 0x1aa   :  { %2147 = vmatprep.mubr.bf16.mxu0 %v7278_v52 }
 0x1b1   :  { %2148 = vmatmul.mubr.bf16.gmra.mrb[4].mxu0 %v6904_v46 }
 0x1b2   :  { %2157 = vmatprep.mubr.bf16.mxu0 %v7278_v52 }
 0x1b9   :  { %2158 = vmatmul.mubr.bf16.gmra.mrb[8].mxu0 %v6905_v47 }
 0x1ba   :  { %2167 = vmatprep.mubr.bf16.mxu0 %v7278_v52 }
 0x1c1   :  { %2168 = vmatmul.mubr.bf16.gmra.mrb[12].mxu0 %v6906_v48 }
 0x1c2   :  { %2177 = vmatprep.mubr.bf16.mxu0 %v7278_v52 }
 0x1c9   :  { %2178 = vmatmul.mubr.bf16.gmra.mrb[16].mxu0 %v6907_v49 }
 0x1ca   :  { %2187 = vmatprep.mubr.bf16.mxu0 %v7278_v52 }
 0x1d1   :  { %2188 = vmatmul.mubr.bf16.gmra.mrb[20].mxu0 %v6908_v50 }
 0x1d2   :  { %2197 = vmatprep.mubr.bf16.mxu0 %v7278_v52 }
 0x1d9   :  { %2198 = vmatmul.mubr.bf16.gmra.mrb[24].mxu0 %v6909_v51 }
 0x1da   :  { %2207 = vmatprep.mubr.bf16.mxu0 %v7278_v52 }
 0x1e1   :  { %2208 = vmatmul.mubr.bf16.gmra.mrb[28].mxu0 %v6910_v53 }
 0x1e2   :  { %2217 = vmatprep.mubr.bf16.mxu0 %v7278_v52 }
 0x1e9   :  { %2218 = vmatmul.mubr.bf16.gmra.mrb[32].mxu0 %v6911_v54 }
 0x1ea   :  { %2227 = vmatprep.mubr.bf16.mxu0 %v7278_v52 }
 0x1f1   :  { %2228 = vmatmul.mubr.bf16.gmra.mrb[36].mxu0 %v6912_v55 }
 0x1f2   :  { %2237 = vmatprep.mubr.bf16.mxu0 %v7278_v52 }
 0x1f9   :  { %2238 = vmatmul.mubr.bf16.gmra.mrb[40].mxu0 %v6913_v56 }
 0x27c   :  { %v2139_v57 = vpop.f32.mrb[0].mxu0 }
 0x27d   :  { %v2141_v58 = vpop.f32.mrb[1].mxu0 }
 0x27e   :  { %v8138_v59 = vmax.f32 %v2139_v57, %v2141_v58  ;;  %v2143_v60 = vpop.f32.mrb[2].mxu0 }
 0x27f   :  { %v2145_v61 = vpop.f32.mrb[3].mxu0 }
 0x280   :  { %v8140_v62 = vmax.f32 %v2143_v60, %v2145_v61 }
 0x284   :  { %v2149_v0 = vpop.f32.mrb[4].mxu0 }
 0x285   :  { %v2151_v2 = vpop.f32.mrb[5].mxu0 }
 0x286   :  { %v8148_v3 = vmax.f32 %v2149_v0, %v2151_v2  ;;  %v2153_v4 = vpop.f32.mrb[6].mxu0 }
 0x287   :  { %v2155_v5 = vpop.f32.mrb[7].mxu0 }
 0x288   :  { %v8150_v6 = vmax.f32 %v2153_v4, %v2155_v5  ;;  %2271 = vrot.lane.b32.xlu0 %v8148_v3, %s7279_s6 }
 0x28c   :  { %2273 = vrot.lane.b32.xlu0 %v8150_v6, %s7279_s6  ;;  %v2159_v8 = vpop.f32.mrb[8].mxu0 }
 0x28d   :  { %v2161_v10 = vpop.f32.mrb[9].mxu0 }
 0x28e   :  { %v8162_v11 = vmax.f32 %v2159_v8, %v2161_v10  ;;  %v2163_v12 = vpop.f32.mrb[10].mxu0 }
 0x28f   :  { %v2165_v13 = vpop.f32.mrb[11].mxu0 }
 0x290   :  { %v8164_v14 = vmax.f32 %v2163_v12, %v2165_v13  ;;  %2267 = vrot.lane.b32.xlu0 %v8138_v59, %s7279_s6  ;;  %2275 = vrot.lane.b32.xlu1 %v8162_v11, %s7279_s6 }
 0x294   :  { %2277 = vrot.lane.b32.xlu1 %v8164_v14, %s7279_s6  ;;  %v2169_v16 = vpop.f32.mrb[12].mxu0 }
 0x295   :  { %v2171_v17 = vpop.f32.mrb[13].mxu0 }
 0x296   :  { %v8178_v18 = vmax.f32 %v2169_v16, %v2171_v17  ;;  %v2173_v19 = vpop.f32.mrb[14].mxu0 }
 0x297   :  { %v2175_v20 = vpop.f32.mrb[15].mxu0 }
 0x298   :  { %v8180_v21 = vmax.f32 %v2173_v19, %v2175_v20  ;;  %2269 = vrot.lane.b32.xlu1 %v8140_v62, %s7279_s6  ;;  %2279 = vrot.lane.b32.xlu0 %v8178_v18, %s7279_s6 }
 0x29c   :  { %2281 = vrot.lane.b32.xlu1 %v8180_v21, %s7279_s6  ;;  %v2179_v22 = vpop.f32.mrb[16].mxu0 }
 0x29d   :  { %v2181_v23 = vpop.f32.mrb[17].mxu0 }
 0x29e   :  { %v8188_v24 = vmax.f32 %v2179_v22, %v2181_v23  ;;  %v2183_v25 = vpop.f32.mrb[18].mxu0 }
 0x29f   :  { %v2185_v26 = vpop.f32.mrb[19].mxu0 }
 0x2a0   :  { %v8190_v27 = vmax.f32 %v2183_v25, %v2185_v26  ;;  %2283 = vrot.lane.b32.xlu0 %v8188_v24, %s7279_s6 }
 0x2a2   :  { %2285 = vrot.lane.b32.xlu1 %v8190_v27, %s7279_s6 }
 0x2a4   :  { %v2189_v28 = vpop.f32.mrb[20].mxu0 }
 0x2a5   :  { %v2191_v29 = vpop.f32.mrb[21].mxu0 }
 0x2a6   :  { %v8196_v30 = vmax.f32 %v2189_v28, %v2191_v29  ;;  %v2193_v31 = vpop.f32.mrb[22].mxu0 }
 0x2a7   :  { %v2195_v32 = vpop.f32.mrb[23].mxu0 }
 0x2a8   :  { %v8198_v33 = vmax.f32 %v2193_v31, %v2195_v32  ;;  %2287 = vrot.lane.b32.xlu0 %v8196_v30, %s7279_s6 }
 0x2aa   :  { %2289 = vrot.lane.b32.xlu1 %v8198_v33, %s7279_s6 }
 0x2ac   :  { %v2199_v34 = vpop.f32.mrb[24].mxu0 }
 0x2ad   :  { %v2201_v35 = vpop.f32.mrb[25].mxu0 }
 0x2ae   :  { %v8204_v36 = vmax.f32 %v2199_v34, %v2201_v35  ;;  %v2203_v37 = vpop.f32.mrb[26].mxu0 }
 0x2af   :  { %v2205_v38 = vpop.f32.mrb[27].mxu0 }
 0x2b0   :  { %v8206_v39 = vmax.f32 %v2203_v37, %v2205_v38  ;;  %2291 = vrot.lane.b32.xlu0 %v8204_v36, %s7279_s6 }
 0x2b2   :  { %2293 = vrot.lane.b32.xlu1 %v8206_v39, %s7279_s6 }
 0x2b4   :  { %v2209_v40 = vpop.f32.mrb[28].mxu0 }
 0x2b5   :  { %v2211_v41 = vpop.f32.mrb[29].mxu0 }
 0x2b6   :  { %v8212_v42 = vmax.f32 %v2209_v40, %v2211_v41  ;;  %v2213_v43 = vpop.f32.mrb[30].mxu0 }
 0x2b7   :  { %v2215_v44 = vpop.f32.mrb[31].mxu0 }
 0x2b8   :  { %v8214_v45 = vmax.f32 %v2213_v43, %v2215_v44  ;;  %2295 = vrot.lane.b32.xlu0 %v8212_v42, %s7279_s6 }
 0x2ba   :  { %2297 = vrot.lane.b32.xlu1 %v8214_v45, %s7279_s6 }
 0x2bc   :  { %v2219_v46 = vpop.f32.mrb[32].mxu0 }
 0x2bd   :  { %v2221_v47 = vpop.f32.mrb[33].mxu0 }
 0x2be   :  { %v8220_v48 = vmax.f32 %v2219_v46, %v2221_v47  ;;  %v2223_v49 = vpop.f32.mrb[34].mxu0 }
 0x2bf   :  { %v2225_v50 = vpop.f32.mrb[35].mxu0 }
 0x2c0   :  { %v8222_v51 = vmax.f32 %v2223_v49, %v2225_v50  ;;  %2299 = vrot.lane.b32.xlu0 %v8220_v48, %s7279_s6 }
 0x2c2   :  { %2301 = vrot.lane.b32.xlu1 %v8222_v51, %s7279_s6 }
 0x2c4   :  { %v2229_v53 = vpop.f32.mrb[36].mxu0 }
 0x2c5   :  { %v2231_v54 = vpop.f32.mrb[37].mxu0 }
 0x2c6   :  { %v8228_v55 = vmax.f32 %v2229_v53, %v2231_v54  ;;  %v2233_v56 = vpop.f32.mrb[38].mxu0  ;;  %v6921_v53 = vld [vmem:[%s9225_s30 + $0x18] sm:$0xff]  }
 0x2c7   :  { %v2235_v57 = vpop.f32.mrb[39].mxu0 }
 0x2c8   :  { %v8230_v58 = vmax.f32 %v2233_v56, %v2235_v57  ;;  %2303 = vrot.lane.b32.xlu0 %v8228_v55, %s7279_s6 }
 0x2ca   :  { %2305 = vrot.lane.b32.xlu1 %v8230_v58, %s7279_s6 }
 0x2cc   :  { %v2239_v60 = vpop.f32.mrb[40].mxu0 }
 0x2cd   :  { %v2241_v61 = vpop.f32.mrb[41].mxu0 }
 0x2ce   :  { %v8236_v63 = vmax.f32 %v2239_v60, %v2241_v61  ;;  %v2243_v0 = vpop.f32.mrb[42].mxu0 }
 0x2cf   :  { %v2244_v1 = vpop.f32.mrb[43].mxu0 }
 0x2d0   :  { %2307 = vrot.lane.b32.xlu0 %v8236_v63, %s7279_s6 }
 0x2fa   :  { %v2272_v2 = vpop.permute.xlu0 %2271 }
 0x2fb   :  { %v2313_v7 = vmax.f32 %v8148_v3, %v2272_v2  ;;  %v6923_v2 = vld [vmem:[%s9225_s30 + $0x48] sm:$0xff]  }
 0x2fd   :  { %v2341_v16 = vadd.f32 %v8245_v9, %v2313_v7 }
 0x2fe   :  { %v2274_v4 = vpop.permute.xlu0 %2273 }
 0x2ff   :  { %v2314_v5 = vmax.f32 %v8150_v6, %v2274_v4  ;;  %v2362_v23 = vmax.f32 %v2341_v16, 0.0  ;;  %v6926_v16 = vld [vmem:[%s9225_s30 + $0x60] sm:$0xff]  }
 0x301   :  { %v2342_v12 = vadd.f32 %v8245_v9, %v2314_v5 }
 0x302   :  { %v2276_v8 = vpop.permute.xlu1 %2275  ;;  %v2268_v13 = vpop.permute.xlu0 %2267 }
 0x303   :  { %v2315_v10 = vmax.f32 %v8162_v11, %v2276_v8  ;;  %v2311_v19 = vmax.f32 %v8138_v59, %v2268_v13  ;;  %v2363_v20 = vmax.f32 %v2342_v12, 0.0 }
 0x305   :  { %v2343_v6 = vadd.f32 %v8245_v9, %v2315_v10  ;;  %v2339_v26 = vadd.f32 %v8245_v9, %v2311_v19  ;;  %v2382_v31 = vpack.c.bf16 %v2363_v20, %v2362_v23  ;;  %v6925_v10 = vld [vmem:[%s9225_s30 + $0x58] sm:$0xff]  }
 0x306   :  { %v2278_v17 = vpop.permute.xlu1 %2277 }
 0x307   :  { %v2316_v3 = vmax.f32 %v8164_v14, %v2278_v17  ;;  %v2364_v11 = vmax.f32 %v2343_v6, 0.0  ;;  %v2360_v35 = vmax.f32 %v2339_v26, 0.0  ;;  %v2411_v40 = vrot.slane %v2382_v31, 1 }
 0x309   :  { %v2344_v22 = vadd.f32 %v8245_v9, %v2316_v3 }
 0x30a   :  { %v2270_v25 = vpop.permute.xlu1 %2269  ;;  %v2280_v38 = vpop.permute.xlu0 %2279 }
 0x30b   :  { %v2365_v28 = vmax.f32 %v2344_v22, 0.0  ;;  %v2312_v29 = vmax.f32 %v8140_v62, %v2270_v25  ;;  %v2317_v44 = vmax.f32 %v8178_v18, %v2280_v38  ;;  %v6919_v62 = vld [vmem:[%s9225_s30 + $0x8] sm:$0xff]   ;;  %v6920_v18 = vld [vmem:[%s9225_s30 + $0x10] sm:$0xff]  }
 0x30c   :  { %v6927_v22 = vld [vmem:[%s9225_s30 + $0x68] sm:$0xff]  }
 0x30d   :  { %v2383_v32 = vpack.c.bf16 %v2365_v28, %v2364_v11  ;;  %v2340_v34 = vadd.f32 %v8245_v9, %v2312_v29  ;;  %v6929_v28 = vld [vmem:[%s9225_s30 + $0x78] sm:$0xff]  }
 0x30e   :  { %v2282_v59 = vpop.permute.xlu1 %2281 }
 0x30f   :  { %v2361_v37 = vmax.f32 %v2340_v34, 0.0  ;;  %v2318_v14 = vmax.f32 %v8180_v21, %v2282_v59  ;;  %v2412_v41 = vrot.slane %v2383_v32, 1  ;;  %v2345_v21 = vadd.f32 %v8245_v9, %v2317_v44 }
 0x310   :  { %v2581_v0 = vrot.slane %v2383_v32, 2  ;;  %v6930_v32 = vld [vmem:[%s9225_s30 + $0x80] sm:$0xff]  }
 0x311   :  { %v2381_v43 = vpack.c.bf16 %v2361_v37, %v2360_v35  ;;  %v2413_v46 = vsel %vm2410_vm0, %v2411_v40, %v2412_v41  ;;  %v2346_v47 = vadd.f32 %v8245_v9, %v2318_v14  ;;  %v2366_v50 = vmax.f32 %v2345_v21, 0.0  ;;  %v6931_v14 = vld [vmem:[%s9225_s30 + $0x88] sm:$0xff]   ;;  %v6934_v21 = vld [vmem:[%s9225_s30 + $0xa0] sm:$0xff]  }
 0x312   :  { %6228 = vmatprep.mubr.msk.bf16.mxu1 %vm2438_vm1, %v2413_v46  ;;  %v2284_v57 = vpop.permute.xlu0 %2283  ;;  %v6933_v46 = vld [vmem:[%s9225_s30 + $0x98] sm:$0xff]  }
 0x313   :  { %6229 = vmatmul.mubr.msk.bf16.vlgmr.msra.gmra.mrb[0].mxu1 %vm2438_vm1, %v2412_v41  ;;  %v2367_v49 = vmax.f32 %v2346_v47, 0.0  ;;  %v2319_v1 = vmax.f32 %v8188_v24, %v2284_v57  ;;  %v6924_v24 = vld [vmem:[%s9225_s30 + $0x50] sm:$0xff]  }
 0x314   :  { %6233 = vmatpush3.bf16.msra.mxu1 %v8173_v15  ;;  %6240 = vmatprep.mubr.msk.bf16.mxu1 %vm2438_vm1, %v2381_v43  ;;  %v2286_v56 = vpop.permute.xlu1 %2285  ;;  %v6922_v15 = vld [vmem:[%s9225_s30 + $0x40] sm:$0xff]  }
 0x315   :  { %6234 = vmatprep.subr.bf16.mxu1 %v6919_v62  ;;  %v2384_v54 = vpack.c.bf16 %v2367_v49, %v2366_v50  ;;  %v2320_v61 = vmax.f32 %v8190_v27, %v2286_v56  ;;  %v2347_v27 = vadd.f32 %v8245_v9, %v2319_v1  ;;  %v6935_v56 = vld [vmem:[%s9225_s30 + $0xa8] sm:$0xff]  }
 0x317   :  { %v2582_v60 = vrot.slane %v2384_v54, 2  ;;  %v2348_v4 = vadd.f32 %v8245_v9, %v2320_v61  ;;  %v2368_v8 = vmax.f32 %v2347_v27, 0.0  ;;  %v2675_v3 = vrot.slane %v2384_v54, 3 }
 0x318   :  { %6235 = vmatpush3.bf16.msra.mxu1 %v6919_v62 }
 0x319   :  { %6236 = vmatprep.subr.bf16.mxu1 %v6920_v18  ;;  %v2583_v5 = vsel %vm2580_vm2, %v2581_v0, %v2582_v60  ;;  %v2369_v7 = vmax.f32 %v2348_v4, 0.0  ;;  %v6937_v0 = vld [vmem:[%s9225_s30 + $0xb8] sm:$0xff]   ;;  %v6938_v4 = vld [vmem:[%s9225_s30 + $0xc0] sm:$0xff]  }
 0x31a   :  { %v2288_v17 = vpop.permute.xlu0 %2287 }
 0x31b   :  { %v2385_v12 = vpack.c.bf16 %v2369_v7, %v2368_v8  ;;  %v2321_v20 = vmax.f32 %v8196_v30, %v2288_v17  ;;  %v6928_v30 = vld [vmem:[%s9225_s30 + $0x70] sm:$0xff]  }
 0x31c   :  { %6237 = vmatpush3.bf16.msra.mxu1 %v6920_v18  ;;  %v2290_v13 = vpop.permute.xlu1 %2289 }
 0x31d   :  { %6238 = vmatprep.subr.bf16.mxu1 %v6921_v53  ;;  %v2676_v19 = vrot.slane %v2385_v12, 3  ;;  %v2322_v6 = vmax.f32 %v8198_v33, %v2290_v13  ;;  %v2349_v33 = vadd.f32 %v8245_v9, %v2321_v20  ;;  %v2769_v37 = vrot.slane %v2385_v12, 4 }
 0x31f   :  { %v2350_v23 = vadd.f32 %v8245_v9, %v2322_v6  ;;  %v2677_v25 = vsel %vm2674_vm3, %v2675_v3, %v2676_v19  ;;  %v2370_v11 = vmax.f32 %v2349_v33, 0.0  ;;  %v6942_v3 = vld [vmem:[%s9225_s30 + $0xe0] sm:$0xff]  }
 0x320   :  { %6239 = vmatpush3.bf16.msra.mxu1 %v6921_v53 }
 0x321   :  { %6244 = vmatprep.subr.bf16.mxu1 %v6922_v15  ;;  %v2371_v26 = vmax.f32 %v2350_v23, 0.0  ;;  %v6943_v23 = vld [vmem:[%s9225_s30 + $0xe8] sm:$0xff]  }
 0x322   :  { %v2292_v34 = vpop.permute.xlu0 %2291 }
 0x323   :  { %6241 = vmatmul.mubr.msk.bf16.vlgmr.msra.gmra.mrb[4].mxu1 %vm2438_vm1, %v2382_v31  ;;  %v2386_v29 = vpack.c.bf16 %v2371_v26, %v2370_v11  ;;  %v2323_v38 = vmax.f32 %v8204_v36, %v2292_v34  ;;  %v6932_v36 = vld [vmem:[%s9225_s30 + $0x90] sm:$0xff]   ;;  %v6946_v34 = vld [vmem:[%s9225_s30 + $0x100] sm:$0xff]  }
 0x324   :  { %6245 = vmatpush3.bf16.msra.mxu1 %v6922_v15  ;;  %6252 = vmatprep.mubr.msk.bf16.mxu1 %vm2438_vm1, %v2583_v5  ;;  %v2294_v31 = vpop.permute.xlu1 %2293  ;;  %v6944_v26 = vld [vmem:[%s9225_s30 + $0xf0] sm:$0xff]  }
 0x325   :  { %6246 = vmatprep.subr.bf16.mxu1 %v6923_v2  ;;  %v2770_v59 = vrot.slane %v2386_v29, 4  ;;  %v2324_v35 = vmax.f32 %v8206_v39, %v2294_v31  ;;  %v2351_v39 = vadd.f32 %v8245_v9, %v2323_v38  ;;  %v2863_v53 = vrot.slane %v2386_v29, 5  ;;  %v6945_v29 = vld [vmem:[%s9225_s30 + $0xf8] sm:$0xff]  }
 0x327   :  { %v2352_v40 = vadd.f32 %v8245_v9, %v2324_v35  ;;  %v2771_v41 = vsel %vm2768_vm4, %v2769_v37, %v2770_v59  ;;  %v2372_v44 = vmax.f32 %v2351_v39, 0.0 }
 0x328   :  { %6247 = vmatpush3.bf16.msra.mxu1 %v6923_v2 }
 0x329   :  { %6248 = vmatprep.subr.bf16.mxu1 %v6924_v24  ;;  %v2373_v43 = vmax.f32 %v2352_v40, 0.0 }
 0x32a   :  { %v2296_v18 = vpop.permute.xlu0 %2295 }
 0x32b   :  { %v2387_v62 = vpack.c.bf16 %v2373_v43, %v2372_v44  ;;  %v2325_v54 = vmax.f32 %v8212_v42, %v2296_v18  ;;  %v6936_v42 = vld [vmem:[%s9225_s30 + $0xb0] sm:$0xff]   ;;  %v6964_v18 = vld [vmem:[%s9227_s0 + $0xc4] ss:$8 sps:$4 sm:$0xff]  }
 0x32c   :  { %6249 = vmatpush3.bf16.msra.mxu1 %v6924_v24  ;;  %v2298_v47 = vpop.permute.xlu1 %2297  ;;  %v6955_v43 = vld [vmem:[%s9227_s0 + $0x94] ss:$8 sps:$4 sm:$0xff]   ;;  %v6953_v44 = vld [vmem:[%s9227_s0 + $0x90] ss:$8 sps:$4 sm:$0xff]  }
 0x32d   :  { %6250 = vmatprep.subr.bf16.mxu1 %v6925_v10  ;;  %v2864_v49 = vrot.slane %v2387_v62, 5  ;;  %v2326_v50 = vmax.f32 %v8214_v45, %v2298_v47  ;;  %v2353_v45 = vadd.f32 %v8245_v9, %v2325_v54  ;;  %v2957_v7 = vrot.slane %v2387_v62, 6  ;;  %v6956_v62 = vld [vmem:[%s9227_s0 + $0xa0] ss:$8 sps:$4 sm:$0xff]   ;;  %v6961_v47 = vld [vmem:[%s9227_s0 + $0xb4] ss:$8 sps:$4 sm:$0xff]  }
 0x32e   :  { %v6965_v54 = vld [vmem:[%s9227_s0 + $0xd0] ss:$8 sps:$4 sm:$0xff]  }
 0x32f   :  { %v2354_v15 = vadd.f32 %v8245_v9, %v2326_v50  ;;  %v2865_v57 = vsel %vm2862_vm5, %v2863_v53, %v2864_v49  ;;  %v2374_v61 = vmax.f32 %v2353_v45, 0.0  ;;  %v6967_v50 = vld [vmem:[%s9227_s0 + $0xd4] ss:$8 sps:$4 sm:$0xff]   ;;  %v6970_v45 = vld [vmem:[%s9227_s0 + $0xe4] ss:$8 sps:$4 sm:$0xff]  }
 0x330   :  { %6251 = vmatpush3.bf16.msra.mxu1 %v6925_v10  ;;  %v6939_v10 = vld [vmem:[%s9225_s30 + $0xc8] sm:$0xff]  }
 0x331   :  { %6256 = vmatprep.subr.bf16.mxu1 %v6926_v16 }
 0x332   :  { %v2300_v5 = vpop.permute.xlu0 %2299 }
 0x333   :  { %6253 = vmatmul.mubr.msk.bf16.vlgmr.msra.gmra.mrb[8].mxu1 %vm2438_vm1, %v2582_v60  ;;  %v2375_v60 = vmax.f32 %v2354_v15, 0.0  ;;  %v2327_v8 = vmax.f32 %v8220_v48, %v2300_v5  ;;  %v6940_v48 = vld [vmem:[%s9225_s30 + $0xd0] sm:$0xff]  }
 0x334   :  { %6257 = vmatpush3.bf16.msra.mxu1 %v6926_v16  ;;  %6264 = vmatprep.mubr.msk.bf16.mxu1 %vm2438_vm1, %v2677_v25  ;;  %v2302_v2 = vpop.permute.xlu1 %2301 }
 0x335   :  { %6258 = vmatprep.subr.bf16.mxu1 %v6927_v22  ;;  %v2388_v1 = vpack.c.bf16 %v2375_v60, %v2374_v61  ;;  %v2328_v24 = vmax.f32 %v8222_v51, %v2302_v2  ;;  %v2355_v51 = vadd.f32 %v8245_v9, %v2327_v8  ;;  %v6973_v60 = vld [vmem:[%s9227_s0 + $0xf4] ss:$8 sps:$4 sm:$0xff]   ;;  %v6971_v61 = vld [vmem:[%s9227_s0 + $0xf0] ss:$8 sps:$4 sm:$0xff]  }
 0x337   :  { %v2958_v27 = vrot.slane %v2388_v1, 6  ;;  %v2356_v12 = vadd.f32 %v8245_v9, %v2328_v24  ;;  %v2376_v17 = vmax.f32 %v2355_v51, 0.0 }
 0x338   :  { %6259 = vmatpush3.bf16.msra.mxu1 %v6927_v22  ;;  %v3051_v22 = vrot.slane %v2388_v1, 7 }
 0x339   :  { %6260 = vmatprep.subr.bf16.mxu1 %v6928_v30  ;;  %v2959_v13 = vsel %vm2956_vm6, %v2957_v7, %v2958_v27  ;;  %v2377_v16 = vmax.f32 %v2356_v12, 0.0 }
 0x33b   :  { %v2389_v6 = vpack.c.bf16 %v2377_v16, %v2376_v17 }
 0x33c   :  { %6261 = vmatpush3.bf16.msra.mxu1 %v6928_v30  ;;  %v2306_v25 = vpop.permute.xlu1 %2305  ;;  %v2304_v30 = vpop.permute.xlu0 %2303 }
 0x33d   :  { %6262 = vmatprep.subr.bf16.mxu1 %v6929_v28  ;;  %v3052_v20 = vrot.slane %v2389_v6, 7  ;;  %v2330_v11 = vmax.f32 %v8230_v58, %v2306_v25 }
 0x33f   :  { %v3053_v33 = vsel %vm3050_vm7, %v3051_v22, %v3052_v20  ;;  %v2358_v31 = vadd.f32 %v8245_v9, %v2330_v11 }
 0x340   :  { %6263 = vmatpush3.bf16.msra.mxu1 %v6929_v28  ;;  %v2329_v28 = vmax.f32 %v8228_v55, %v2304_v30  ;;  %v6947_v55 = vld [vmem:[%s9225_s30 + $0x108] sm:$0xff]  }
 0x341   :  { %6268 = vmatprep.subr.bf16.mxu1 %v6930_v32 }
 0x342   :  { %v2308_v37 = vpop.permute.xlu0 %2307 }
 0x343   :  { %6265 = vmatmul.mubr.msk.bf16.vlgmr.msra.gmra.mrb[12].mxu1 %vm2438_vm1, %v2676_v19  ;;  %v6941_v19 = vld [vmem:[%s9225_s30 + $0xd8] sm:$0xff]   ;;  %v2331_v38 = vmax.f32 %v8236_v63, %v2308_v37  ;;  %v6950_v63 = vld [vmem:[%s9227_s0 + $0x80] ss:$8 sps:$4 sm:$0xff]  }
 0x344   :  { %6269 = vmatpush3.bf16.msra.mxu1 %v6930_v32  ;;  %6276 = vmatprep.mubr.msk.bf16.mxu1 %vm2438_vm1, %v2771_v41  ;;  %v2357_v32 = vadd.f32 %v8245_v9, %v2329_v28  ;;  %v6949_v41 = vld [vmem:[%s9225_s30 + $0x118] sm:$0xff]  }
 0x345   :  { %6270 = vmatprep.subr.bf16.mxu1 %v6931_v14  ;;  %v2359_v40 = vadd.f32 %v8245_v9, %v2331_v38  ;;  %v6952_v9 = vld [vmem:[%s9227_s0 + $0x84] ss:$8 sps:$4 sm:$0xff]  }
 0x346   :  { %v2378_v58 = vmax.f32 %v2357_v32, 0.0 }
 0x347   :  { %v2380_v39 = vmax.f32 %v2359_v40, 0.0 }
 0x348   :  { %6271 = vmatpush3.bf16.msra.mxu1 %v6931_v14  ;;  %v6948_v14 = vld [vmem:[%s9225_s30 + $0x110] sm:$0xff]  }
 0x349   :  { %6272 = vmatprep.subr.bf16.mxu1 %v6932_v36 }
 0x34c   :  { %6273 = vmatpush3.bf16.msra.mxu1 %v6932_v36  ;;  %v2391_v36 = vpack.c.bf16 %v2380_v39, %v2380_v39 }
 0x34d   :  { %6274 = vmatprep.subr.bf16.mxu1 %v6933_v46 }
 0x350   :  { %6275 = vmatpush3.bf16.msra.mxu1 %v6933_v46  ;;  %v6958_v46 = vld [vmem:[%s9227_s0 + $0xa4] ss:$8 sps:$4 sm:$0xff]  }
 0x351   :  { %6280 = vmatprep.subr.bf16.mxu1 %v6934_v21 }
 0x353   :  { %6277 = vmatmul.mubr.msk.bf16.vlgmr.msra.gmra.mrb[16].mxu1 %vm2438_vm1, %v2770_v59  ;;  %v2379_v59 = vmax.f32 %v2358_v31, 0.0 }
 0x354   :  { %6281 = vmatpush3.bf16.msra.mxu1 %v6934_v21  ;;  %6288 = vmatprep.mubr.msk.bf16.mxu1 %vm2438_vm1, %v2865_v57  ;;  %v6959_v21 = vld [vmem:[%s9227_s0 + $0xb0] ss:$8 sps:$4 sm:$0xff]  }
 0x355   :  { %6282 = vmatprep.subr.bf16.mxu1 %v6935_v56  ;;  %v2390_v35 = vpack.c.bf16 %v2379_v59, %v2378_v58 }
 0x358   :  { %6283 = vmatpush3.bf16.msra.mxu1 %v6935_v56 }
 0x359   :  { %6284 = vmatprep.subr.bf16.mxu1 %v6936_v42 }
 0x35c   :  { %6285 = vmatpush3.bf16.msra.mxu1 %v6936_v42  ;;  %v6968_v42 = vld [vmem:[%s9227_s0 + $0xe0] ss:$8 sps:$4 sm:$0xff]  }
 0x35d   :  { %6286 = vmatprep.subr.bf16.mxu1 %v6937_v0 }
 0x360   :  { %6287 = vmatpush3.bf16.msra.mxu1 %v6937_v0  ;;  %v6976_v0 = vld [vmem:[%s9227_s0 + $0x4] ss:$8 sps:$4 sm:$0xff]  }
 0x361   :  { %6292 = vmatprep.subr.bf16.mxu1 %v6938_v4 }
 0x363   :  { %6289 = vmatmul.mubr.msk.bf16.vlgmr.msra.gmra.mrb[20].mxu1 %vm2438_vm1, %v2864_v49  ;;  %v6962_v49 = vld [vmem:[%s9227_s0 + $0xc0] ss:$8 sps:$4 sm:$0xff]  }
 0x364   :  { %6293 = vmatpush3.bf16.msra.mxu1 %v6938_v4  ;;  %6300 = vmatprep.mubr.msk.bf16.mxu1 %vm2438_vm1, %v2959_v13 }
 0x365   :  { %6294 = vmatprep.subr.bf16.mxu1 %v6939_v10 }
 0x368   :  { %6295 = vmatpush3.bf16.msra.mxu1 %v6939_v10 }
 0x369   :  { %6296 = vmatprep.subr.bf16.mxu1 %v6940_v48 }
 0x36c   :  { %6297 = vmatpush3.bf16.msra.mxu1 %v6940_v48 }
 0x36d   :  { %6298 = vmatprep.subr.bf16.mxu1 %v6941_v19 }
 0x370   :  { %6299 = vmatpush3.bf16.msra.mxu1 %v6941_v19 }
 0x371   :  { %6304 = vmatprep.subr.bf16.mxu1 %v6942_v3 }
 0x373   :  { %6301 = vmatmul.mubr.msk.bf16.vlgmr.msra.gmra.mrb[24].mxu1 %vm2438_vm1, %v2958_v27 }
 0x374   :  { %6305 = vmatpush3.bf16.msra.mxu1 %v6942_v3  ;;  %6312 = vmatprep.mubr.msk.bf16.mxu1 %vm2438_vm1, %v3053_v33 }
 0x375   :  { %6306 = vmatprep.subr.bf16.mxu1 %v6943_v23 }
 0x378   :  { %6307 = vmatpush3.bf16.msra.mxu1 %v6943_v23 }
 0x379   :  { %6308 = vmatprep.subr.bf16.mxu1 %v6944_v26 }
 0x37c   :  { %6309 = vmatpush3.bf16.msra.mxu1 %v6944_v26 }
 0x37d   :  { %6310 = vmatprep.subr.bf16.mxu1 %v6945_v29 }
 0x380   :  { %6311 = vmatpush3.bf16.msra.mxu1 %v6945_v29 }
 0x381   :  { %6316 = vmatprep.subr.bf16.mxu1 %v6946_v34 }
 0x383   :  { %6313 = vmatmul.mubr.msk.bf16.vlgmr.msra.gmra.mrb[28].mxu1 %vm2438_vm1, %v3052_v20 }
 0x384   :  { %6317 = vmatpush3.bf16.msra.mxu1 %v6946_v34  ;;  %6324 = vmatprep.mubr.msk.bf16.mxu1 %vm2438_vm1, %v2390_v35 }
 0x385   :  { %6318 = vmatprep.subr.bf16.mxu1 %v6947_v55 }
 0x388   :  { %6319 = vmatpush3.bf16.msra.mxu1 %v6947_v55 }
 0x389   :  { %6320 = vmatprep.subr.bf16.mxu1 %v6948_v14 }
 0x38c   :  { %6321 = vmatpush3.bf16.msra.mxu1 %v6948_v14 }
 0x38d   :  { %6322 = vmatprep.subr.bf16.mxu1 %v6949_v41 }
 0x390   :  { %6323 = vmatpush3.bf16.msra.mxu1 %v6949_v41 }
 0x391   :  { %3354 = vmatprep.subr.bf16.mxu1 %v6952_v9 }
 0x393   :  { %6325 = vmatmul.mubr.msk.bf16.vlgmr.msra.gmra.mrb[32].mxu1 %vm2438_vm1, %v2391_v36 }
 0x394   :  { %3386 = vmatprep.mubr.bf16.mxu1 %v7278_v52  ;;  %3355 = vmatpush1.bf16.msra.mxu1 %v6950_v63 }
 0x395   :  { %3356 = vmatprep.subr.bf16.mxu1 %v6955_v43 }
 0x398   :  { %3357 = vmatpush1.bf16.msra.mxu1 %v6953_v44 }
 0x399   :  { %3358 = vmatprep.subr.bf16.mxu1 %v6958_v46 }
 0x39c   :  { %3359 = vmatpush1.bf16.msra.mxu1 %v6956_v62 }
 0x39d   :  { %3360 = vmatprep.subr.bf16.mxu1 %v6961_v47 }
 0x3a0   :  { %3361 = vmatpush1.bf16.msra.mxu1 %v6959_v21 }
 0x3a1   :  { %3362 = vmatprep.subr.bf16.mxu1 %v6964_v18  ;;  %v5863_v18 = vld [vmem:[%s9228_s3] ss:$0 sm:$0xff] }
 0x3a4   :  { %3363 = vmatpush1.bf16.msra.mxu1 %v6962_v49 }
 0x3a5   :  { %3364 = vmatprep.subr.bf16.mxu1 %v6967_v50 }
 0x3a8   :  { %3365 = vmatpush1.bf16.msra.mxu1 %v6965_v54 }
 0x3a9   :  { %3366 = vmatprep.subr.bf16.mxu1 %v6970_v45 }
 0x3ac   :  { %3367 = vmatpush1.bf16.msra.mxu1 %v6968_v42 }
 0x3ad   :  { %3368 = vmatprep.subr.bf16.mxu1 %v6973_v60 }
 0x3b0   :  { %3369 = vmatpush1.bf16.msra.mxu1 %v6971_v61 }
 0x3b1   :  { %3475 = vmatprep.subr.bf16.mxu1 %v6976_v0 }
 0x3e6   :  { %v6230_v53 = vpop.f32.mrb[0].mxu1 }
 0x3e7   :  { %v2479_v56 = vpop.f32.mrb[1].mxu1 }
 0x3e8   :  { %v6231_v15 = vpop.f32.mrb[2].mxu1 }
 0x3e9   :  { %v2482_v57 = vpop.f32.mrb[3].mxu1 }
 0x3f6   :  { %v6242_v1 = vpop.f32.mrb[4].mxu1 }
 0x3f7   :  { %v2566_v2 = vadd.f32 %v6242_v1, %v6230_v53  ;;  %v2557_v4 = vpop.f32.mrb[5].mxu1  ;;  %v6974_v1 = vld [vmem:[%s9227_s0] ss:$8 sps:$4 sm:$0xff]  }
 0x3f8   :  { %v2558_v5 = vadd.f32 %v2557_v4, %v2479_v56  ;;  %v6243_v27 = vpop.f32.mrb[6].mxu1  ;;  %v6979_v4 = vld [vmem:[%s9227_s0 + $0x14] ss:$8 sps:$4 sm:$0xff]  }
 0x3f9   :  { %v2560_v24 = vpop.f32.mrb[7].mxu1  ;;  %v6982_v27 = vld [vmem:[%s9227_s0 + $0x24] ss:$8 sps:$4 sm:$0xff]  }
 0x3fa   :  { %v2561_v7 = vadd.f32 %v2560_v24, %v2482_v57  ;;  %v6980_v24 = vld [vmem:[%s9227_s0 + $0x20] ss:$8 sps:$4 sm:$0xff]  }
 0x406   :  { %v6254_v8 = vpop.f32.mrb[8].mxu1 }
 0x407   :  { %v2664_v10 = vadd.f32 %v6254_v8, %v2566_v2  ;;  %v2648_v12 = vpop.f32.mrb[9].mxu1  ;;  %v6983_v8 = vld [vmem:[%s9227_s0 + $0x30] ss:$8 sps:$4 sm:$0xff]  }
 0x408   :  { %v2662_v13 = vadd.f32 %v2648_v12, %v2558_v5  ;;  %v6255_v51 = vpop.f32.mrb[10].mxu1  ;;  %v6977_v5 = vld [vmem:[%s9227_s0 + $0x10] ss:$8 sps:$4 sm:$0xff]   ;;  %v6986_v12 = vld [vmem:[%s9227_s0 + $0x40] ss:$8 sps:$4 sm:$0xff]  }
 0x409   :  { %v2651_v48 = vpop.f32.mrb[11].mxu1  ;;  %v6989_v51 = vld [vmem:[%s9227_s0 + $0x50] ss:$8 sps:$4 sm:$0xff]  }
 0x40a   :  { %v2663_v16 = vadd.f32 %v2651_v48, %v2561_v7  ;;  %v6985_v7 = vld [vmem:[%s9227_s0 + $0x34] ss:$8 sps:$4 sm:$0xff]   ;;  %v6994_v48 = vld [vmem:[%s9227_s0 + $0x64] ss:$8 sps:$4 sm:$0xff]  }
 0x416   :  { %v6266_v17 = vpop.f32.mrb[12].mxu1 }
 0x417   :  { %v2758_v19 = vadd.f32 %v6266_v17, %v2664_v10  ;;  %v2742_v6 = vpop.f32.mrb[13].mxu1  ;;  %v6988_v10 = vld [vmem:[%s9227_s0 + $0x44] ss:$8 sps:$4 sm:$0xff]   ;;  %v6997_v17 = vld [vmem:[%s9227_s0 + $0x74] ss:$8 sps:$4 sm:$0xff]  }
 0x418   :  { %v2756_v3 = vadd.f32 %v2742_v6, %v2662_v13  ;;  %v6267_v20 = vpop.f32.mrb[14].mxu1  ;;  %v6991_v13 = vld [vmem:[%s9227_s0 + $0x54] ss:$8 sps:$4 sm:$0xff]   ;;  %v7000_v6 = vld [vmem:[%s9227_s0 + $0x104] ss:$8 sps:$4 sm:$0xff]  }
 0x419   :  { %v2745_v22 = vpop.f32.mrb[15].mxu1  ;;  %v7003_v20 = vld [vmem:[%s9227_s0 + $0x114] ss:$8 sps:$4 sm:$0xff]  }
 0x41a   :  { %v2757_v23 = vadd.f32 %v2745_v22, %v2663_v16  ;;  %v6992_v16 = vld [vmem:[%s9227_s0 + $0x60] ss:$8 sps:$4 sm:$0xff]   ;;  %v7001_v22 = vld [vmem:[%s9227_s0 + $0x110] ss:$8 sps:$4 sm:$0xff]  }
 0x426   :  { %v6278_v25 = vpop.f32.mrb[16].mxu1 }
 0x427   :  { %v2852_v33 = vadd.f32 %v6278_v25, %v2758_v19  ;;  %v2836_v30 = vpop.f32.mrb[17].mxu1  ;;  %v6995_v19 = vld [vmem:[%s9227_s0 + $0x70] ss:$8 sps:$4 sm:$0xff]   ;;  %v7004_v25 = vld [vmem:[%s9227_s0 + $0x120] ss:$8 sps:$4 sm:$0xff]  }
 0x428   :  { %v2850_v26 = vadd.f32 %v2836_v30, %v2756_v3  ;;  %v6279_v11 = vpop.f32.mrb[18].mxu1  ;;  %v6998_v3 = vld [vmem:[%s9227_s0 + $0x100] ss:$8 sps:$4 sm:$0xff]   ;;  %v7007_v30 = vld [vmem:[%s9227_s0 + $0x130] ss:$8 sps:$4 sm:$0xff]  }
 0x429   :  { %v2839_v28 = vpop.f32.mrb[19].mxu1  ;;  %v7010_v11 = vld [vmem:[%s9227_s0 + $0x140] ss:$8 sps:$4 sm:$0xff]  }
 0x42a   :  { %v2851_v29 = vadd.f32 %v2839_v28, %v2757_v23  ;;  %v7006_v23 = vld [vmem:[%s9227_s0 + $0x124] ss:$8 sps:$4 sm:$0xff]   ;;  %v7015_v28 = vld [vmem:[%s9227_s0 + $0x154] ss:$8 sps:$4 sm:$0xff]  }
 0x436   :  { %v6290_v31 = vpop.f32.mrb[20].mxu1 }
 0x437   :  { %v2946_v32 = vadd.f32 %v6290_v31, %v2852_v33  ;;  %v2930_v34 = vpop.f32.mrb[21].mxu1  ;;  %v7009_v33 = vld [vmem:[%s9227_s0 + $0x134] ss:$8 sps:$4 sm:$0xff]   ;;  %v7018_v31 = vld [vmem:[%s9227_s0 + $0x164] ss:$8 sps:$4 sm:$0xff]  }
 0x438   :  { %v2944_v59 = vadd.f32 %v2930_v34, %v2850_v26  ;;  %v6291_v58 = vpop.f32.mrb[22].mxu1  ;;  %v7012_v26 = vld [vmem:[%s9227_s0 + $0x144] ss:$8 sps:$4 sm:$0xff]   ;;  %v7021_v34 = vld [vmem:[%s9227_s0 + $0x174] ss:$8 sps:$4 sm:$0xff]  }
 0x439   :  { %v2933_v55 = vpop.f32.mrb[23].mxu1  ;;  %v7024_v58 = vld [vmem:[%s9227_s0 + $0x184] ss:$8 sps:$4 sm:$0xff]  }
 0x43a   :  { %v2945_v35 = vadd.f32 %v2933_v55, %v2851_v29  ;;  %v7013_v29 = vld [vmem:[%s9227_s0 + $0x150] ss:$8 sps:$4 sm:$0xff]   ;;  %v7022_v55 = vld [vmem:[%s9227_s0 + $0x180] ss:$8 sps:$4 sm:$0xff]  }
 0x446   :  { %v6302_v37 = vpop.f32.mrb[24].mxu1 }
 0x447   :  { %v3040_v38 = vadd.f32 %v6302_v37, %v2946_v32  ;;  %v3024_v14 = vpop.f32.mrb[25].mxu1  ;;  %v7016_v32 = vld [vmem:[%s9227_s0 + $0x160] ss:$8 sps:$4 sm:$0xff]   ;;  %v7027_v37 = vld [vmem:[%s9227_s0 + $0x194] ss:$8 sps:$4 sm:$0xff]  }
 0x448   :  { %v3038_v40 = vadd.f32 %v3024_v14, %v2944_v59  ;;  %v6303_v41 = vpop.f32.mrb[26].mxu1  ;;  %v7019_v59 = vld [vmem:[%s9227_s0 + $0x170] ss:$8 sps:$4 sm:$0xff]   ;;  %v7030_v14 = vld [vmem:[%s9227_s0 + $0x1a4] ss:$8 sps:$4 sm:$0xff]  }
 0x449   :  { %v3027_v39 = vpop.f32.mrb[27].mxu1  ;;  %v7033_v41 = vld [vmem:[%s9227_s0 + $0x1b4] ss:$8 sps:$4 sm:$0xff]  }
 0x44a   :  { %v3039_v36 = vadd.f32 %v3027_v39, %v2945_v35  ;;  %v7031_v39 = vld [vmem:[%s9227_s0 + $0x1b0] ss:$8 sps:$4 sm:$0xff]  }
 0x456   :  { %v6314_v63 = vpop.f32.mrb[28].mxu1 }
 0x457   :  { %v3134_v9 = vadd.f32 %v6314_v63, %v3040_v38  ;;  %v3118_v43 = vpop.f32.mrb[29].mxu1  ;;  %v7025_v38 = vld [vmem:[%s9227_s0 + $0x190] ss:$8 sps:$4 sm:$0xff]   ;;  %v7034_v63 = vld [vmem:[%s9227_s0 + $0x1c0] ss:$8 sps:$4 sm:$0xff]  }
 0x458   :  { %v3132_v44 = vadd.f32 %v3118_v43, %v3038_v40  ;;  %v6315_v46 = vpop.f32.mrb[30].mxu1  ;;  %v7028_v40 = vld [vmem:[%s9227_s0 + $0x1a0] ss:$8 sps:$4 sm:$0xff]   ;;  %v7037_v43 = vld [vmem:[%s9227_s0 + $0x1d0] ss:$8 sps:$4 sm:$0xff]  }
 0x459   :  { %v3121_v62 = vpop.f32.mrb[31].mxu1  ;;  %v7040_v46 = vld [vmem:[%s9227_s0 + $0x1e0] ss:$8 sps:$4 sm:$0xff]  }
 0x45a   :  { %v3133_v47 = vadd.f32 %v3121_v62, %v3039_v36  ;;  %v7036_v36 = vld [vmem:[%s9227_s0 + $0x1c4] ss:$8 sps:$4 sm:$0xff]   ;;  %v7045_v62 = vld [vmem:[%s9227_s0 + $0x1f4] ss:$8 sps:$4 sm:$0xff]  }
 0x466   :  { %v6326_v21 = vpop.f32.mrb[32].mxu1 }
 0x467   :  { %v3223_v49 = vadd.f32 %v6326_v21, %v3134_v9  ;;  %v3207_v50 = vpop.f32.mrb[33].mxu1  ;;  %v7039_v9 = vld [vmem:[%s9227_s0 + $0x1d4] ss:$8 sps:$4 sm:$0xff]   ;;  %v7048_v21 = vld [vmem:[%s9227_s0 + $0x204] ss:$8 sps:$4 sm:$0xff]  }
 0x468   :  { %v3221_v53 = vadd.f32 %v3207_v50, %v3132_v44  ;;  %v6327_v54 = vpop.f32.mrb[34].mxu1  ;;  %v7042_v44 = vld [vmem:[%s9227_s0 + $0x1e4] ss:$8 sps:$4 sm:$0xff]   ;;  %v7051_v50 = vld [vmem:[%s9227_s0 + $0x214] ss:$8 sps:$4 sm:$0xff]  }
 0x469   :  { %v8456_v56 = vadd.f32 %v5863_v18, %v3223_v49  ;;  %v3210_v15 = vpop.f32.mrb[35].mxu1  ;;  %v7054_v54 = vld [vmem:[%s9227_s0 + $0x224] ss:$8 sps:$4 sm:$0xff]  }
 0x46a   :  { %v3231_v57 = vadd.f32 %v5863_v18, %v3221_v53  ;;  %v3222_v45 = vadd.f32 %v3210_v15, %v3133_v47  ;;  %v7043_v47 = vld [vmem:[%s9227_s0 + $0x1f0] ss:$8 sps:$4 sm:$0xff]   ;;  %v7052_v15 = vld [vmem:[%s9227_s0 + $0x220] ss:$8 sps:$4 sm:$0xff]  }
 0x46b   :  { %v7049_v53 = vld [vmem:[%s9227_s0 + $0x210] ss:$8 sps:$4 sm:$0xff]  }
 0x46c   :  { %v3232_v42 = vadd.f32 %v5863_v18, %v3222_v45  ;;  %v3234_v60 = vmax.f32 %v3231_v57, 0.0  ;;  %v7046_v18 = vld [vmem:[%s9227_s0 + $0x200] ss:$8 sps:$4 sm:$0xff]   ;;  %v7057_v57 = vld [vmem:[%s9227_s0 + $0x234] ss:$8 sps:$4 sm:$0xff]  }
 0x46d   :  { %v7055_v45 = vld [vmem:[%s9227_s0 + $0x230] ss:$8 sps:$4 sm:$0xff]  }
 0x46e   :  { %v3235_v61 = vmax.f32 %v3232_v42, 0.0  ;;  %v7060_v42 = vld [vmem:[%s9227_s0 + $0x244] ss:$8 sps:$4 sm:$0xff]  }
 0x470   :  { %v8458_v0 = vpack.c.bf16 %v3235_v61, %v3234_v60  ;;  %v7058_v60 = vld [vmem:[%s9227_s0 + $0x240] ss:$8 sps:$4 sm:$0xff]   ;;  %v7063_v61 = vld [vmem:[%s9227_s0 + $0x254] ss:$8 sps:$4 sm:$0xff]  }
 0x472   :  { %v3272_v2 = vrot.slane %v8458_v0, 1  ;;  %v3532_v35 = vrot.slane %v8458_v0, 2  ;;  %v3673_v49 = vrot.slane %v8458_v0, 3 }
 0x474   :  { %3387 = vmatmul.mubr.bf16.vlgmr.msra.gmra.mrb[36].mxu1 %v3272_v2  ;;  %v7066_v2 = vld [vmem:[%s9227_s0 + $0x264] ss:$8 sps:$4 sm:$0xff]  }
 0x475   :  { %3476 = vmatpush1.bf16.msra.mxu1 %v6974_v1  ;;  %3507 = vmatprep.mubr.bf16.mxu1 %v7278_v52  ;;  %v7061_v1 = vld [vmem:[%s9227_s0 + $0x250] ss:$8 sps:$4 sm:$0xff]  }
 0x476   :  { %3477 = vmatprep.subr.bf16.mxu1 %v6979_v4  ;;  %v7064_v4 = vld [vmem:[%s9227_s0 + $0x260] ss:$8 sps:$4 sm:$0xff]  }
 0x479   :  { %3478 = vmatpush1.bf16.msra.mxu1 %v6977_v5  ;;  %v7069_v5 = vld [vmem:[%s9227_s0 + $0x274] ss:$8 sps:$4 sm:$0xff]  }
 0x47a   :  { %3479 = vmatprep.subr.bf16.mxu1 %v6982_v27  ;;  %v7067_v27 = vld [vmem:[%s9227_s0 + $0x270] ss:$8 sps:$4 sm:$0xff]  }
 0x47d   :  { %3480 = vmatpush1.bf16.msra.mxu1 %v6980_v24  ;;  %v7072_v24 = vld [vmem:[%s9227_s0 + $0x284] ss:$8 sps:$4 sm:$0xff]  }
 0x47e   :  { %3481 = vmatprep.subr.bf16.mxu1 %v6985_v7  ;;  %v7070_v7 = vld [vmem:[%s9227_s0 + $0x280] ss:$8 sps:$4 sm:$0xff]  }
 0x481   :  { %3482 = vmatpush1.bf16.msra.mxu1 %v6983_v8  ;;  %v3814_v8 = vrot.slane %v8458_v0, 4 }
 0x482   :  { %3483 = vmatprep.subr.bf16.mxu1 %v6988_v10  ;;  %v7075_v10 = vld [vmem:[%s9227_s0 + $0x294] ss:$8 sps:$4 sm:$0xff]  }
 0x485   :  { %3484 = vmatpush1.bf16.msra.mxu1 %v6986_v12  ;;  %v7073_v12 = vld [vmem:[%s9227_s0 + $0x290] ss:$8 sps:$4 sm:$0xff]  }
 0x486   :  { %3485 = vmatprep.subr.bf16.mxu1 %v6991_v13  ;;  %v7078_v13 = vld [vmem:[%s9227_s0 + $0x2a4] ss:$8 sps:$4 sm:$0xff]  }
 0x489   :  { %3486 = vmatpush1.bf16.msra.mxu1 %v6989_v51  ;;  %v7076_v51 = vld [vmem:[%s9227_s0 + $0x2a0] ss:$8 sps:$4 sm:$0xff]  }
 0x48a   :  { %3487 = vmatprep.subr.bf16.mxu1 %v6994_v48  ;;  %v7081_v48 = vld [vmem:[%s9227_s0 + $0x2b4] ss:$8 sps:$4 sm:$0xff]  }
 0x48d   :  { %3488 = vmatpush1.bf16.msra.mxu1 %v6992_v16  ;;  %v7079_v16 = vld [vmem:[%s9227_s0 + $0x2b0] ss:$8 sps:$4 sm:$0xff]  }
 0x48e   :  { %3489 = vmatprep.subr.bf16.mxu1 %v6997_v17  ;;  %v7084_v17 = vld [vmem:[%s9227_s0 + $0x2c4] ss:$8 sps:$4 sm:$0xff]  }
 0x491   :  { %3490 = vmatpush1.bf16.msra.mxu1 %v6995_v19  ;;  %v7082_v19 = vld [vmem:[%s9227_s0 + $0x2c0] ss:$8 sps:$4 sm:$0xff]  }
 0x492   :  { %3614 = vmatprep.subr.bf16.mxu1 %v7000_v6  ;;  %v7087_v6 = vld [vmem:[%s9227_s0 + $0x2d4] ss:$8 sps:$4 sm:$0xff]  }
 0x494   :  { %3508 = vmatmul.mubr.bf16.vlgmr.msra.gmra.mrb[40].mxu1 %v8458_v0 }
 0x495   :  { %3615 = vmatpush1.bf16.msra.mxu1 %v6998_v3  ;;  %3646 = vmatprep.mubr.bf16.mxu1 %v7278_v52  ;;  %v7085_v3 = vld [vmem:[%s9227_s0 + $0x2d0] ss:$8 sps:$4 sm:$0xff]  }
 0x496   :  { %3616 = vmatprep.subr.bf16.mxu1 %v7003_v20  ;;  %v7090_v20 = vld [vmem:[%s9227_s0 + $0x2e4] ss:$8 sps:$4 sm:$0xff]  }
 0x499   :  { %3617 = vmatpush1.bf16.msra.mxu1 %v7001_v22  ;;  %v7088_v22 = vld [vmem:[%s9227_s0 + $0x2e0] ss:$8 sps:$4 sm:$0xff]  }
 0x49a   :  { %3618 = vmatprep.subr.bf16.mxu1 %v7006_v23  ;;  %v7093_v23 = vld [vmem:[%s9227_s0 + $0x2f4] ss:$8 sps:$4 sm:$0xff]  }
 0x49d   :  { %3619 = vmatpush1.bf16.msra.mxu1 %v7004_v25  ;;  %v7091_v25 = vld [vmem:[%s9227_s0 + $0x2f0] ss:$8 sps:$4 sm:$0xff]  }
 0x49e   :  { %3620 = vmatprep.subr.bf16.mxu1 %v7009_v33  ;;  %v7096_v33 = vld [vmem:[%s9227_s0 + $0x304] ss:$8 sps:$4 sm:$0xff]  }
 0x4a1   :  { %3621 = vmatpush1.bf16.msra.mxu1 %v7007_v30  ;;  %v7094_v30 = vld [vmem:[%s9227_s0 + $0x300] ss:$8 sps:$4 sm:$0xff]  }
 0x4a2   :  { %3622 = vmatprep.subr.bf16.mxu1 %v7012_v26  ;;  %v3955_v26 = vrot.slane %v8458_v0, 5 }
 0x4a5   :  { %3623 = vmatpush1.bf16.msra.mxu1 %v7010_v11  ;;  %v7099_v11 = vld [vmem:[%s9227_s0 + $0x314] ss:$8 sps:$4 sm:$0xff]  }
 0x4a6   :  { %3624 = vmatprep.subr.bf16.mxu1 %v7015_v28  ;;  %v7097_v28 = vld [vmem:[%s9227_s0 + $0x310] ss:$8 sps:$4 sm:$0xff]  }
 0x4a9   :  { %3625 = vmatpush1.bf16.msra.mxu1 %v7013_v29  ;;  %v7102_v29 = vld [vmem:[%s9227_s0 + $0x324] ss:$8 sps:$4 sm:$0xff]  }
 0x4aa   :  { %3626 = vmatprep.subr.bf16.mxu1 %v7018_v31  ;;  %v7100_v31 = vld [vmem:[%s9227_s0 + $0x320] ss:$8 sps:$4 sm:$0xff]  }
 0x4ad   :  { %3627 = vmatpush1.bf16.msra.mxu1 %v7016_v32  ;;  %v7105_v32 = vld [vmem:[%s9227_s0 + $0x334] ss:$8 sps:$4 sm:$0xff]  }
 0x4ae   :  { %3628 = vmatprep.subr.bf16.mxu1 %v7021_v34  ;;  %v7103_v34 = vld [vmem:[%s9227_s0 + $0x330] ss:$8 sps:$4 sm:$0xff]  }
 0x4b1   :  { %3629 = vmatpush1.bf16.msra.mxu1 %v7019_v59  ;;  %v7108_v59 = vld [vmem:[%s9227_s0 + $0x344] ss:$8 sps:$4 sm:$0xff]  }
 0x4b2   :  { %3755 = vmatprep.subr.bf16.mxu1 %v7024_v58  ;;  %v7106_v58 = vld [vmem:[%s9227_s0 + $0x340] ss:$8 sps:$4 sm:$0xff]  }
 0x4b4   :  { %3647 = vmatmul.mubr.bf16.vlgmr.msra.gmra.mrb[44].mxu1 %v3532_v35  ;;  %v7109_v35 = vld [vmem:[%s9227_s0 + $0x350] ss:$8 sps:$4 sm:$0xff]  }
 0x4b5   :  { %3756 = vmatpush1.bf16.msra.mxu1 %v7022_v55  ;;  %3787 = vmatprep.mubr.bf16.mxu1 %v7278_v52  ;;  %v7111_v55 = vld [vmem:[%s9227_s0 + $0x354] ss:$8 sps:$4 sm:$0xff]  }
 0x4b6   :  { %3757 = vmatprep.subr.bf16.mxu1 %v7027_v37  ;;  %v7114_v37 = vld [vmem:[%s9227_s0 + $0x364] ss:$8 sps:$4 sm:$0xff]  }
 0x4b9   :  { %3758 = vmatpush1.bf16.msra.mxu1 %v7025_v38  ;;  %v7112_v38 = vld [vmem:[%s9227_s0 + $0x360] ss:$8 sps:$4 sm:$0xff]  }
 0x4ba   :  { %3759 = vmatprep.subr.bf16.mxu1 %v7030_v14  ;;  %v7117_v14 = vld [vmem:[%s9227_s0 + $0x374] ss:$8 sps:$4 sm:$0xff]  }
 0x4bd   :  { %3760 = vmatpush1.bf16.msra.mxu1 %v7028_v40  ;;  %v7115_v40 = vld [vmem:[%s9227_s0 + $0x370] ss:$8 sps:$4 sm:$0xff]  }
 0x4be   :  { %3761 = vmatprep.subr.bf16.mxu1 %v7033_v41  ;;  %v7120_v41 = vld [vmem:[%s9227_s0 + $0x384] ss:$8 sps:$4 sm:$0xff]  }
 0x4c1   :  { %3762 = vmatpush1.bf16.msra.mxu1 %v7031_v39  ;;  %v7118_v39 = vld [vmem:[%s9227_s0 + $0x380] ss:$8 sps:$4 sm:$0xff]  }
 0x4c2   :  { %3763 = vmatprep.subr.bf16.mxu1 %v7036_v36  ;;  %v4096_v36 = vrot.slane %v8458_v0, 6 }
 0x4c5   :  { %3764 = vmatpush1.bf16.msra.mxu1 %v7034_v63  ;;  %v7123_v63 = vld [vmem:[%s9227_s0 + $0x394] ss:$8 sps:$4 sm:$0xff]  }
 0x4c6   :  { %3765 = vmatprep.subr.bf16.mxu1 %v7039_v9  ;;  %v7121_v9 = vld [vmem:[%s9227_s0 + $0x390] ss:$8 sps:$4 sm:$0xff]  }
 0x4c9   :  { %3766 = vmatpush1.bf16.msra.mxu1 %v7037_v43  ;;  %v7126_v43 = vld [vmem:[%s9227_s0 + $0x3a4] ss:$8 sps:$4 sm:$0xff]  }
 0x4ca   :  { %3767 = vmatprep.subr.bf16.mxu1 %v7042_v44  ;;  %v7124_v44 = vld [vmem:[%s9227_s0 + $0x3a0] ss:$8 sps:$4 sm:$0xff]  }
 0x4cd   :  { %3768 = vmatpush1.bf16.msra.mxu1 %v7040_v46  ;;  %v7129_v46 = vld [vmem:[%s9227_s0 + $0x3b4] ss:$8 sps:$4 sm:$0xff]  }
 0x4ce   :  { %3769 = vmatprep.subr.bf16.mxu1 %v7045_v62  ;;  %v7127_v62 = vld [vmem:[%s9227_s0 + $0x3b0] ss:$8 sps:$4 sm:$0xff]  }
 0x4d1   :  { %3770 = vmatpush1.bf16.msra.mxu1 %v7043_v47  ;;  %v7132_v47 = vld [vmem:[%s9227_s0 + $0x3c4] ss:$8 sps:$4 sm:$0xff]  }
 0x4d2   :  { %3896 = vmatprep.subr.bf16.mxu1 %v7048_v21  ;;  %v7130_v21 = vld [vmem:[%s9227_s0 + $0x3c0] ss:$8 sps:$4 sm:$0xff]  }
 0x4d4   :  { %3788 = vmatmul.mubr.bf16.vlgmr.msra.gmra.mrb[48].mxu1 %v3673_v49  ;;  %v7133_v49 = vld [vmem:[%s9227_s0 + $0x3d0] ss:$8 sps:$4 sm:$0xff]  }
 0x4d5   :  { %3897 = vmatpush1.bf16.msra.mxu1 %v7046_v18  ;;  %3928 = vmatprep.mubr.bf16.mxu1 %v7278_v52  ;;  %v7135_v18 = vld [vmem:[%s9227_s0 + $0x3d4] ss:$8 sps:$4 sm:$0xff]  }
 0x4d6   :  { %3898 = vmatprep.subr.bf16.mxu1 %v7051_v50  ;;  %v7138_v50 = vld [vmem:[%s9227_s0 + $0x3e4] ss:$8 sps:$4 sm:$0xff]  }
 0x4d9   :  { %3899 = vmatpush1.bf16.msra.mxu1 %v7049_v53 }
 0x4da   :  { %3900 = vmatprep.subr.bf16.mxu1 %v7054_v54 }
 0x4dd   :  { %3901 = vmatpush1.bf16.msra.mxu1 %v7052_v15 }
 0x4de   :  { %3902 = vmatprep.subr.bf16.mxu1 %v7057_v57  ;;  %v7136_v57 = vld [vmem:[%s9227_s0 + $0x3e0] ss:$8 sps:$4 sm:$0xff]  }
 0x4e1   :  { %3903 = vmatpush1.bf16.msra.mxu1 %v7055_v45 }
 0x4e2   :  { %3904 = vmatprep.subr.bf16.mxu1 %v7060_v42  ;;  %v7141_v42 = vld [vmem:[%s9227_s0 + $0x3f4] ss:$8 sps:$4 sm:$0xff]  }
 0x4e5   :  { %3905 = vmatpush1.bf16.msra.mxu1 %v7058_v60  ;;  %v7139_v60 = vld [vmem:[%s9227_s0 + $0x3f0] ss:$8 sps:$4 sm:$0xff]  }
 0x4e6   :  { %3906 = vmatprep.subr.bf16.mxu1 %v7063_v61  ;;  %v7144_v61 = vld [vmem:[%s9227_s0 + $0x404] ss:$8 sps:$4 sm:$0xff]  }
 0x4e9   :  { %3907 = vmatpush1.bf16.msra.mxu1 %v7061_v1  ;;  %v7142_v1 = vld [vmem:[%s9227_s0 + $0x400] ss:$8 sps:$4 sm:$0xff]  }
 0x4ea   :  { %3908 = vmatprep.subr.bf16.mxu1 %v7066_v2  ;;  %v4237_v2 = vrot.slane %v8458_v0, 7  ;;  %v7148_v0 = vld [vmem:[%s9227_s0 + $0x420] ss:$8 sps:$4 sm:$0xff]  }
 0x4ed   :  { %3909 = vmatpush1.bf16.msra.mxu1 %v7064_v4  ;;  %v7147_v4 = vld [vmem:[%s9227_s0 + $0x414] ss:$8 sps:$4 sm:$0xff]  }
 0x4ee   :  { %3910 = vmatprep.subr.bf16.mxu1 %v7069_v5  ;;  %v7145_v5 = vld [vmem:[%s9227_s0 + $0x410] ss:$8 sps:$4 sm:$0xff]  }
 0x4f1   :  { %3911 = vmatpush1.bf16.msra.mxu1 %v7067_v27  ;;  %v7150_v27 = vld [vmem:[%s9227_s0 + $0x424] ss:$8 sps:$4 sm:$0xff]  }
 0x4f2   :  { %4037 = vmatprep.subr.bf16.mxu1 %v7072_v24  ;;  %v7153_v24 = vld [vmem:[%s9227_s0 + $0x434] ss:$8 sps:$4 sm:$0xff]  }
 0x4f4   :  { %3929 = vmatmul.mubr.bf16.vlgmr.msra.gmra.mrb[52].mxu1 %v3814_v8  ;;  %v7156_v8 = vld [vmem:[%s9227_s0 + $0x444] ss:$8 sps:$4 sm:$0xff]  }
 0x4f5   :  { %4038 = vmatpush1.bf16.msra.mxu1 %v7070_v7  ;;  %4069 = vmatprep.mubr.bf16.mxu1 %v7278_v52  ;;  %v7151_v7 = vld [vmem:[%s9227_s0 + $0x430] ss:$8 sps:$4 sm:$0xff]  }
 0x4f6   :  { %4039 = vmatprep.subr.bf16.mxu1 %v7075_v10  ;;  %v7154_v10 = vld [vmem:[%s9227_s0 + $0x440] ss:$8 sps:$4 sm:$0xff]  }
 0x4f9   :  { %4040 = vmatpush1.bf16.msra.mxu1 %v7073_v12  ;;  %v7159_v12 = vld [vmem:[%s9227_s0 + $0x454] ss:$8 sps:$4 sm:$0xff]  }
 0x4fa   :  { %4041 = vmatprep.subr.bf16.mxu1 %v7078_v13  ;;  %v7157_v13 = vld [vmem:[%s9227_s0 + $0x450] ss:$8 sps:$4 sm:$0xff]  }
 0x4fd   :  { %4042 = vmatpush1.bf16.msra.mxu1 %v7076_v51  ;;  %v7162_v51 = vld [vmem:[%s9227_s0 + $0x464] ss:$8 sps:$4 sm:$0xff]  }
 0x4fe   :  { %4043 = vmatprep.subr.bf16.mxu1 %v7081_v48 }
 0x501   :  { %4044 = vmatpush1.bf16.msra.mxu1 %v7079_v16 }
 0x502   :  { %4045 = vmatprep.subr.bf16.mxu1 %v7084_v17 }
 0x505   :  { %4046 = vmatpush1.bf16.msra.mxu1 %v7082_v19 }
 0x506   :  { %4047 = vmatprep.subr.bf16.mxu1 %v7087_v6 }
 0x509   :  { %4048 = vmatpush1.bf16.msra.mxu1 %v7085_v3  ;;  %v7160_v3 = vld [vmem:[%s9227_s0 + $0x460] ss:$8 sps:$4 sm:$0xff]  }
 0x50a   :  { %4049 = vmatprep.subr.bf16.mxu1 %v7090_v20 }
 0x50d   :  { %4050 = vmatpush1.bf16.msra.mxu1 %v7088_v22  ;;  %v7165_v22 = vld [vmem:[%s9227_s0 + $0x474] ss:$8 sps:$4 sm:$0xff]  }
 0x50e   :  { %4051 = vmatprep.subr.bf16.mxu1 %v7093_v23  ;;  %v7166_v23 = vld [vmem:[%s9229_s27] ss:$8 sps:$4 sm:$0xff]  }
 0x511   :  { %4052 = vmatpush1.bf16.msra.mxu1 %v7091_v25  ;;  %v7168_v25 = vld [vmem:[%s9229_s27 + $0x4] ss:$8 sps:$4 sm:$0xff]  }
 0x512   :  { %4178 = vmatprep.subr.bf16.mxu1 %v7096_v33  ;;  %v7163_v33 = vld [vmem:[%s9227_s0 + $0x470] ss:$8 sps:$4 sm:$0xff]   ;;  %4773 = vmatprep.subr.bf16.mxu0 %v7168_v25  ;;  %v7220_v25 = vld [vmem:[%s9193_s12 + $0x48] sm:$0xff]  }
 0x513   :  { %4774 = vmatpush1.bf16.msra.mxu0 %v7166_v23  ;;  %v7218_v23 = vld [vmem:[%s9193_s12] sm:$0xff]  }
 0x514   :  { %4070 = vmatmul.mubr.bf16.vlgmr.msra.gmra.mrb[56].mxu1 %v3955_v26  ;;  %v3236_v26 = vmax.f32 %v8456_v56, 0.0 }
 0x515   :  { %4179 = vmatpush1.bf16.msra.mxu1 %v7094_v30  ;;  %4210 = vmatprep.mubr.bf16.mxu1 %v7278_v52  ;;  %v7171_v30 = vld [vmem:[%s9229_s27 + $0x14] ss:$8 sps:$4 sm:$0xff]  }
 0x516   :  { %4180 = vmatprep.subr.bf16.mxu1 %v7099_v11  ;;  %v7169_v11 = vld [vmem:[%s9229_s27 + $0x10] ss:$8 sps:$4 sm:$0xff]   ;;  %4775 = vmatprep.subr.bf16.mxu0 %v7171_v30 }
 0x517   :  { %4776 = vmatpush1.bf16.msra.mxu0 %v7169_v11  ;;  %v7224_v30 = vld [vmem:[%s9193_s12 + $0x50] sm:$0xff]   ;;  %v7228_v11 = vld [vmem:[%s9193_s12 + $0x58] sm:$0xff]  }
 0x519   :  { %4181 = vmatpush1.bf16.msra.mxu1 %v7097_v28  ;;  %v7174_v28 = vld [vmem:[%s9229_s27 + $0x24] ss:$8 sps:$4 sm:$0xff]  }
 0x51a   :  { %4182 = vmatprep.subr.bf16.mxu1 %v7102_v29  ;;  %v7172_v29 = vld [vmem:[%s9229_s27 + $0x20] ss:$8 sps:$4 sm:$0xff]   ;;  %4777 = vmatprep.subr.bf16.mxu0 %v7174_v28  ;;  %v7230_v28 = vld [vmem:[%s9193_s12 + $0x18] sm:$0xff]  }
 0x51b   :  { %4778 = vmatpush1.bf16.msra.mxu0 %v7172_v29  ;;  %v7232_v29 = vld [vmem:[%s9193_s12 + $0x60] sm:$0xff]  }
 0x51d   :  { %4183 = vmatpush1.bf16.msra.mxu1 %v7100_v31  ;;  %v3238_v31 = vpack.c.bf16 %v3236_v26, %v3236_v26  ;;  %v7226_v26 = vld [vmem:[%s9193_s12 + $0x10] sm:$0xff]  }
 0x51e   :  { %4184 = vmatprep.subr.bf16.mxu1 %v7105_v32 }
 0x521   :  { %4185 = vmatpush1.bf16.msra.mxu1 %v7103_v34 }
 0x522   :  { %4186 = vmatprep.subr.bf16.mxu1 %v7108_v59 }
 0x525   :  { %4187 = vmatpush1.bf16.msra.mxu1 %v7106_v58 }
 0x526   :  { %4188 = vmatprep.subr.bf16.mxu1 %v7111_v55 }
 0x529   :  { %4189 = vmatpush1.bf16.msra.mxu1 %v7109_v35  ;;  %v7175_v35 = vld [vmem:[%s9229_s27 + $0x30] ss:$8 sps:$4 sm:$0xff]  }
 0x52a   :  { %4190 = vmatprep.subr.bf16.mxu1 %v7114_v37  ;;  %v7177_v37 = vld [vmem:[%s9229_s27 + $0x34] ss:$8 sps:$4 sm:$0xff]  }
 0x52b   :  { %4779 = vmatprep.subr.bf16.mxu0 %v7177_v37 }
 0x52c   :  { %4780 = vmatpush1.bf16.msra.mxu0 %v7175_v35 }
 0x52d   :  { %4191 = vmatpush1.bf16.msra.mxu1 %v7112_v38  ;;  %v7180_v38 = vld [vmem:[%s9229_s27 + $0x44] ss:$8 sps:$4 sm:$0xff]  }
 0x52e   :  { %4192 = vmatprep.subr.bf16.mxu1 %v7117_v14  ;;  %4781 = vmatprep.subr.bf16.mxu0 %v7180_v38  ;;  %v7183_v14 = vld [vmem:[%s9229_s27 + $0x54] ss:$8 sps:$4 sm:$0xff]  }
 0x531   :  { %4193 = vmatpush1.bf16.msra.mxu1 %v7115_v40  ;;  %v7181_v40 = vld [vmem:[%s9229_s27 + $0x50] ss:$8 sps:$4 sm:$0xff]  }
 0x532   :  { %4319 = vmatprep.subr.bf16.mxu1 %v7120_v41  ;;  %v7186_v41 = vld [vmem:[%s9229_s27 + $0x64] ss:$8 sps:$4 sm:$0xff]  }
 0x534   :  { %4211 = vmatmul.mubr.bf16.vlgmr.msra.gmra.mrb[60].mxu1 %v4096_v36  ;;  %v7189_v36 = vld [vmem:[%s9229_s27 + $0x74] ss:$8 sps:$4 sm:$0xff]  }
 0x535   :  { %4320 = vmatpush1.bf16.msra.mxu1 %v7118_v39  ;;  %4351 = vmatprep.mubr.bf16.mxu1 %v7278_v52  ;;  %v7184_v39 = vld [vmem:[%s9229_s27 + $0x60] ss:$8 sps:$4 sm:$0xff]  }
 0x536   :  { %4321 = vmatprep.subr.bf16.mxu1 %v7123_v63  ;;  %v7187_v63 = vld [vmem:[%s9229_s27 + $0x70] ss:$8 sps:$4 sm:$0xff]  }
 0x539   :  { %4322 = vmatpush1.bf16.msra.mxu1 %v7121_v9  ;;  %v7192_v9 = vld [vmem:[%s9229_s27 + $0x84] ss:$8 sps:$4 sm:$0xff]  }
 0x53a   :  { %4323 = vmatprep.subr.bf16.mxu1 %v7126_v43  ;;  %v7190_v43 = vld [vmem:[%s9229_s27 + $0x80] ss:$8 sps:$4 sm:$0xff]  }
 0x53d   :  { %4324 = vmatpush1.bf16.msra.mxu1 %v7124_v44 }
 0x53e   :  { %4325 = vmatprep.subr.bf16.mxu1 %v7129_v46 }
 0x541   :  { %4326 = vmatpush1.bf16.msra.mxu1 %v7127_v62 }
 0x542   :  { %4327 = vmatprep.subr.bf16.mxu1 %v7132_v47 }
 0x545   :  { %4328 = vmatpush1.bf16.msra.mxu1 %v7130_v21 }
 0x546   :  { %4329 = vmatprep.subr.bf16.mxu1 %v7135_v18 }
 0x547   :  { %v3388_v53 = vpop.f32.mrb[36].mxu1 }
 0x548   :  { %v3390_v54 = vpop.f32.mrb[37].mxu1 }
 0x549   :  { %4330 = vmatpush1.bf16.msra.mxu1 %v7133_v49  ;;  %v3392_v15 = vpop.f32.mrb[38].mxu1  ;;  %v7193_v49 = vld [vmem:[%s9229_s27 + $0x90] ss:$8 sps:$4 sm:$0xff]  }
 0x54a   :  { %v3393_v45 = vpop.f32.mrb[39].mxu1  ;;  %4331 = vmatprep.subr.bf16.mxu1 %v7138_v50  ;;  %v7195_v50 = vld [vmem:[%s9229_s27 + $0x94] ss:$8 sps:$4 sm:$0xff]  }
 0x54b   :  { %v7201_v15 = vld [vmem:[%s9229_s27 + $0xb4] ss:$8 sps:$4 sm:$0xff]   ;;  %v7204_v45 = vld [vmem:[%s9229_s27 + $0xc4] ss:$8 sps:$4 sm:$0xff]  }
 0x54d   :  { %4332 = vmatpush1.bf16.msra.mxu1 %v7136_v57  ;;  %v7199_v57 = vld [vmem:[%s9229_s27 + $0xb0] ss:$8 sps:$4 sm:$0xff]  }
 0x54e   :  { %4333 = vmatprep.subr.bf16.mxu1 %v7141_v42  ;;  %v7202_v42 = vld [vmem:[%s9229_s27 + $0xc0] ss:$8 sps:$4 sm:$0xff]  }
 0x551   :  { %4334 = vmatpush1.bf16.msra.mxu1 %v7139_v60  ;;  %v7207_v60 = vld [vmem:[%s9229_s27 + $0xd4] ss:$8 sps:$4 sm:$0xff]  }
 0x552   :  { %4458 = vmatprep.subr.bf16.mxu1 %v7144_v61  ;;  %v7205_v61 = vld [vmem:[%s9229_s27 + $0xd0] ss:$8 sps:$4 sm:$0xff]  }
 0x554   :  { %4352 = vmatmul.mubr.bf16.vlgmr.msra.gmra.mrb[64].mxu1 %v4237_v2 }
 0x555   :  { %4459 = vmatpush1.bf16.msra.mxu1 %v7142_v1  ;;  %4490 = vmatprep.mubr.bf16.mxu1 %v7278_v52  ;;  %v4552_v1 = vld [vmem:[%s9230_s25] sm:$0x77] }
 0x556   :  { %4460 = vmatprep.subr.bf16.mxu1 %v7147_v4  ;;  %v6009_v4 = vcombine.high %v4552_v1, %v4552_v1 }
 0x559   :  { %4461 = vmatpush1.bf16.msra.mxu1 %v7145_v5  ;;  %v7280_v5 = vmov 65535  }
 0x55a   :  { %4462 = vmatprep.subr.bf16.mxu1 %v7150_v27  ;;  %v4564_v27 = vsel %vm2956_vm6, 4294967295, %v7280_v5  ;;  %v7219_v5 = vld [vmem:[%s9194_s18] sm:$0xff]  }
 0x55d   :  { %4463 = vmatpush1.bf16.msra.mxu1 %v7148_v0 }
 0x55e   :  { %4464 = vmatprep.subr.bf16.mxu1 %v7153_v24 }
 0x561   :  { %4465 = vmatpush1.bf16.msra.mxu1 %v7151_v7  ;;  %v7210_v7 = vld [vmem:[%s9229_s27 + $0xe4] ss:$8 sps:$4 sm:$0xff]  }
 0x562   :  { %4466 = vmatprep.subr.bf16.mxu1 %v7156_v8  ;;  %v6008_v8 = vcombine.low %v4552_v1, %v4552_v1 }
 0x565   :  { %4467 = vmatpush1.bf16.msra.mxu1 %v7154_v10  ;;  %v4565_v10 = vsel %vm2862_vm5, %v4564_v27, 0 }
 0x566   :  { %4468 = vmatprep.subr.bf16.mxu1 %v7159_v12 }
 0x567   :  { %v3509_v48 = vpop.f32.mrb[40].mxu1 }
 0x568   :  { %v3510_v16 = vadd.f32 %v3509_v48, %v3388_v53  ;;  %v3511_v17 = vpop.f32.mrb[41].mxu1  ;;  %v7198_v53 = vld [vmem:[%s9229_s27 + $0xa4] ss:$8 sps:$4 sm:$0xff]   ;;  %v4570_v48 = vand.u32 %v6009_v4, %v4565_v10 }
 0x569   :  { %v3512_v19 = vadd.f32 %v3511_v17, %v3390_v54  ;;  %v3513_v6 = vpop.f32.mrb[42].mxu1  ;;  %4469 = vmatpush1.bf16.msra.mxu1 %v7157_v13  ;;  %v7196_v54 = vld [vmem:[%s9229_s27 + $0xa0] ss:$8 sps:$4 sm:$0xff]   ;;  %v4567_v17 = vand.u32 %v6008_v8, %v4565_v10  ;;  %v7227_v8 = vld [vmem:[%s9194_s18 + $0x10] sm:$0xff]   ;;  %v7229_v10 = vld [vmem:[%s9194_s18 + $0x58] sm:$0xff]  }
 0x56a   :  { %v3514_v20 = vpop.f32.mrb[43].mxu1  ;;  %4470 = vmatprep.subr.bf16.mxu1 %v7162_v51  ;;  %v7208_v51 = vld [vmem:[%s9229_s27 + $0xe0] ss:$8 sps:$4 sm:$0xff]   ;;  %v7213_v6 = vld [vmem:[%s9229_s27 + $0xf0] ss:$8 sps:$4 sm:$0xff]  }
 0x56b   :  { %v7216_v20 = vld [vmem:[%s9193_s12 + $0x40] sm:$0xff]  }
 0x56d   :  { %4471 = vmatpush1.bf16.msra.mxu1 %v7160_v3  ;;  %v4551_v3 = vld [vmem:[%s9231_s1] sm:$0x1] }
 0x56e   :  { %4472 = vmatprep.subr.bf16.mxu1 %v7165_v22  ;;  %v7217_v22 = vld [vmem:[%s9194_s18 + $0x40] sm:$0xff]  }
 0x571   :  { %4473 = vmatpush1.bf16.msra.mxu1 %v7163_v33  ;;  %v7222_v33 = vld [vmem:[%s9193_s12 + $0x8] sm:$0xff]  }
 0x572   :  { %4572 = vmatprep.subr.bf16.mxu1 %v4570_v48  ;;  %v7237_v48 = vld [vmem:[%s9194_s18 + $0x68] sm:$0xff]  }
 0x574   :  { %4491 = vmatmul.mubr.bf16.vlgmr.msra.gmra.mrb[68].mxu1 %v3238_v31  ;;  %v7234_v31 = vld [vmem:[%s9193_s12 + $0x20] sm:$0xff]  }
 0x575   :  { %4604 = vmatprep.mubr.bf16.mxu1 %v7278_v52  ;;  %v7178_v52 = vld [vmem:[%s9229_s27 + $0x40] ss:$8 sps:$4 sm:$0xff]   ;;  %4573 = vmatpush1.bf16.msra.mxu1 %v4567_v17 }
 0x576   :  { %4782 = vmatpush1.bf16.msra.mxu0 %v7178_v52  ;;  %6156 = vmatprep.subr.bf16.mxu1 %v7216_v20 }
 0x577   :  { %4783 = vmatprep.subr.bf16.mxu0 %v7183_v14 }
 0x57a   :  { %4784 = vmatpush1.bf16.msra.mxu0 %v7181_v40 }
 0x57b   :  { %4785 = vmatprep.subr.bf16.mxu0 %v7186_v41  ;;  %v7236_v41 = vld [vmem:[%s9193_s12 + $0x68] sm:$0xff]  }
 0x57c   :  { %6010 = vmatmul.mubr.msk.bf16.vlgmr.msra.gmra.mrb[72].mxu1 %vm4558_vm8, %v4551_v3 }
 0x57d   :  { %6157 = vmatpush3.bf16.msra.mxu1 %v7218_v23  ;;  %v7241_v23 = vld [vmem:[%s9194_s18 + $0x70] sm:$0xff]  }
 0x57e   :  { %4786 = vmatpush1.bf16.msra.mxu0 %v7184_v39  ;;  %6158 = vmatprep.subr.bf16.mxu1 %v7220_v25  ;;  %v7242_v25 = vld [vmem:[%s9193_s12 + $0x30] sm:$0xff]  }
 0x57f   :  { %4787 = vmatprep.subr.bf16.mxu0 %v7189_v36 }
 0x581   :  { %6159 = vmatpush3.bf16.msra.mxu1 %v7222_v33  ;;  %v7243_v33 = vld [vmem:[%s9194_s18 + $0x30] sm:$0xff]  }
 0x582   :  { %4788 = vmatpush1.bf16.msra.mxu0 %v7187_v63  ;;  %6160 = vmatprep.subr.bf16.mxu1 %v7224_v30  ;;  %v7244_v30 = vld [vmem:[%s9193_s12 + $0x78] sm:$0xff]  }
 0x583   :  { %4789 = vmatprep.subr.bf16.mxu0 %v7192_v9 }
 0x585   :  { %6161 = vmatpush3.bf16.msra.mxu1 %v7226_v26  ;;  %v7245_v26 = vld [vmem:[%s9194_s18 + $0x78] sm:$0xff]  }
 0x586   :  { %4790 = vmatpush1.bf16.msra.mxu0 %v7190_v43  ;;  %6162 = vmatprep.subr.bf16.mxu1 %v7228_v11  ;;  %v7246_v11 = vld [vmem:[%s9193_s12 + $0x38] sm:$0xff]  }
 0x587   :  { %v3648_v56 = vpop.f32.mrb[44].mxu1  ;;  %4791 = vmatprep.subr.bf16.mxu0 %v7195_v50 }
 0x588   :  { %v3655_v32 = vadd.f32 %v3648_v56, %v3510_v16  ;;  %v3650_v34 = vpop.f32.mrb[45].mxu1 }
 0x589   :  { %v3656_v59 = vadd.f32 %v3650_v34, %v3512_v19  ;;  %v3652_v58 = vpop.f32.mrb[46].mxu1  ;;  %v7215_v19 = vld [vmem:[%s9229_s27 + $0xf4] ss:$8 sps:$4 sm:$0xff]   ;;  %6163 = vmatpush3.bf16.msra.mxu1 %v7230_v28 }
 0x58a   :  { %v3653_v55 = vpop.f32.mrb[47].mxu1  ;;  %4792 = vmatpush1.bf16.msra.mxu0 %v7193_v49  ;;  %6164 = vmatprep.subr.bf16.mxu1 %v7232_v29  ;;  %v7247_v28 = vld [vmem:[%s9194_s18 + $0x38] sm:$0xff]   ;;  %v4814_v29 = vld [vmem:[%s9196_s11] sm:$0x3] }
 0x58b   :  { %4793 = vmatprep.subr.bf16.mxu0 %v7198_v53 }
 0x58d   :  { %6165 = vmatpush3.bf16.msra.mxu1 %v7234_v31 }
 0x58e   :  { %4794 = vmatpush1.bf16.msra.mxu0 %v7196_v54  ;;  %6166 = vmatprep.subr.bf16.mxu1 %v7236_v41 }
 0x58f   :  { %4795 = vmatprep.subr.bf16.mxu0 %v7201_v15 }
 0x592   :  { %4796 = vmatpush1.bf16.msra.mxu0 %v7199_v57 }
 0x593   :  { %4797 = vmatprep.subr.bf16.mxu0 %v7204_v45 }
 0x596   :  { %4798 = vmatpush1.bf16.msra.mxu0 %v7202_v42 }
 0x597   :  { %4799 = vmatprep.subr.bf16.mxu0 %v7207_v60 }
 0x59a   :  { %4800 = vmatpush1.bf16.msra.mxu0 %v7205_v61 }
 0x59b   :  { %4801 = vmatprep.subr.bf16.mxu0 %v7210_v7  ;;  %v7225_v7 = vld [vmem:[%s9194_s18 + $0x50] sm:$0xff]  }
 0x59e   :  { %4802 = vmatpush1.bf16.msra.mxu0 %v7208_v51  ;;  %v7235_v51 = vld [vmem:[%s9194_s18 + $0x20] sm:$0xff]  }
 0x59f   :  { %4803 = vmatprep.subr.bf16.mxu0 %v7215_v19  ;;  %v7238_v19 = vld [vmem:[%s9193_s12 + $0x28] sm:$0xff]  }
 0x5a0   :  { %6167 = vmatpush3.bf16.msra.mxu1 %v7238_v19  ;;  %v7259_v19 = vld [vmem:[%s9200_s20 + $0x18] sm:$0xff]  }
 0x5a2   :  { %4804 = vmatpush1.bf16.msra.mxu0 %v7213_v6  ;;  %v7239_v6 = vld [vmem:[%s9194_s18 + $0x28] sm:$0xff]  }
 0x5a3   :  { %6188 = vmatprep.subr.bf16.mxu0 %v7217_v22  ;;  %v7240_v22 = vld [vmem:[%s9193_s12 + $0x70] sm:$0xff]  }
 0x5a4   :  { %6168 = vmatprep.subr.bf16.mxu1 %v7240_v22  ;;  %v7261_v22 = vld [vmem:[%s9203_s22 + $0x8] sm:$0xff]  }
 0x5a5   :  { %6169 = vmatpush3.bf16.msra.mxu1 %v7242_v25  ;;  %v7263_v25 = vld [vmem:[%s9203_s22 + $0x18] sm:$0xff]  }
 0x5a6   :  { %6170 = vmatprep.subr.bf16.mxu1 %v7244_v30 }
 0x5a7   :  { %v3789_v44 = vpop.f32.mrb[48].mxu1 }
 0x5a8   :  { %v3796_v46 = vadd.f32 %v3789_v44, %v3655_v32  ;;  %v3791_v62 = vpop.f32.mrb[49].mxu1 }
 0x5a9   :  { %v3797_v47 = vadd.f32 %v3791_v62, %v3656_v59  ;;  %v3793_v21 = vpop.f32.mrb[50].mxu1  ;;  %6171 = vmatpush3.bf16.msra.mxu1 %v7246_v11 }
 0x5aa   :  { %v3794_v18 = vpop.f32.mrb[51].mxu1  ;;  %v4501_v21 = vld [vmem:[%s9195_s8] sm:$0x3] }
 0x5c7   :  { %v3930_v2 = vpop.f32.mrb[52].mxu1 }
 0x5c8   :  { %v3937_v0 = vadd.f32 %v3930_v2, %v3796_v46  ;;  %v3932_v24 = vpop.f32.mrb[53].mxu1  ;;  %v2309_v46 = vlaneseq }
 0x5c9   :  { %v3938_v12 = vadd.f32 %v3932_v24, %v3797_v47  ;;  %v3934_v13 = vpop.f32.mrb[54].mxu1  ;;  %v7223_v24 = vld [vmem:[%s9194_s18 + $0x8] sm:$0xff]  }
 0x5ca   :  { %v3935_v16 = vpop.f32.mrb[55].mxu1  ;;  %v9000_v62 = vshrl.u32 %v2309_v46, 7  ;;  %v7233_v13 = vld [vmem:[%s9194_s18 + $0x60] sm:$0xff]  }
 0x5cc   :  { %v4505_v47 = vsub.s32 0, %v9000_v62  ;;  %v4509_v18 = vsub.s32 1, %v9000_v62 }
 0x5ce   :  { %v4506_v49 = vrot.slane %v4501_v21, %v4505_v47  ;;  %v4510_v53 = vrot.slane %v4501_v21, %v4509_v18  ;;  %v4819_v31 = vrot.slane %v4814_v29, %v4505_v47  ;;  %v6043_v47 = vld [vmem:[%s9198_s13] ss:$0 sm:$0xff] }
 0x5e7   :  { %v4071_v56 = vpop.f32.mrb[56].mxu1 }
 0x5e8   :  { %v4078_v32 = vadd.f32 %v4071_v56, %v3937_v0  ;;  %v4073_v34 = vpop.f32.mrb[57].mxu1  ;;  %v7221_v0 = vld [vmem:[%s9194_s18 + $0x48] sm:$0xff]  }
 0x5e9   :  { %v4079_v59 = vadd.f32 %v4073_v34, %v3938_v12  ;;  %v4075_v58 = vpop.f32.mrb[58].mxu1  ;;  %v7231_v12 = vld [vmem:[%s9194_s18 + $0x18] sm:$0xff]  }
 0x5ea   :  { %v4076_v55 = vpop.f32.mrb[59].mxu1 }
 0x607   :  { %v4212_v35 = vpop.f32.mrb[60].mxu1 }
 0x608   :  { %v4219_v37 = vadd.f32 %v4212_v35, %v4078_v32  ;;  %v4214_v38 = vpop.f32.mrb[61].mxu1  ;;  %v4823_v32 = vrot.slane %v4814_v29, %v4509_v18 }
 0x609   :  { %v4220_v52 = vadd.f32 %v4214_v38, %v4079_v59  ;;  %v4216_v14 = vpop.f32.mrb[62].mxu1 }
 0x60a   :  { %v4217_v40 = vpop.f32.mrb[63].mxu1 }
 0x627   :  { %v4353_v39 = vpop.f32.mrb[64].mxu1 }
 0x628   :  { %v4360_v36 = vadd.f32 %v4353_v39, %v4219_v37  ;;  %v4355_v63 = vpop.f32.mrb[65].mxu1  ;;  %v7248_v39 = vld [vmem:[%s9197_s14] sm:$0xff]  }
 0x629   :  { %v4361_v9 = vadd.f32 %v4355_v63, %v4220_v52  ;;  %v4357_v43 = vpop.f32.mrb[66].mxu1  ;;  %v7249_v63 = vld [vmem:[%s9197_s14 + $0x8] sm:$0xff]  }
 0x62a   :  { %v4358_v44 = vpop.f32.mrb[67].mxu1  ;;  %v7251_v43 = vld [vmem:[%s9197_s14 + $0x18] sm:$0xff]  }
 0x647   :  { %v4492_v50 = vpop.f32.mrb[68].mxu1 }
 0x648   :  { %v4499_v54 = vadd.f32 %v4492_v50, %v4360_v36  ;;  %v4494_v15 = vpop.f32.mrb[69].mxu1  ;;  %v7281_v36 = vmov 0.0  }
 0x649   :  { %v4500_v57 = vadd.f32 %v4494_v15, %v4361_v9  ;;  %v4496_v45 = vpop.f32.mrb[70].mxu1  ;;  %6328 = vmatprep.subr.bf16.mxu1 %v7281_v36  ;;  %v7250_v9 = vld [vmem:[%s9197_s14 + $0x10] sm:$0xff]  }
 0x64a   :  { %v4513_v42 = vadd.f32 %v4506_v49, %v4499_v54  ;;  %v4497_v60 = vpop.f32.mrb[71].mxu1 }
 0x64b   :  { %v4514_v61 = vadd.f32 %v4510_v53, %v4500_v57 }
 0x64c   :  { %v4515_v1 = vmax.f32 %v4513_v42, 0.0 }
 0x64d   :  { %v4516_v2 = vmax.f32 %v4514_v61, 0.0  ;;  %v7252_v61 = vld [vmem:[%s9199_s16] sm:$0xff]  }
 0x64e   :  { %v4517_v27 = vpack.c.bf16 %v4515_v1, %v4515_v1  ;;  %v7253_v1 = vld [vmem:[%s9199_s16 + $0x8] sm:$0xff]  }
 0x64f   :  { %v4518_v4 = vpack.c.bf16 %v4516_v2, %v4516_v2  ;;  %v4606_v16 = vpop.f32.mrb[72].mxu1  ;;  %v7254_v2 = vld [vmem:[%s9199_s16 + $0x10] sm:$0xff]  }
 0x650   :  { %v4608_v17 = vpop.f32.mrb[73].mxu1 }
 0x651   :  { %4805 = vmatprep.mubr.bf16.mxu0 %v4518_v4  ;;  %v4610_v3 = vpop.f32.mrb[74].mxu1  ;;  %v7255_v4 = vld [vmem:[%s9199_s16 + $0x18] sm:$0xff]  }
 0x652   :  { %4806 = vmatmul.mubr.bf16.vlgmr.msra.gmra.mrb[44].mxu0 %v4517_v27  ;;  %v4611_v20 = vpop.f32.mrb[75].mxu1 }
 0x653   :  { %6189 = vmatpush3.bf16.msra.mxu0 %v7219_v5  ;;  %v6060_v5 = vld [vmem:[%s9201_s15] ss:$0 sm:$0xff] }
 0x654   :  { %6190 = vmatprep.subr.bf16.mxu0 %v7221_v0  ;;  %v7260_v20 = vld [vmem:[%s9203_s22] sm:$0xff]  }
 0x657   :  { %6191 = vmatpush3.bf16.msra.mxu0 %v7223_v24 }
 0x658   :  { %6192 = vmatprep.subr.bf16.mxu0 %v7225_v7 }
 0x65b   :  { %6193 = vmatpush3.bf16.msra.mxu0 %v7227_v8 }
 0x65c   :  { %6194 = vmatprep.subr.bf16.mxu0 %v7229_v10  ;;  %v6073_v10 = vld [vmem:[%s9202_s19] ss:$0 sm:$0xff] }
 0x65f   :  { %6195 = vmatpush3.bf16.msra.mxu0 %v7231_v12 }
 0x660   :  { %6196 = vmatprep.subr.bf16.mxu0 %v7233_v13 }
 0x663   :  { %6197 = vmatpush3.bf16.msra.mxu0 %v7235_v51  ;;  %v7256_v51 = vld [vmem:[%s9200_s20] sm:$0xff]  }
 0x664   :  { %6198 = vmatprep.subr.bf16.mxu0 %v7237_v48 }
 0x667   :  { %6199 = vmatpush3.bf16.msra.mxu0 %v7239_v6 }
 0x668   :  { %6200 = vmatprep.subr.bf16.mxu0 %v7241_v23  ;;  %v7262_v23 = vld [vmem:[%s9203_s22 + $0x10] sm:$0xff]  }
 0x66b   :  { %6201 = vmatpush3.bf16.msra.mxu0 %v7243_v33  ;;  %v6066_v33 = vld [vmem:[%s9204_s17] ss:$0 sm:$0xff] }
 0x66c   :  { %6202 = vmatprep.subr.bf16.mxu0 %v7245_v26 }
 0x66f   :  { %6203 = vmatpush3.bf16.msra.mxu0 %v7247_v28 }
 0x725   :  { %v4807_v56 = vpop.f32.mrb[44].mxu0 }
 0x726   :  { %v4808_v34 = vadd.f32 %v4807_v56, %v4606_v16  ;;  %v4809_v59 = vpop.f32.mrb[45].mxu0  ;;  %v7257_v16 = vld [vmem:[%s9200_s20 + $0x8] sm:$0xff]   ;;  %v6090_v56 = vld [vmem:[%s9205_s21] ss:$0 sm:$0xff] }
 0x727   :  { %v4810_v58 = vadd.f32 %v4809_v59, %v4608_v17  ;;  %v4811_v55 = vpop.f32.mrb[46].mxu0  ;;  %v7258_v17 = vld [vmem:[%s9200_s20 + $0x10] sm:$0xff]  }
 0x728   :  { %v4826_v35 = vadd.f32 %v4819_v31, %v4808_v34  ;;  %v4812_v37 = vpop.f32.mrb[47].mxu0 }
 0x729   :  { %v4827_v38 = vadd.f32 %v4823_v32, %v4810_v58 }
 0x72a   :  { %v4828_v52 = vmax.f32 %v4826_v35, 0.0 }
 0x72b   :  { %v4829_v14 = vmax.f32 %v4827_v38, 0.0  ;;  %v29_v38 = vstv %s9206_s23 }
 0x72c   :  { %v4830_v41 = vpack.c.bf16 %v4828_v52, %v4828_v52  ;;  %30 = vst [vmem:[#allocation2] sm:$0x1] %v29_v38 }
 0x72d   :  { %v4831_v40 = vpack.c.bf16 %v4829_v14, %v4829_v14 }
 0x72f   :  { %4999 = vmatprep.mubr.bf16.mxu1 %v4831_v40  ;;  %5373 = vmatprep.mubr.bf16.mxu0 %v4831_v40 }
 0x730   :  { %5000 = vmatmul.mubr.bf16.vlgmr.msra.gmra.mrb[76].mxu1 %v4830_v41  ;;  %5374 = vmatmul.mubr.bf16.vlgmr.msra.gmra.mrb[48].mxu0 %v4830_v41 }
 0x731   :  { %6329 = vmatpush3.bf16.msra.mxu1 %v7248_v39  ;;  %6336 = vmatprep.mubr.msk.bf16.mxu1 %vm7282_vm9, %v7281_v36 }
 0x732   :  { %6330 = vmatprep.subr.bf16.mxu1 %v7281_v36 }
 0x735   :  { %6331 = vmatpush3.bf16.msra.mxu1 %v7249_v63 }
 0x736   :  { %6332 = vmatprep.subr.bf16.mxu1 %v7281_v36 }
 0x739   :  { %6333 = vmatpush3.bf16.msra.mxu1 %v7250_v9 }
 0x73a   :  { %6334 = vmatprep.subr.bf16.mxu1 %v7281_v36 }
 0x73d   :  { %6335 = vmatpush3.bf16.msra.mxu1 %v7251_v43  ;;  %v5188_v43 = vld [vmem:[%s9207_s2] sm:$0x3] }
 0x73e   :  { %6340 = vmatprep.subr.bf16.mxu1 %v7281_v36 }
 0x803   :  { %v6172_v44 = vpop.f32.mrb[76].mxu1  ;;  %v6204_v62 = vpop.f32.mrb[48].mxu0 }
 0x804   :  { %v6173_v21 = vpop.f32.mrb[77].mxu1  ;;  %v6205_v18 = vpop.f32.mrb[49].mxu0 }
 0x805   :  { %v6174_v49 = vadd.f32 %v6173_v21, %v6172_v44  ;;  %v6206_v50 = vadd.f32 %v6205_v18, %v6204_v62  ;;  %v6175_v53 = vpop.f32.mrb[78].mxu1  ;;  %v6207_v54 = vpop.f32.mrb[50].mxu0 }
 0x806   :  { %v6176_v15 = vpop.f32.mrb[79].mxu1  ;;  %v6208_v57 = vpop.f32.mrb[51].mxu0 }
 0x807   :  { %v5002_v45 = vadd.f32 %v6174_v49, %v6043_v47  ;;  %v5376_v13 = vadd.f32 %v6206_v50, %v6073_v10  ;;  %v2310_v49 = vand.u32 127, %v2309_v46 }
 0x809   :  { %7264 = vtanh.f32 %v5002_v45  ;;  %vm5551_vm12 = vcmp.eq.s32.totalorder %v2310_v49, 2  ;;  %vm5550_vm13 = vcmp.eq.s32.totalorder %v2310_v49, 1  ;;  %vm5549_vm14 = vcmp.eq.s32.totalorder %v2310_v49, 0 }
 0x813   :  { %v7265_v42 = vpop.eup %7264 }
 0x814   :  { %v5008_v60 = vpack.c.bf16 %v7265_v42, %v7265_v42 }
 0x816   :  { %6337 = vmatmul.mubr.msk.bf16.vlgmr.msra.gmra.mrb[80].mxu1 %vm2438_vm1, %v5008_v60 }
 0x817   :  { %6348 = vmatprep.mubr.msk.bf16.mxu1 %vm7282_vm9, %v7281_v36  ;;  %6341 = vmatpush3.bf16.msra.mxu1 %v7252_v61 }
 0x818   :  { %6342 = vmatprep.subr.bf16.mxu1 %v7281_v36 }
 0x81b   :  { %6343 = vmatpush3.bf16.msra.mxu1 %v7253_v1 }
 0x81c   :  { %6344 = vmatprep.subr.bf16.mxu1 %v7281_v36 }
 0x81f   :  { %6345 = vmatpush3.bf16.msra.mxu1 %v7254_v2 }
 0x820   :  { %6346 = vmatprep.subr.bf16.mxu1 %v7281_v36 }
 0x823   :  { %6347 = vmatpush3.bf16.msra.mxu1 %v7255_v4  ;;  %v6096_v4 = vld [vmem:[#allocation2] ss:$0 sm:$0xff] }
 0x824   :  { %6352 = vmatprep.subr.bf16.mxu1 %v7281_v36 }
 0x8e9   :  { %v5085_v27 = vpop.f32.mrb[80].mxu1 }
 0x8ea   :  { %v5086_v0 = vadd.f32 %v6060_v5, %v5085_v27  ;;  %v6338_v24 = vpop.f32.mrb[81].mxu1 }
 0x8eb   :  { %v5088_v7 = vpop.f32.mrb[82].mxu1 }
 0x8ec   :  { %7266 = vtanh.f32 %v5086_v0  ;;  %v6339_v8 = vpop.f32.mrb[83].mxu1 }
 0x8ed   :  { %7268 = vtanh.f32 %v5376_v13 }
 0x8f6   :  { %v7267_v12 = vpop.eup %7266 }
 0x8f7   :  { %v5092_v48 = vpack.c.bf16 %v7267_v12, %v7267_v12  ;;  %v7269_v6 = vpop.eup %7268 }
 0x8f8   :  { %v5382_v3 = vpack.c.bf16 %v7269_v6, %v7269_v6 }
 0x8f9   :  { %6349 = vmatmul.mubr.msk.bf16.vlgmr.msra.gmra.mrb[84].mxu1 %vm2438_vm1, %v5092_v48 }
 0x8fa   :  { %6353 = vmatpush3.bf16.msra.mxu1 %v7256_v51  ;;  %6360 = vmatprep.mubr.msk.bf16.mxu1 %vm7282_vm9, %v7281_v36 }
 0x8fb   :  { %6354 = vmatprep.subr.bf16.mxu1 %v7281_v36 }
 0x8fe   :  { %6355 = vmatpush3.bf16.msra.mxu1 %v7257_v16 }
 0x8ff   :  { %6356 = vmatprep.subr.bf16.mxu1 %v7281_v36 }
 0x902   :  { %6357 = vmatpush3.bf16.msra.mxu1 %v7258_v17 }
 0x903   :  { %6358 = vmatprep.subr.bf16.mxu1 %v7281_v36 }
 0x906   :  { %6359 = vmatpush3.bf16.msra.mxu1 %v7259_v19 }
 0x907   :  { %6364 = vmatprep.subr.bf16.mxu1 %v7281_v36 }
 0x909   :  { %6361 = vmatmul.mubr.msk.bf16.vlgmr.msra.gmra.mrb[88].mxu1 %vm2438_vm1, %v5382_v3 }
 0x90a   :  { %6372 = vmatprep.mubr.msk.bf16.mxu1 %vm7282_vm9, %v7281_v36  ;;  %6365 = vmatpush3.bf16.msra.mxu1 %v7260_v20 }
 0x90b   :  { %6366 = vmatprep.subr.bf16.mxu1 %v7281_v36 }
 0x90e   :  { %6367 = vmatpush3.bf16.msra.mxu1 %v7261_v22 }
 0x90f   :  { %6368 = vmatprep.subr.bf16.mxu1 %v7281_v36 }
 0x912   :  { %6369 = vmatpush3.bf16.msra.mxu1 %v7262_v23 }
 0x913   :  { %6370 = vmatprep.subr.bf16.mxu1 %v7281_v36 }
 0x916   :  { %6371 = vmatpush3.bf16.msra.mxu1 %v7263_v25 }
 0x9cc   :  { %v5169_v30 = vpop.f32.mrb[84].mxu1 }
 0x9cd   :  { %v5170_v26 = vadd.f32 %v6066_v33, %v5169_v30  ;;  %v6350_v11 = vpop.f32.mrb[85].mxu1 }
 0x9ce   :  { %v5172_v28 = vpop.f32.mrb[86].mxu1 }
 0x9cf   :  { %v6351_v29 = vpop.f32.mrb[87].mxu1  ;;  %v5176_v31 = vsel %vm5175_vm10, %v5170_v26, -inf }
 0x9d0   :  { %5177 = vmax.xlane.f32.xlu1 %v5176_v31 }
 0x9dc   :  { %v5459_v32 = vpop.f32.mrb[88].mxu1 }
 0x9dd   :  { %v5460_v34 = vadd.f32 %v6090_v56, %v5459_v32  ;;  %v6362_v59 = vpop.f32.mrb[89].mxu1 }
 0x9de   :  { %v5462_v58 = vpop.f32.mrb[90].mxu1 }
 0x9df   :  { %7270 = vtanh.f32 %v5460_v34  ;;  %v6363_v55 = vpop.f32.mrb[91].mxu1 }
 0x9e9   :  { %v7271_v35 = vpop.eup %7270 }
 0x9ea   :  { %v5466_v37 = vpack.c.bf16 %v7271_v35, %v7271_v35 }
 0x9ec   :  { %6373 = vmatmul.mubr.msk.bf16.vlgmr.msra.gmra.mrb[92].mxu1 %vm2438_vm1, %v5466_v37 }
 0xa5d   :  { %v5178_v52 = vpop.xlane.xlu1 %5177 }
 0xa5e   :  { %v5179_v14 = vsub.f32 %v5170_v26, %v5178_v52 }
 0xa60   :  { %v5180_v40 = vmul.f32 1.442695, %v5179_v14 }
 0xa62   :  { %7272 = vpow2.f32 %v5180_v40 }
 0xa6c   :  { %v7273_v41 = vpop.eup %7272 }
 0xa6d   :  { %v5182_v39 = vsel %vm5175_vm10, %v7273_v41, 0.0  ;;  %v5199_v63 = vmul.f32 %v7273_v41, %v5179_v14 }
 0xa6e   :  { %5183 = vadd.xlane.f32.xlu0 %v5182_v39 }
 0xa6f   :  { %v5200_v9 = vsel %vm5175_vm10, %v5199_v63, 0.0 }
 0xa70   :  { %5201 = vadd.xlane.f32.xlu1 %v5200_v9 }
 0xa84   :  { %5190 = vperm.xlu0 %6557, %v5188_v43  }
 0xabf   :  { %v5543_v44 = vpop.f32.mrb[92].mxu1 }
 0xac0   :  { %v6374_v62 = vpop.f32.mrb[93].mxu1  ;;  %v5544_v5 = vadd.f32 %v6096_v4, %v5543_v44 }
 0xac1   :  { %v5546_v47 = vpop.f32.mrb[94].mxu1 }
 0xac2   :  { %v6375_v21 = vpop.f32.mrb[95].mxu1 }
 0xafb   :  { %v5184_v18 = vpop.xlane.xlu0 %5183 }
 0xafc   :  { %7274 = vlog2.f32 %v5184_v18 }
 0xafd   :  { %7276 = vrcp.f32 %v5184_v18  ;;  %v5202_v15 = vpop.xlane.xlu1 %5201 }
 0xb03   :  { %v5191_v50 = vpop.permute.xlu0 %5190 }
 0xb04   :  { %vm5192_vm11 = vcmp.eq.s32.totalorder %v2310_v49, %v5191_v50 }
 0xb05   :  { %v6072_v42 = vsel %vm5192_vm11, 1.0, %v7281_v36 }
 0xb06   :  { %v7275_v53 = vpop.eup %7274 }
 0xb07   :  { %v7277_v54 = vpop.eup %7276  ;;  %v5186_v57 = vmul.f32 0.6931472, %v7275_v53 }
 0xb08   :  { %v5204_v45 = vmul.f32 %v7277_v54, %v5202_v15 }
 0xb09   :  { %v5187_v60 = vsub.f32 %v5179_v14, %v5186_v57 }
 0xb0a   :  { %v5205_v61 = vsub.f32 %v5186_v57, %v5204_v45 }
 0xb0b   :  { %v5195_v1 = vmul.f32 %v6072_v42, %v5187_v60 }
 0xb0c   :  { %v5552_v46 = vsel %vm5551_vm12, %v5205_v61, 0.0 }
 0xb0d   :  { %v5196_v2 = vsel %vm5175_vm10, %v5195_v1, 0.0 }
 0xb0e   :  { %5197 = vadd.xlane.f32.xlu1 %v5196_v2 }
 0xb1f   :  { %5555 = vperm.xlu1 %6558, %v5544_v5  }
 0xb9b   :  { %v5198_v27 = vpop.xlane.xlu1 %5197 }
 0xb9f   :  { %v5556_v0 = vpop.permute.xlu1 %5555 }
 0xba0   :  { %v5558_v24 = vsel %vm5550_vm13, %v5556_v0, %v5552_v46 }
 0xba1   :  { %v5559_v7 = vsel %vm5549_vm14, %v5198_v27, %v5558_v24 }
 0xba2   :  { %5560 = vst [vmem:[%s9208_s24] sm:$0x3] %v5559_v7 }

</bundles_post_ra>
